<compile_context>
chip_gen: v5e
topology: v5e:2x2
jax: 0.10.0
libtpu: 0.0.40
codegen_flags: <defaults>
</compile_context>

<pallas_src>
import jax
import jax.numpy as jnp
from jax.experimental import pallas as pl
from jax.experimental.pallas import tpu as pltpu

_LN_EPS = 1e-5  # PyTorch nn.LayerNorm default


def _sigmoid(x):
    # Review: avoid the multi-op f32 divide of 1/(1+exp(-x)).  tanh is a single
    # EUP op (same slot as exp) and this form is numerically identical to
    # jax.nn.sigmoid at f32 precision.
    return 0.5 * (jnp.tanh(0.5 * x) + 1.0)


def _layer_norm(x, gamma, beta):
    mean = jnp.mean(x, axis=-1, keepdims=True)
    xc = x - mean
    var = jnp.mean(xc * xc, axis=-1, keepdims=True)
    return xc * jax.lax.rsqrt(var + _LN_EPS) * gamma + beta


def _round_up(x, m):
    return ((x + m - 1) // m) * m


def _make_kernel(num_extra_layers, tile_b, num_quantiles, embedding_size, use_pack):
    T, E = num_quantiles, embedding_size
    pack = 128 // T if use_pack else 1
    rows = (tile_b * T) // 128 if use_pack else 0

    def kernel(*refs):
        it = iter(refs)
        take = lambda n: [next(it) for _ in range(n)]

        state_ref, action_ref, tau_ref = take(3)
        ws0, wa0, b0, g0, be0 = take(5)
        extra = [take(4) for _ in range(num_extra_layers)]
        wt, bt, gt, bet = take(4)
        wm, bm, gm, bem = take(4)
        wl, bl = take(2)                      # bl is a (1,) SMEM scalar
        (out_ref,) = take(1)

        f32 = jnp.float32

        # ---- base_fc (state/action concat fused into a split first Linear) ----
        h = (jnp.dot(state_ref[...], ws0[...], preferred_element_type=f32)
             + jnp.dot(action_ref[...], wa0[...], preferred_element_type=f32)
             + b0[...])
        h = jnp.maximum(_layer_norm(h, g0[...], be0[...]), 0.0)
        for w, b, g, be in extra:
            h = jnp.dot(h, w[...], preferred_element_type=f32) + b[...]
            h = jnp.maximum(_layer_norm(h, g[...], be[...]), 0.0)
        L = h.shape[-1]                                   # last_size

        # ---- quantile embedding: cos(tau * k * pi), k = 1..E -------------------
        # tau arrives lane-major as (tile_b, T).  Move it to one value per
        # (batch, quantile) sublane row using only well-supported ops:
        # (tile_b, T) -> (tile_b, 1, T)  [lane dim unchanged],
        # mask with eye(T, T), lane-reduce with keepdims -> (tile_b, T, 1).
        tau_row = tau_ref[...].reshape(tile_b, 1, T)
        ti = jax.lax.broadcasted_iota(jnp.int32, (T, T), 0)
        si = jax.lax.broadcasted_iota(jnp.int32, (T, T), 1)
        eye = (ti == si).astype(f32)
        tau_col = jnp.sum(tau_row * eye, axis=-1, keepdims=True)   # (tile_b, T, 1)

        k = jax.lax.broadcasted_iota(jnp.int32, (1, 1, E), 2) + 1
        k_pi = k.astype(f32) * jnp.pi
        x = jnp.cos(tau_col * k_pi).reshape(tile_b * T, E)          # (TB*T, E)

        # ---- tau_fc: Linear -> LayerNorm -> Sigmoid -----------------------------
        phi = jnp.dot(x, wt[...], preferred_element_type=f32) + bt[...]
        phi = _sigmoid(_layer_norm(phi, gt[...], bet[...]))         # (TB*T, L)

        # ---- merge: phi * h (broadcast over quantiles, no broadcast_to) ---------
        merged = phi.reshape(tile_b, T, L) * h.reshape(tile_b, 1, L)
        merged = merged.reshape(tile_b * T, L)
        z = jnp.dot(merged, wm[...], preferred_element_type=f32) + bm[...]
        z = jnp.maximum(_layer_norm(z, gm[...], bem[...]), 0.0)     # (TB*T, Hl)
        Hl = z.shape[-1]

        # ---- last_fc: Linear(Hl, 1) + Sigmoid as VPU multiply + lane reduce -----
        q = jnp.sum(z.reshape(tile_b, T, Hl) * wl[...], axis=-1)    # (tile_b, T)
        q = _sigmoid(q + bl[0])

        if use_pack:
            # Pack 128//T batch rows into each 128-lane output row so the
            # HBM writeback is a dense, unmasked block.
            q4 = q.reshape(rows, pack, T)
            out_ref[...] = jnp.concatenate(
                [q4[:, j, :] for j in range(pack)], axis=-1)        # (rows, 128)
        else:
            out_ref[...] = q                                        # (tile_b, T)

    return kernel


def quantile_qrisk_forward(state, action, tau, params, *, tile_b=None,
                           vmem_limit_bytes=None, single_buffer_params=False):
    """state: (B, S), action: (B, A), tau: (B, T) -> quantile values (B, T)."""
    B, S = state.shape
    A = action.shape[-1]
    T = tau.shape[-1]

    base0 = params["base0"]
    base_extra = params["base_extra"]
    tau_p = params["tau"]
    merge_p = params["merge"]
    wl, bl = params["last"]
    E, L = tau_p[0].shape
    Hl = merge_p[0].shape[1]
    H1 = base0[0].shape[1]

    # ---- batch tile: multiple of 8 (sublane rule), large enough to amortize
    # the ~0.35us/step overhead, small enough for >=2 grid steps when possible
    # (v7x megacore) and for v7x's 64 MiB VMEM.
    pack_possible = (T < 128) and (128 % T == 0) and ((B * T) % 128 == 0)
    if tile_b is None:
        if B <= 8:
            tile_b = B
        else:
            align = 8
            if pack_possible and 1024 % T == 0:
                align = max(8, 1024 // T)   # keep packed-out rows a multiple of 8
            cand = min(256, _round_up(pl.cdiv(B, 2), align))
            tile_b = cand if cand < B else B
    grid = (pl.cdiv(B, tile_b),)

    rows_total = (B * T) // 128 if pack_possible else 0
    rows_tile = (tile_b * T) // 128 if (tile_b * T) % 128 == 0 else 0
    use_pack = (pack_possible and rows_tile > 0
                and (rows_tile % 8 == 0 or rows_tile == rows_total))

    flat = list(base0)
    for layer in base_extra:
        flat.extend(layer)
    flat.extend(tau_p)
    flat.extend(merge_p)
    flat.append(wl)
    flat.append(bl)                           # scalar last-layer bias -> SMEM

    def row_spec(shape):
        zeros = (0,) * (len(shape) - 1)
        return pl.BlockSpec(shape, lambda i: (i,) + zeros)

    def const_spec(shape):
        zeros = (0,) * len(shape)
        if single_buffer_params:
            # Weights never change block index; a single buffer halves their
            # VMEM footprint (useful for wide layers on v7x's 64 MiB VMEM).
            return pl.BlockSpec(shape, lambda i: zeros,
                                pipeline_mode=pl.Buffered(1))
        return pl.BlockSpec(shape, lambda i: zeros)

    in_specs = [row_spec((tile_b, S)), row_spec((tile_b, A)),
                row_spec((tile_b, T))]
    in_specs += [const_spec(a.shape) for a in flat[:-1]]   # weights stay resident
    in_specs.append(pl.BlockSpec(memory_space=pltpu.MemorySpace.SMEM))

    if use_pack:
        out_shape = jax.ShapeDtypeStruct((rows_total, 128), jnp.float32)
        out_spec = pl.BlockSpec((rows_tile, 128), lambda i: (i, 0))
    else:
        out_shape = jax.ShapeDtypeStruct((B, T), jnp.float32)
        out_spec = pl.BlockSpec((tile_b, T), lambda i: (i, 0))

    # Advisory cost estimate so XLA can overlap this small custom call.
    flops = 2 * B * (S + A) * H1
    for w, _, _, _ in base_extra:
        flops += 2 * B * int(w.shape[0]) * int(w.shape[1])
    flops += 2 * B * T * (E * L + L * Hl + Hl)
    transcendentals = B * T * (E + L + 2)
    bytes_accessed = 4 * B * (S + A + T + T) + sum(int(a.size) * 4 for a in flat)

    cp_kwargs = dict(dimension_semantics=("parallel",))
    if vmem_limit_bytes is not None:
        cp_kwargs["vmem_limit_bytes"] = vmem_limit_bytes

    kernel = _make_kernel(len(base_extra), tile_b, T, E, use_pack)
    out = pl.pallas_call(
        kernel,
        out_shape=out_shape,
        grid=grid,
        in_specs=in_specs,
        out_specs=out_spec,
        compiler_params=pltpu.CompilerParams(**cp_kwargs),
        cost_estimate=pl.CostEstimate(flops=flops,
                                      transcendentals=transcendentals,
                                      bytes_accessed=bytes_accessed),
    )(state, action, tau, *flat)

    if use_pack:
        out = out.reshape(B, T)               # free row-major view back to (B, T)
    return out


def init_quantile_qrisk_params(key, state_dim, action_dim, hidden_dim,
                               embedding_size=64):
    """Fresh params (PyTorch nn.Linear default init); weights stored (in, out)."""
    hidden_dim = tuple(hidden_dim)
    assert len(hidden_dim) >= 2, "kernel expects at least one base_fc layer"

    def linear(k, fan_in, fan_out):
        lim = 1.0 / (fan_in ** 0.5)
        kw, kb = jax.random.split(k)
        w = jax.random.uniform(kw, (fan_in, fan_out), jnp.float32, -lim, lim)
        b = jax.random.uniform(kb, (1, fan_out), jnp.float32, -lim, lim)
        return w, b

    def ln(n):
        return jnp.ones((1, n), jnp.float32), jnp.zeros((1, n), jnp.float32)

    n_base = len(hidden_dim) - 1
    keys = jax.random.split(key, n_base + 3)

    H1 = hidden_dim[0]
    w0, b0 = linear(keys[0], state_dim + action_dim, H1)
    g0, be0 = ln(H1)
    base0 = (w0[:state_dim], w0[state_dim:], b0, g0, be0)   # split W1 = fused concat

    base_extra = []
    last = H1
    for i, n in enumerate(hidden_dim[1:-1], start=1):
        w, b = linear(keys[i], last, n)
        g, be = ln(n)
        base_extra.append((w, b, g, be))
        last = n

    wt, bt = linear(keys[n_base], embedding_size, last)
    gt, bet = ln(last)
    wm, bm = linear(keys[n_base + 1], last, hidden_dim[-1])
    gm, bem = ln(hidden_dim[-1])
    wl, bl = linear(keys[n_base + 2], hidden_dim[-1], 1)

    return {
        "base0": base0,
        "base_extra": base_extra,
        "tau": (wt, bt, gt, bet),
        "merge": (wm, bm, gm, bem),
        "last": (wl.reshape(1, hidden_dim[-1]), bl.reshape(1)),
    }


def quantile_qrisk_reference(state, action, tau, params):
    """Pure-JAX mirror of the PyTorch module forward (for checking the kernel)."""
    def ln(x, g, b):
        m = x.mean(-1, keepdims=True)
        v = ((x - m) ** 2).mean(-1, keepdims=True)
        return (x - m) / jnp.sqrt(v + _LN_EPS) * g + b

    ws0, wa0, b0, g0, be0 = params["base0"]
    w0 = jnp.concatenate([ws0, wa0], axis=0)
    h = jnp.concatenate([state, action], axis=-1) @ w0 + b0
    h = jax.nn.relu(ln(h, g0, be0))
    for w, b, g, be in params["base_extra"]:
        h = jax.nn.relu(ln(h @ w + b, g, be))

    wt, bt, gt, bet = params["tau"]
    E = wt.shape[0]
    k_pi = jnp.arange(1, E + 1, dtype=jnp.float32) * jnp.pi
    x = jnp.cos(tau[:, :, None] * k_pi)                    # (B, T, E)
    x = jax.nn.sigmoid(ln(x @ wt + bt, gt, bet))           # (B, T, L)

    h = x * h[:, None, :]
    wm, bm, gm, bem = params["merge"]
    h = jax.nn.relu(ln(h @ wm + bm, gm, bem))              # (B, T, Hl)

    wl, bl = params["last"]
    return jax.nn.sigmoid(jnp.sum(h * wl[0], axis=-1) + bl[0])   # (B, T)


if __name__ == "__main__":
    B, STATE_DIM, ACTION_DIM = 8, 16, 4
    HIDDEN_DIM = (32, 32)
    EMBEDDING_SIZE = 64
    NUM_QUANTILES = 32

    key = jax.random.PRNGKey(0)
    ks, ka, kt, kp = jax.random.split(key, 4)
    state = jax.random.normal(ks, (B, STATE_DIM), jnp.float32)
    action = jax.random.normal(ka, (B, ACTION_DIM), jnp.float32)
    tau = jax.random.uniform(kt, (B, NUM_QUANTILES), dtype=jnp.float32)

    params = init_quantile_qrisk_params(kp, STATE_DIM, ACTION_DIM, HIDDEN_DIM,
                                        EMBEDDING_SIZE)

    out = quantile_qrisk_forward(state, action, tau, params)
    out = jax.block_until_ready(out)

    ref = quantile_qrisk_reference(state, action, tau, params)
    assert out.shape == (B, NUM_QUANTILES), out.shape
    max_err = float(jnp.max(jnp.abs(out - ref)))
    assert jnp.allclose(out, ref, atol=1e-4, rtol=1e-4), max_err

    print("KERNEL_OK")
</pallas_src>

<mosaic_0001>
module attributes {stable_mosaic.version = 11 : i64} {
  func.func @kernel(%arg0: i32, %arg1: memref<8x16xf32, #tpu.memory_space<vmem>>, %arg2: memref<8x4xf32, #tpu.memory_space<vmem>>, %arg3: memref<8x32xf32, #tpu.memory_space<vmem>>, %arg4: memref<16x32xf32, #tpu.memory_space<vmem>>, %arg5: memref<4x32xf32, #tpu.memory_space<vmem>>, %arg6: memref<1x32xf32, #tpu.memory_space<vmem>>, %arg7: memref<1x32xf32, #tpu.memory_space<vmem>>, %arg8: memref<1x32xf32, #tpu.memory_space<vmem>>, %arg9: memref<64x32xf32, #tpu.memory_space<vmem>>, %arg10: memref<1x32xf32, #tpu.memory_space<vmem>>, %arg11: memref<1x32xf32, #tpu.memory_space<vmem>>, %arg12: memref<1x32xf32, #tpu.memory_space<vmem>>, %arg13: memref<32x32xf32, #tpu.memory_space<vmem>>, %arg14: memref<1x32xf32, #tpu.memory_space<vmem>>, %arg15: memref<1x32xf32, #tpu.memory_space<vmem>>, %arg16: memref<1x32xf32, #tpu.memory_space<vmem>>, %arg17: memref<1x32xf32, #tpu.memory_space<vmem>>, %arg18: memref<1xf32, #tpu.memory_space<smem>>, %arg19: memref<2x128xf32, #tpu.memory_space<vmem>>) attributes {dimension_semantics = [#tpu.dimension_semantics<parallel>], iteration_bounds = array<i64: 1>, scalar_prefetch = 0 : i64, scratch_operands = 0 : i64, tpu.core_type = #tpu.core_type<tc>, window_params = [{transform_indices = @transform_0, window_bounds = array<i64: 8, 16>}, {transform_indices = @transform_1, window_bounds = array<i64: 8, 4>}, {transform_indices = @transform_2, window_bounds = array<i64: 8, 32>}, {pipeline_mode = #tpu.pipeline_mode<synchronous>, transform_indices = @transform_3, window_bounds = array<i64: 16, 32>}, {pipeline_mode = #tpu.pipeline_mode<synchronous>, transform_indices = @transform_4, window_bounds = array<i64: 4, 32>}, {pipeline_mode = #tpu.pipeline_mode<synchronous>, transform_indices = @transform_5, window_bounds = array<i64: 1, 32>}, {pipeline_mode = #tpu.pipeline_mode<synchronous>, transform_indices = @transform_6, window_bounds = array<i64: 1, 32>}, {pipeline_mode = #tpu.pipeline_mode<synchronous>, transform_indices = @transform_7, window_bounds = array<i64: 1, 32>}, {pipeline_mode = #tpu.pipeline_mode<synchronous>, transform_indices = @transform_8, window_bounds = array<i64: 64, 32>}, {pipeline_mode = #tpu.pipeline_mode<synchronous>, transform_indices = @transform_9, window_bounds = array<i64: 1, 32>}, {pipeline_mode = #tpu.pipeline_mode<synchronous>, transform_indices = @transform_10, window_bounds = array<i64: 1, 32>}, {pipeline_mode = #tpu.pipeline_mode<synchronous>, transform_indices = @transform_11, window_bounds = array<i64: 1, 32>}, {pipeline_mode = #tpu.pipeline_mode<synchronous>, transform_indices = @transform_12, window_bounds = array<i64: 32, 32>}, {pipeline_mode = #tpu.pipeline_mode<synchronous>, transform_indices = @transform_13, window_bounds = array<i64: 1, 32>}, {pipeline_mode = #tpu.pipeline_mode<synchronous>, transform_indices = @transform_14, window_bounds = array<i64: 1, 32>}, {pipeline_mode = #tpu.pipeline_mode<synchronous>, transform_indices = @transform_15, window_bounds = array<i64: 1, 32>}, {pipeline_mode = #tpu.pipeline_mode<synchronous>, transform_indices = @transform_16, window_bounds = array<i64: 1, 32>}, {transform_indices = @transform_17, window_bounds = array<i64: 1>}, {transform_indices = @transform_18, window_bounds = array<i64: 2, 128>}]} {
    %c0 = arith.constant 0 : index
    %c0_0 = arith.constant 0 : index
    %0 = vector.load %arg1[%c0, %c0_0] : memref<8x16xf32, #tpu.memory_space<vmem>>, vector<8x16xf32>
    %c0_1 = arith.constant 0 : index
    %c0_2 = arith.constant 0 : index
    %1 = vector.load %arg4[%c0_1, %c0_2] : memref<16x32xf32, #tpu.memory_space<vmem>>, vector<16x32xf32>
    %cst = arith.constant dense<0.000000e+00> : vector<8x32xf32>
    %2 = tpu.matmul %0, %1, %cst {dimension_numbers = #tpu.dot_dimension_numbers<[1], [0], [0], [1], [0, 0, 1, 1], [], []>} : vector<8x16xf32>, vector<16x32xf32>, vector<8x32xf32> -> vector<8x32xf32>
    %c0_3 = arith.constant 0 : index
    %c0_4 = arith.constant 0 : index
    %3 = vector.load %arg2[%c0_3, %c0_4] : memref<8x4xf32, #tpu.memory_space<vmem>>, vector<8x4xf32>
    %c0_5 = arith.constant 0 : index
    %c0_6 = arith.constant 0 : index
    %4 = vector.load %arg5[%c0_5, %c0_6] : memref<4x32xf32, #tpu.memory_space<vmem>>, vector<4x32xf32>
    %cst_7 = arith.constant dense<0.000000e+00> : vector<8x32xf32>
    %5 = tpu.matmul %3, %4, %cst_7 {dimension_numbers = #tpu.dot_dimension_numbers<[1], [0], [0], [1], [0, 0, 1, 1], [], []>} : vector<8x4xf32>, vector<4x32xf32>, vector<8x32xf32> -> vector<8x32xf32>
    %6 = arith.addf %2, %5 : vector<8x32xf32>
    %c0_8 = arith.constant 0 : index
    %c0_9 = arith.constant 0 : index
    %7 = vector.load %arg6[%c0_8, %c0_9] : memref<1x32xf32, #tpu.memory_space<vmem>>, vector<1x32xf32>
    %8 = vector.broadcast %7 : vector<1x32xf32> to vector<8x32xf32>
    %9 = arith.addf %6, %8 : vector<8x32xf32>
    %c0_10 = arith.constant 0 : index
    %c0_11 = arith.constant 0 : index
    %10 = vector.load %arg7[%c0_10, %c0_11] : memref<1x32xf32, #tpu.memory_space<vmem>>, vector<1x32xf32>
    %c0_12 = arith.constant 0 : index
    %c0_13 = arith.constant 0 : index
    %11 = vector.load %arg8[%c0_12, %c0_13] : memref<1x32xf32, #tpu.memory_space<vmem>>, vector<1x32xf32>
    %cst_14 = arith.constant dense<0.000000e+00> : vector<8xf32>
    %12 = vector.multi_reduction <add>, %9, %cst_14 [1] : vector<8x32xf32> to vector<8xf32>
    %13 = vector.shape_cast %12 : vector<8xf32> to vector<8x1xf32>
    %cst_15 = arith.constant 3.200000e+01 : f32
    %14 = vector.broadcast %cst_15 : f32 to vector<8x1xf32>
    %15 = arith.divf %13, %14 : vector<8x1xf32>
    %16 = vector.broadcast %15 : vector<8x1xf32> to vector<8x32xf32>
    %17 = arith.subf %9, %16 : vector<8x32xf32>
    %18 = arith.mulf %17, %17 : vector<8x32xf32>
    %cst_16 = arith.constant dense<0.000000e+00> : vector<8xf32>
    %19 = vector.multi_reduction <add>, %18, %cst_16 [1] : vector<8x32xf32> to vector<8xf32>
    %20 = vector.shape_cast %19 : vector<8xf32> to vector<8x1xf32>
    %cst_17 = arith.constant 3.200000e+01 : f32
    %21 = vector.broadcast %cst_17 : f32 to vector<8x1xf32>
    %22 = arith.divf %20, %21 : vector<8x1xf32>
    %cst_18 = arith.constant 9.99999974E-6 : f32
    %23 = vector.broadcast %cst_18 : f32 to vector<8x1xf32>
    %24 = arith.addf %22, %23 : vector<8x1xf32>
    %25 = math.rsqrt %24 : vector<8x1xf32>
    %26 = vector.broadcast %25 : vector<8x1xf32> to vector<8x32xf32>
    %27 = arith.mulf %17, %26 : vector<8x32xf32>
    %28 = vector.broadcast %10 : vector<1x32xf32> to vector<8x32xf32>
    %29 = arith.mulf %27, %28 : vector<8x32xf32>
    %30 = vector.broadcast %11 : vector<1x32xf32> to vector<8x32xf32>
    %31 = arith.addf %29, %30 : vector<8x32xf32>
    %cst_19 = arith.constant 0.000000e+00 : f32
    %32 = vector.broadcast %cst_19 : f32 to vector<8x32xf32>
    %33 = arith.maximumf %31, %32 : vector<8x32xf32>
    %c0_20 = arith.constant 0 : index
    %c0_21 = arith.constant 0 : index
    %34 = vector.load %arg3[%c0_20, %c0_21] : memref<8x32xf32, #tpu.memory_space<vmem>>, vector<8x32xf32>
    %35 = vector.shape_cast %34 : vector<8x32xf32> to vector<8x1x32xf32>
    %36 = tpu.iota {dimensions = array<i32: 0>} : vector<32x32xi32>
    %37 = tpu.iota {dimensions = array<i32: 1>} : vector<32x32xi32>
    %38 = arith.cmpi eq, %36, %37 : vector<32x32xi32>
    %39 = arith.extui %38 : vector<32x32xi1> to vector<32x32xi32>
    %40 = arith.sitofp %39 : vector<32x32xi32> to vector<32x32xf32>
    %41 = vector.shape_cast %40 : vector<32x32xf32> to vector<1x32x32xf32>
    %42 = vector.broadcast %35 : vector<8x1x32xf32> to vector<8x32x32xf32>
    %43 = vector.broadcast %41 : vector<1x32x32xf32> to vector<8x32x32xf32>
    %44 = arith.mulf %42, %43 : vector<8x32x32xf32>
    %cst_22 = arith.constant dense<0.000000e+00> : vector<8x32xf32>
    %45 = vector.multi_reduction <add>, %44, %cst_22 [2] : vector<8x32x32xf32> to vector<8x32xf32>
    %46 = vector.shape_cast %45 : vector<8x32xf32> to vector<8x32x1xf32>
    %47 = tpu.iota {dimensions = array<i32: 2>} : vector<1x1x64xi32>
    %c1_i32 = arith.constant 1 : i32
    %48 = vector.broadcast %c1_i32 : i32 to vector<1x1x64xi32>
    %49 = arith.addi %47, %48 : vector<1x1x64xi32>
    %50 = arith.sitofp %49 : vector<1x1x64xi32> to vector<1x1x64xf32>
    %cst_23 = arith.constant 3.14159274 : f32
    %51 = vector.broadcast %cst_23 : f32 to vector<1x1x64xf32>
    %52 = arith.mulf %50, %51 : vector<1x1x64xf32>
    %53 = vector.broadcast %46 : vector<8x32x1xf32> to vector<8x32x64xf32>
    %54 = vector.broadcast %52 : vector<1x1x64xf32> to vector<8x32x64xf32>
    %55 = arith.mulf %53, %54 : vector<8x32x64xf32>
    %56 = math.cos %55 : vector<8x32x64xf32>
    %57 = vector.shape_cast %56 : vector<8x32x64xf32> to vector<256x64xf32>
    %c0_24 = arith.constant 0 : index
    %c0_25 = arith.constant 0 : index
    %58 = vector.load %arg9[%c0_24, %c0_25] : memref<64x32xf32, #tpu.memory_space<vmem>>, vector<64x32xf32>
    %cst_26 = arith.constant dense<0.000000e+00> : vector<256x32xf32>
    %59 = tpu.matmul %57, %58, %cst_26 {dimension_numbers = #tpu.dot_dimension_numbers<[1], [0], [0], [1], [0, 0, 1, 1], [], []>} : vector<256x64xf32>, vector<64x32xf32>, vector<256x32xf32> -> vector<256x32xf32>
    %c0_27 = arith.constant 0 : index
    %c0_28 = arith.constant 0 : index
    %60 = vector.load %arg10[%c0_27, %c0_28] : memref<1x32xf32, #tpu.memory_space<vmem>>, vector<1x32xf32>
    %61 = vector.broadcast %60 : vector<1x32xf32> to vector<256x32xf32>
    %62 = arith.addf %59, %61 : vector<256x32xf32>
    %c0_29 = arith.constant 0 : index
    %c0_30 = arith.constant 0 : index
    %63 = vector.load %arg11[%c0_29, %c0_30] : memref<1x32xf32, #tpu.memory_space<vmem>>, vector<1x32xf32>
    %c0_31 = arith.constant 0 : index
    %c0_32 = arith.constant 0 : index
    %64 = vector.load %arg12[%c0_31, %c0_32] : memref<1x32xf32, #tpu.memory_space<vmem>>, vector<1x32xf32>
    %cst_33 = arith.constant dense<0.000000e+00> : vector<256xf32>
    %65 = vector.multi_reduction <add>, %62, %cst_33 [1] : vector<256x32xf32> to vector<256xf32>
    %66 = vector.shape_cast %65 : vector<256xf32> to vector<256x1xf32>
    %cst_34 = arith.constant 3.200000e+01 : f32
    %67 = vector.broadcast %cst_34 : f32 to vector<256x1xf32>
    %68 = arith.divf %66, %67 : vector<256x1xf32>
    %69 = vector.broadcast %68 : vector<256x1xf32> to vector<256x32xf32>
    %70 = arith.subf %62, %69 : vector<256x32xf32>
    %71 = arith.mulf %70, %70 : vector<256x32xf32>
    %cst_35 = arith.constant dense<0.000000e+00> : vector<256xf32>
    %72 = vector.multi_reduction <add>, %71, %cst_35 [1] : vector<256x32xf32> to vector<256xf32>
    %73 = vector.shape_cast %72 : vector<256xf32> to vector<256x1xf32>
    %cst_36 = arith.constant 3.200000e+01 : f32
    %74 = vector.broadcast %cst_36 : f32 to vector<256x1xf32>
    %75 = arith.divf %73, %74 : vector<256x1xf32>
    %cst_37 = arith.constant 9.99999974E-6 : f32
    %76 = vector.broadcast %cst_37 : f32 to vector<256x1xf32>
    %77 = arith.addf %75, %76 : vector<256x1xf32>
    %78 = math.rsqrt %77 : vector<256x1xf32>
    %79 = vector.broadcast %78 : vector<256x1xf32> to vector<256x32xf32>
    %80 = arith.mulf %70, %79 : vector<256x32xf32>
    %81 = vector.broadcast %63 : vector<1x32xf32> to vector<256x32xf32>
    %82 = arith.mulf %80, %81 : vector<256x32xf32>
    %83 = vector.broadcast %64 : vector<1x32xf32> to vector<256x32xf32>
    %84 = arith.addf %82, %83 : vector<256x32xf32>
    %cst_38 = arith.constant 5.000000e-01 : f32
    %85 = vector.broadcast %cst_38 : f32 to vector<256x32xf32>
    %86 = arith.mulf %85, %84 : vector<256x32xf32>
    %87 = math.tanh %86 : vector<256x32xf32>
    %cst_39 = arith.constant 1.000000e+00 : f32
    %88 = vector.broadcast %cst_39 : f32 to vector<256x32xf32>
    %89 = arith.addf %87, %88 : vector<256x32xf32>
    %cst_40 = arith.constant 5.000000e-01 : f32
    %90 = vector.broadcast %cst_40 : f32 to vector<256x32xf32>
    %91 = arith.mulf %90, %89 : vector<256x32xf32>
    %92 = vector.shape_cast %91 : vector<256x32xf32> to vector<8x32x32xf32>
    %93 = vector.shape_cast %33 : vector<8x32xf32> to vector<8x1x32xf32>
    %94 = vector.broadcast %93 : vector<8x1x32xf32> to vector<8x32x32xf32>
    %95 = arith.mulf %92, %94 : vector<8x32x32xf32>
    %96 = vector.shape_cast %95 : vector<8x32x32xf32> to vector<256x32xf32>
    %c0_41 = arith.constant 0 : index
    %c0_42 = arith.constant 0 : index
    %97 = vector.load %arg13[%c0_41, %c0_42] : memref<32x32xf32, #tpu.memory_space<vmem>>, vector<32x32xf32>
    %cst_43 = arith.constant dense<0.000000e+00> : vector<256x32xf32>
    %98 = tpu.matmul %96, %97, %cst_43 {dimension_numbers = #tpu.dot_dimension_numbers<[1], [0], [0], [1], [0, 0, 1, 1], [], []>} : vector<256x32xf32>, vector<32x32xf32>, vector<256x32xf32> -> vector<256x32xf32>
    %c0_44 = arith.constant 0 : index
    %c0_45 = arith.constant 0 : index
    %99 = vector.load %arg14[%c0_44, %c0_45] : memref<1x32xf32, #tpu.memory_space<vmem>>, vector<1x32xf32>
    %100 = vector.broadcast %99 : vector<1x32xf32> to vector<256x32xf32>
    %101 = arith.addf %98, %100 : vector<256x32xf32>
    %c0_46 = arith.constant 0 : index
    %c0_47 = arith.constant 0 : index
    %102 = vector.load %arg15[%c0_46, %c0_47] : memref<1x32xf32, #tpu.memory_space<vmem>>, vector<1x32xf32>
    %c0_48 = arith.constant 0 : index
    %c0_49 = arith.constant 0 : index
    %103 = vector.load %arg16[%c0_48, %c0_49] : memref<1x32xf32, #tpu.memory_space<vmem>>, vector<1x32xf32>
    %cst_50 = arith.constant dense<0.000000e+00> : vector<256xf32>
    %104 = vector.multi_reduction <add>, %101, %cst_50 [1] : vector<256x32xf32> to vector<256xf32>
    %105 = vector.shape_cast %104 : vector<256xf32> to vector<256x1xf32>
    %cst_51 = arith.constant 3.200000e+01 : f32
    %106 = vector.broadcast %cst_51 : f32 to vector<256x1xf32>
    %107 = arith.divf %105, %106 : vector<256x1xf32>
    %108 = vector.broadcast %107 : vector<256x1xf32> to vector<256x32xf32>
    %109 = arith.subf %101, %108 : vector<256x32xf32>
    %110 = arith.mulf %109, %109 : vector<256x32xf32>
    %cst_52 = arith.constant dense<0.000000e+00> : vector<256xf32>
    %111 = vector.multi_reduction <add>, %110, %cst_52 [1] : vector<256x32xf32> to vector<256xf32>
    %112 = vector.shape_cast %111 : vector<256xf32> to vector<256x1xf32>
    %cst_53 = arith.constant 3.200000e+01 : f32
    %113 = vector.broadcast %cst_53 : f32 to vector<256x1xf32>
    %114 = arith.divf %112, %113 : vector<256x1xf32>
    %cst_54 = arith.constant 9.99999974E-6 : f32
    %115 = vector.broadcast %cst_54 : f32 to vector<256x1xf32>
    %116 = arith.addf %114, %115 : vector<256x1xf32>
    %117 = math.rsqrt %116 : vector<256x1xf32>
    %118 = vector.broadcast %117 : vector<256x1xf32> to vector<256x32xf32>
    %119 = arith.mulf %109, %118 : vector<256x32xf32>
    %120 = vector.broadcast %102 : vector<1x32xf32> to vector<256x32xf32>
    %121 = arith.mulf %119, %120 : vector<256x32xf32>
    %122 = vector.broadcast %103 : vector<1x32xf32> to vector<256x32xf32>
    %123 = arith.addf %121, %122 : vector<256x32xf32>
    %cst_55 = arith.constant 0.000000e+00 : f32
    %124 = vector.broadcast %cst_55 : f32 to vector<256x32xf32>
    %125 = arith.maximumf %123, %124 : vector<256x32xf32>
    %126 = vector.shape_cast %125 : vector<256x32xf32> to vector<8x32x32xf32>
    %c0_56 = arith.constant 0 : index
    %c0_57 = arith.constant 0 : index
    %127 = vector.load %arg17[%c0_56, %c0_57] : memref<1x32xf32, #tpu.memory_space<vmem>>, vector<1x32xf32>
    %128 = vector.shape_cast %127 : vector<1x32xf32> to vector<1x1x32xf32>
    %129 = vector.broadcast %128 : vector<1x1x32xf32> to vector<8x32x32xf32>
    %130 = arith.mulf %126, %129 : vector<8x32x32xf32>
    %cst_58 = arith.constant dense<0.000000e+00> : vector<8x32xf32>
    %131 = vector.multi_reduction <add>, %130, %cst_58 [2] : vector<8x32x32xf32> to vector<8x32xf32>
    %c0_59 = arith.constant 0 : index
    %132 = memref.load %arg18[%c0_59] : memref<1xf32, #tpu.memory_space<smem>>
    %133 = vector.broadcast %132 : f32 to vector<8x32xf32>
    %134 = arith.addf %131, %133 : vector<8x32xf32>
    %cst_60 = arith.constant 5.000000e-01 : f32
    %135 = vector.broadcast %cst_60 : f32 to vector<8x32xf32>
    %136 = arith.mulf %135, %134 : vector<8x32xf32>
    %137 = math.tanh %136 : vector<8x32xf32>
    %cst_61 = arith.constant 1.000000e+00 : f32
    %138 = vector.broadcast %cst_61 : f32 to vector<8x32xf32>
    %139 = arith.addf %137, %138 : vector<8x32xf32>
    %cst_62 = arith.constant 5.000000e-01 : f32
    %140 = vector.broadcast %cst_62 : f32 to vector<8x32xf32>
    %141 = arith.mulf %140, %139 : vector<8x32xf32>
    %142 = vector.shape_cast %141 : vector<8x32xf32> to vector<2x4x32xf32>
    %143 = vector.extract_strided_slice %142 {offsets = [0, 0, 0], sizes = [2, 1, 32], strides = [1, 1, 1]} : vector<2x4x32xf32> to vector<2x1x32xf32>
    %144 = vector.shape_cast %143 : vector<2x1x32xf32> to vector<2x32xf32>
    %145 = vector.extract_strided_slice %142 {offsets = [0, 1, 0], sizes = [2, 1, 32], strides = [1, 1, 1]} : vector<2x4x32xf32> to vector<2x1x32xf32>
    %146 = vector.shape_cast %145 : vector<2x1x32xf32> to vector<2x32xf32>
    %147 = vector.extract_strided_slice %142 {offsets = [0, 2, 0], sizes = [2, 1, 32], strides = [1, 1, 1]} : vector<2x4x32xf32> to vector<2x1x32xf32>
    %148 = vector.shape_cast %147 : vector<2x1x32xf32> to vector<2x32xf32>
    %149 = vector.extract_strided_slice %142 {offsets = [0, 3, 0], sizes = [2, 1, 32], strides = [1, 1, 1]} : vector<2x4x32xf32> to vector<2x1x32xf32>
    %150 = vector.shape_cast %149 : vector<2x1x32xf32> to vector<2x32xf32>
    %151 = tpu.concatenate %144, %146, %148, %150 in 1 : vector<2x32xf32>, vector<2x32xf32>, vector<2x32xf32>, vector<2x32xf32> -> vector<2x128xf32>
    %c0_63 = arith.constant 0 : index
    %c0_64 = arith.constant 0 : index
    %152 = vector.load %arg19[%c0_63, %c0_64] : memref<2x128xf32, #tpu.memory_space<vmem>>, vector<2x128xf32>
    tpu.vector_store %arg19[%c0_63, %c0_64], %151 {strides = array<i32>} : memref<2x128xf32, #tpu.memory_space<vmem>>, vector<2x128xf32>,
    return
  }
  func.func @transform_0(%arg0: i32) -> (i32, i32) {
    %c0_i32 = arith.constant 0 : i32
    %c0_i32_0 = arith.constant 0 : i32
    return %arg0, %c0_i32 : i32, i32
  }
  func.func @transform_1(%arg0: i32) -> (i32, i32) {
    %c0_i32 = arith.constant 0 : i32
    %c0_i32_0 = arith.constant 0 : i32
    return %arg0, %c0_i32 : i32, i32
  }
  func.func @transform_2(%arg0: i32) -> (i32, i32) {
    %c0_i32 = arith.constant 0 : i32
    %c0_i32_0 = arith.constant 0 : i32
    return %arg0, %c0_i32 : i32, i32
  }
  func.func @transform_3(%arg0: i32) -> (i32, i32) {
    %c0_i32 = arith.constant 0 : i32
    %c0_i32_0 = arith.constant 0 : i32
    %c0_i32_1 = arith.constant 0 : i32
    return %c0_i32, %c0_i32_0 : i32, i32
  }
  func.func @transform_4(%arg0: i32) -> (i32, i32) {
    %c0_i32 = arith.constant 0 : i32
    %c0_i32_0 = arith.constant 0 : i32
    %c0_i32_1 = arith.constant 0 : i32
    return %c0_i32, %c0_i32_0 : i32, i32
  }
  func.func @transform_5(%arg0: i32) -> (i32, i32) {
    %c0_i32 = arith.constant 0 : i32
    %c0_i32_0 = arith.constant 0 : i32
    %c0_i32_1 = arith.constant 0 : i32
    return %c0_i32, %c0_i32_0 : i32, i32
  }
  func.func @transform_6(%arg0: i32) -> (i32, i32) {
    %c0_i32 = arith.constant 0 : i32
    %c0_i32_0 = arith.constant 0 : i32
    %c0_i32_1 = arith.constant 0 : i32
    return %c0_i32, %c0_i32_0 : i32, i32
  }
  func.func @transform_7(%arg0: i32) -> (i32, i32) {
    %c0_i32 = arith.constant 0 : i32
    %c0_i32_0 = arith.constant 0 : i32
    %c0_i32_1 = arith.constant 0 : i32
    return %c0_i32, %c0_i32_0 : i32, i32
  }
  func.func @transform_8(%arg0: i32) -> (i32, i32) {
    %c0_i32 = arith.constant 0 : i32
    %c0_i32_0 = arith.constant 0 : i32
    %c0_i32_1 = arith.constant 0 : i32
    return %c0_i32, %c0_i32_0 : i32, i32
  }
  func.func @transform_9(%arg0: i32) -> (i32, i32) {
    %c0_i32 = arith.constant 0 : i32
    %c0_i32_0 = arith.constant 0 : i32
    %c0_i32_1 = arith.constant 0 : i32
    return %c0_i32, %c0_i32_0 : i32, i32
  }
  func.func @transform_10(%arg0: i32) -> (i32, i32) {
    %c0_i32 = arith.constant 0 : i32
    %c0_i32_0 = arith.constant 0 : i32
    %c0_i32_1 = arith.constant 0 : i32
    return %c0_i32, %c0_i32_0 : i32, i32
  }
  func.func @transform_11(%arg0: i32) -> (i32, i32) {
    %c0_i32 = arith.constant 0 : i32
    %c0_i32_0 = arith.constant 0 : i32
    %c0_i32_1 = arith.constant 0 : i32
    return %c0_i32, %c0_i32_0 : i32, i32
  }
  func.func @transform_12(%arg0: i32) -> (i32, i32) {
    %c0_i32 = arith.constant 0 : i32
    %c0_i32_0 = arith.constant 0 : i32
    %c0_i32_1 = arith.constant 0 : i32
    return %c0_i32, %c0_i32_0 : i32, i32
  }
  func.func @transform_13(%arg0: i32) -> (i32, i32) {
    %c0_i32 = arith.constant 0 : i32
    %c0_i32_0 = arith.constant 0 : i32
    %c0_i32_1 = arith.constant 0 : i32
    return %c0_i32, %c0_i32_0 : i32, i32
  }
  func.func @transform_14(%arg0: i32) -> (i32, i32) {
    %c0_i32 = arith.constant 0 : i32
    %c0_i32_0 = arith.constant 0 : i32
    %c0_i32_1 = arith.constant 0 : i32
    return %c0_i32, %c0_i32_0 : i32, i32
  }
  func.func @transform_15(%arg0: i32) -> (i32, i32) {
    %c0_i32 = arith.constant 0 : i32
    %c0_i32_0 = arith.constant 0 : i32
    %c0_i32_1 = arith.constant 0 : i32
    return %c0_i32, %c0_i32_0 : i32, i32
  }
  func.func @transform_16(%arg0: i32) -> (i32, i32) {
    %c0_i32 = arith.constant 0 : i32
    %c0_i32_0 = arith.constant 0 : i32
    %c0_i32_1 = arith.constant 0 : i32
    return %c0_i32, %c0_i32_0 : i32, i32
  }
  func.func @transform_17(%arg0: i32) -> i32 {
    %c0_i32 = arith.constant 0 : i32
    %c0_i32_0 = arith.constant 0 : i32
    return %c0_i32 : i32
  }
  func.func @transform_18(%arg0: i32) -> (i32, i32) {
    %c0_i32 = arith.constant 0 : i32
    %c0_i32_0 = arith.constant 0 : i32
    return %arg0, %c0_i32 : i32, i32
  }
}

</mosaic_0001>

<bundles_post_ra>
// kernel: tpu_custom_call.1
= control target key start
LH: loop header
LB: loop body
LE: loop exit
PB: predicated region body
PF: predicated region fallthrough
CT: control target
= control target key end

     0   :  { %s15705_s0 = inlined_call_operand.vmem [shape: f32[8,16], index: 0, kind: input, shape index: {}]   ;;  %s15706_s1 = inlined_call_operand.vmem [shape: f32[8,4], index: 1, kind: input, shape index: {}]   ;;  %s15707_s2 = inlined_call_operand.vmem [shape: f32[8,32], index: 2, kind: input, shape index: {}]   ;;  %s15708_s3 = inlined_call_operand.vmem [shape: f32[16,32], index: 3, kind: input, shape index: {}]   ;;  %s15709_s4 = inlined_call_operand.vmem [shape: f32[4,32], index: 4, kind: input, shape index: {}]   ;;  %s15710_s5 = inlined_call_operand.vmem [shape: f32[1,32], index: 5, kind: input, shape index: {}]   ;;  %s15711_s6 = inlined_call_operand.vmem [shape: f32[1,32], index: 6, kind: input, shape index: {}]   ;;  %s15712_s7 = inlined_call_operand.vmem [shape: f32[1,32], index: 7, kind: input, shape index: {}]   ;;  %s15713_s8 = inlined_call_operand.vmem [shape: f32[64,32], index: 8, kind: input, shape index: {}]   ;;  %s15714_s9 = inlined_call_operand.vmem [shape: f32[1,32], index: 9, kind: input, shape index: {}]   ;;  %s15715_s10 = inlined_call_operand.vmem [shape: f32[1,32], index: 10, kind: input, shape index: {}]   ;;  %s15716_s11 = inlined_call_operand.vmem [shape: f32[1,32], index: 11, kind: input, shape index: {}]   ;;  %s15717_s12 = inlined_call_operand.vmem [shape: f32[32,32], index: 12, kind: input, shape index: {}]   ;;  %s15718_s13 = inlined_call_operand.vmem [shape: f32[1,32], index: 13, kind: input, shape index: {}]   ;;  %s15719_s14 = inlined_call_operand.vmem [shape: f32[1,32], index: 14, kind: input, shape index: {}]   ;;  %s15720_s15 = inlined_call_operand.vmem [shape: f32[1,32], index: 15, kind: input, shape index: {}]   ;;  %s15721_s16 = inlined_call_operand.vmem [shape: f32[1,32], index: 16, kind: input, shape index: {}]   ;;  %s15722_s17 = inlined_call_operand.<no memory space> [shape: f32[1], index: 17, kind: input, shape index: {}]   ;;  %s15723_s18 = inlined_call_operand.hbm [shape: f32[2,128], index: 18, kind: output, shape index: {}]  }
   0x1   :  { %15925 = sst [smem:[#allocation105_spill]] %s15705_s0 }
   0x2   :  { %15926 = sst [smem:[#allocation106_spill]] %s15706_s1 }
   0x3   :  { %15927 = sst [smem:[#allocation107_spill]] %s15707_s2 }
   0x4   :  { %s15928_s29 = sld [smem:[#allocation107_spill]]  ;;  %v173_v1 = vlaneseq  ;;  %vm15892_vm1 = vcmask 261120   ;;  %v8439_v10 = vmov 0.0  }
   0x6   :  { %v174_v3 = vshrl.u32 %v173_v1, 7  ;;  %v8550_v4 = vand.u32 127, %v173_v1 }
   0x8   :  { %15929 = vst [vmem:[#allocation6_spill] sm:$0xff] %v8550_v4  ;;  %vm180_vm0 = vcmp.eq.s32.totalorder %v174_v3, %v8550_v4  ;;  %v176_v7 = vadd.s32 16, %v174_v3  ;;  %v175_v8 = vadd.s32 8, %v174_v3  ;;  %v177_v9 = vadd.s32 24, %v174_v3 }
   0x9   :  { %v8554_v11 = vsel %vm180_vm0, 1.0, %v8439_v10 }
   0xa   :  { %v8547_v0 = vld [vmem:[%s15928_s29] sm:$0xff]  ;;  %15930 = vst [vmem:[#allocation7_spill] sm:$0xff] %v8554_v11  ;;  %vm182_vm2 = vcmp.eq.s32.totalorder %v176_v7, %v8550_v4  ;;  %vm181_vm3 = vcmp.eq.s32.totalorder %v175_v8, %v8550_v4 }
   0xb   :  { %v166_v2 = vrot.slane %v8547_v0, 1  ;;  %v192_v5 = vperm.slane %v8547_v0, 0 }
   0xd   :  { %v193_v6 = vperm.slane %v166_v2, 0  ;;  %v208_v13 = vmul.f32 %v8554_v11, %v192_v5 }
   0xf   :  { %v212_v12 = vmul.f32 %v8554_v11, %v193_v6 }
  0x10   :  { %24 = vsyncpa [#allocation4], 0  ;;  %v8560_v14 = vsel %vm182_vm2, 1.0, %v8439_v10  ;;  %v8562_v15 = vsel %vm181_vm3, 1.0, %v8439_v10  ;;  %vm183_vm4 = vcmp.eq.s32.totalorder %v177_v9, %v8550_v4  ;;  %v240_v17 = vsel %vm15892_vm1, %v208_v13, 0.0  ;;  %s15957_s20 = sld [smem:[#allocation106_spill]] }
  0x11   :  { %15931 = vst [vmem:[#allocation8_spill] sm:$0xff] %v8560_v14  ;;  %v252_v16 = vsel %vm15892_vm1, %v212_v12, 0.0  ;;  %v210_v18 = vmul.f32 %v8560_v14, %v192_v5  ;;  %241 = vadd.xlane.f32.xlu0 %v240_v17  ;;  %v8568_v19 = vsel %vm183_vm4, 1.0, %v8439_v10  ;;  %v213_v21 = vmul.f32 %v8562_v15, %v193_v6  ;;  %s15968_s28 = sld [smem:[#allocation105_spill]] }
  0x12   :  { %15932 = vst [vmem:[#allocation9_spill] sm:$0xff] %v8562_v15  ;;  %253 = vadd.xlane.f32.xlu2 %v252_v16  ;;  %v209_v22 = vmul.f32 %v8562_v15, %v192_v5  ;;  %v167_v23 = vrot.slane %v8547_v0, 2  ;;  %v211_v24 = vmul.f32 %v8568_v19, %v192_v5  ;;  %v214_v30 = vmul.f32 %v8560_v14, %v193_v6 }
  0x13   :  { %15933 = vst [vmem:[#allocation10_spill] sm:$0xff] %v8568_v19  ;;  %v246_v20 = vsel %vm15892_vm1, %v210_v18, 0.0  ;;  %v255_v25 = vsel %vm15892_vm1, %v213_v21, 0.0  ;;  %v215_v31 = vmul.f32 %v8568_v19, %v193_v6  ;;  %v168_v37 = vrot.slane %v8547_v0, 3 }
  0x14   :  { %247 = vadd.xlane.f32.xlu1 %v246_v20  ;;  %v243_v26 = vsel %vm15892_vm1, %v209_v22, 0.0  ;;  %v194_v27 = vperm.slane %v167_v23, 0  ;;  %v249_v28 = vsel %vm15892_vm1, %v211_v24, 0.0  ;;  %v258_v33 = vsel %vm15892_vm1, %v214_v30, 0.0 }
  0x15   :  { %v261_v34 = vsel %vm15892_vm1, %v215_v31, 0.0  ;;  %v195_v41 = vperm.slane %v168_v37, 0  ;;  %v169_v45 = vrot.slane %v8547_v0, 4  ;;  %v170_v53 = vrot.slane %v8547_v0, 5 }
  0x16   :  { %v216_v29 = vmul.f32 %v8554_v11, %v194_v27  ;;  %v219_v35 = vmul.f32 %v8568_v19, %v194_v27  ;;  %v217_v36 = vmul.f32 %v8562_v15, %v194_v27  ;;  %v218_v38 = vmul.f32 %v8560_v14, %v194_v27 }
  0x17   :  { %v222_v43 = vmul.f32 %v8560_v14, %v195_v41  ;;  %v220_v44 = vmul.f32 %v8554_v11, %v195_v41  ;;  %v221_v46 = vmul.f32 %v8562_v15, %v195_v41  ;;  %v196_v49 = vperm.slane %v169_v45, 0 }
  0x18   :  { %v264_v32 = vsel %vm15892_vm1, %v216_v29, 0.0  ;;  %v273_v39 = vsel %vm15892_vm1, %v219_v35, 0.0  ;;  %v267_v40 = vsel %vm15892_vm1, %v217_v36, 0.0  ;;  %v270_v42 = vsel %vm15892_vm1, %v218_v38, 0.0 }
  0x19   :  { %244 = vadd.xlane.f32.xlu0 %v243_v26  ;;  %v282_v47 = vsel %vm15892_vm1, %v222_v43, 0.0  ;;  %v276_v48 = vsel %vm15892_vm1, %v220_v44, 0.0  ;;  %v279_v50 = vsel %vm15892_vm1, %v221_v46, 0.0  ;;  %v225_v51 = vmul.f32 %v8562_v15, %v196_v49 }
  0x1a   :  { %256 = vadd.xlane.f32.xlu2 %v255_v25  ;;  %v223_v52 = vmul.f32 %v8568_v19, %v195_v41  ;;  %v224_v54 = vmul.f32 %v8554_v11, %v196_v49  ;;  %v197_v57 = vperm.slane %v170_v53, 0  ;;  %v226_v59 = vmul.f32 %v8560_v14, %v196_v49 }
  0x1b   :  { %v291_v55 = vsel %vm15892_vm1, %v225_v51, 0.0  ;;  %v227_v61 = vmul.f32 %v8568_v19, %v196_v49  ;;  %v336_v9 = vadd.s32 1, %v8550_v4  ;;  %vm70_vm3 = vcmask 1043456  }
  0x1c   :  { %250 = vadd.xlane.f32.xlu1 %v249_v28  ;;  %v285_v56 = vsel %vm15892_vm1, %v223_v52, 0.0  ;;  %v288_v58 = vsel %vm15892_vm1, %v224_v54, 0.0  ;;  %v228_v60 = vmul.f32 %v8554_v11, %v197_v57  ;;  %v294_v62 = vsel %vm15892_vm1, %v226_v59, 0.0 }
  0x1d   :  { %v297_v1 = vsel %vm15892_vm1, %v227_v61, 0.0  ;;  %v229_v2 = vmul.f32 %v8562_v15, %v197_v57  ;;  %v231_v3 = vmul.f32 %v8568_v19, %v197_v57  ;;  %v230_v5 = vmul.f32 %v8560_v14, %v197_v57 }
  0x1e   :  { %v300_v63 = vsel %vm15892_vm1, %v228_v60, 0.0  ;;  %v337_v10 = vcvt.s32.f32 %v336_v9  ;;  %v15725_v61 = vmov 2102212464   ;;  %vm66_vm4 = vcmask 31744  }
  0x1f   :  { %v303_v6 = vsel %vm15892_vm1, %v229_v2, 0.0  ;;  %v309_v7 = vsel %vm15892_vm1, %v231_v3, 0.0  ;;  %v306_v8 = vsel %vm15892_vm1, %v230_v5, 0.0 }
  0x20   :  { %v8618_v12 = vmul.f32 3.1415927, %v337_v10  ;;  %v15733_v10 = vmov 1326507024  }
  0x21   :  { %259 = vadd.xlane.f32.xlu0 %v258_v33 }
  0x22   :  { %265 = vadd.xlane.f32.xlu2 %v264_v32  ;;  %15934 = vst [vmem:[#allocation11_spill] sm:$0xff] %v8618_v12 }
  0x24   :  { %262 = vadd.xlane.f32.xlu1 %v261_v34 }
  0x29   :  { %268 = vadd.xlane.f32.xlu0 %v267_v40 }
  0x2a   :  { %274 = vadd.xlane.f32.xlu2 %v273_v39 }
  0x2c   :  { %271 = vadd.xlane.f32.xlu1 %v270_v42 }
  0x31   :  { %277 = vadd.xlane.f32.xlu0 %v276_v48 }
  0x32   :  { %283 = vadd.xlane.f32.xlu2 %v282_v47 }
  0x34   :  { %280 = vadd.xlane.f32.xlu1 %v279_v50 }
  0x39   :  { %286 = vadd.xlane.f32.xlu0 %v285_v56 }
  0x3a   :  { %292 = vadd.xlane.f32.xlu2 %v291_v55 }
  0x3c   :  { %289 = vadd.xlane.f32.xlu1 %v288_v58 }
  0x41   :  { %295 = vadd.xlane.f32.xlu0 %v294_v62 }
  0x42   :  { %301 = vadd.xlane.f32.xlu2 %v300_v63  ;;  %v15729_v63 = vmov 920167782  }
  0x44   :  { %298 = vadd.xlane.f32.xlu1 %v297_v1 }
  0x49   :  { %304 = vadd.xlane.f32.xlu0 %v303_v6 }
  0x4a   :  { %310 = vadd.xlane.f32.xlu2 %v309_v7 }
  0x4c   :  { %307 = vadd.xlane.f32.xlu1 %v306_v8 }
  0x84   :  { %v242_v17 = vpop.xlane.xlu0 %241 }
  0x85   :  { %v254_v13 = vpop.xlane.xlu2 %253  ;;  %v8624_v20 = vmul.f32 %v8618_v12, %v242_v17 }
  0x86   :  { %v8621_v16 = vmul.f32 %v8618_v12, %v254_v13 }
  0x87   :  { %v248_v18 = vpop.xlane.xlu1 %247  ;;  %v374_v23 = vand.u32 2139095040, %v8624_v20 }
  0x88   :  { %15935 = vst [vmem:[#allocation12_spill] sm:$0xff] %v8621_v16  ;;  %v990_v21 = vand.u32 2139095040, %v8621_v16  ;;  %v8628_v22 = vmul.f32 %v8618_v12, %v248_v18 }
  0x89   :  { %v375_v26 = vshrl.u32 %v374_v23, 23 }
  0x8a   :  { %v991_v24 = vshrl.u32 %v990_v21, 23  ;;  %v682_v25 = vand.u32 2139095040, %v8628_v22 }
  0x8b   :  { %v7952_v31 = vadd.s32 4294967169, %v375_v26 }
  0x8c   :  { %v7964_v28 = vadd.s32 4294967169, %v991_v24  ;;  %v683_v29 = vshrl.u32 %v682_v25, 23  ;;  %v245_v32 = vpop.xlane.xlu0 %244 }
  0x8d   :  { %v257_v27 = vpop.xlane.xlu2 %256  ;;  %v8637_v36 = vmul.f32 %v8618_v12, %v245_v32  ;;  %v381_v37 = vadd.s32 1, %v7952_v31 }
  0x8e   :  { %v8633_v30 = vmul.f32 %v8618_v12, %v257_v27  ;;  %v997_v33 = vadd.s32 1, %v7964_v28  ;;  %v7958_v34 = vadd.s32 4294967169, %v683_v29 }
  0x8f   :  { %v251_v39 = vpop.xlane.xlu1 %250  ;;  %v528_v41 = vand.u32 2139095040, %v8637_v36  ;;  %vm382_vm6 = vcmp.gt.s32.totalorder %v381_v37, 0 }
  0x90   :  { %15936 = vst [vmem:[#allocation13_spill] sm:$0xff] %v8633_v30  ;;  %v1144_v35 = vand.u32 2139095040, %v8633_v30  ;;  %vm998_vm5 = vcmp.gt.s32.totalorder %v997_v33, 0  ;;  %v689_v38 = vadd.s32 1, %v7958_v34  ;;  %v8641_v43 = vmul.f32 %v8618_v12, %v251_v39 }
  0x91   :  { %v999_v42 = vsel %vm998_vm5, %v997_v33, 0  ;;  %v383_v45 = vsel %vm382_vm6, %v381_v37, 0  ;;  %v529_v47 = vshrl.u32 %v528_v41, 23 }
  0x92   :  { %v1145_v40 = vshrl.u32 %v1144_v35, 23  ;;  %vm690_vm7 = vcmp.gt.s32.totalorder %v689_v38, 0  ;;  %v8643_v44 = vand.u32 31, %v999_v42  ;;  %v836_v49 = vand.u32 2139095040, %v8641_v43 }
  0x93   :  { %v691_v48 = vsel %vm690_vm7, %v689_v38, 0  ;;  %v8646_v51 = vand.u32 31, %v383_v45  ;;  %v7955_v54 = vadd.s32 4294967169, %v529_v47  ;;  %v8656_v57 = vshrl.u32 %v999_v42, 5 }
  0x94   :  { %15937 = vst [vmem:[#allocation14_spill] sm:$0xff] %v8643_v44  ;;  %v7967_v46 = vadd.s32 4294967169, %v1145_v40  ;;  %v8649_v52 = vsub.s32 32, %v8643_v44  ;;  %v8651_v55 = vand.u32 31, %v691_v48  ;;  %v837_v58 = vshrl.u32 %v836_v49, 23  ;;  %v260_v59 = vpop.xlane.xlu0 %259 }
  0x95   :  { %v266_v50 = vpop.xlane.xlu2 %265  ;;  %15940 = vst [vmem:[#allocation17_spill] sm:$0xff] %v8656_v57  ;;  %v8659_v60 = vsub.s32 32, %v8646_v51  ;;  %v1013_v62 = vshll.u32 %v15725_v61, %v8643_v44  ;;  %v535_v2 = vadd.s32 1, %v7955_v54  ;;  %v1016_v6 = vshll.u32 %v15729_v63, %v8643_v44  ;;  %v5300_v44 = vld [vmem:[%s15713_s8 + $0x8] sm:$0xff] }
  0x96   :  { %15938 = vst [vmem:[#allocation15_spill] sm:$0xff] %v8649_v52  ;;  %v1151_v53 = vadd.s32 1, %v7967_v46  ;;  %v8654_v56 = vmul.f32 %v8618_v12, %v266_v50  ;;  %v1014_v1 = vshrl.u32 %v15729_v63, %v8649_v52  ;;  %v8666_v3 = vsub.s32 32, %v8651_v55 }
  0x97   :  { %vm1022_vm9 = vcmp.lt.s32.totalorder %v8656_v57, 4  ;;  %v8672_v7 = vshrl.u32 %v383_v45, 5  ;;  %v7961_v8 = vadd.s32 4294967169, %v837_v58  ;;  %v263_v9 = vpop.xlane.xlu1 %262  ;;  %v1017_v13 = vshrl.u32 %v15733_v10, %v8649_v52 }
  0x98   :  { %15939 = vst [vmem:[#allocation16_spill] sm:$0xff] %v8654_v56  ;;  %vm1152_vm8 = vcmp.gt.s32.totalorder %v1151_v53, 0  ;;  %v1606_v5 = vand.u32 2139095040, %v8654_v56  ;;  %v397_v17 = vshll.u32 %v15725_v61, %v8646_v51  ;;  %v398_v18 = vshrl.u32 %v15729_v63, %v8659_v60 }
  0x99   :  { %v1153_v21 = vsel %vm1152_vm8, %v1151_v53, 0  ;;  %v8680_v23 = vor.u32 %v1014_v1, %v1013_v62  ;;  %v401_v24 = vshrl.u32 %v15733_v10, %v8659_v60  ;;  %vm536_vm10 = vcmp.gt.s32.totalorder %v535_v2, 0 }
  0x9a   :  { %v8685_v25 = vmul.f32 %v8618_v12, %v260_v59  ;;  %v705_v26 = vshll.u32 %v15725_v61, %v8651_v55  ;;  %v706_v27 = vshrl.u32 %v15729_v63, %v8666_v3  ;;  %v1607_v28 = vshrl.u32 %v1606_v5, 23 }
  0x9b   :  { %15941 = vst [vmem:[#allocation18_spill] sm:$0xff] %v8680_v23  ;;  %v8692_v29 = vmul.f32 %v8618_v12, %v263_v9  ;;  %v400_v31 = vshll.u32 %v15729_v63, %v8646_v51  ;;  %v8696_v32 = vshrl.u32 %v691_v48, 5  ;;  %v8698_v33 = vand.u32 31, %v1153_v21 }
  0x9c   :  { %15942 = vst [vmem:[#allocation19_spill] sm:$0xff] %v8685_v25  ;;  %v843_v34 = vadd.s32 1, %v7961_v8  ;;  %v1018_v35 = vor.u32 %v1017_v13, %v1016_v6  ;;  %v708_v37 = vshll.u32 %v15729_v63, %v8651_v55  ;;  %v709_v38 = vshrl.u32 %v15733_v10, %v8666_v3  ;;  %v269_v46 = vpop.xlane.xlu0 %268 }
  0x9d   :  { %15943 = vst [vmem:[#allocation20_spill] sm:$0xff] %v8692_v29  ;;  %v537_v39 = vsel %vm536_vm10, %v535_v2, 0  ;;  %v8704_v40 = vor.u32 %v398_v18, %v397_v17  ;;  %v402_v41 = vor.u32 %v401_v24, %v400_v31  ;;  %vm406_vm11 = vcmp.lt.s32.totalorder %v8672_v7, 4  ;;  %v275_v45 = vpop.xlane.xlu2 %274 }
  0x9e   :  { %15944 = vst [vmem:[#allocation21_spill] sm:$0xff] %v8698_v33  ;;  %v1298_v42 = vand.u32 2139095040, %v8685_v25  ;;  %v8711_v47 = vsel %vm1022_vm9, %v8680_v23, 920167782  ;;  %v8713_v48 = vor.u32 %v706_v27, %v705_v26  ;;  %v7976_v49 = vadd.s32 4294967169, %v1607_v28 }
  0x9f   :  { %15945 = vst [vmem:[#allocation22_spill] sm:$0xff] %v8711_v47  ;;  %v1452_v50 = vand.u32 2139095040, %v8692_v29  ;;  %vm714_vm12 = vcmp.lt.s32.totalorder %v8696_v32, 4  ;;  %v8718_v53 = vsub.s32 32, %v8698_v33  ;;  %v8720_v54 = vand.u32 31, %v537_v39 }
  0xa0   :  { %vm844_vm13 = vcmp.gt.s32.totalorder %v843_v34, 0  ;;  %v8724_v58 = vsel %vm1022_vm9, %v1018_v35, 1326507024  ;;  %v710_v59 = vor.u32 %v709_v38, %v708_v37  ;;  %v8726_v62 = vshrl.u32 %v1153_v21, 5 }
  0xa1   :  { %15946 = vst [vmem:[#allocation23_spill] sm:$0xff] %v8718_v53  ;;  %v8729_v1 = vmul.f32 %v8618_v12, %v275_v45  ;;  %v8734_v2 = vsel %vm406_vm11, %v8704_v40, 920167782  ;;  %v8738_v5 = vsel %vm406_vm11, %v402_v41, 1326507024  ;;  %v1299_v6 = vshrl.u32 %v1298_v42, 23  ;;  %v272_v42 = vpop.xlane.xlu1 %271 }
  0xa2   :  { %15947 = vst [vmem:[#allocation24_spill] sm:$0xff] %v8724_v58  ;;  %v8743_v8 = vsel %vm714_vm12, %v8713_v48, 920167782  ;;  %v845_v9 = vsel %vm844_vm13, %v843_v34, 0  ;;  %v1613_v13 = vadd.s32 1, %v7976_v49  ;;  %v1453_v17 = vshrl.u32 %v1452_v50, 23 }
  0xa3   :  { %15948 = vst [vmem:[#allocation25_spill] sm:$0xff] %v8726_v62  ;;  %v1167_v18 = vshll.u32 %v15725_v61, %v8698_v33  ;;  %v1168_v21 = vshrl.u32 %v15729_v63, %v8718_v53  ;;  %v8750_v24 = vsub.s32 32, %v8720_v54  ;;  %v171_v26 = vrot.slane %v8547_v0, 6 }
  0xa4   :  { %15949 = vst [vmem:[#allocation26_spill] sm:$0xff] %v8729_v1  ;;  %v8755_v27 = vsel %vm714_vm12, %v710_v59, 1326507024  ;;  %v1170_v28 = vshll.u32 %v15729_v63, %v8698_v33  ;;  %vm1176_vm14 = vcmp.lt.s32.totalorder %v8726_v62, 4  ;;  %v2068_v31 = vand.u32 2139095040, %v8729_v1 }
  0xa5   :  { %v1171_v34 = vshrl.u32 %v15733_v10, %v8718_v53  ;;  %v8763_v35 = vshrl.u32 %v537_v39, 5  ;;  %v8765_v37 = vand.u32 31, %v845_v9  ;;  %v7970_v38 = vadd.s32 4294967169, %v1299_v6  ;;  %v278_v6 = vpop.xlane.xlu0 %277 }
  0xa6   :  { %v551_v0 = vshll.u32 %v15725_v61, %v8720_v54  ;;  %vm1614_vm15 = vcmp.gt.s32.totalorder %v1613_v13, 0  ;;  %v7973_v41 = vadd.s32 4294967169, %v1453_v17  ;;  %v8769_v45 = vperm.slane %v171_v26, 0 }
  0xa7   :  { %v8771_v49 = vor.u32 %v1168_v21, %v1167_v18  ;;  %v552_v50 = vshrl.u32 %v15729_v63, %v8750_v24  ;;  %v554_v39 = vshll.u32 %v15729_v63, %v8720_v54  ;;  %v8778_v59 = vmul.f32 %v8618_v12, %v269_v46 }
  0xa8   :  { %15950 = vst [vmem:[#allocation27_spill] sm:$0xff] %v8769_v45  ;;  %v555_v61 = vshrl.u32 %v15733_v10, %v8750_v24  ;;  %v2069_v4 = vshrl.u32 %v2068_v31, 23  ;;  %v232_v17 = vmul.f32 %v8554_v11, %v8769_v45  ;;  %v233_v18 = vmul.f32 %v8562_v15, %v8769_v45 }
  0xa9   :  { %15951 = vst [vmem:[#allocation28_spill] sm:$0xff] %v8771_v49  ;;  %vm560_vm0 = vcmp.lt.s32.totalorder %v8763_v35, 4  ;;  %v8788_v21 = vsub.s32 32, %v8765_v37  ;;  %v1615_v26 = vsel %vm1614_vm15, %v1613_v13, 0  ;;  %v1305_v63 = vadd.s32 1, %v7970_v38 }
  0xaa   :  { %15952 = vst [vmem:[#allocation29_spill] sm:$0xff] %v8778_v59  ;;  %v8791_v46 = vmul.f32 %v8618_v12, %v272_v42  ;;  %v1459_v1 = vadd.s32 1, %v7973_v41  ;;  %v8794_v10 = vmul.f32 %v8618_v12, %v278_v6  ;;  %v312_v31 = vsel %vm15892_vm1, %v232_v17, 0.0  ;;  %v65_v38 = vld [vmem:[%s15709_s4] sm:$0xf] }
  0xab   :  { %v315_v56 = vsel %vm15892_vm1, %v233_v18, 0.0  ;;  %v1172_v29 = vor.u32 %v1171_v34, %v1170_v28  ;;  %v8801_v15 = vsel %vm1176_vm14, %v8771_v49, 920167782  ;;  %v8803_v11 = vshrl.u32 %v845_v9, 5  ;;  %313 = vadd.xlane.f32.xlu0 %v312_v31  ;;  %v284_v34 = vpop.xlane.xlu2 %283  ;;  %v64_v9 = vld [vmem:[%s15957_s20] sm:$0xff]  ;;  %7945 = vmatpush.msk.msra.mxu1 %vm70_vm3, %v65_v38 }
  0xac   :  { %15953 = vst [vmem:[#allocation30_spill] sm:$0xff] %v8791_v46  ;;  %v1760_v13 = vand.u32 2139095040, %v8778_v59  ;;  %316 = vadd.xlane.f32.xlu1 %v315_v56  ;;  %v8809_v41 = vor.u32 %v552_v50, %v551_v0  ;;  %v556_v42 = vor.u32 %v555_v61, %v554_v39  ;;  %v8811_v6 = vand.u32 31, %v1615_v26  ;;  %v63_v56 = vld [vmem:[%s15708_s3 + $0x8] sm:$0xff]  ;;  %7946 = vmatmul.msk.f32.vlgmr.msra.gmra.mxu1 %vm66_vm4, %v64_v9 }
  0xad   :  { %15954 = vst [vmem:[#allocation31_spill] sm:$0xff] %v8794_v10  ;;  %v7985_v28 = vadd.s32 4294967169, %v2069_v4  ;;  %vm1306_vm2 = vcmp.gt.s32.totalorder %v1305_v63, 0  ;;  %v1914_v17 = vand.u32 2139095040, %v8791_v46  ;;  %v15958_v0 = vmov 2102212464   ;;  %112 = vmatpush.msrb.mxu1 %v63_v56 }
  0xae   :  { %15955 = vst [vmem:[#allocation32_spill] sm:$0xff] %v8801_v15  ;;  %v859_v61 = vshll.u32 %v15958_v0, %v8765_v37  ;;  %v15959_v50 = vmov 920167782   ;;  %vm1460_vm5 = vcmp.gt.s32.totalorder %v1459_v1, 0  ;;  %v2222_v39 = vand.u32 2139095040, %v8794_v10  ;;  %v62_v15 = vld [vmem:[%s15708_s3] sm:$0xff] }
  0xaf   :  { %15956 = vst [vmem:[#allocation33_spill] sm:$0xff] %v8811_v6  ;;  %v860_v4 = vshrl.u32 %v15959_v50, %v8788_v21  ;;  %v8827_v18 = vsel %vm1176_vm14, %v1172_v29, 1326507024  ;;  %v862_v31 = vshll.u32 %v15959_v50, %v8765_v37  ;;  %v15961_v46 = vmov 1326507024   ;;  %113 = vmatpush.msrb.mxu1 %v62_v15  ;;  %v281_v15 = vpop.xlane.xlu1 %280 }
  0xb0   :  { %15960 = vst [vmem:[#allocation34_spill] sm:$0xff] %v8827_v18  ;;  %v863_v59 = vshrl.u32 %v15961_v46, %v8788_v21  ;;  %v1761_v25 = vshrl.u32 %v1760_v13, 23  ;;  %vm868_vm6 = vcmp.lt.s32.totalorder %v8803_v11, 4  ;;  %v8838_v38 = vsub.s32 32, %v8811_v6 }
  0xb1   :  { %v1307_v29 = vsel %vm1306_vm2, %v1305_v63, 0  ;;  %v2075_v10 = vadd.s32 1, %v7985_v28  ;;  %v8841_v49 = vshrl.u32 %v1615_v26, 5  ;;  %v1461_v18 = vsel %vm1460_vm5, %v1459_v1, 0 }
  0xb2   :  { %15962 = vst [vmem:[#allocation35_spill] sm:$0xff] %v8838_v38  ;;  %v1915_v62 = vshrl.u32 %v1914_v17, 23  ;;  %v8844_v13 = vmul.f32 %v8618_v12, %v284_v34  ;;  %v8849_v9 = vsel %vm560_vm0, %v8809_v41, 920167782  ;;  %v8853_v53 = vsel %vm560_vm0, %v556_v42, 1326507024 }
  0xb3   :  { %15963 = vst [vmem:[#allocation36_spill] sm:$0xff] %v8841_v49  ;;  %v8855_v33 = vor.u32 %v860_v4, %v859_v61  ;;  %v2223_v63 = vshrl.u32 %v2222_v39, 23  ;;  %v864_v26 = vor.u32 %v863_v59, %v862_v31  ;;  %v1629_v1 = vshll.u32 %v15958_v0, %v8811_v6  ;;  %v5306_v17 = vld [vmem:[%s15713_s8 + $0x38] sm:$0xff]  ;;  %v5305_v42 = vld [vmem:[%s15713_s8 + $0x30] sm:$0xff]  ;;  %v61_v59 = vld [vmem:[%s15968_s28] sm:$0xff]  ;;  %v293_v47 = vpop.xlane.xlu2 %292 }
  0xb4   :  { %15964 = vst [vmem:[#allocation37_spill] sm:$0xff] %v8844_v13  ;;  %v8859_v28 = vand.u32 31, %v1307_v29  ;;  %v7979_v34 = vadd.s32 4294967169, %v1761_v25  ;;  %v1630_v56 = vshrl.u32 %v15959_v50, %v8838_v38  ;;  %v8869_v61 = vand.u32 31, %v1461_v18  ;;  %5416 = vmatpush.msra.mxu0 %v5306_v17  ;;  %8112 = vmatpush.msra.mxu2 %v5306_v17  ;;  %v5304_v31 = vld [vmem:[%s15713_s8 + $0x28] sm:$0xff] }
  0xb5   :  { %15965 = vst [vmem:[#allocation38_spill] sm:$0xff] %v8855_v33  ;;  %vm2076_vm7 = vcmp.gt.s32.totalorder %v2075_v10, 0  ;;  %vm94_vm8 = vcmask 130048   ;;  %v8876_v25 = vshll.u32 %v15959_v50, %v8811_v6  ;;  %vm15864_vm10 = vcmp.lt.s32.totalorder %v8841_v49, 4 }
  0xb6   :  { %15966 = vst [vmem:[#allocation39_spill] sm:$0xff] %v8859_v28  ;;  %v7982_v4 = vadd.s32 4294967169, %v1915_v62  ;;  %v2530_v39 = vand.u32 2139095040, %v8844_v13  ;;  %v8886_v19 = vsel %vm868_vm6, %v8855_v33, 920167782  ;;  %v8890_v17 = vshrl.u32 %v15961_v46, %v8838_v38  ;;  %5417 = vmatpush.msra.mxu0 %v5305_v42  ;;  %8113 = vmatpush.msra.mxu2 %v5305_v42 }
  0xb7   :  { %15967 = vst [vmem:[#allocation40_spill] sm:$0xff] %v8869_v61  ;;  %v8892_v6 = vshrl.u32 %v1307_v29, 5  ;;  %v7988_v30 = vadd.s32 4294967169, %v2223_v63  ;;  %v8895_v62 = vsub.s32 32, %v8859_v28  ;;  %v2077_v13 = vsel %vm2076_vm7, %v2075_v10, 0  ;;  %7947 = vmatmul.msk.f32.vlgmr.msrb.gmra.mxu1 %vm94_vm8, %v61_v59  ;;  %v5303_v29 = vld [vmem:[%s15713_s8 + $0x20] sm:$0xff]  ;;  %v290_v49 = vpop.xlane.xlu1 %289 }
  0xb8   :  { %v1767_v23 = vadd.s32 1, %v7979_v34  ;;  %v8899_v58 = vmul.f32 %v8618_v12, %v281_v15  ;;  %v8907_v63 = vsel %vm868_vm6, %v864_v26, 1326507024  ;;  %v8909_v42 = vor.u32 %v1630_v56, %v1629_v1  ;;  %5418 = vmatpush.msra.mxu0 %v5304_v31  ;;  %8114 = vmatpush.msra.mxu2 %v5304_v31 }
  0xb9   :  { %15969 = vst [vmem:[#allocation41_spill] sm:$0xff] %v8892_v6  ;;  %v1321_v38 = vshll.u32 %v15958_v0, %v8859_v28  ;;  %v8914_v10 = vsub.s32 32, %v8869_v61  ;;  %v8918_v34 = vshll.u32 %v15959_v50, %v8859_v28  ;;  %v1921_v15 = vadd.s32 1, %v7982_v4 }
  0xba   :  { %15970 = vst [vmem:[#allocation42_spill] sm:$0xff] %v8895_v62  ;;  %v2531_v59 = vshrl.u32 %v2530_v39, 23  ;;  %v8921_v57 = vmul.f32 %v8618_v12, %v293_v47  ;;  %v1634_v26 = vor.u32 %v8890_v17, %v8876_v25  ;;  %vm1330_vm13 = vcmp.lt.s32.totalorder %v8892_v6, 4  ;;  %5419 = vmatpush.msra.mxu0 %v5303_v29  ;;  %8115 = vmatpush.msra.mxu2 %v5303_v29  ;;  %v5302_v29 = vld [vmem:[%s15713_s8 + $0x18] sm:$0xff] }
  0xbb   :  { %15971 = vst [vmem:[#allocation43_spill] sm:$0xff] %v8899_v58  ;;  %v8926_v1 = vand.u32 31, %v2077_v13  ;;  %v2229_v56 = vadd.s32 1, %v7988_v30  ;;  %v1322_v31 = vshrl.u32 %v15959_v50, %v8895_v62  ;;  %v1325_v4 = vshrl.u32 %v15961_v46, %v8895_v62 }
  0xbc   :  { %15972 = vst [vmem:[#allocation44_spill] sm:$0xff] %v8907_v63  ;;  %vm1768_vm15 = vcmp.gt.s32.totalorder %v1767_v23, 0  ;;  %v2376_v47 = vand.u32 2139095040, %v8899_v58  ;;  %v8936_v25 = vsel %vm15864_vm10, %v8909_v42, 920167782  ;;  %v8938_v39 = vshrl.u32 %v1461_v18, 5  ;;  %5420 = vmatpush.msra.mxu0 %v5302_v29  ;;  %8116 = vmatpush.msra.mxu2 %v5302_v29 }
  0xbd   :  { %15973 = vst [vmem:[#allocation45_spill] sm:$0xff] %v8909_v42  ;;  %v1475_v30 = vshll.u32 %v15958_v0, %v8869_v61  ;;  %v1476_v17 = vshrl.u32 %v15959_v50, %v8914_v10  ;;  %v5301_v58 = vld [vmem:[%s15713_s8 + $0x10] sm:$0xff]  ;;  %v1478_v42 = vshll.u32 %v15959_v50, %v8869_v61  ;;  %vm1922_vm2 = vcmp.gt.s32.totalorder %v1921_v15, 0 }
  0xbe   :  { %15974 = vst [vmem:[#allocation46_spill] sm:$0xff] %v8914_v10  ;;  %v7994_v18 = vadd.s32 4294967169, %v2531_v59  ;;  %v1479_v62 = vshrl.u32 %v15961_v46, %v8914_v10  ;;  %v8956_v28 = vsub.s32 32, %v8926_v1  ;;  %v1769_v52 = vsel %vm1768_vm15, %v1767_v23, 0  ;;  %5421 = vmatpush.msra.mxu0 %v5301_v58  ;;  %8117 = vmatpush.msra.mxu2 %v5301_v58 }
  0xbf   :  { %15975 = vst [vmem:[#allocation47_spill] sm:$0xff] %v8921_v57  ;;  %vm2230_vm3 = vcmp.gt.s32.totalorder %v2229_v56, 0  ;;  %v8962_v61 = vor.u32 %v1322_v31, %v1321_v38  ;;  %v1326_v59 = vor.u32 %v1325_v4, %v8918_v34  ;;  %v234_v29 = vmul.f32 %v8560_v14, %v8769_v45  ;;  %v5299_v38 = vld [vmem:[%s15713_s8] sm:$0xff]  ;;  %s7936_s8 = sshll.u32 %s15723_s18, 4  ;;  %s7937_s8 = int_to_ptr.hbm [resolvable:$true] %s7936_s8 }
  0xc0   :  { %15976 = vst [vmem:[#allocation48_spill] sm:$0xff] %v8926_v1  ;;  %v8967_v10 = vor.u32 %v1476_v17, %v1475_v30  ;;  %vm15865_vm4 = vcmp.lt.s32.totalorder %v8938_v39, 4  ;;  %v8970_v23 = vshrl.u32 %v2077_v13, 5  ;;  %v1923_v16 = vsel %vm1922_vm2, %v1921_v15, 0  ;;  %5422 = vmatpush.msra.mxu0 %v5300_v44  ;;  %8118 = vmatpush.msra.mxu2 %v5300_v44 }
  0xc1   :  { %15977 = vst [vmem:[#allocation49_spill] sm:$0xff] %v8936_v25  ;;  %v2992_v25 = vand.u32 2139095040, %v8921_v57  ;;  %v2377_v57 = vshrl.u32 %v2376_v47, 23  ;;  %v8976_v31 = vand.u32 31, %v1769_v52  ;;  %v2537_v34 = vadd.s32 1, %v7994_v18 }
  0xc2   :  { %15978 = vst [vmem:[#allocation50_spill] sm:$0xff] %v8938_v39  ;;  %v2231_v4 = vsel %vm2230_vm3, %v2229_v56, 0  ;;  %v1480_v58 = vor.u32 %v1479_v62, %v1478_v42  ;;  %v2091_v30 = vshll.u32 %v15958_v0, %v8926_v1  ;;  %v2092_v13 = vshrl.u32 %v15959_v50, %v8956_v28  ;;  %5423 = vmatpush.msra.mxu0 %v5299_v38 }
  0xc3   :  { %15979 = vst [vmem:[#allocation51_spill] sm:$0xff] %v8956_v28  ;;  %v2993_v47 = vshrl.u32 %v2992_v25, 23  ;;  %v2094_v15 = vshll.u32 %v15959_v50, %v8926_v1  ;;  %v2095_v17 = vshrl.u32 %v15961_v46, %v8956_v28  ;;  %v8986_v14 = vand.u32 31, %v1923_v16  ;;  %8119 = vmatpush.msra.mxu2 %v5299_v38 }
  0xc4   :  { %15980 = vst [vmem:[#allocation52_spill] sm:$0xff] %v8962_v61  ;;  %v7991_v18 = vadd.s32 4294967169, %v2377_v57  ;;  %v318_v56 = vsel %vm15892_vm1, %v234_v29, 0.0  ;;  %v8991_v44 = vsel %vm15864_vm10, %v1634_v26, 1326507024  ;;  %v8998_v42 = vshrl.u32 %v1769_v52, 5 }
  0xc5   :  { %15981 = vst [vmem:[#allocation53_spill] sm:$0xff] %v8967_v10  ;;  %v8996_v62 = vsel %vm1330_vm13, %v8962_v61, 920167782  ;;  %v9000_v25 = vand.u32 31, %v2231_v4  ;;  %319 = vadd.xlane.f32.xlu2 %v318_v56  ;;  %v9004_v57 = vsel %vm1330_vm13, %v1326_v59, 1326507024  ;;  %v9018_v1 = vor.u32 %v2092_v13, %v2091_v30 }
  0xc6   :  { %15982 = vst [vmem:[#allocation54_spill] sm:$0xff] %v8970_v23  ;;  %v9007_v29 = vsub.s32 32, %v8976_v31  ;;  %vm2538_vm5 = vcmp.gt.s32.totalorder %v2537_v34, 0  ;;  %v8003_v26 = vadd.s32 4294967169, %v2993_v47  ;;  %v9012_v38 = vsel %vm15865_vm4, %v8967_v10, 920167782 }
  0xc7   :  { %15983 = vst [vmem:[#allocation55_spill] sm:$0xff] %v8976_v31  ;;  %v9016_v52 = vsel %vm15865_vm4, %v1480_v58, 1326507024  ;;  %vm15838_vm7 = vcmp.lt.s32.totalorder %v8970_v23, 4  ;;  %v2096_v59 = vor.u32 %v2095_v17, %v2094_v15  ;;  %v1783_v56 = vshll.u32 %v15958_v0, %v8976_v31 }
  0xc8   :  { %15984 = vst [vmem:[#allocation56_spill] sm:$0xff] %v8986_v14  ;;  %v9024_v28 = vsub.s32 32, %v8986_v14  ;;  %v2383_v47 = vadd.s32 1, %v7991_v18  ;;  %vm15856_vm8 = vcmp.lt.s32.totalorder %v8998_v42, 4  ;;  %v2539_v58 = vsel %vm2538_vm5, %v2537_v34, 0 }
  0xc9   :  { %15985 = vst [vmem:[#allocation57_spill] sm:$0xff] %v8991_v44  ;;  %v287_v44 = vpop.xlane.xlu0 %286  ;;  %v9030_v30 = vsub.s32 32, %v9000_v25  ;;  %v1784_v13 = vshrl.u32 %v15959_v50, %v9007_v29  ;;  %v1787_v15 = vshrl.u32 %v15961_v46, %v9007_v29  ;;  %v9036_v17 = vshrl.u32 %v1923_v16, 5 }
  0xca   :  { %15986 = vst [vmem:[#allocation58_spill] sm:$0xff] %v8996_v62  ;;  %v2999_v18 = vadd.s32 1, %v8003_v26  ;;  %v1937_v10 = vshll.u32 %v15958_v0, %v8986_v14  ;;  %v9043_v34 = vmul.f32 %v8618_v12, %v287_v44  ;;  %v1938_v39 = vshrl.u32 %v15959_v50, %v9024_v28 }
  0xcb   :  { %15987 = vst [vmem:[#allocation59_spill] sm:$0xff] %v8998_v42  ;;  %v1941_v16 = vshrl.u32 %v15961_v46, %v9024_v28  ;;  %vm2384_vm15 = vcmp.gt.s32.totalorder %v2383_v47, 0  ;;  %v2245_v26 = vshll.u32 %v15958_v0, %v9000_v25  ;;  %v2248_v44 = vshll.u32 %v15959_v50, %v9000_v25 }
  0xcc   :  { %15988 = vst [vmem:[#allocation60_spill] sm:$0xff] %v9000_v25  ;;  %v9065_v62 = vsel %vm15838_vm7, %v9018_v1, 920167782  ;;  %v9069_v61 = vshrl.u32 %v2231_v4, 5  ;;  %vm3000_vm2 = vcmp.gt.s32.totalorder %v2999_v18, 0  ;;  %v2385_v6 = vsel %vm2384_vm15, %v2383_v47, 0 }
  0xcd   :  { %15989 = vst [vmem:[#allocation61_spill] sm:$0xff] %v9004_v57  ;;  %v2684_v45 = vand.u32 2139095040, %v9043_v34  ;;  %v9075_v25 = vsel %vm15838_vm7, %v2096_v59, 1326507024  ;;  %vm15852_vm3 = vcmp.lt.s32.totalorder %v9036_v17, 4  ;;  %v3001_v47 = vsel %vm3000_vm2, %v2999_v18, 0 }
  0xce   :  { %15990 = vst [vmem:[#allocation62_spill] sm:$0xff] %v9007_v29  ;;  %v9052_v29 = vand.u32 31, %v2539_v58  ;;  %vm15837_vm5 = vcmp.lt.s32.totalorder %v9069_v61, 4  ;;  %vm403_vm15 = vcmp.lt.s32.totalorder %v8672_v7, 1  ;;  %vm405_vm2 = vcmp.lt.s32.totalorder %v8672_v7, 3 }
  0xcf   :  { %15991 = vst [vmem:[#allocation63_spill] sm:$0xff] %v9012_v38  ;;  %v1786_v38 = vshll.u32 %v15959_v50, %v8976_v31  ;;  %v1940_v31 = vshll.u32 %v15959_v50, %v8986_v14  ;;  %v2246_v14 = vshrl.u32 %v15959_v50, %v9030_v30  ;;  %vm668_vm4 = vweird.f32 %v8637_v36 }
  0xd0   :  { %15992 = vst [vmem:[#allocation64_spill] sm:$0xff] %v9016_v52  ;;  %v9046_v52 = vmul.f32 %v8618_v12, %v290_v49  ;;  %v2249_v49 = vshrl.u32 %v15961_v46, %v9030_v30 }
  0xd1   :  { %15993 = vst [vmem:[#allocation65_spill] sm:$0xff] %v9018_v1  ;;  %v1788_v57 = vor.u32 %v1787_v15, %v1786_v38  ;;  %v1942_v63 = vor.u32 %v1941_v16, %v1940_v31  ;;  %v9083_v4 = vor.u32 %v2246_v14, %v2245_v26  ;;  %v9090_v15 = vshrl.u32 %v2539_v58, 5 }
  0xd2   :  { %15994 = vst [vmem:[#allocation66_spill] sm:$0xff] %v9024_v28  ;;  %v9067_v28 = vor.u32 %v1784_v13, %v1783_v56  ;;  %v2838_v33 = vand.u32 2139095040, %v9046_v52  ;;  %v9081_v56 = vsub.s32 32, %v9052_v29  ;;  %v2250_v38 = vor.u32 %v2249_v49, %v2248_v44 }
  0xd3   :  { %15995 = vst [vmem:[#allocation67_spill] sm:$0xff] %v9030_v30  ;;  %v9077_v30 = vor.u32 %v1938_v39, %v1937_v10  ;;  %v9093_v10 = vand.u32 31, %v2385_v6  ;;  %v9097_v39 = vsel %vm15856_vm8, %v1788_v57, 1326507024  ;;  %v9101_v14 = vshll.u32 %v15958_v0, %v9052_v29 }
  0xd4   :  { %15996 = vst [vmem:[#allocation68_spill] sm:$0xff] %v9036_v17  ;;  %v9088_v13 = vsel %vm15856_vm8, %v9067_v28, 920167782  ;;  %v2685_v31 = vshrl.u32 %v2684_v45, 23  ;;  %v2839_v59 = vshrl.u32 %v2838_v33, 23  ;;  %v9114_v16 = vshll.u32 %v15959_v50, %v9052_v29 }
  0xd5   :  { %15997 = vst [vmem:[#allocation69_spill] sm:$0xff] %v9043_v34  ;;  %v9106_v18 = vsel %vm15852_vm3, %v9077_v30, 920167782  ;;  %v9110_v58 = vsel %vm15852_vm3, %v1942_v63, 1326507024  ;;  %v9116_v57 = vand.u32 31, %v3001_v47  ;;  %v9120_v26 = vshrl.u32 %v15959_v50, %v9081_v56  ;;  %v296_v63 = vpop.xlane.xlu0 %295 }
  0xd6   :  { %15998 = vst [vmem:[#allocation70_spill] sm:$0xff] %v9052_v29  ;;  %v9125_v33 = vsel %vm15837_vm5, %v9083_v4, 920167782  ;;  %v9129_v45 = vsel %vm15837_vm5, %v2250_v38, 1326507024  ;;  %v9134_v49 = vshrl.u32 %v15961_v46, %v9081_v56  ;;  %v9137_v34 = vsub.s32 32, %v9093_v10 }
  0xd7   :  { %15999 = vst [vmem:[#allocation71_spill] sm:$0xff] %v9065_v62  ;;  %v9139_v29 = vshrl.u32 %v2385_v6, 5  ;;  %v9147_v38 = vmul.f32 %v8618_v12, %v296_v63  ;;  %v15826_v44 = vmov 2475754826   ;;  %v16024_v6 = vand.u32 2147483647, %v8624_v20 }
  0xd8   :  { %16000 = vst [vmem:[#allocation72_spill] sm:$0xff] %v9067_v28  ;;  %v15835_v63 = vmov 2131351028   ;;  %v9182_v1 = vshrl.u32 %v3001_v47, 5  ;;  %vm404_vm5 = vcmp.lt.s32.totalorder %v8672_v7, 2 }
  0xd9   :  { %16001 = vst [vmem:[#allocation73_spill] sm:$0xff] %v9069_v61 }
  0xda   :  { %16002 = vst [vmem:[#allocation74_spill] sm:$0xff] %v9075_v25 }
  0xdb   :  { %16003 = vst [vmem:[#allocation75_spill] sm:$0xff] %v9077_v30 }
  0xdc   :  { %16004 = vst [vmem:[#allocation76_spill] sm:$0xff] %v9081_v56  ;;  %v389_v56 = vshrl.u32 %v15826_v44, %v8659_v60 }
  0xdd   :  { %16005 = vst [vmem:[#allocation77_spill] sm:$0xff] %v9083_v4  ;;  %v392_v4 = vshrl.u32 %v15835_v63, %v8659_v60 }
  0xde   :  { %16006 = vst [vmem:[#allocation78_spill] sm:$0xff] %v9088_v13  ;;  %v15850_v13 = vmov 0  }
  0xdf   :  { %16007 = vst [vmem:[#allocation79_spill] sm:$0xff] %v9090_v15  ;;  %v8000_v15 = vadd.s32 4294967169, %v2839_v59 }
  0xe0   :  { %16008 = vst [vmem:[#allocation80_spill] sm:$0xff] %v9093_v10 }
  0xe1   :  { %16009 = vst [vmem:[#allocation81_spill] sm:$0xff] %v9097_v39  ;;  %v2845_v25 = vadd.s32 1, %v8000_v15 }
  0xe2   :  { %16010 = vst [vmem:[#allocation82_spill] sm:$0xff] %v9101_v14  ;;  %v299_v14 = vpop.xlane.xlu1 %298 }
  0xe3   :  { %16011 = vst [vmem:[#allocation83_spill] sm:$0xff] %v9106_v18  ;;  %v9180_v61 = vmul.f32 %v8618_v12, %v299_v14  ;;  %vm2846_vm7 = vcmp.gt.s32.totalorder %v2845_v25, 0 }
  0xe4   :  { %16012 = vst [vmem:[#allocation84_spill] sm:$0xff] %v9110_v58  ;;  %v15849_v58 = vand.u32 2147483647, %v8637_v36 }
  0xe5   :  { %16013 = vst [vmem:[#allocation85_spill] sm:$0xff] %v9114_v16  ;;  %v9141_v16 = vadd.s32 4294967169, %v2685_v31  ;;  %v15824_v31 = vmov 683565275  }
  0xe6   :  { %16014 = vst [vmem:[#allocation86_spill] sm:$0xff] %v9116_v57  ;;  %v388_v59 = vshll.u32 %v15824_v31, %v8646_v51  ;;  %v394_v31 = vshll.u32 %v15835_v63, %v8646_v51  ;;  %v9191_v63 = vshll.u32 %v15959_v50, %v9116_v57 }
  0xe7   :  { %16015 = vst [vmem:[#allocation87_spill] sm:$0xff] %v9120_v26  ;;  %v9144_v26 = vsub.s32 32, %v9116_v57 }
  0xe8   :  { %16016 = vst [vmem:[#allocation88_spill] sm:$0xff] %v9125_v33  ;;  %v9167_v33 = vshrl.u32 %v15959_v50, %v9137_v34  ;;  %v390_v62 = vor.u32 %v389_v56, %v388_v59  ;;  %v16031_v56 = vmov 683565275  }
  0xe9   :  { %16017 = vst [vmem:[#allocation89_spill] sm:$0xff] %v9129_v45  ;;  %v9163_v45 = vshll.u32 %v15958_v0, %v9093_v10 }
  0xea   :  { %16018 = vst [vmem:[#allocation90_spill] sm:$0xff] %v9134_v49  ;;  %v395_v49 = vshrl.u32 %v15958_v0, %v8659_v60 }
  0xeb   :  { %16019 = vst [vmem:[#allocation91_spill] sm:$0xff] %v9137_v34 }
  0xec   :  { %16020 = vst [vmem:[#allocation92_spill] sm:$0xff] %v9139_v29  ;;  %v378_v29 = vand.u32 8388607, %v16024_v6  ;;  %v9171_v6 = vshll.u32 %v15959_v50, %v9093_v10  ;;  %v396_v23 = vor.u32 %v395_v49, %v394_v31  ;;  %v3015_v10 = vshll.u32 %v15958_v0, %v9116_v57 }
  0xed   :  { %16021 = vst [vmem:[#allocation93_spill] sm:$0xff] %v9141_v16  ;;  %v391_v16 = vshll.u32 %v15826_v44, %v8646_v51  ;;  %v9177_v44 = vshrl.u32 %v15961_v46, %v9137_v34  ;;  %v3016_v51 = vshrl.u32 %v15959_v50, %v9144_v26  ;;  %v9203_v31 = vshrl.u32 %v15961_v46, %v9144_v26 }
  0xee   :  { %16022 = vst [vmem:[#allocation94_spill] sm:$0xff] %v9144_v26  ;;  %v379_v14 = vor.u32 8388608, %v378_v29  ;;  %v408_v47 = vsel %vm406_vm11, %v396_v23, 2102212464  ;;  %vm3024_vm11 = vcmp.lt.s32.totalorder %v9182_v1, 4 }
  0xef   :  { %16023 = vst [vmem:[#allocation95_spill] sm:$0xff] %v9147_v38 }
  0xf0   :  { %16025 = vst [vmem:[#allocation96_spill] sm:$0xff] %v9163_v45  ;;  %v393_v45 = vor.u32 %v392_v4, %v391_v16  ;;  %v387_v4 = vshrl.u32 %v16031_v56, %v8659_v60  ;;  %v413_v16 = vsel %vm405_vm2, %v396_v23, %v8734_v2 }
  0xf1   :  { %16026 = vst [vmem:[#allocation97_spill] sm:$0xff] %v9167_v33  ;;  %v3146_v33 = vand.u32 2139095040, %v9147_v38 }
  0xf2   :  { %16027 = vst [vmem:[#allocation98_spill] sm:$0xff] %v9171_v6  ;;  %v411_v15 = vsel %vm403_vm15, %v390_v62, %v393_v45  ;;  %v415_v49 = vsel %vm403_vm15, %v393_v45, %v396_v23  ;;  %v407_v59 = vsel %vm403_vm15, %v387_v4, %v390_v62  ;;  %v409_v34 = vsel %vm405_vm2, %v393_v45, %v408_v47 }
  0xf3   :  { %16028 = vst [vmem:[#allocation99_spill] sm:$0xff] %v9177_v44  ;;  %v3147_v29 = vshrl.u32 %v3146_v33, 23  ;;  %v414_v60 = vsel %vm404_vm5, %v411_v15, %v413_v16  ;;  %v417_v44 = vsel %vm405_vm2, %v8704_v40, %v8738_v5  ;;  %v9209_v6 = vshll.u32 %v379_v14, 8 }
  0xf4   :  { %16029 = vst [vmem:[#allocation100_spill] sm:$0xff] %v9180_v61  ;;  %v418_v2 = vsel %vm404_vm5, %v415_v49, %v417_v44  ;;  %v444_v23 = vand.u32 65535, %v414_v60  ;;  %v445_v30 = vshrl.u32 %v414_v60, 16  ;;  %v9216_v62 = vor.u32 %v3016_v51, %v3015_v10 }
  0xf5   :  { %16030 = vst [vmem:[#allocation101_spill] sm:$0xff] %v9182_v1  ;;  %v420_v18 = vand.u32 65535, %v9209_v6  ;;  %v421_v33 = vshrl.u32 %v9209_v6, 16  ;;  %v422_v17 = vand.u32 65535, %v418_v2  ;;  %v423_v15 = vshrl.u32 %v418_v2, 16 }
  0xf6   :  { %16032 = vst [vmem:[#allocation102_spill] sm:$0xff] %v9216_v62  ;;  %v2847_v5 = vsel %vm2846_vm7, %v2845_v25, 0  ;;  %v9221_v45 = vadd.s32 4294967169, %v3147_v29  ;;  %v9227_v14 = vsel %vm404_vm5, %v407_v59, %v409_v34  ;;  %v532_v10 = vand.u32 8388607, %v15849_v58 }
  0xf7   :  { %v9223_v44 = vshrl.u32 %v2847_v5, 5  ;;  %v425_v4 = vmul.u32 %v423_v15, %v420_v18  ;;  %v426_v47 = vmul.u32 %v422_v17, %v421_v33  ;;  %v447_v16 = vmul.u32 %v445_v30, %v420_v18 }
  0xf8   :  { %v448_v49 = vmul.u32 %v444_v23, %v421_v33  ;;  %v424_v51 = vmul.u32 %v422_v17, %v420_v18  ;;  %v427_v60 = vmul.u32 %v423_v15, %v421_v33  ;;  %v446_v40 = vmul.u32 %v444_v23, %v420_v18 }
  0xf9   :  { %v428_v2 = vshll.u32 %v425_v4, 16  ;;  %v429_v25 = vshrl.u32 %v425_v4, 16  ;;  %v430_v29 = vshll.u32 %v426_v47, 16  ;;  %v449_v28 = vmul.u32 %v445_v30, %v421_v33 }
  0xfa   :  { %v450_v39 = vshll.u32 %v447_v16, 16  ;;  %v451_v34 = vshrl.u32 %v447_v16, 16  ;;  %v452_v59 = vshll.u32 %v448_v49, 16  ;;  %v542_v17 = vshll.u32 %v16031_v56, %v8720_v54 }
  0xfb   :  { %vm432_vm7 = vc.u32 %v424_v51, %v428_v2  ;;  %v434_v7 = vadd.s32 %v428_v2, %v424_v51  ;;  %v16033_v23 = vmov 2475754826   ;;  %v533_v16 = vor.u32 8388608, %v532_v10 }
  0xfc   :  { %v433_v42 = vsel %vm432_vm7, 1, %v15850_v13  ;;  %vm454_vm5 = vc.u32 %v446_v40, %v450_v39  ;;  %v456_v38 = vadd.s32 %v450_v39, %v446_v40  ;;  %v543_v30 = vshrl.u32 %v16033_v23, %v8750_v24 }
  0xfd   :  { %v435_v15 = vadd.s32 %v433_v42, %v427_v60  ;;  %vm436_vm15 = vc.u32 %v434_v7, %v430_v29  ;;  %v455_v18 = vsel %vm454_vm5, 1, %v15850_v13  ;;  %v545_v39 = vshll.u32 %v16033_v23, %v8720_v54 }
  0xfe   :  { %v437_v33 = vsel %vm436_vm15, 1, %v15850_v13  ;;  %v457_v4 = vadd.s32 %v455_v18, %v449_v28  ;;  %vm458_vm2 = vc.u32 %v456_v38, %v452_v59  ;;  %v9240_v58 = vor.u32 %v543_v30, %v542_v17 }
  0xff   :  { %v439_v51 = vadd.s32 %v437_v33, %v435_v15  ;;  %v459_v2 = vsel %vm458_vm2, 1, %v15850_v13  ;;  %v16034_v40 = vmov 2131351028   ;;  %v549_v28 = vshrl.u32 %v15958_v0, %v8750_v24 }
 0x100   :  { %v461_v42 = vadd.s32 %v459_v2, %v457_v4  ;;  %v546_v60 = vshrl.u32 %v16034_v40, %v8750_v24  ;;  %v548_v29 = vshll.u32 %v16034_v40, %v8720_v54  ;;  %v431_v7 = vshrl.u32 %v426_v47, 16 }
 0x101   :  { %v440_v10 = vadd.s32 %v439_v51, %v429_v25  ;;  %v453_v15 = vshrl.u32 %v448_v49, 16  ;;  %v9250_v18 = vadd.s32 %v456_v38, %v452_v59  ;;  %vm557_vm7 = vcmp.lt.s32.totalorder %v8763_v35, 1 }
 0x102   :  { %v462_v17 = vadd.s32 %v461_v42, %v451_v34  ;;  %v547_v30 = vor.u32 %v546_v60, %v545_v39  ;;  %v550_v33 = vor.u32 %v549_v28, %v548_v29  ;;  %vm558_vm5 = vcmp.lt.s32.totalorder %v8763_v35, 2 }
 0x103   :  { %v9253_v4 = vadd.s32 %v440_v10, %v431_v7  ;;  %vm559_vm15 = vcmp.lt.s32.totalorder %v8763_v35, 3  ;;  %v9257_v54 = vshll.u32 %v533_v16, 8  ;;  %v9272_v25 = vsel %vm3024_vm11, %v9216_v62, 920167782 }
 0x104   :  { %v463_v2 = vadd.s32 %v462_v17, %v453_v15  ;;  %v565_v47 = vsel %vm557_vm7, %v9240_v58, %v547_v30  ;;  %v567_v38 = vsel %vm559_vm15, %v550_v33, %v8849_v9  ;;  %v571_v49 = vsel %vm559_vm15, %v8809_v41, %v8853_v53  ;;  %16035 = vst [vmem:[#allocation103_spill] sm:$0xff] %v9272_v25 }
 0x105   :  { %v9274_v34 = vand.u32 31, %v2847_v5  ;;  %vm466_vm2 = vc.u32 %v9253_v4, %v9250_v18  ;;  %v568_v59 = vsel %vm558_vm5, %v565_v47, %v567_v38  ;;  %v464_v9 = vmul.u32 %v9209_v6, %v9227_v14 }
 0x106   :  { %v467_v16 = vadd.s32 1, %v463_v2  ;;  %v569_v53 = vsel %vm557_vm7, %v547_v30, %v550_v33  ;;  %v574_v41 = vand.u32 65535, %v9257_v54  ;;  %v575_v5 = vshrl.u32 %v9257_v54, 16 }
 0x107   :  { %v572_v51 = vsel %vm558_vm5, %v569_v53, %v571_v49  ;;  %v598_v39 = vand.u32 65535, %v568_v59  ;;  %v599_v42 = vshrl.u32 %v568_v59, 16  ;;  %v16036_v60 = vor.u32 %v9203_v31, %v9191_v63 }
 0x108   :  { %v468_v6 = vsel %vm466_vm2, %v467_v16, %v463_v2  ;;  %v576_v14 = vand.u32 65535, %v572_v51  ;;  %v577_v28 = vshrl.u32 %v572_v51, 16  ;;  %v9296_v7 = vadd.s32 1, %v9221_v45 }
 0x109   :  { %v9293_v29 = vsel %vm3024_vm11, %v16036_v60, 1326507024  ;;  %v469_v10 = vadd.s32 %v468_v6, %v464_v9  ;;  %v601_v15 = vmul.u32 %v599_v42, %v574_v41  ;;  %v602_v17 = vmul.u32 %v598_v39, %v575_v5 }
 0x10a   :  { %16037 = vst [vmem:[#allocation104_spill] sm:$0xff] %v9293_v29  ;;  %v3300_v47 = vand.u32 2139095040, %v9180_v61  ;;  %v541_v38 = vshrl.u32 %v16031_v56, %v8750_v24  ;;  %v579_v49 = vmul.u32 %v577_v28, %v574_v41  ;;  %v580_v63 = vmul.u32 %v576_v14, %v575_v5 }
 0x10b   :  { %v470_v31 = vadd.s32 536870912, %v469_v10  ;;  %v562_v59 = vsel %vm560_vm0, %v550_v33, 2102212464  ;;  %v600_v2 = vmul.u32 %v598_v39, %v574_v41  ;;  %v604_v16 = vshll.u32 %v601_v15, 16 }
 0x10c   :  { %v578_v53 = vmul.u32 %v576_v14, %v574_v41  ;;  %v581_v51 = vmul.u32 %v577_v28, %v575_v5  ;;  %v582_v45 = vshll.u32 %v579_v49, 16  ;;  %v603_v60 = vmul.u32 %v599_v42, %v575_v5 }
 0x10d   :  { %v9303_v9 = vshrl.u32 %v470_v31, 30  ;;  %v584_v6 = vshll.u32 %v580_v63, 16  ;;  %v606_v13 = vshll.u32 %v602_v17, 16  ;;  %vm608_vm2 = vc.u32 %v600_v2, %v604_v16 }
 0x10e   :  { %vm586_vm3 = vc.u32 %v578_v53, %v582_v45  ;;  %v588_v61 = vadd.s32 %v582_v45, %v578_v53  ;;  %v16038_v24 = vmov 0   ;;  %v610_v62 = vadd.s32 %v604_v16, %v600_v2 }
 0x10f   :  { %v609_v25 = vsel %vm608_vm2, 1, %v16038_v24  ;;  %v9307_v29 = vsub.s32 32, %v9274_v34  ;;  %v472_v33 = vshll.u32 %v9303_v9, 30  ;;  %v587_v41 = vsel %vm586_vm3, 1, %v16038_v24 }
 0x110   :  { %v611_v39 = vadd.s32 %v609_v25, %v603_v60  ;;  %v561_v5 = vsel %vm557_vm7, %v541_v38, %v9240_v58  ;;  %v589_v42 = vadd.s32 %v587_v41, %v581_v51  ;;  %vm590_vm0 = vc.u32 %v588_v61, %v584_v6 }
 0x111   :  { %vm612_vm8 = vc.u32 %v610_v62, %v606_v13  ;;  %v473_v14 = vsub.s32 %v469_v10, %v472_v33  ;;  %v563_v28 = vsel %vm559_vm15, %v547_v30, %v562_v59  ;;  %v591_v31 = vsel %vm590_vm0, 1, %v16038_v24 }
 0x112   :  { %v613_v2 = vsel %vm612_vm8, 1, %v16038_v24  ;;  %v583_v16 = vshrl.u32 %v579_v49, 16  ;;  %v593_v53 = vadd.s32 %v591_v31, %v589_v42  ;;  %v605_v45 = vshrl.u32 %v601_v15, 16 }
 0x113   :  { %v615_v1 = vadd.s32 %v613_v2, %v611_v39  ;;  %v9320_v25 = vshll.u32 %v15958_v0, %v9274_v34  ;;  %v9324_v61 = vshll.u32 %v15959_v50, %v9274_v34  ;;  %vm474_vm3 = vcmp.lt.s32.totalorder %v473_v14, 0 }
 0x114   :  { %v475_v58 = vsub.s32 0, %v473_v14  ;;  %v585_v10 = vshrl.u32 %v580_v63, 16  ;;  %v594_v30 = vadd.s32 %v593_v53, %v583_v16  ;;  %v607_v38 = vshrl.u32 %v602_v17, 16 }
 0x115   :  { %v616_v59 = vadd.s32 %v615_v1, %v605_v45  ;;  %v9326_v51 = vshrl.u32 %v3300_v47, 23  ;;  %v564_v15 = vsel %vm558_vm5, %v561_v5, %v563_v28  ;;  %v15859_v60 = vand.u32 2147483647, %v8628_v22 }
 0x116   :  { %v476_v49 = vsel %vm474_vm3, %v475_v58, %v473_v14  ;;  %v9331_v33 = vadd.s32 %v594_v30, %v585_v10  ;;  %v9333_v41 = vadd.s32 %v610_v62, %v606_v13  ;;  %v9337_v63 = vshrl.u32 %v15959_v50, %v9307_v29 }
 0x117   :  { %v477_v6 = vclz %v476_v49  ;;  %v617_v39 = vadd.s32 %v616_v59, %v607_v38  ;;  %v696_v1 = vshll.u32 %v16031_v56, %v8651_v55  ;;  %v697_v17 = vshrl.u32 %v16033_v23, %v8666_v3 }
 0x118   :  { %v699_v35 = vshll.u32 %v16033_v23, %v8651_v55  ;;  %v618_v5 = vmul.u32 %v9257_v54, %v564_v15  ;;  %vm620_vm8 = vc.u32 %v9331_v33, %v9333_v41  ;;  %v686_v62 = vand.u32 8388607, %v15859_v60 }
 0x119   :  { %v7953_v47 = vadd.s32 4294967294, %v477_v6  ;;  %v621_v13 = vadd.s32 1, %v617_v39  ;;  %v700_v42 = vshrl.u32 %v16034_v40, %v8666_v3  ;;  %v702_v28 = vshll.u32 %v16034_v40, %v8651_v55 }
 0x11a   :  { %v703_v31 = vshrl.u32 %v15958_v0, %v8666_v3  ;;  %v465_v2 = vadd.s32 %v9250_v18, %v9253_v4  ;;  %v698_v16 = vor.u32 %v697_v17, %v696_v1  ;;  %vm711_vm5 = vcmp.lt.s32.totalorder %v8696_v32, 1 }
 0x11b   :  { %vm7954_vm7 = vcmp.lt.s32.totalorder %v7953_v47, 0  ;;  %v622_v54 = vsel %vm620_vm8, %v621_v13, %v617_v39  ;;  %v701_v58 = vor.u32 %v700_v42, %v699_v35  ;;  %vm713_vm15 = vcmp.lt.s32.totalorder %v8696_v32, 3 }
 0x11c   :  { %v480_v53 = vsel %vm7954_vm7, 0, %v7953_v47  ;;  %v623_v45 = vadd.s32 %v622_v54, %v618_v5  ;;  %v704_v10 = vor.u32 %v703_v31, %v702_v28  ;;  %v9362_v55 = vshrl.u32 %v15961_v46, %v9307_v29 }
 0x11d   :  { %v481_v30 = vsub.s32 32, %v480_v53  ;;  %v485_v38 = vsub.s32 4294967266, %v480_v53  ;;  %v495_v59 = vsub.s32 4, %v9303_v9  ;;  %v687_v4 = vor.u32 8388608, %v686_v62 }
 0x11e   :  { %v624_v18 = vadd.s32 536870912, %v623_v45  ;;  %v482_v49 = vshll.u32 %v473_v14, %v480_v53  ;;  %vm712_vm2 = vcmp.lt.s32.totalorder %v8696_v32, 2  ;;  %v719_v1 = vsel %vm711_vm5, %v698_v16, %v701_v58 }
 0x11f   :  { %v483_v15 = vshrl.u32 %v465_v2, %v481_v30  ;;  %v486_v6 = vadd.s32 127, %v485_v38  ;;  %v721_v17 = vsel %vm713_vm15, %v704_v10, %v8743_v8  ;;  %v723_v35 = vsel %vm711_vm5, %v701_v58, %v704_v10 }
 0x120   :  { %v9366_v39 = vshrl.u32 %v624_v18, 30  ;;  %vm373_vm0 = vcmp.lt.s32.totalorder %v8624_v20, 0  ;;  %v725_v5 = vsel %vm713_vm15, %v8713_v48, %v8755_v27  ;;  %v9386_v42 = vshll.u32 %v687_v4, 8 }
 0x121   :  { %v484_v47 = vor.u32 %v483_v15, %v482_v49  ;;  %v487_v14 = vshll.u32 %v486_v6, 23  ;;  %v496_v13 = vsel %vm373_vm0, %v495_v59, %v9303_v9  ;;  %v726_v8 = vsel %vm712_vm2, %v723_v35, %v725_v5 }
 0x122   :  { %v626_v62 = vshll.u32 %v9366_v39, 30  ;;  %v722_v31 = vsel %vm712_vm2, %v719_v1, %v721_v17  ;;  %v730_v2 = vand.u32 65535, %v726_v8  ;;  %v731_v54 = vshrl.u32 %v726_v8, 16 }
 0x123   :  { %v488_v28 = vor.u32 4788187, %v487_v14  ;;  %v16039_v53 = vand.u32 2147483647, %v8624_v20  ;;  %v728_v9 = vand.u32 65535, %v9386_v42  ;;  %v729_v30 = vshrl.u32 %v9386_v42, 16 }
 0x124   :  { %v9396_v27 = vsub.s32 %v623_v45, %v626_v62  ;;  %v491_v59 = vcvt.s32.f32 %v484_v47  ;;  %v695_v4 = vshrl.u32 %v16031_v56, %v8666_v3  ;;  %v716_v45 = vsel %vm714_vm12, %v704_v10, 2102212464 }
 0x125   :  { %vm9392_vm3 = vcmp.le.f32.partialorder %v16039_v53, 0.7853982  ;;  %v489_v38 = vand.u32 2147483647, %v488_v28  ;;  %v753_v15 = vshrl.u32 %v722_v31, 16  ;;  %v732_v1 = vmul.u32 %v730_v2, %v728_v9 }
 0x126   :  { %v498_v18 = vsel %vm9392_vm3, 0, %v496_v13  ;;  %vm628_vm8 = vcmp.lt.s32.totalorder %v9396_v27, 0  ;;  %v629_v49 = vsub.s32 0, %v9396_v27  ;;  %v733_v17 = vmul.u32 %v731_v54, %v728_v9 }
 0x127   :  { %v492_v6 = vmul.f32 %v491_v59, %v489_v38  ;;  %v9408_v35 = vmul.u32 %v730_v2, %v729_v30  ;;  %v9410_v47 = vand.u32 3, %v498_v18  ;;  %v619_v14 = vadd.s32 %v9333_v41, %v9331_v33 }
 0x128   :  { %v630_v3 = vsel %vm628_vm8, %v629_v49, %v9396_v27  ;;  %v752_v5 = vand.u32 65535, %v722_v31  ;;  %v715_v8 = vsel %vm711_vm5, %v695_v4, %v698_v16  ;;  %v736_v10 = vshll.u32 %v733_v17, 16 }
 0x129   :  { %v493_v13 = vxor.u32 2147483648, %v492_v6  ;;  %v631_v62 = vclz %v630_v3  ;;  %v717_v28 = vsel %vm713_vm15, %v701_v58, %v716_v45  ;;  %v735_v53 = vmul.u32 %v731_v54, %v729_v30 }
 0x12a   :  { %v738_v2 = vshll.u32 %v9408_v35, 16  ;;  %v9420_v38 = vmul.u32 %v753_v15, %v728_v9  ;;  %vm740_vm12 = vc.u32 %v732_v1, %v736_v10  ;;  %v742_v31 = vadd.s32 %v736_v10, %v732_v1 }
 0x12b   :  { %v494_v33 = vsel %vm373_vm0, %v493_v13, %v492_v6  ;;  %v7956_v41 = vadd.s32 4294967294, %v631_v62  ;;  %v741_v16 = vsel %vm740_vm12, 1, %v16038_v24  ;;  %v754_v18 = vmul.u32 %v752_v5, %v728_v9 }
 0x12c   :  { %v9427_v59 = vsel %vm9392_vm3, %v8624_v20, %v494_v33  ;;  %v756_v58 = vmul.u32 %v752_v5, %v729_v30  ;;  %v743_v4 = vadd.s32 %v741_v16, %v735_v53  ;;  %vm744_vm5 = vc.u32 %v742_v31, %v738_v2 }
 0x12d   :  { %v499_v54 = vmul.f32 %v9427_v59, %v9427_v59  ;;  %vm7957_vm7 = vcmp.lt.s32.totalorder %v7956_v41, 0  ;;  %v737_v45 = vshrl.u32 %v733_v17, 16  ;;  %v745_v6 = vsel %vm744_vm5, 1, %v16038_v24 }
 0x12e   :  { %v634_v49 = vsel %vm7957_vm7, 0, %v7956_v41  ;;  %v758_v1 = vshll.u32 %v9420_v38, 16  ;;  %v757_v62 = vmul.u32 %v753_v15, %v729_v30  ;;  %vm527_vm15 = vcmp.lt.s32.totalorder %v8637_v36, 0 }
 0x12f   :  { %v500_v3 = vmul.f32 -0.001358992, %v499_v54  ;;  %v507_v48 = vmul.f32 -0.00019511016, %v499_v54  ;;  %v635_v13 = vsub.s32 32, %v634_v49  ;;  %v636_v9 = vshll.u32 %v9396_v27, %v634_v49 }
 0x130   :  { %v639_v5 = vsub.s32 4294967266, %v634_v49  ;;  %v747_v10 = vadd.s32 %v745_v6, %v743_v4  ;;  %v760_v33 = vshll.u32 %v756_v58, 16  ;;  %vm762_vm0 = vc.u32 %v754_v18, %v758_v1 }
 0x131   :  { %v501_v60 = vadd.f32 0.041655596, %v500_v3  ;;  %v508_v53 = vadd.f32 0.008332121, %v507_v48  ;;  %v637_v2 = vshrl.u32 %v619_v14, %v635_v13  ;;  %v763_v31 = vsel %vm762_vm0, 1, %v16038_v24 }
 0x132   :  { %v640_v17 = vadd.s32 127, %v639_v5  ;;  %v748_v41 = vadd.s32 %v747_v10, %v737_v45  ;;  %v764_v16 = vadd.s32 %v758_v1, %v754_v18  ;;  %v718_v30 = vsel %vm712_vm2, %v715_v8, %v717_v28 }
 0x133   :  { %v502_v26 = vmul.f32 %v501_v60, %v499_v54  ;;  %v509_v57 = vmul.f32 %v508_v53, %v499_v54  ;;  %v765_v15 = vadd.s32 %v763_v31, %v757_v62  ;;  %vm520_vm3 = vcmp.eq.s32.totalorder %v9410_v47, 2 }
 0x134   :  { %v638_v27 = vor.u32 %v637_v2, %v636_v9  ;;  %v641_v4 = vshll.u32 %v640_v17, 23  ;;  %v739_v49 = vshrl.u32 %v9408_v35, 16  ;;  %vm766_vm8 = vc.u32 %v764_v16, %v760_v33 }
 0x135   :  { %v503_v14 = vadd.f32 -0.4999988, %v502_v26  ;;  %v510_v6 = vadd.f32 -0.16666654, %v509_v57  ;;  %v649_v45 = vsub.s32 4, %v9366_v39  ;;  %v767_v3 = vsel %vm766_vm8, 1, %v16038_v24 }
 0x136   :  { %vm517_vm12 = vcmp.eq.s32.totalorder %v9410_v47, 0  ;;  %v16042_v60 = vand.u32 2147483647, %v8637_v36  ;;  %v642_v8 = vor.u32 4788187, %v641_v4  ;;  %v9450_v28 = vadd.s32 %v748_v41, %v739_v49 }
 0x137   :  { %v759_v35 = vshrl.u32 %v9420_v38, 16  ;;  %v769_v18 = vadd.s32 %v767_v3, %v765_v15  ;;  %vm3154_vm2 = vcmp.gt.s32.totalorder %v9296_v7, 0  ;;  %v504_v57 = vmul.f32 %v503_v14, %v499_v54 }
 0x138   :  { %vm9446_vm7 = vcmp.le.f32.partialorder %v16042_v60, 0.7853982  ;;  %v511_v26 = vmul.f32 %v510_v6, %v499_v54  ;;  %vm516_vm5 = vcmp.lt.s32.totalorder %v9410_v47, 2  ;;  %vm5311_vm0 = vcmask 523264  }
 0x139   :  { %v761_v1 = vshrl.u32 %v756_v58, 16  ;;  %vm514_vm8 = vweird.f32 %v8624_v20  ;;  %v643_v48 = vand.u32 2147483647, %v642_v8  ;;  %v645_v13 = vcvt.s32.f32 %v638_v27 }
 0x13a   :  { %v9456_v62 = vadd.s32 %v764_v16, %v760_v33  ;;  %v770_v9 = vadd.s32 %v769_v18, %v759_v35  ;;  %v505_v5 = vadd.f32 1.0, %v504_v57  ;;  %v512_v10 = vadd.f32 1.0, %v511_v26 }
 0x13b   :  { %v650_v38 = vsel %vm527_vm15, %v649_v45, %v9366_v39  ;;  %v833_v53 = vand.u32 2147483647, %v8641_v43  ;;  %v646_v54 = vmul.f32 %v645_v13, %v643_v48  ;;  %v850_v58 = vshll.u32 %v16031_v56, %v8765_v37 }
 0x13c   :  { %v771_v2 = vadd.s32 %v770_v9, %v761_v1  ;;  %vm774_vm10 = vc.u32 %v9450_v28, %v9456_v62  ;;  %v513_v33 = vmul.f32 %v512_v10, %v9427_v59  ;;  %v521_v17 = vxor.u32 2147483648, %v505_v5 }
 0x13d   :  { %v851_v41 = vshrl.u32 %v16033_v23, %v8788_v21  ;;  %v853_v31 = vshll.u32 %v16033_v23, %v8765_v37  ;;  %v647_v39 = vxor.u32 2147483648, %v646_v54  ;;  %v772_v16 = vmul.u32 %v9386_v42, %v718_v30 }
 0x13e   :  { %v775_v15 = vadd.s32 1, %v771_v2  ;;  %v854_v27 = vshrl.u32 %v16034_v40, %v8788_v21  ;;  %v518_v4 = vxor.u32 2147483648, %v513_v33  ;;  %v522_v49 = vsel %vm520_vm3, %v521_v17, %v513_v33  ;;  %v16045_v33 = vld [vmem:[#allocation44_spill] sm:$0xff]  ;;  %v16046_v17 = vld [vmem:[#allocation38_spill] sm:$0xff] }
 0x13f   :  { %v840_v59 = vand.u32 8388607, %v833_v53  ;;  %v856_v14 = vshll.u32 %v16034_v40, %v8765_v37  ;;  %v648_v6 = vsel %vm527_vm15, %v647_v39, %v646_v54  ;;  %v9482_v3 = vor.u32 %v851_v41, %v850_v58 }
 0x140   :  { %v776_v45 = vsel %vm774_vm10, %v775_v15, %v771_v2  ;;  %v857_v42 = vshrl.u32 %v15958_v0, %v8788_v21  ;;  %v519_v30 = vsel %vm517_vm12, %v505_v5, %v518_v4  ;;  %v9491_v60 = vsel %vm9446_vm7, %v8637_v36, %v648_v6 }
 0x141   :  { %v777_v8 = vadd.s32 %v776_v45, %v772_v16  ;;  %v855_v35 = vor.u32 %v854_v27, %v853_v31  ;;  %v523_v37 = vsel %vm516_vm5, %v519_v30, %v522_v49  ;;  %v653_v18 = vmul.f32 %v9491_v60, %v9491_v60 }
 0x142   :  { %v858_v57 = vor.u32 %v857_v42, %v856_v14  ;;  %vm865_vm10 = vcmp.lt.s32.totalorder %v8803_v11, 1  ;;  %v524_v26 = vsel %vm514_vm8, nan, %v523_v37  ;;  %v652_v1 = vsel %vm9446_vm7, 0, %v650_v38 }
 0x143   :  { %v778_v48 = vadd.s32 536870912, %v777_v8  ;;  %v841_v13 = vor.u32 8388608, %v840_v59  ;;  %v9505_v9 = vsel %vm3154_vm2, %v9296_v7, 0  ;;  %8048 = vmatmul.msk.f32.vlgmr.msra.gmra.mxu0 %vm5311_vm0, %v524_v26  ;;  %v654_v47 = vmul.f32 -0.001358992, %v653_v18 }
 0x144   :  { %v661_v5 = vmul.f32 -0.00019511016, %v653_v18  ;;  %vm867_vm15 = vcmp.lt.s32.totalorder %v8803_v11, 3  ;;  %v9510_v10 = vadd.s32 4294967169, %v9326_v51  ;;  %vm866_vm3 = vcmp.lt.s32.totalorder %v8803_v11, 2 }
 0x145   :  { %v779_v20 = vshrl.u32 %v778_v48, 30  ;;  %v877_v32 = vsel %vm865_vm10, %v855_v35, %v858_v57  ;;  %v655_v38 = vadd.f32 0.041655596, %v654_v47  ;;  %v9515_v2 = vand.u32 3, %v652_v1 }
 0x146   :  { %v662_v54 = vadd.f32 0.008332121, %v661_v5  ;;  %v873_v7 = vsel %vm865_vm10, %v9482_v3, %v855_v35  ;;  %v875_v51 = vsel %vm867_vm15, %v858_v57, %v8886_v19  ;;  %v879_v41 = vsel %vm867_vm15, %v16046_v17, %v16045_v33 }
 0x147   :  { %v780_v58 = vshll.u32 %v779_v20, 30  ;;  %v9527_v31 = vshll.u32 %v841_v13, 8  ;;  %v656_v39 = vmul.f32 %v655_v38, %v653_v18  ;;  %vm681_vm12 = vcmp.lt.s32.totalorder %v8628_v22, 0 }
 0x148   :  { %v663_v16 = vmul.f32 %v662_v54, %v653_v18  ;;  %v880_v15 = vsel %vm866_vm3, %v877_v32, %v879_v41  ;;  %v849_v4 = vshrl.u32 %v16031_v56, %v8788_v21  ;;  %vm674_vm7 = vcmp.eq.s32.totalorder %v9515_v2, 2 }
 0x149   :  { %v9532_v27 = vsub.s32 %v777_v8, %v780_v58  ;;  %v882_v19 = vand.u32 65535, %v9527_v31  ;;  %v883_v49 = vshrl.u32 %v9527_v31, 16  ;;  %v657_v59 = vadd.f32 -0.4999988, %v656_v39 }
 0x14a   :  { %v664_v14 = vadd.f32 -0.16666654, %v663_v16  ;;  %v876_v6 = vsel %vm866_vm3, %v873_v7, %v875_v51  ;;  %v884_v45 = vand.u32 65535, %v880_v15  ;;  %vm671_vm2 = vcmp.eq.s32.totalorder %v9515_v2, 0 }
 0x14b   :  { %vm782_vm5 = vcmp.lt.s32.totalorder %v9532_v27, 0  ;;  %v783_v42 = vsub.s32 0, %v9532_v27  ;;  %v803_v30 = vsub.s32 4, %v779_v20  ;;  %v885_v21 = vshrl.u32 %v880_v15, 16 }
 0x14c   :  { %v658_v8 = vmul.f32 %v657_v59, %v653_v18  ;;  %v665_v37 = vmul.f32 %v664_v14, %v653_v18  ;;  %vm670_vm8 = vcmp.lt.s32.totalorder %v9515_v2, 2  ;;  %v773_v26 = vadd.s32 %v9456_v62, %v9450_v28 }
 0x14d   :  { %v870_v1 = vsel %vm868_vm6, %v858_v57, 2102212464  ;;  %v784_v48 = vsel %vm782_vm5, %v783_v42, %v9532_v27  ;;  %v886_v13 = vmul.u32 %v884_v45, %v882_v19  ;;  %v9551_v47 = vmul.u32 %v884_v45, %v883_v49 }
 0x14e   :  { %v906_v5 = vand.u32 65535, %v876_v6  ;;  %v659_v32 = vadd.f32 1.0, %v658_v8  ;;  %v666_v38 = vadd.f32 1.0, %v665_v37  ;;  %v785_v54 = vclz %v784_v48  ;;  %v302_v8 = vpop.xlane.xlu2 %301 }
 0x14f   :  { %v887_v18 = vmul.u32 %v885_v21, %v882_v19  ;;  %v9555_v7 = vsel %vm681_vm12, %v803_v30, %v779_v20  ;;  %v869_v28 = vsel %vm865_vm10, %v849_v4, %v9482_v3  ;;  %v871_v62 = vsel %vm867_vm15, %v855_v35, %v870_v1 }
 0x150   :  { %v907_v57 = vshrl.u32 %v876_v6, 16  ;;  %v667_v58 = vmul.f32 %v666_v38, %v9491_v60  ;;  %v675_v51 = vxor.u32 2147483648, %v659_v32  ;;  %v7959_v33 = vadd.s32 4294967294, %v785_v54 }
 0x151   :  { %v890_v17 = vshll.u32 %v887_v18, 16  ;;  %v889_v41 = vmul.u32 %v885_v21, %v883_v49  ;;  %v892_v39 = vshll.u32 %v9551_v47, 16  ;;  %v908_v16 = vmul.u32 %v906_v5, %v882_v19 }
 0x152   :  { %v909_v15 = vmul.u32 %v907_v57, %v882_v19  ;;  %v672_v20 = vxor.u32 2147483648, %v667_v58  ;;  %vm7960_vm6 = vcmp.lt.s32.totalorder %v7959_v33, 0  ;;  %v910_v59 = vmul.u32 %v906_v5, %v883_v49 }
 0x153   :  { %vm894_vm5 = vc.u32 %v886_v13, %v890_v17  ;;  %v676_v3 = vsel %vm674_vm7, %v675_v51, %v667_v58  ;;  %v788_v4 = vsel %vm7960_vm6, 0, %v7959_v33  ;;  %v896_v14 = vadd.s32 %v890_v17, %v886_v13 }
 0x154   :  { %v895_v35 = vsel %vm894_vm5, 1, %v16038_v24  ;;  %v673_v60 = vsel %vm671_vm2, %v659_v32, %v672_v20  ;;  %v789_v6 = vsub.s32 32, %v788_v4  ;;  %v790_v45 = vshll.u32 %v9532_v27, %v788_v4  ;;  %v16051_v20 = vld [vmem:[#allocation12_spill] sm:$0xff] }
 0x155   :  { %v793_v42 = vsub.s32 4294967266, %v788_v4  ;;  %v677_v19 = vsel %vm670_vm8, %v673_v60, %v676_v3  ;;  %v897_v30 = vadd.s32 %v895_v35, %v889_v41  ;;  %vm898_vm10 = vc.u32 %v896_v14, %v892_v39 }
 0x156   :  { %v912_v21 = vshll.u32 %v909_v15, 16  ;;  %v678_v37 = vsel %vm668_vm4, nan, %v677_v19  ;;  %v791_v1 = vshrl.u32 %v773_v26, %v789_v6  ;;  %v899_v13 = vsel %vm898_vm10, 1, %v16038_v24  ;;  %v16053_v19 = vld [vmem:[#allocation15_spill] sm:$0xff] }
 0x157   :  { %v794_v48 = vadd.s32 127, %v793_v42  ;;  %8049 = vmatmul.msk.f32.gmra.mxu0 %vm5311_vm0, %v678_v37  ;;  %v891_v5 = vshrl.u32 %v887_v18, 16  ;;  %v901_v32 = vadd.s32 %v899_v13, %v897_v30  ;;  %v911_v27 = vmul.u32 %v907_v57, %v883_v49  ;;  %v16052_v42 = vld [vmem:[#allocation14_spill] sm:$0xff] }
 0x158   :  { %v914_v38 = vshll.u32 %v910_v59, 16  ;;  %v792_v54 = vor.u32 %v791_v1, %v790_v45  ;;  %vm916_vm15 = vc.u32 %v908_v16, %v912_v21  ;;  %v918_v58 = vadd.s32 %v912_v21, %v908_v16 }
 0x159   :  { %v795_v2 = vshll.u32 %v794_v48, 23  ;;  %v9577_v51 = vmul.f32 %v8618_v12, %v302_v8  ;;  %v16048_v36 = vand.u32 2147483647, %v8628_v22  ;;  %v902_v33 = vadd.s32 %v901_v32, %v891_v5  ;;  %v305_v5 = vpop.xlane.xlu0 %304 }
 0x15a   :  { %v917_v17 = vsel %vm916_vm15, 1, %v16038_v24  ;;  %v872_v49 = vsel %vm866_vm3, %v869_v28, %v871_v62  ;;  %vm920_vm7 = vc.u32 %v918_v58, %v914_v38  ;;  %v893_v39 = vshrl.u32 %v9551_v47, 16 }
 0x15b   :  { %16047 = vst [vmem:[#allocation44_spill] sm:$0xff] %v9577_v51  ;;  %vm9581_vm4 = vcmp.le.f32.partialorder %v16048_v36, 0.7853982  ;;  %v796_v18 = vor.u32 4788187, %v795_v2  ;;  %v919_v57 = vadd.s32 %v917_v17, %v911_v27  ;;  %v921_v16 = vsel %vm920_vm7, 1, %v16038_v24 }
 0x15c   :  { %v806_v41 = vsel %vm9581_vm4, 0, %v9555_v7  ;;  %v15866_v3 = vand.u32 2147483647, %v16051_v20  ;;  %v799_v35 = vcvt.s32.f32 %v792_v54  ;;  %v913_v14 = vshrl.u32 %v909_v15, 16  ;;  %v16055_v36 = vld [vmem:[#allocation24_spill] sm:$0xff] }
 0x15d   :  { %v797_v4 = vand.u32 2147483647, %v796_v18  ;;  %v923_v60 = vadd.s32 %v921_v16, %v919_v57  ;;  %v9594_v6 = vadd.s32 %v902_v33, %v893_v39  ;;  %v915_v11 = vshrl.u32 %v910_v59, 16  ;;  %v16056_v33 = vld [vmem:[#allocation18_spill] sm:$0xff] }
 0x15e   :  { %v9596_v28 = vadd.s32 %v918_v58, %v914_v38  ;;  %v994_v62 = vand.u32 8388607, %v15866_v3  ;;  %v1004_v47 = vshll.u32 %v16031_v56, %v16052_v42  ;;  %v1005_v30 = vshrl.u32 %v16033_v23, %v16053_v19  ;;  %v16054_v38 = vld [vmem:[#allocation17_spill] sm:$0xff] }
 0x15f   :  { %v800_v45 = vmul.f32 %v799_v35, %v797_v4  ;;  %v924_v7 = vadd.s32 %v923_v60, %v913_v14  ;;  %v1007_v15 = vshll.u32 %v16033_v23, %v16052_v42  ;;  %v1008_v59 = vshrl.u32 %v16034_v40, %v16053_v19  ;;  %v16058_v35 = vld [vmem:[#allocation22_spill] sm:$0xff] }
 0x160   :  { %v995_v21 = vor.u32 8388608, %v994_v62  ;;  %v1010_v8 = vshll.u32 %v16034_v40, %v16052_v42  ;;  %v926_v48 = vmul.u32 %v9527_v31, %v872_v49  ;;  %v1011_v13 = vshrl.u32 %v15958_v0, %v16053_v19 }
 0x161   :  { %v801_v37 = vxor.u32 2147483648, %v800_v45  ;;  %v925_v1 = vadd.s32 %v924_v7, %v915_v11  ;;  %vm928_vm3 = vc.u32 %v9594_v6, %v9596_v28  ;;  %v9615_v32 = vor.u32 %v1005_v30, %v1004_v47 }
 0x162   :  { %v9617_v27 = vor.u32 %v1008_v59, %v1007_v15  ;;  %vm1021_vm2 = vcmp.lt.s32.totalorder %v16054_v38, 3  ;;  %v9622_v58 = vor.u32 %v1011_v13, %v1010_v8  ;;  %vm1019_vm8 = vcmp.lt.s32.totalorder %v16054_v38, 1 }
 0x163   :  { %v802_v54 = vsel %vm681_vm12, %v801_v37, %v800_v45  ;;  %v929_v2 = vadd.s32 1, %v925_v1  ;;  %vm1020_vm6 = vcmp.lt.s32.totalorder %v16054_v38, 2  ;;  %v1033_v17 = vsel %vm1021_vm2, %v16056_v33, %v16055_v36 }
 0x164   :  { %v9628_v31 = vsel %vm9581_vm4, %v8628_v22, %v802_v54  ;;  %v9635_v18 = vshll.u32 %v995_v21, 8  ;;  %v9639_v49 = vor.u32 %v9337_v63, %v9320_v25  ;;  %v9642_v57 = vmul.f32 %v8618_v12, %v305_v5 }
 0x165   :  { %v807_v26 = vmul.f32 %v9628_v31, %v9628_v31  ;;  %v930_v39 = vsel %vm928_vm3, %v929_v2, %v925_v1  ;;  %v1027_v4 = vsel %vm1019_vm8, %v9615_v32, %v9617_v27  ;;  %v1029_v14 = vsel %vm1021_vm2, %v9622_v58, %v16058_v35 }
 0x166   :  { %16057 = vst [vmem:[#allocation38_spill] sm:$0xff] %v9642_v57  ;;  %v931_v16 = vadd.s32 %v930_v39, %v926_v48  ;;  %v1031_v25 = vsel %vm1019_vm8, %v9617_v27, %v9622_v58  ;;  %v9658_v11 = vand.u32 3, %v806_v41  ;;  %v1036_v7 = vand.u32 65535, %v9635_v18 }
 0x167   :  { %v808_v63 = vmul.f32 -0.001358992, %v807_v26  ;;  %v815_v60 = vmul.f32 -0.00019511016, %v807_v26  ;;  %v1034_v62 = vsel %vm1020_vm6, %v1031_v25, %v1033_v17  ;;  %v1037_v42 = vshrl.u32 %v9635_v18, 16 }
 0x168   :  { %v932_v45 = vadd.s32 536870912, %v931_v16  ;;  %v1038_v47 = vand.u32 65535, %v1034_v62  ;;  %v1030_v15 = vsel %vm1020_vm6, %v1027_v4, %v1029_v14  ;;  %v1039_v59 = vshrl.u32 %v1034_v62, 16 }
 0x169   :  { %v809_v30 = vadd.f32 0.041655596, %v808_v63  ;;  %v816_v21 = vadd.f32 0.008332121, %v815_v60  ;;  %v2866_v8 = vor.u32 %v9362_v55, %v9324_v61  ;;  %v9669_v41 = vshrl.u32 %v9505_v9, 5 }
 0x16a   :  { %v9671_v37 = vshrl.u32 %v932_v45, 30  ;;  %v1040_v1 = vmul.u32 %v1038_v47, %v1036_v7  ;;  %v1041_v5 = vmul.u32 %v1039_v59, %v1036_v7  ;;  %v9673_v54 = vmul.u32 %v1038_v47, %v1037_v42 }
 0x16b   :  { %v810_v48 = vmul.f32 %v809_v30, %v807_v26  ;;  %v817_v13 = vmul.f32 %v816_v21, %v807_v26  ;;  %v9676_v2 = vand.u32 31, %v9505_v9  ;;  %v9679_v36 = vadd.s32 1, %v9510_v10 }
 0x16c   :  { %v934_v33 = vshll.u32 %v9671_v37, 30  ;;  %v1061_v17 = vshrl.u32 %v1030_v15, 16  ;;  %vm828_vm12 = vcmp.eq.s32.totalorder %v9658_v11, 2  ;;  %v1043_v35 = vmul.u32 %v1039_v59, %v1037_v42 }
 0x16d   :  { %v811_v39 = vadd.f32 -0.4999988, %v810_v48  ;;  %v818_v4 = vadd.f32 -0.16666654, %v817_v13  ;;  %v1044_v14 = vshll.u32 %v1041_v5, 16  ;;  %vm825_vm5 = vcmp.eq.s32.totalorder %v9658_v11, 0 }
 0x16e   :  { %v927_v25 = vadd.s32 %v9596_v28, %v9594_v6  ;;  %v9686_v63 = vsub.s32 %v931_v16, %v934_v33  ;;  %v1003_v9 = vshrl.u32 %v16031_v56, %v16053_v19  ;;  %v1060_v10 = vand.u32 65535, %v1030_v15 }
 0x16f   :  { %v812_v60 = vmul.f32 %v811_v39, %v807_v26  ;;  %v819_v62 = vmul.f32 %v818_v4, %v807_v26  ;;  %vm824_vm10 = vcmp.lt.s32.totalorder %v9658_v11, 2  ;;  %v1046_v45 = vshll.u32 %v9673_v54, 16 }
 0x170   :  { %vm1048_vm15 = vc.u32 %v1040_v1, %v1044_v14  ;;  %vm822_vm4 = vweird.f32 %v8628_v22  ;;  %vm936_vm7 = vcmp.lt.s32.totalorder %v9686_v63, 0  ;;  %v937_v47 = vsub.s32 0, %v9686_v63 }
 0x171   :  { %v1049_v6 = vsel %vm1048_vm15, 1, %v16038_v24  ;;  %v1063_v28 = vmul.u32 %v1061_v17, %v1036_v7  ;;  %v813_v16 = vadd.f32 1.0, %v812_v60  ;;  %v820_v30 = vadd.f32 1.0, %v819_v62 }
 0x172   :  { %v1050_v19 = vadd.s32 %v1044_v14, %v1040_v1  ;;  %v1051_v21 = vadd.s32 %v1049_v6, %v1043_v35  ;;  %v938_v26 = vsel %vm936_vm7, %v937_v47, %v9686_v63  ;;  %v1023_v15 = vsel %vm1019_vm8, %v1003_v9, %v9615_v32 }
 0x173   :  { %v1045_v59 = vshrl.u32 %v1041_v5, 16  ;;  %v1062_v48 = vmul.u32 %v1060_v10, %v1036_v7  ;;  %v821_v13 = vmul.f32 %v820_v30, %v9628_v31  ;;  %v829_v33 = vxor.u32 2147483648, %v813_v16 }
 0x174   :  { %v939_v39 = vclz %v938_v26  ;;  %vm1052_vm3 = vc.u32 %v1050_v19, %v1046_v45  ;;  %v1064_v3 = vmul.u32 %v1060_v10, %v1037_v42  ;;  %v1065_v60 = vmul.u32 %v1061_v17, %v1037_v42 }
 0x175   :  { %v1053_v4 = vsel %vm1052_vm3, 1, %v16038_v24  ;;  %v1066_v62 = vshll.u32 %v1063_v28, 16  ;;  %v826_v1 = vxor.u32 2147483648, %v821_v13  ;;  %v1024_v14 = vsel %vm1022_vm9, %v9622_v58, 2102212464 }
 0x176   :  { %v7962_v35 = vadd.s32 4294967294, %v939_v39  ;;  %v1055_v47 = vadd.s32 %v1053_v4, %v1051_v21  ;;  %v830_v32 = vsel %vm828_vm12, %v829_v33, %v821_v13  ;;  %v1047_v31 = vshrl.u32 %v9673_v54, 16  ;;  %v16059_v39 = vld [vmem:[#allocation13_spill] sm:$0xff] }
 0x177   :  { %v1068_v7 = vshll.u32 %v1064_v3, 16  ;;  %vm1070_vm8 = vc.u32 %v1062_v48, %v1066_v62  ;;  %v827_v5 = vsel %vm825_vm5, %v813_v16, %v826_v1  ;;  %v1072_v58 = vadd.s32 %v1066_v62, %v1062_v48  ;;  %v16061_v1 = vld [vmem:[#allocation10_spill] sm:$0xff] }
 0x178   :  { %vm7963_vm15 = vcmp.lt.s32.totalorder %v7962_v35, 0  ;;  %v1056_v42 = vadd.s32 %v1055_v47, %v1045_v59  ;;  %v1071_v17 = vsel %vm1070_vm8, 1, %v16038_v24  ;;  %v831_v9 = vsel %vm824_vm10, %v827_v5, %v830_v32  ;;  %v16062_v5 = vld [vmem:[#allocation21_spill] sm:$0xff] }
 0x179   :  { %v942_v10 = vsel %vm7963_vm15, 0, %v7962_v35  ;;  %v1073_v45 = vadd.s32 %v1071_v17, %v1065_v60  ;;  %v832_v6 = vsel %vm822_vm4, nan, %v831_v9  ;;  %v1025_v19 = vsel %vm1021_vm2, %v9617_v27, %v1024_v14 }
 0x17a   :  { %v943_v30 = vsub.s32 32, %v942_v10  ;;  %v947_v54 = vsub.s32 4294967266, %v942_v10  ;;  %8050 = vmatmul.msk.f32.gmra.mxu0 %vm5311_vm0, %v832_v6  ;;  %v944_v16 = vshll.u32 %v9686_v63, %v942_v10  ;;  %v9720_v21 = vadd.s32 %v1056_v42, %v1047_v31  ;;  %v16063_v10 = vld [vmem:[#allocation23_spill] sm:$0xff] }
 0x17b   :  { %v1067_v11 = vshrl.u32 %v1063_v28, 16  ;;  %vm1074_vm9 = vc.u32 %v1072_v58, %v1068_v7  ;;  %vm2870_vm12 = vcmp.lt.s32.totalorder %v9223_v44, 4  ;;  %v9724_v48 = vadd.s32 %v1072_v58, %v1068_v7 }
 0x17c   :  { %v945_v26 = vshrl.u32 %v927_v25, %v943_v30  ;;  %v948_v59 = vadd.s32 127, %v947_v54  ;;  %v1075_v22 = vsel %vm1074_vm9, 1, %v16038_v24  ;;  %v1026_v13 = vsel %vm1020_vm6, %v1023_v15, %v1025_v19  ;;  %v16060_v25 = vld [vmem:[#allocation27_spill] sm:$0xff] }
 0x17d   :  { %v1069_v27 = vshrl.u32 %v1064_v3, 16  ;;  %v1077_v33 = vadd.s32 %v1075_v22, %v1073_v45  ;;  %v1141_v4 = vand.u32 2147483647, %v16059_v39  ;;  %v3454_v63 = vand.u32 2139095040, %v9577_v51 }
 0x17e   :  { %v3608_v28 = vand.u32 2139095040, %v9642_v57  ;;  %v946_v60 = vor.u32 %v945_v26, %v944_v16  ;;  %v949_v62 = vshll.u32 %v948_v59, 23  ;;  %vm835_vm2 = vcmp.lt.s32.totalorder %v8641_v43, 0 }
 0x17f   :  { %v235_v35 = vmul.f32 %v16061_v1, %v16060_v25  ;;  %v1078_v14 = vadd.s32 %v1077_v33, %v1067_v11  ;;  %v1148_v38 = vand.u32 8388607, %v1141_v4  ;;  %v957_v3 = vsub.s32 4, %v9671_v37  ;;  %v16064_v11 = vld [vmem:[#allocation25_spill] sm:$0xff] }
 0x180   :  { %v950_v15 = vor.u32 4788187, %v949_v62  ;;  %v1080_v47 = vmul.u32 %v9635_v18, %v1026_v13  ;;  %vm1082_vm6 = vc.u32 %v9720_v21, %v9724_v48  ;;  %v1161_v42 = vshll.u32 %v16033_v23, %v16062_v5  ;;  %v16066_v62 = vld [vmem:[#allocation28_spill] sm:$0xff] }
 0x181   :  { %v321_v32 = vsel %vm15892_vm1, %v235_v35, 0.0  ;;  %v1079_v31 = vadd.s32 %v1078_v14, %v1069_v27  ;;  %v1149_v7 = vor.u32 8388608, %v1148_v38  ;;  %v953_v9 = vcvt.s32.f32 %v946_v60  ;;  %v16065_v60 = vld [vmem:[#allocation34_spill] sm:$0xff] }
 0x182   :  { %v951_v17 = vand.u32 2147483647, %v950_v15  ;;  %322 = vadd.xlane.f32.xlu0 %v321_v32  ;;  %v1162_v58 = vshrl.u32 %v16034_v40, %v16063_v10  ;;  %v1164_v45 = vshll.u32 %v16034_v40, %v16062_v5  ;;  %v1158_v6 = vshll.u32 %v16031_v56, %v16062_v5 }
 0x183   :  { %v1083_v18 = vadd.s32 1, %v1079_v31  ;;  %v1159_v30 = vshrl.u32 %v16033_v23, %v16063_v10  ;;  %v1165_v54 = vshrl.u32 %v15958_v0, %v16063_v10  ;;  %vm1173_vm5 = vcmp.lt.s32.totalorder %v16064_v11, 1 }
 0x184   :  { %v954_v19 = vmul.f32 %v953_v9, %v951_v17  ;;  %v1163_v16 = vor.u32 %v1162_v58, %v1161_v42  ;;  %vm1175_vm10 = vcmp.lt.s32.totalorder %v16064_v11, 3  ;;  %v958_v26 = vsel %vm835_vm2, %v957_v3, %v9671_v37 }
 0x185   :  { %v1084_v59 = vsel %vm1082_vm6, %v1083_v18, %v1079_v31  ;;  %v1166_v22 = vor.u32 %v1165_v54, %v1164_v45  ;;  %v9761_v13 = vshll.u32 %v1149_v7, 8  ;;  %vm1174_vm4 = vcmp.lt.s32.totalorder %v16064_v11, 2 }
 0x186   :  { %v955_v27 = vxor.u32 2147483648, %v954_v19  ;;  %v1085_v33 = vadd.s32 %v1084_v59, %v1080_v47  ;;  %v1187_v25 = vsel %vm1175_vm10, %v16066_v62, %v16065_v60  ;;  %v9771_v37 = vsel %vm2870_vm12, %v9639_v49, 920167782 }
 0x187   :  { %vm9775_vm7 = vcmp.le.f32.partialorder %v833_v53, 0.7853982  ;;  %v1160_v14 = vor.u32 %v1159_v30, %v1158_v6  ;;  %v1185_v38 = vsel %vm1173_vm5, %v1163_v16, %v1166_v22  ;;  %v1157_v32 = vshrl.u32 %v16031_v56, %v16063_v10  ;;  %v16069_v6 = vld [vmem:[#allocation32_spill] sm:$0xff] }
 0x188   :  { %v956_v15 = vsel %vm835_vm2, %v955_v27, %v954_v19  ;;  %v960_v3 = vsel %vm9775_vm7, 0, %v958_v26  ;;  %v1086_v47 = vadd.s32 536870912, %v1085_v33  ;;  %v1188_v31 = vsel %vm1174_vm4, %v1185_v38, %v1187_v25 }
 0x189   :  { %v9790_v53 = vsel %vm9775_vm7, %v8641_v43, %v956_v15  ;;  %v1190_v7 = vand.u32 65535, %v9761_v13  ;;  %v9796_v5 = vshrl.u32 %v9761_v13, 16  ;;  %v1192_v9 = vand.u32 65535, %v1188_v31 }
 0x18a   :  { %v961_v42 = vmul.f32 %v9790_v53, %v9790_v53  ;;  %v9800_v17 = vshrl.u32 %v1086_v47, 30  ;;  %v1193_v10 = vshrl.u32 %v1188_v31, 16  ;;  %v9807_v58 = vsel %vm2870_vm12, %v2866_v8, 1326507024 }
 0x18b   :  { %v1178_v45 = vsel %vm1176_vm14, %v1166_v22, 2102212464  ;;  %v1181_v18 = vsel %vm1173_vm5, %v1160_v14, %v1163_v16  ;;  %v1183_v30 = vsel %vm1175_vm10, %v1166_v22, %v16069_v6  ;;  %v9816_v26 = vand.u32 3, %v960_v3 }
 0x18c   :  { %v962_v54 = vmul.f32 -0.001358992, %v961_v42  ;;  %v969_v19 = vmul.f32 -0.00019511016, %v961_v42  ;;  %v1088_v61 = vshll.u32 %v9800_v17, 30  ;;  %v1177_v55 = vsel %vm1173_vm5, %v1157_v32, %v1160_v14 }
 0x18d   :  { %v1194_v8 = vmul.u32 %v1192_v9, %v1190_v7  ;;  %v1195_v59 = vmul.u32 %v1193_v10, %v1190_v7  ;;  %v9822_v27 = vmul.u32 %v1192_v9, %v9796_v5  ;;  %v1184_v22 = vsel %vm1174_vm4, %v1181_v18, %v1183_v30 }
 0x18e   :  { %v963_v60 = vadd.f32 0.041655596, %v962_v54  ;;  %v970_v62 = vadd.f32 0.008332121, %v969_v19  ;;  %v9824_v25 = vsub.s32 %v1085_v33, %v1088_v61  ;;  %v1179_v35 = vsel %vm1175_vm10, %v1163_v16, %v1178_v45 }
 0x18f   :  { %v1197_v38 = vmul.u32 %v1193_v10, %v9796_v5  ;;  %v1198_v15 = vshll.u32 %v1195_v59, 16  ;;  %v1200_v14 = vshll.u32 %v9822_v27, 16  ;;  %v1214_v31 = vand.u32 65535, %v1184_v22 }
 0x190   :  { %v964_v3 = vmul.f32 %v963_v60, %v961_v42  ;;  %v971_v47 = vmul.f32 %v970_v62, %v961_v42  ;;  %vm1090_vm14 = vcmp.lt.s32.totalorder %v9824_v25, 0  ;;  %v1091_v32 = vsub.s32 0, %v9824_v25 }
 0x191   :  { %vm1202_vm3 = vc.u32 %v1194_v8, %v1198_v15  ;;  %v1204_v33 = vadd.s32 %v1198_v15, %v1194_v8  ;;  %v1215_v9 = vshrl.u32 %v1184_v22, 16  ;;  %vm979_vm8 = vcmp.eq.s32.totalorder %v9816_v26, 0 }
 0x192   :  { %v965_v6 = vadd.f32 -0.4999988, %v964_v3  ;;  %v972_v18 = vadd.f32 -0.16666654, %v971_v47  ;;  %v1092_v30 = vsel %vm1090_vm14, %v1091_v32, %v9824_v25  ;;  %v1203_v16 = vsel %vm1202_vm3, 1, %v16038_v24 }
 0x193   :  { %vm982_vm15 = vcmp.eq.s32.totalorder %v9816_v26, 2  ;;  %v1081_v10 = vadd.s32 %v9724_v48, %v9720_v21  ;;  %v1093_v45 = vclz %v1092_v30  ;;  %v9842_v54 = vsel %vm1174_vm4, %v1177_v55, %v1179_v35 }
 0x194   :  { %v966_v19 = vmul.f32 %v965_v6, %v961_v42  ;;  %v973_v61 = vmul.f32 %v972_v18, %v961_v42  ;;  %vm978_vm9 = vcmp.lt.s32.totalorder %v9816_v26, 2  ;;  %v1205_v8 = vadd.s32 %v1203_v16, %v1197_v38 }
 0x195   :  { %vm1206_vm2 = vc.u32 %v1204_v33, %v1200_v14  ;;  %vm976_vm6 = vweird.f32 %v8641_v43  ;;  %v7965_v60 = vadd.s32 4294967294, %v1093_v45  ;;  %v1199_v62 = vshrl.u32 %v1195_v59, 16 }
 0x196   :  { %v1207_v22 = vsel %vm1206_vm2, 1, %v16038_v24  ;;  %v1217_v15 = vmul.u32 %v1215_v9, %v1190_v7  ;;  %v967_v3 = vadd.f32 1.0, %v966_v19  ;;  %v974_v21 = vadd.f32 1.0, %v973_v61 }
 0x197   :  { %v1209_v48 = vadd.s32 %v1207_v22, %v1205_v8  ;;  %v1218_v11 = vmul.u32 %v1214_v31, %v9796_v5  ;;  %vm7966_vm5 = vcmp.lt.s32.totalorder %v7965_v60, 0  ;;  %v1111_v55 = vsub.s32 4, %v9800_v17 }
 0x198   :  { %v1216_v42 = vmul.u32 %v1214_v31, %v1190_v7  ;;  %v1220_v35 = vshll.u32 %v1217_v15, 16  ;;  %v975_v38 = vmul.f32 %v974_v21, %v9790_v53  ;;  %v983_v14 = vxor.u32 2147483648, %v967_v3 }
 0x199   :  { %v1096_v47 = vsel %vm7966_vm5, 0, %v7965_v60  ;;  %v1201_v32 = vshrl.u32 %v9822_v27, 16  ;;  %v1219_v6 = vmul.u32 %v1215_v9, %v9796_v5  ;;  %v1221_v18 = vshrl.u32 %v1217_v15, 16 }
 0x19a   :  { %v1097_v59 = vsub.s32 32, %v1096_v47  ;;  %v1101_v33 = vsub.s32 4294967266, %v1096_v47  ;;  %v980_v30 = vxor.u32 2147483648, %v975_v38  ;;  %v1098_v16 = vshll.u32 %v9824_v25, %v1096_v47 }
 0x19b   :  { %v1210_v45 = vadd.s32 %v1209_v48, %v1199_v62  ;;  %v1222_v19 = vshll.u32 %v1218_v11, 16  ;;  %vm1224_vm10 = vc.u32 %v1216_v42, %v1220_v35  ;;  %v1226_v7 = vadd.s32 %v1220_v35, %v1216_v42 }
 0x19c   :  { %v1099_v61 = vshrl.u32 %v1081_v10, %v1097_v59  ;;  %v1102_v8 = vadd.s32 127, %v1101_v33  ;;  %v981_v53 = vsel %vm979_vm8, %v967_v3, %v980_v30  ;;  %v984_v27 = vsel %vm982_vm15, %v983_v14, %v975_v38 }
 0x19d   :  { %v1225_v31 = vsel %vm1224_vm10, 1, %v16038_v24  ;;  %v2835_v5 = vand.u32 2147483647, %v9046_v52  ;;  %v985_v9 = vsel %vm978_vm9, %v981_v53, %v984_v27  ;;  %vm989_vm4 = vcmp.lt.s32.totalorder %v16051_v20, 0 }
 0x19e   :  { %v1100_v25 = vor.u32 %v1099_v61, %v1098_v16  ;;  %v1103_v60 = vshll.u32 %v1102_v8, 23  ;;  %v1227_v62 = vadd.s32 %v1225_v31, %v1219_v6  ;;  %v986_v10 = vsel %vm976_vm6, nan, %v985_v9 }
 0x19f   :  { %vm1228_vm7 = vc.u32 %v1226_v7, %v1222_v19  ;;  %v2842_v22 = vand.u32 8388607, %v2835_v5  ;;  %v2852_v15 = vshll.u32 %v16031_v56, %v9274_v34  ;;  %8051 = vmatmul.msk.f32.gmra.mxu0 %vm5311_vm0, %v986_v10  ;;  %v9869_v26 = vadd.s32 %v1210_v45, %v1201_v32 }
 0x1a0   :  { %v1104_v3 = vor.u32 4788187, %v1103_v60  ;;  %v1229_v21 = vsel %vm1228_vm7, 1, %v16038_v24  ;;  %v2853_v43 = vshrl.u32 %v16033_v23, %v9307_v29  ;;  %v1107_v48 = vcvt.s32.f32 %v1100_v25 }
 0x1a1   :  { %v1223_v42 = vshrl.u32 %v1218_v11, 16  ;;  %v9874_v35 = vadd.s32 %v1226_v7, %v1222_v19  ;;  %v1231_v38 = vadd.s32 %v1229_v21, %v1227_v62  ;;  %v2843_v47 = vor.u32 8388608, %v2842_v22 }
 0x1a2   :  { %v1105_v14 = vand.u32 2147483647, %v1104_v3  ;;  %v2855_v59 = vshll.u32 %v16033_v23, %v9274_v34  ;;  %v2856_v33 = vshrl.u32 %v16034_v40, %v9307_v29  ;;  %v9880_v6 = vor.u32 %v2853_v43, %v2852_v15 }
 0x1a3   :  { %v1232_v32 = vadd.s32 %v1231_v38, %v1221_v18  ;;  %v2858_v30 = vshll.u32 %v16034_v40, %v9274_v34  ;;  %v2859_v11 = vshrl.u32 %v15958_v0, %v9307_v29  ;;  %vm2867_vm14 = vcmp.lt.s32.totalorder %v9223_v44, 1  ;;  %v16073_v38 = vld [vmem:[#allocation19_spill] sm:$0xff] }
 0x1a4   :  { %v1108_v16 = vmul.f32 %v1107_v48, %v1105_v14  ;;  %v2857_v45 = vor.u32 %v2856_v33, %v2855_v59  ;;  %vm2869_vm3 = vcmp.lt.s32.totalorder %v9223_v44, 3  ;;  %vm2868_vm8 = vcmp.lt.s32.totalorder %v9223_v44, 2 }
 0x1a5   :  { %v1233_v19 = vadd.s32 %v1232_v32, %v1223_v42  ;;  %v2860_v61 = vor.u32 %v2859_v11, %v2858_v30  ;;  %v2881_v18 = vsel %vm2869_vm3, %v9639_v49, %v9807_v58  ;;  %v1234_v34 = vmul.u32 %v9761_v13, %v9842_v54 }
 0x1a6   :  { %v1109_v8 = vxor.u32 2147483648, %v1108_v16  ;;  %vm1236_vm15 = vc.u32 %v9869_v26, %v9874_v35  ;;  %v9897_v7 = vshll.u32 %v2843_v47, 8  ;;  %v2875_v27 = vsel %vm2867_vm14, %v9880_v6, %v2857_v45 }
 0x1a7   :  { %v1237_v53 = vadd.s32 1, %v1233_v19  ;;  %v2877_v31 = vsel %vm2869_vm3, %v2860_v61, %v9771_v37  ;;  %v2879_v49 = vsel %vm2867_vm14, %v2857_v45, %v2860_v61  ;;  %v9908_v58 = vsub.s32 32, %v9676_v2 }
 0x1a8   :  { %v16070_v13 = vand.u32 2147483647, %v16051_v20  ;;  %v1110_v9 = vsel %vm989_vm4, %v1109_v8, %v1108_v16  ;;  %v2882_v25 = vsel %vm2868_vm8, %v2879_v49, %v2881_v18  ;;  %v9922_v37 = vshll.u32 %v15958_v0, %v9676_v2 }
 0x1a9   :  { %v1112_v60 = vsel %vm989_vm4, %v1111_v55, %v9800_v17  ;;  %v1238_v10 = vsel %vm1236_vm15, %v1237_v53, %v1233_v19  ;;  %v2878_v3 = vsel %vm2868_vm8, %v2875_v27, %v2877_v31  ;;  %v2884_v21 = vand.u32 65535, %v9897_v7 }
 0x1aa   :  { %vm9912_vm9 = vcmp.le.f32.partialorder %v16070_v13, 0.7853982  ;;  %v1239_v15 = vadd.s32 %v1238_v10, %v1234_v34  ;;  %v2885_v43 = vshrl.u32 %v9897_v7, 16  ;;  %v2886_v48 = vand.u32 65535, %v2882_v25 }
 0x1ab   :  { %v1113_v62 = vsel %vm9912_vm9, %v16051_v20, %v1110_v9  ;;  %v2887_v42 = vshrl.u32 %v2882_v25, 16  ;;  %v1295_v14 = vand.u32 2147483647, %v16073_v38  ;;  %v1114_v17 = vsel %vm9912_vm9, 0, %v1112_v60 }
 0x1ac   :  { %v1115_v22 = vmul.f32 %v1113_v62, %v1113_v62  ;;  %v1240_v59 = vadd.s32 536870912, %v1239_v15  ;;  %v2888_v33 = vmul.u32 %v2886_v48, %v2884_v21  ;;  %v9939_v30 = vmul.u32 %v2886_v48, %v2885_v43 }
 0x1ad   :  { %v2889_v32 = vmul.u32 %v2887_v42, %v2884_v21  ;;  %v2909_v11 = vshrl.u32 %v2878_v3, 16  ;;  %v2851_v8 = vshrl.u32 %v16031_v56, %v9307_v29  ;;  %v1131_v34 = vand.u32 3, %v1114_v17 }
 0x1ae   :  { %v1116_v55 = vmul.f32 -0.001358992, %v1115_v22  ;;  %v1123_v47 = vmul.f32 -0.00019511016, %v1115_v22  ;;  %v9941_v18 = vshrl.u32 %v1240_v59, 30  ;;  %v2894_v27 = vshll.u32 %v9939_v30, 16 }
 0x1af   :  { %v2892_v53 = vshll.u32 %v2889_v32, 16  ;;  %v2908_v31 = vand.u32 65535, %v2878_v3  ;;  %v2872_v9 = vsel %vm2870_vm12, %v2860_v61, 2102212464  ;;  %v2891_v25 = vmul.u32 %v2887_v42, %v2885_v43 }
 0x1b0   :  { %v1117_v16 = vadd.f32 0.041655596, %v1116_v55  ;;  %v1124_v19 = vadd.f32 0.008332121, %v1123_v47  ;;  %v1242_v54 = vshll.u32 %v9941_v18, 30  ;;  %v9949_v10 = vmul.u32 %v2909_v11, %v2884_v21 }
 0x1b1   :  { %vm2896_vm2 = vc.u32 %v2888_v33, %v2892_v53  ;;  %v2898_v60 = vadd.s32 %v2892_v53, %v2888_v33  ;;  %v2871_v3 = vsel %vm2867_vm14, %v2851_v8, %v9880_v6  ;;  %vm1133_vm6 = vcmp.eq.s32.totalorder %v1131_v34, 0 }
 0x1b2   :  { %v1118_v49 = vmul.f32 %v1117_v16, %v1115_v22  ;;  %v1125_v13 = vmul.f32 %v1124_v19, %v1115_v22  ;;  %v9951_v29 = vsub.s32 %v1239_v15, %v1242_v54  ;;  %v2873_v17 = vsel %vm2869_vm3, %v2857_v45, %v2872_v9 }
 0x1b3   :  { %v2897_v47 = vsel %vm2896_vm2, 1, %v16038_v24  ;;  %vm2900_vm12 = vc.u32 %v2898_v60, %v2894_v27  ;;  %v2912_v61 = vmul.u32 %v2908_v31, %v2885_v43  ;;  %vm1132_vm5 = vcmp.lt.s32.totalorder %v1131_v34, 2 }
 0x1b4   :  { %v1119_v48 = vadd.f32 -0.4999988, %v1118_v49  ;;  %v1126_v55 = vadd.f32 -0.16666654, %v1125_v13  ;;  %vm1244_vm10 = vcmp.lt.s32.totalorder %v9951_v29, 0  ;;  %v1245_v15 = vsub.s32 0, %v9951_v29 }
 0x1b5   :  { %vm1130_vm4 = vweird.f32 %v16051_v20  ;;  %v2899_v33 = vadd.s32 %v2897_v47, %v2891_v25  ;;  %v2901_v6 = vsel %vm2900_vm12, 1, %v16038_v24  ;;  %v2910_v16 = vmul.u32 %v2908_v31, %v2884_v21 }
 0x1b6   :  { %v1120_v42 = vmul.f32 %v1119_v48, %v1115_v22  ;;  %v1127_v59 = vmul.f32 %v1126_v55, %v1115_v22  ;;  %v2914_v19 = vshll.u32 %v9949_v10, 16  ;;  %v1246_v53 = vsel %vm1244_vm10, %v1245_v15, %v9951_v29 }
 0x1b7   :  { %v2893_v27 = vshrl.u32 %v2889_v32, 16  ;;  %vm1136_vm7 = vcmp.eq.s32.totalorder %v1131_v34, 2  ;;  %v1235_v22 = vadd.s32 %v9874_v35, %v9869_v26  ;;  %v1247_v49 = vclz %v1246_v53 }
 0x1b8   :  { %v1121_v45 = vadd.f32 1.0, %v1120_v42  ;;  %v1128_v8 = vadd.f32 1.0, %v1127_v59  ;;  %v2913_v13 = vmul.u32 %v2909_v11, %v2885_v43  ;;  %v2903_v60 = vadd.s32 %v2901_v6, %v2899_v33 }
 0x1b9   :  { %v2916_v25 = vshll.u32 %v2912_v61, 16  ;;  %v7968_v48 = vadd.s32 4294967294, %v1247_v49  ;;  %v2874_v21 = vsel %vm2868_vm8, %v2871_v3, %v2873_v17  ;;  %vm2918_vm14 = vc.u32 %v2910_v16, %v2914_v19 }
 0x1ba   :  { %v1129_v54 = vmul.f32 %v1128_v8, %v1113_v62  ;;  %v1137_v9 = vxor.u32 2147483648, %v1121_v45  ;;  %v2920_v31 = vadd.s32 %v2914_v19, %v2910_v16  ;;  %v2895_v47 = vshrl.u32 %v9939_v30, 16 }
 0x1bb   :  { %v2904_v32 = vadd.s32 %v2903_v60, %v2893_v27  ;;  %v2919_v42 = vsel %vm2918_vm14, 1, %v16038_v24  ;;  %vm7969_vm3 = vcmp.lt.s32.totalorder %v7968_v48, 0  ;;  %v2915_v26 = vshrl.u32 %v9949_v10, 16 }
 0x1bc   :  { %v1134_v55 = vxor.u32 2147483648, %v1129_v54  ;;  %v2921_v35 = vadd.s32 %v2919_v42, %v2913_v13  ;;  %vm2922_vm15 = vc.u32 %v2920_v31, %v2916_v25  ;;  %v1138_v43 = vsel %vm1136_vm7, %v1137_v9, %v1129_v54 }
 0x1bd   :  { %v1250_v11 = vsel %vm7969_vm3, 0, %v7968_v48  ;;  %v2923_v44 = vsel %vm2922_vm15, 1, %v16038_v24  ;;  %v2917_v30 = vshrl.u32 %v2912_v61, 16  ;;  %v9978_v33 = vadd.s32 %v2904_v32, %v2895_v47 }
 0x1be   :  { %v1135_v62 = vsel %vm1133_vm6, %v1121_v45, %v1134_v55  ;;  %v1251_v17 = vsub.s32 32, %v1250_v11  ;;  %v1255_v59 = vsub.s32 4294967266, %v1250_v11  ;;  %v9980_v10 = vadd.s32 %v2920_v31, %v2916_v25  ;;  %v16075_v25 = vld [vmem:[#allocation42_spill] sm:$0xff] }
 0x1bf   :  { %v1139_v3 = vsel %vm1132_vm5, %v1135_v62, %v1138_v43  ;;  %v2925_v6 = vadd.s32 %v2923_v44, %v2921_v35  ;;  %v9984_v16 = vshll.u32 %v15959_v50, %v9676_v2  ;;  %v1252_v34 = vshll.u32 %v9951_v29, %v1250_v11  ;;  %v16074_v29 = vld [vmem:[#allocation39_spill] sm:$0xff] }
 0x1c0   :  { %v1140_v15 = vsel %vm1130_vm4, nan, %v1139_v3  ;;  %v1253_v19 = vshrl.u32 %v1235_v22, %v1251_v17  ;;  %v1256_v45 = vadd.s32 127, %v1255_v59  ;;  %v9990_v61 = vshrl.u32 %v3454_v63, 23  ;;  %v16077_v3 = vld [vmem:[#allocation61_spill] sm:$0xff]  ;;  %v16078_v17 = vld [vmem:[#allocation52_spill] sm:$0xff] }
 0x1c1   :  { %8052 = vmatmul.msk.f32.gmra.mxu0 %vm5311_vm0, %v1140_v15  ;;  %vm1143_vm8 = vcmp.lt.s32.totalorder %v16059_v39, 0  ;;  %v2926_v20 = vadd.s32 %v2925_v6, %v2915_v26  ;;  %v1302_v8 = vand.u32 8388607, %v1295_v14  ;;  %v1265_v49 = vsub.s32 4, %v9941_v18  ;;  %v16076_v26 = vld [vmem:[#allocation41_spill] sm:$0xff] }
 0x1c2   :  { %v1254_v53 = vor.u32 %v1253_v19, %v1252_v34  ;;  %v1257_v27 = vshll.u32 %v1256_v45, 23  ;;  %v2928_v13 = vmul.u32 %v9897_v7, %v2874_v21  ;;  %vm2930_vm9 = vc.u32 %v9978_v33, %v9980_v10 }
 0x1c3   :  { %v2927_v54 = vadd.s32 %v2926_v20, %v2917_v30  ;;  %v1312_v63 = vshll.u32 %v16031_v56, %v16074_v29  ;;  %v1315_v22 = vshll.u32 %v16033_v23, %v16074_v29  ;;  %v1303_v60 = vor.u32 8388608, %v1302_v8 }
 0x1c4   :  { %v1258_v9 = vor.u32 4788187, %v1257_v27  ;;  %v1313_v48 = vshrl.u32 %v16033_v23, %v16075_v25  ;;  %v1316_v31 = vshrl.u32 %v16034_v40, %v16075_v25  ;;  %v1261_v55 = vcvt.s32.f32 %v1254_v53 }
 0x1c5   :  { %v2931_v7 = vadd.s32 1, %v2927_v54  ;;  %v1318_v21 = vshll.u32 %v16034_v40, %v16074_v29  ;;  %v1319_v47 = vshrl.u32 %v15958_v0, %v16075_v25  ;;  %vm1327_vm2 = vcmp.lt.s32.totalorder %v16076_v26, 1 }
 0x1c6   :  { %v1259_v32 = vand.u32 2147483647, %v1258_v9  ;;  %v1317_v42 = vor.u32 %v1316_v31, %v1315_v22  ;;  %vm1329_vm6 = vcmp.lt.s32.totalorder %v16076_v26, 3  ;;  %v1266_v35 = vsel %vm1143_vm8, %v1265_v49, %v9941_v18 }
 0x1c7   :  { %v2932_v62 = vsel %vm2930_vm9, %v2931_v7, %v2927_v54  ;;  %v1320_v43 = vor.u32 %v1319_v47, %v1318_v21  ;;  %vm1328_vm12 = vcmp.lt.s32.totalorder %v16076_v26, 2  ;;  %v1341_v59 = vsel %vm1329_vm6, %v16078_v17, %v16077_v3 }
 0x1c8   :  { %v1262_v11 = vmul.f32 %v1261_v55, %v1259_v32  ;;  %v2933_v44 = vadd.s32 %v2932_v62, %v2928_v13  ;;  %v10024_v30 = vshll.u32 %v1303_v60, 8  ;;  %v10028_v15 = vshrl.u32 %v15959_v50, %v9908_v58 }
 0x1c9   :  { %vm10032_vm5 = vcmp.le.f32.partialorder %v1141_v4, 0.7853982  ;;  %v1314_v6 = vor.u32 %v1313_v48, %v1312_v63  ;;  %v1339_v34 = vsel %vm1327_vm2, %v1317_v42, %v1320_v43  ;;  %v1311_v8 = vshrl.u32 %v16031_v56, %v16075_v25  ;;  %v16081_v25 = vld [vmem:[#allocation58_spill] sm:$0xff] }
 0x1ca   :  { %v1263_v19 = vxor.u32 2147483648, %v1262_v11  ;;  %v1268_v45 = vsel %vm10032_vm5, 0, %v1266_v35  ;;  %v2934_v20 = vadd.s32 536870912, %v2933_v44  ;;  %v1332_v53 = vsel %vm1330_vm13, %v1320_v43, 2102212464 }
 0x1cb   :  { %v1342_v4 = vsel %vm1328_vm12, %v1339_v34, %v1341_v59  ;;  %v1344_v27 = vand.u32 65535, %v10024_v30  ;;  %v1345_v49 = vshrl.u32 %v10024_v30, 16  ;;  %v10054_v22 = vshrl.u32 %v15961_v46, %v9908_v58 }
 0x1cc   :  { %v1264_v13 = vsel %vm1143_vm8, %v1263_v19, %v1262_v11  ;;  %v10050_v54 = vshrl.u32 %v2934_v20, 30  ;;  %v1346_v29 = vand.u32 65535, %v1342_v4  ;;  %v1347_v63 = vshrl.u32 %v1342_v4, 16 }
 0x1cd   :  { %v10059_v9 = vsel %vm10032_vm5, %v16059_v39, %v1264_v13  ;;  %v1335_v60 = vsel %vm1327_vm2, %v1314_v6, %v1317_v42  ;;  %v1337_v48 = vsel %vm1329_vm6, %v1320_v43, %v16081_v25  ;;  %v10068_v55 = vand.u32 3, %v1268_v45 }
 0x1ce   :  { %v1269_v31 = vmul.f32 %v10059_v9, %v10059_v9  ;;  %v2936_v7 = vshll.u32 %v10050_v54, 30  ;;  %v1331_v21 = vsel %vm1327_vm2, %v1311_v8, %v1314_v6  ;;  %v1333_v47 = vsel %vm1329_vm6, %v1317_v42, %v1332_v53 }
 0x1cf   :  { %v1348_v32 = vmul.u32 %v1346_v29, %v1344_v27  ;;  %v1349_v35 = vmul.u32 %v1347_v63, %v1344_v27  ;;  %v10075_v62 = vmul.u32 %v1346_v29, %v1345_v49  ;;  %v1338_v17 = vsel %vm1328_vm12, %v1335_v60, %v1337_v48 }
 0x1d0   :  { %v1270_v11 = vmul.f32 -0.001358992, %v1269_v31  ;;  %v1277_v3 = vmul.f32 -0.00019511016, %v1269_v31  ;;  %v10077_v43 = vsub.s32 %v2933_v44, %v2936_v7  ;;  %v1351_v59 = vmul.u32 %v1347_v63, %v1345_v49 }
 0x1d1   :  { %v1352_v18 = vshll.u32 %v1349_v35, 16  ;;  %v1354_v34 = vshll.u32 %v10075_v62, 16  ;;  %v1368_v19 = vand.u32 65535, %v1338_v17  ;;  %v2929_v20 = vadd.s32 %v9980_v10, %v9978_v33 }
 0x1d2   :  { %v1271_v6 = vadd.f32 0.041655596, %v1270_v11  ;;  %v1278_v45 = vadd.f32 0.008332121, %v1277_v3  ;;  %vm2938_vm13 = vcmp.lt.s32.totalorder %v10077_v43, 0  ;;  %v2939_v42 = vsub.s32 0, %v10077_v43 }
 0x1d3   :  { %vm1356_vm10 = vc.u32 %v1348_v32, %v1352_v18  ;;  %v1358_v44 = vadd.s32 %v1352_v18, %v1348_v32  ;;  %v1369_v8 = vshrl.u32 %v1338_v17, 16  ;;  %v2959_v60 = vsub.s32 4, %v10050_v54 }
 0x1d4   :  { %v1272_v53 = vmul.f32 %v1271_v6, %v1269_v31  ;;  %v1279_v4 = vmul.f32 %v1278_v45, %v1269_v31  ;;  %v2940_v13 = vsel %vm2938_vm13, %v2939_v42, %v10077_v43  ;;  %v1357_v29 = vsel %vm1356_vm10, 1, %v16038_v24 }
 0x1d5   :  { %v2941_v63 = vclz %v2940_v13  ;;  %v10091_v25 = vsel %vm1328_vm12, %v1331_v21, %v1333_v47  ;;  %v1370_v48 = vmul.u32 %v1368_v19, %v1344_v27  ;;  %vm1290_vm4 = vcmp.eq.s32.totalorder %v10068_v55, 2 }
 0x1d6   :  { %v1273_v7 = vadd.f32 -0.4999988, %v1272_v53  ;;  %v1280_v11 = vadd.f32 -0.16666654, %v1279_v4  ;;  %v1359_v33 = vadd.s32 %v1357_v29, %v1351_v59  ;;  %vm1360_vm7 = vc.u32 %v1358_v44, %v1354_v34 }
 0x1d7   :  { %vm1287_vm14 = vcmp.eq.s32.totalorder %v10068_v55, 0  ;;  %v8001_v10 = vadd.s32 4294967294, %v2941_v63  ;;  %v1361_v32 = vsel %vm1360_vm7, 1, %v16038_v24  ;;  %v1371_v3 = vmul.u32 %v1369_v8, %v1344_v27 }
 0x1d8   :  { %v1372_v17 = vmul.u32 %v1368_v19, %v1345_v49  ;;  %v1274_v18 = vmul.f32 %v1273_v7, %v1269_v31  ;;  %v1281_v6 = vmul.f32 %v1280_v11, %v1269_v31  ;;  %vm1286_vm3 = vcmp.lt.s32.totalorder %v10068_v55, 2 }
 0x1d9   :  { %v1353_v26 = vshrl.u32 %v1349_v35, 16  ;;  %v1363_v21 = vadd.s32 %v1361_v32, %v1359_v33  ;;  %vm1284_vm15 = vweird.f32 %v16059_v39  ;;  %vm8002_vm8 = vcmp.lt.s32.totalorder %v8001_v10, 0 }
 0x1da   :  { %v1355_v47 = vshrl.u32 %v10075_v62, 16  ;;  %v1373_v59 = vmul.u32 %v1369_v8, %v1345_v49  ;;  %v1374_v34 = vshll.u32 %v1371_v3, 16  ;;  %v1275_v45 = vadd.f32 1.0, %v1274_v18 }
 0x1db   :  { %v1282_v42 = vadd.f32 1.0, %v1281_v6  ;;  %v2944_v44 = vsel %vm8002_vm8, 0, %v8001_v10  ;;  %v1375_v53 = vshrl.u32 %v1371_v3, 16  ;;  %vm2837_vm9 = vcmp.lt.s32.totalorder %v9046_v52, 0  ;;  %v16082_v10 = vld [vmem:[#allocation47_spill] sm:$0xff] }
 0x1dc   :  { %v2945_v27 = vsub.s32 32, %v2944_v44  ;;  %v2946_v31 = vshll.u32 %v10077_v43, %v2944_v44  ;;  %v2949_v19 = vsub.s32 4294967266, %v2944_v44  ;;  %v1376_v4 = vshll.u32 %v1372_v17, 16 }
 0x1dd   :  { %v1283_v35 = vmul.f32 %v1282_v42, %v10059_v9  ;;  %v1291_v13 = vxor.u32 2147483648, %v1275_v45  ;;  %v1364_v29 = vadd.s32 %v1363_v21, %v1353_v26  ;;  %vm1378_vm2 = vc.u32 %v1370_v48, %v1374_v34 }
 0x1de   :  { %v2947_v63 = vshrl.u32 %v2929_v20, %v2945_v27  ;;  %v2950_v62 = vadd.s32 127, %v2949_v19  ;;  %v1379_v49 = vsel %vm1378_vm2, 1, %v16038_v24  ;;  %v1380_v8 = vadd.s32 %v1374_v34, %v1370_v48 }
 0x1df   :  { %v1288_v7 = vxor.u32 2147483648, %v1283_v35  ;;  %v1377_v11 = vshrl.u32 %v1372_v17, 16  ;;  %v1381_v33 = vadd.s32 %v1379_v49, %v1373_v59  ;;  %v15867_v32 = vand.u32 2147483647, %v16082_v10  ;;  %v8404_v17 = vld [vmem:[%s15928_s29] sm:$0xff] }
 0x1e0   :  { %vm3308_vm6 = vcmp.gt.s32.totalorder %v9679_v36, 0  ;;  %v1292_v43 = vsel %vm1290_vm4, %v1291_v13, %v1283_v35  ;;  %v2948_v3 = vor.u32 %v2947_v63, %v2946_v31  ;;  %v2951_v9 = vshll.u32 %v2950_v62, 23  ;;  %v16086_v13 = vld [vmem:[#allocation7_spill] sm:$0xff]  ;;  %v16087_v62 = vld [vmem:[#allocation86_spill] sm:$0xff] }
 0x1e1   :  { %vm1382_vm12 = vc.u32 %v1380_v8, %v1376_v4  ;;  %v1289_v20 = vsel %vm1287_vm14, %v1275_v45, %v1288_v7  ;;  %vm10111_vm5 = vcmp.le.f32.partialorder %v2835_v5, 0.7853982  ;;  %v172_v18 = vrot.slane %v8404_v17, 7  ;;  %v16088_v49 = vld [vmem:[#allocation94_spill] sm:$0xff]  ;;  %v16089_v17 = vld [vmem:[#allocation101_spill] sm:$0xff] }
 0x1e2   :  { %v1383_v6 = vsel %vm1382_vm12, 1, %v16038_v24  ;;  %v2996_v26 = vand.u32 8388607, %v15867_v32  ;;  %v1293_v21 = vsel %vm1286_vm3, %v1289_v20, %v1292_v43  ;;  %v2952_v59 = vor.u32 4788187, %v2951_v9 }
 0x1e3   :  { %v2955_v34 = vcvt.s32.f32 %v2948_v3  ;;  %v1385_v45 = vadd.s32 %v1383_v6, %v1381_v33  ;;  %v1294_v5 = vsel %vm1284_vm15, nan, %v1293_v21  ;;  %v10125_v42 = vperm.slane %v172_v18, 0  ;;  %v16090_v6 = vld [vmem:[#allocation104_spill] sm:$0xff] }
 0x1e4   :  { %v10127_v44 = vadd.s32 %v1364_v29, %v1355_v47  ;;  %v10129_v27 = vadd.s32 %v1380_v8, %v1376_v4  ;;  %8053 = vmatmul.msk.f32.gmra.mxu0 %vm5311_vm0, %v1294_v5  ;;  %v2953_v31 = vand.u32 2147483647, %v2952_v59  ;;  %v1388_v55 = vmul.u32 %v10024_v30, %v10091_v25 }
 0x1e5   :  { %16085 = vst [vmem:[#allocation12_spill] sm:$0xff] %v10125_v42  ;;  %v1386_v19 = vadd.s32 %v1385_v45, %v1375_v53  ;;  %v2997_v35 = vor.u32 8388608, %v2996_v26  ;;  %v236_v63 = vmul.f32 %v16086_v13, %v10125_v42  ;;  %v3006_v39 = vshll.u32 %v16031_v56, %v16087_v62  ;;  %v16091_v26 = vld [vmem:[#allocation102_spill] sm:$0xff]  ;;  %v16092_v13 = vld [vmem:[#allocation103_spill] sm:$0xff] }
 0x1e6   :  { %v3007_v47 = vshrl.u32 %v16033_v23, %v16088_v49  ;;  %v3009_v4 = vshll.u32 %v16033_v23, %v16087_v62  ;;  %v2956_v29 = vmul.f32 %v2955_v34, %v2953_v31  ;;  %v3010_v53 = vshrl.u32 %v16034_v40, %v16088_v49 }
 0x1e7   :  { %v1387_v8 = vadd.s32 %v1386_v19, %v1377_v11  ;;  %v3012_v30 = vshll.u32 %v16034_v40, %v16087_v62  ;;  %v2960_v25 = vsel %vm2837_vm9, %v2959_v60, %v10050_v54  ;;  %v324_v7 = vsel %vm15892_vm1, %v236_v63, 0.0 }
 0x1e8   :  { %vm1390_vm13 = vc.u32 %v10127_v44, %v10129_v27  ;;  %v3013_v11 = vshrl.u32 %v15958_v0, %v16088_v49  ;;  %v2957_v33 = vxor.u32 2147483648, %v2956_v29  ;;  %325 = vadd.xlane.f32.xlu1 %v324_v7  ;;  %v10156_v3 = vor.u32 %v3007_v47, %v3006_v39 }
 0x1e9   :  { %v1391_v43 = vadd.s32 1, %v1387_v8  ;;  %v10158_v9 = vor.u32 %v3010_v53, %v3009_v4  ;;  %vm3021_vm10 = vcmp.lt.s32.totalorder %v16089_v17, 1  ;;  %vm3023_vm4 = vcmp.lt.s32.totalorder %v16089_v17, 3 }
 0x1ea   :  { %v10160_v20 = vor.u32 %v3013_v11, %v3012_v30  ;;  %v10164_v54 = vshll.u32 %v2997_v35, 8  ;;  %v2958_v60 = vsel %vm2837_vm9, %v2957_v33, %v2956_v29  ;;  %vm3022_vm7 = vcmp.lt.s32.totalorder %v16089_v17, 2 }
 0x1eb   :  { %v1392_v18 = vsel %vm1390_vm13, %v1391_v43, %v1387_v8  ;;  %v3035_v21 = vsel %vm3023_vm4, %v16091_v26, %v16090_v6  ;;  %v3309_v59 = vsel %vm3308_vm6, %v9679_v36, 0  ;;  %v10178_v34 = vshrl.u32 %v3608_v28, 23 }
 0x1ec   :  { %v2961_v45 = vsel %vm10111_vm5, %v9046_v52, %v2958_v60  ;;  %v1393_v5 = vadd.s32 %v1392_v18, %v1388_v55  ;;  %v2962_v31 = vsel %vm10111_vm5, 0, %v2960_v25  ;;  %v3029_v35 = vsel %vm3021_vm10, %v10156_v3, %v10158_v9 }
 0x1ed   :  { %v2963_v19 = vmul.f32 %v2961_v45, %v2961_v45  ;;  %v3033_v36 = vsel %vm3021_vm10, %v10158_v9, %v10160_v20  ;;  %v3031_v55 = vsel %vm3023_vm4, %v10160_v20, %v16092_v13  ;;  %v3038_v63 = vand.u32 65535, %v10164_v54 }
 0x1ee   :  { %v1394_v28 = vadd.s32 536870912, %v1393_v5  ;;  %v3036_v48 = vsel %vm3022_vm7, %v3033_v36, %v3035_v21  ;;  %v10201_v47 = vshrl.u32 %v10164_v54, 16  ;;  %v10203_v29 = vshrl.u32 %v3309_v59, 5 }
 0x1ef   :  { %v2964_v62 = vmul.f32 -0.001358992, %v2963_v19  ;;  %v2971_v39 = vmul.f32 -0.00019511016, %v2963_v19  ;;  %v3040_v4 = vand.u32 65535, %v3036_v48  ;;  %v10205_v8 = vand.u32 31, %v3309_v59 }
 0x1f0   :  { %v10207_v53 = vshrl.u32 %v1394_v28, 30  ;;  %v3041_v30 = vshrl.u32 %v3036_v48, 16  ;;  %v10209_v11 = vand.u32 3, %v2962_v31  ;;  %v3032_v33 = vsel %vm3022_vm7, %v3029_v35, %v3031_v55 }
 0x1f1   :  { %v2965_v25 = vadd.f32 0.041655596, %v2964_v62  ;;  %v2972_v7 = vadd.f32 0.008332121, %v2971_v39  ;;  %v3042_v60 = vmul.u32 %v3040_v4, %v3038_v63  ;;  %v10215_v6 = vmul.u32 %v3040_v4, %v10201_v47 }
 0x1f2   :  { %v1396_v43 = vshll.u32 %v10207_v53, 30  ;;  %v3043_v18 = vmul.u32 %v3041_v30, %v3038_v63  ;;  %v10219_v26 = vor.u32 %v10028_v15, %v9922_v37  ;;  %v10222_v21 = vadd.s32 4294967169, %v9990_v61 }
 0x1f3   :  { %v2966_v59 = vmul.f32 %v2965_v25, %v2963_v19  ;;  %v2973_v31 = vmul.f32 %v2972_v7, %v2963_v19  ;;  %v3062_v13 = vand.u32 65535, %v3032_v33  ;;  %v3045_v62 = vmul.u32 %v3041_v30, %v10201_v47 }
 0x1f4   :  { %v10226_v35 = vsub.s32 %v1393_v5, %v1396_v43  ;;  %v3046_v28 = vshll.u32 %v3043_v18, 16  ;;  %v3063_v39 = vshrl.u32 %v3032_v33, 16  ;;  %vm2981_vm14 = vcmp.eq.s32.totalorder %v10209_v11, 0 }
 0x1f5   :  { %v2967_v55 = vadd.f32 -0.4999988, %v2966_v59  ;;  %v2974_v48 = vadd.f32 -0.16666654, %v2973_v31  ;;  %vm2984_vm3 = vcmp.eq.s32.totalorder %v10209_v11, 2  ;;  %v3048_v61 = vshll.u32 %v10215_v6, 16 }
 0x1f6   :  { %vm1398_vm15 = vcmp.lt.s32.totalorder %v10226_v35, 0  ;;  %v1399_v37 = vsub.s32 0, %v10226_v35  ;;  %vm3050_vm8 = vc.u32 %v3042_v60, %v3046_v28  ;;  %vm2980_vm9 = vcmp.lt.s32.totalorder %v10209_v11, 2 }
 0x1f7   :  { %v2968_v15 = vmul.f32 %v2967_v55, %v2963_v19  ;;  %v2975_v5 = vmul.f32 %v2974_v48, %v2963_v19  ;;  %v3051_v4 = vsel %vm3050_vm8, 1, %v16038_v24  ;;  %v3052_v25 = vadd.s32 %v3046_v28, %v3042_v60 }
 0x1f8   :  { %vm2978_vm2 = vweird.f32 %v9046_v52  ;;  %v1389_v30 = vadd.s32 %v10129_v27, %v10127_v44  ;;  %v1400_v7 = vsel %vm1398_vm15, %v1399_v37, %v10226_v35  ;;  %v3005_v33 = vshrl.u32 %v16031_v56, %v16088_v49 }
 0x1f9   :  { %v3026_v43 = vsel %vm3024_vm11, %v10160_v20, 2102212464  ;;  %v2969_v19 = vadd.f32 1.0, %v2968_v15  ;;  %v2976_v59 = vadd.f32 1.0, %v2975_v5  ;;  %v1401_v31 = vclz %v1400_v7 }
 0x1fa   :  { %v3053_v55 = vadd.s32 %v3051_v4, %v3045_v62  ;;  %vm3054_vm6 = vc.u32 %v3052_v25, %v3048_v61  ;;  %v3064_v60 = vmul.u32 %v3062_v13, %v3038_v63  ;;  %v3065_v28 = vmul.u32 %v3063_v39, %v3038_v63  ;;  %v308_v4 = vpop.xlane.xlu1 %307 }
 0x1fb   :  { %v3066_v48 = vmul.u32 %v3062_v13, %v10201_v47  ;;  %v2977_v32 = vmul.f32 %v2976_v59, %v2961_v45  ;;  %v2985_v44 = vxor.u32 2147483648, %v2969_v19  ;;  %v7971_v27 = vadd.s32 4294967294, %v1401_v31 }
 0x1fc   :  { %v3055_v37 = vsel %vm3054_vm6, 1, %v16038_v24  ;;  %v3025_v49 = vsel %vm3021_vm10, %v3005_v33, %v10156_v3  ;;  %v3047_v36 = vshrl.u32 %v3043_v18, 16  ;;  %v3068_v15 = vshll.u32 %v3065_v28, 16 }
 0x1fd   :  { %v3057_v20 = vadd.s32 %v3055_v37, %v3053_v55  ;;  %v2982_v5 = vxor.u32 2147483648, %v2977_v32  ;;  %vm7972_vm11 = vcmp.lt.s32.totalorder %v7971_v27, 0  ;;  %v3027_v63 = vsel %vm3023_vm4, %v10158_v9, %v3026_v43  ;;  %v16094_v55 = vld [vmem:[#allocation20_spill] sm:$0xff] }
 0x1fe   :  { %v3049_v13 = vshrl.u32 %v10215_v6, 16  ;;  %v1404_v45 = vsel %vm7972_vm11, 0, %v7971_v27  ;;  %v3067_v62 = vmul.u32 %v3063_v39, %v10201_v47  ;;  %v3070_v61 = vshll.u32 %v3066_v48, 16 }
 0x1ff   :  { %vm3072_vm12 = vc.u32 %v3064_v60, %v3068_v15  ;;  %v2983_v3 = vsel %vm2981_vm14, %v2969_v19, %v2982_v5  ;;  %v2986_v18 = vsel %vm2984_vm3, %v2985_v44, %v2977_v32  ;;  %v1405_v25 = vsub.s32 32, %v1404_v45 }
 0x200   :  { %v1409_v7 = vsub.s32 4294967266, %v1404_v45  ;;  %v2987_v33 = vsel %vm2980_vm9, %v2983_v3, %v2986_v18  ;;  %v1406_v9 = vshll.u32 %v10226_v35, %v1404_v45  ;;  %v3058_v6 = vadd.s32 %v3057_v20, %v3047_v36  ;;  %v16096_v3 = vld [vmem:[#allocation46_spill] sm:$0xff] }
 0x201   :  { %v3073_v43 = vsel %vm3072_vm12, 1, %v16038_v24  ;;  %v2988_v47 = vsel %vm2978_vm2, nan, %v2987_v33  ;;  %v1407_v39 = vshrl.u32 %v1389_v30, %v1405_v25  ;;  %v3074_v31 = vadd.s32 %v3068_v15, %v3064_v60 }
 0x202   :  { %v1410_v59 = vadd.s32 127, %v1409_v7  ;;  %v10266_v19 = vadd.s32 4294967169, %v10178_v34  ;;  %v10269_v32 = vmul.f32 %v8618_v12, %v308_v4  ;;  %8064 = vmatmul.msk.f32.vlgmr.msra.gmra.mxu2 %vm5311_vm0, %v2988_v47  ;;  %v3075_v11 = vadd.s32 %v3073_v43, %v3067_v62  ;;  %v16097_v43 = vld [vmem:[#allocation50_spill] sm:$0xff] }
 0x203   :  { %v15868_v35 = vand.u32 2147483647, %v16094_v55  ;;  %vm1297_vm5 = vcmp.lt.s32.totalorder %v16073_v38, 0  ;;  %v1408_v36 = vor.u32 %v1407_v39, %v1406_v9  ;;  %v3069_v52 = vshrl.u32 %v3065_v28, 16  ;;  %v16095_v28 = vld [vmem:[#allocation40_spill] sm:$0xff] }
 0x204   :  { %16093 = vst [vmem:[#allocation14_spill] sm:$0xff] %v10269_v32  ;;  %v1411_v44 = vshll.u32 %v1410_v59, 23  ;;  %vm3076_vm13 = vc.u32 %v3074_v31, %v3070_v61  ;;  %v1419_v30 = vsub.s32 4, %v10207_v53  ;;  %v3028_v34 = vsel %vm3022_vm7, %v3025_v49, %v3027_v63 }
 0x205   :  { %v3077_v60 = vsel %vm3076_vm13, 1, %v16038_v24  ;;  %v1456_v27 = vand.u32 8388607, %v15868_v35  ;;  %v10280_v20 = vadd.s32 %v3058_v6, %v3049_v13  ;;  %v3071_v15 = vshrl.u32 %v3066_v48, 16 }
 0x206   :  { %v1412_v37 = vor.u32 4788187, %v1411_v44  ;;  %v3079_v5 = vadd.s32 %v3077_v60, %v3075_v11  ;;  %v1415_v45 = vcvt.s32.f32 %v1408_v36  ;;  %v10282_v62 = vadd.s32 %v3074_v31, %v3070_v61  ;;  %v16098_v11 = vld [vmem:[#allocation64_spill] sm:$0xff]  ;;  %v16099_v36 = vld [vmem:[#allocation53_spill] sm:$0xff] }
 0x207   :  { %v1466_v4 = vshll.u32 %v16031_v56, %v16095_v28  ;;  %v1467_v17 = vshrl.u32 %v16033_v23, %v16096_v3  ;;  %v1469_v18 = vshll.u32 %v16033_v23, %v16095_v28  ;;  %v1470_v13 = vshrl.u32 %v16034_v40, %v16096_v3 }
 0x208   :  { %v1413_v49 = vand.u32 2147483647, %v1412_v37  ;;  %v3080_v63 = vadd.s32 %v3079_v5, %v3069_v52  ;;  %v1457_v25 = vor.u32 8388608, %v1456_v27  ;;  %v1472_v61 = vshll.u32 %v16034_v40, %v16095_v28 }
 0x209   :  { %v10292_v48 = vor.u32 %v1467_v17, %v1466_v4  ;;  %v1473_v7 = vshrl.u32 %v15958_v0, %v16096_v3  ;;  %v10298_v6 = vor.u32 %v1470_v13, %v1469_v18  ;;  %vm1481_vm10 = vcmp.lt.s32.totalorder %v16097_v43, 1 }
 0x20a   :  { %v1416_v33 = vmul.f32 %v1415_v45, %v1413_v49  ;;  %v3081_v9 = vadd.s32 %v3080_v63, %v3071_v15  ;;  %v3082_v47 = vmul.u32 %v10164_v54, %v3028_v34  ;;  %vm3084_vm4 = vc.u32 %v10280_v20, %v10282_v62  ;;  %v16102_v15 = vld [vmem:[#allocation63_spill] sm:$0xff] }
 0x20b   :  { %v10304_v39 = vor.u32 %v1473_v7, %v1472_v61  ;;  %vm1483_vm7 = vcmp.lt.s32.totalorder %v16097_v43, 3  ;;  %vm1482_vm14 = vcmp.lt.s32.totalorder %v16097_v43, 2  ;;  %vm10314_vm3 = vcmp.le.f32.partialorder %v1295_v14, 0.7853982 }
 0x20c   :  { %v1417_v59 = vxor.u32 2147483648, %v1416_v33  ;;  %v3085_v31 = vadd.s32 1, %v3081_v9  ;;  %v1495_v44 = vsel %vm1483_vm7, %v16099_v36, %v16098_v11  ;;  %v1420_v52 = vsel %vm1297_vm5, %v1419_v30, %v10207_v53 }
 0x20d   :  { %v1493_v34 = vsel %vm1481_vm10, %v10298_v6, %v10304_v39  ;;  %v10325_v60 = vshll.u32 %v1457_v25, 8  ;;  %v1489_v14 = vsel %vm1481_vm10, %v10292_v48, %v10298_v6  ;;  %v1491_v53 = vsel %vm1483_vm7, %v10304_v39, %v16102_v15 }
 0x20e   :  { %v1418_v27 = vsel %vm1297_vm5, %v1417_v59, %v1416_v33  ;;  %v3086_v37 = vsel %vm3084_vm4, %v3085_v31, %v3081_v9  ;;  %v10338_v30 = vsub.s32 32, %v10205_v8  ;;  %v1496_v28 = vsel %vm1482_vm14, %v1493_v34, %v1495_v44 }
 0x20f   :  { %v10343_v5 = vsel %vm10314_vm3, %v16073_v38, %v1418_v27  ;;  %v3087_v45 = vadd.s32 %v3086_v37, %v3082_v47  ;;  %v1498_v17 = vand.u32 65535, %v10325_v60  ;;  %v1499_v49 = vshrl.u32 %v10325_v60, 16 }
 0x210   :  { %v1423_v4 = vmul.f32 %v10343_v5, %v10343_v5  ;;  %v1500_v63 = vand.u32 65535, %v1496_v28  ;;  %v1422_v18 = vsel %vm10314_vm3, 0, %v1420_v52  ;;  %v1492_v25 = vsel %vm1482_vm14, %v1489_v14, %v1491_v53 }
 0x211   :  { %v3088_v13 = vadd.s32 536870912, %v3087_v45  ;;  %v1501_v61 = vshrl.u32 %v1496_v28, 16  ;;  %v10357_v7 = vshll.u32 %v15958_v0, %v10205_v8  ;;  %v10363_v59 = vshll.u32 %v15959_v50, %v10205_v8 }
 0x212   :  { %v1424_v33 = vmul.f32 -0.001358992, %v1423_v4  ;;  %v1431_v9 = vmul.f32 -0.00019511016, %v1423_v4  ;;  %v10359_v47 = vmul.u32 %v1500_v63, %v1499_v49  ;;  %v1502_v11 = vmul.u32 %v1500_v63, %v1498_v17 }
 0x213   :  { %v10365_v31 = vshrl.u32 %v3088_v13, 30  ;;  %v1503_v36 = vmul.u32 %v1501_v61, %v1498_v17  ;;  %v10367_v52 = vand.u32 3, %v1422_v18  ;;  %v1523_v34 = vshrl.u32 %v1492_v25, 16 }
 0x214   :  { %v1425_v44 = vadd.f32 0.041655596, %v1424_v33  ;;  %v1432_v54 = vadd.f32 0.008332121, %v1431_v9  ;;  %v1505_v37 = vmul.u32 %v1501_v61, %v1499_v49  ;;  %v1522_v15 = vand.u32 65535, %v1492_v25 }
 0x215   :  { %v3090_v27 = vshll.u32 %v10365_v31, 30  ;;  %v1506_v14 = vshll.u32 %v1503_v36, 16  ;;  %v1465_v35 = vshrl.u32 %v16031_v56, %v16096_v3  ;;  %v1508_v13 = vshll.u32 %v10359_v47, 16 }
 0x216   :  { %v1426_v53 = vmul.f32 %v1425_v44, %v1423_v4  ;;  %v1433_v28 = vmul.f32 %v1432_v54, %v1423_v4  ;;  %v3083_v63 = vadd.s32 %v10282_v62, %v10280_v20  ;;  %vm1444_vm8 = vcmp.eq.s32.totalorder %v10367_v52, 2 }
 0x217   :  { %v10375_v33 = vsub.s32 %v3087_v45, %v3090_v27  ;;  %vm1510_vm15 = vc.u32 %v1502_v11, %v1506_v14  ;;  %v1512_v18 = vadd.s32 %v1506_v14, %v1502_v11  ;;  %v1525_v61 = vmul.u32 %v1523_v34, %v1498_v17 }
 0x218   :  { %v1427_v9 = vadd.f32 -0.4999988, %v1426_v53  ;;  %v1434_v1 = vadd.f32 -0.16666654, %v1433_v28  ;;  %v1511_v25 = vsel %vm1510_vm15, 1, %v16038_v24  ;;  %vm1441_vm9 = vcmp.eq.s32.totalorder %v10367_v52, 0 }
 0x219   :  { %vm3092_vm2 = vcmp.lt.s32.totalorder %v10375_v33, 0  ;;  %v3093_v3 = vsub.s32 0, %v10375_v33  ;;  %v1513_v44 = vadd.s32 %v1511_v25, %v1505_v37  ;;  %v10382_v54 = vmul.u32 %v1522_v15, %v1499_v49 }
 0x21a   :  { %vm3178_vm6 = vcmp.lt.s32.totalorder %v9669_v41, 4  ;;  %v1428_v20 = vmul.f32 %v1427_v9, %v1423_v4  ;;  %v1435_v62 = vmul.f32 %v1434_v1, %v1423_v4  ;;  %vm1440_vm11 = vcmp.lt.s32.totalorder %v10367_v52, 2 }
 0x21b   :  { %v1485_v45 = vsel %vm1481_vm10, %v1465_v35, %v10292_v48  ;;  %vm1514_vm12 = vc.u32 %v1512_v18, %v1508_v13  ;;  %v3094_v11 = vsel %vm3092_vm2, %v3093_v3, %v10375_v33  ;;  %vm16103_vm5 = vcmp.lt.s32.totalorder %v16097_v43, 4  ;;  %v16105_v43 = vld [vmem:[#allocation9_spill] sm:$0xff] }
 0x21c   :  { %v1486_v27 = vsel %vm16103_vm5, %v10304_v39, 2102212464  ;;  %v1507_v37 = vshrl.u32 %v1503_v36, 16  ;;  %v1524_v14 = vmul.u32 %v1522_v15, %v1498_v17  ;;  %v1429_v53 = vadd.f32 1.0, %v1428_v20 }
 0x21d   :  { %v1436_v28 = vadd.f32 1.0, %v1435_v62  ;;  %v3095_v25 = vclz %v3094_v11  ;;  %v1515_v1 = vsel %vm1514_vm12, 1, %v16038_v24  ;;  %v1527_v9 = vmul.u32 %v1523_v34, %v1499_v49 }
 0x21e   :  { %v1517_v4 = vadd.s32 %v1515_v1, %v1513_v44  ;;  %v1528_v57 = vshll.u32 %v1525_v61, 16  ;;  %v1530_v51 = vshll.u32 %v10382_v54, 16  ;;  %v1445_v48 = vxor.u32 2147483648, %v1429_v53 }
 0x21f   :  { %v1437_v35 = vmul.f32 %v1436_v28, %v10343_v5  ;;  %v8004_v13 = vadd.s32 4294967294, %v3095_v25  ;;  %v1487_v39 = vsel %vm1483_vm7, %v10298_v6, %v1486_v27  ;;  %v1509_v17 = vshrl.u32 %v10359_v47, 16 }
 0x220   :  { %v1529_v36 = vshrl.u32 %v1525_v61, 16  ;;  %vm1532_vm13 = vc.u32 %v1524_v14, %v1528_v57  ;;  %v1534_v15 = vadd.s32 %v1528_v57, %v1524_v14  ;;  %v1518_v3 = vadd.s32 %v1517_v4, %v1507_v37 }
 0x221   :  { %v1442_v18 = vxor.u32 2147483648, %v1437_v35  ;;  %vm8005_vm10 = vcmp.lt.s32.totalorder %v8004_v13, 0  ;;  %v1533_v49 = vsel %vm1532_vm13, 1, %v16038_v24  ;;  %v1446_v34 = vsel %vm1444_vm8, %v1445_v48, %v1437_v35  ;;  %v16106_v48 = vld [vmem:[#allocation95_spill] sm:$0xff] }
 0x222   :  { %v3098_v5 = vsel %vm8005_vm10, 0, %v8004_v13  ;;  %v1535_v44 = vadd.s32 %v1533_v49, %v1527_v9  ;;  %vm1536_vm4 = vc.u32 %v1534_v15, %v1530_v51  ;;  %vm1438_vm7 = vweird.f32 %v16073_v38 }
 0x223   :  { %v1443_v20 = vsel %vm1441_vm9, %v1429_v53, %v1442_v18  ;;  %v3099_v6 = vsub.s32 32, %v3098_v5  ;;  %v3100_v47 = vshll.u32 %v10375_v33, %v3098_v5  ;;  %v3103_v61 = vsub.s32 4294967266, %v3098_v5 }
 0x224   :  { %v1447_v57 = vsel %vm1440_vm11, %v1443_v20, %v1446_v34  ;;  %v1531_v62 = vshrl.u32 %v10382_v54, 16  ;;  %v1537_v11 = vsel %vm1536_vm4, 1, %v16038_v24  ;;  %v10414_v53 = vsel %vm3178_vm6, %v10219_v26, 920167782 }
 0x225   :  { %v1448_v27 = vsel %vm1438_vm7, nan, %v1447_v57  ;;  %v3101_v37 = vshrl.u32 %v3083_v63, %v3099_v6  ;;  %v3104_v14 = vadd.s32 127, %v3103_v61  ;;  %v1539_v28 = vadd.s32 %v1537_v11, %v1535_v44  ;;  %v311_v11 = vpop.xlane.xlu2 %310 }
 0x226   :  { %8054 = vmatmul.msk.f32.gmra.mxu0 %vm5311_vm0, %v1448_v27  ;;  %v1488_v38 = vsel %vm1482_vm14, %v1485_v45, %v1487_v39  ;;  %v10419_v52 = vadd.s32 %v1518_v3, %v1509_v17  ;;  %v10421_v33 = vadd.s32 %v1534_v15, %v1530_v51  ;;  %v16104_v54 = vor.u32 %v10054_v22, %v9984_v16 }
 0x227   :  { %v3102_v25 = vor.u32 %v3101_v37, %v3100_v47  ;;  %v3105_v1 = vshll.u32 %v3104_v14, 23  ;;  %v1540_v4 = vadd.s32 %v1539_v28, %v1529_v36  ;;  %v3461_v9 = vadd.s32 1, %v10222_v21 }
 0x228   :  { %v3188_v63 = vsel %vm3178_vm6, %v16104_v54, 1326507024  ;;  %v3615_v35 = vadd.s32 1, %v10266_v19  ;;  %v237_v45 = vmul.f32 %v16105_v43, %v10125_v42  ;;  %v15873_v13 = vand.u32 2147483647, %v16106_v48 }
 0x229   :  { %v3106_v51 = vor.u32 4788187, %v3105_v1  ;;  %v3109_v39 = vcvt.s32.f32 %v3102_v25  ;;  %v1541_v17 = vadd.s32 %v1540_v4, %v1531_v62  ;;  %v1542_v16 = vmul.u32 %v10325_v60, %v1488_v38 }
 0x22a   :  { %v327_v22 = vsel %vm15892_vm1, %v237_v45, 0.0  ;;  %vm1544_vm14 = vc.u32 %v10419_v52, %v10421_v33  ;;  %v3163_v21 = vshll.u32 %v16033_v23, %v9676_v2  ;;  %v3164_v19 = vshrl.u32 %v16034_v40, %v9908_v58 }
 0x22b   :  { %v3324_v36 = vshrl.u32 %v15959_v50, %v10338_v30  ;;  %v3107_v15 = vand.u32 2147483647, %v3106_v51  ;;  %328 = vadd.xlane.f32.xlu2 %v327_v22  ;;  %v1545_v18 = vadd.s32 1, %v1541_v17  ;;  %v3166_v60 = vshll.u32 %v16034_v40, %v9676_v2 }
 0x22c   :  { %v3327_v3 = vshrl.u32 %v15961_v46, %v10338_v30  ;;  %v3113_v49 = vsub.s32 4, %v10365_v31  ;;  %v3150_v34 = vand.u32 8388607, %v15873_v13  ;;  %v3167_v5 = vshrl.u32 %v15958_v0, %v9908_v58 }
 0x22d   :  { %vm2991_vm3 = vcmp.lt.s32.totalorder %v16082_v10, 0  ;;  %v3110_v20 = vmul.f32 %v3109_v39, %v3107_v15  ;;  %v1546_v6 = vsel %vm1544_vm14, %v1545_v18, %v1541_v17  ;;  %vm3332_vm15 = vcmp.lt.s32.totalorder %v10203_v29, 4 }
 0x22e   :  { %vm3462_vm8 = vcmp.gt.s32.totalorder %v3461_v9, 0  ;;  %v1547_v47 = vadd.s32 %v1546_v6, %v1542_v16  ;;  %v10455_v61 = vor.u32 %v3164_v19, %v3163_v21  ;;  %v10457_v57 = vor.u32 %v3167_v5, %v3166_v60 }
 0x22f   :  { %vm3616_vm9 = vcmp.gt.s32.totalorder %v3615_v35, 0  ;;  %v3111_v62 = vxor.u32 2147483648, %v3110_v20  ;;  %vm3175_vm2 = vcmp.lt.s32.totalorder %v9669_v41, 1  ;;  %vm3177_vm11 = vcmp.lt.s32.totalorder %v9669_v41, 3 }
 0x230   :  { %v16107_v27 = vand.u32 2147483647, %v16082_v10  ;;  %v3114_v14 = vsel %vm2991_vm3, %v3113_v49, %v10365_v31  ;;  %v1548_v28 = vadd.s32 536870912, %v1547_v47  ;;  %v3151_v38 = vor.u32 8388608, %v3150_v34 }
 0x231   :  { %v3112_v54 = vsel %vm2991_vm3, %v3111_v62, %v3110_v20  ;;  %v3160_v25 = vshll.u32 %v16031_v56, %v9676_v2  ;;  %v3161_v1 = vshrl.u32 %v16033_v23, %v9908_v58  ;;  %vm3176_vm5 = vcmp.lt.s32.totalorder %v9669_v41, 2 }
 0x232   :  { %vm10463_vm12 = vcmp.le.f32.partialorder %v16107_v27, 0.7853982  ;;  %v10480_v43 = vshrl.u32 %v1548_v28, 30  ;;  %v3187_v31 = vsel %vm3175_vm2, %v10455_v61, %v10457_v57  ;;  %v3189_v2 = vsel %vm3177_vm11, %v10219_v26, %v3188_v63 }
 0x233   :  { %v3115_v4 = vsel %vm10463_vm12, %v16082_v10, %v3112_v54  ;;  %v10490_v45 = vor.u32 %v3324_v36, %v10357_v7  ;;  %v3463_v51 = vsel %vm3462_vm8, %v3461_v9, 0  ;;  %v10494_v39 = vmul.f32 %v8618_v12, %v311_v11 }
 0x234   :  { %v3117_v17 = vmul.f32 %v3115_v4, %v3115_v4  ;;  %v3328_v16 = vor.u32 %v3327_v3, %v10363_v59  ;;  %v3116_v22 = vsel %vm10463_vm12, 0, %v3114_v14  ;;  %v1550_v21 = vshll.u32 %v10480_v43, 30 }
 0x235   :  { %16110 = vst [vmem:[#allocation15_spill] sm:$0xff] %v10494_v39  ;;  %v10500_v19 = vshll.u32 %v3151_v38, 8  ;;  %v3617_v26 = vsel %vm3616_vm9, %v3615_v35, 0  ;;  %v3190_v9 = vsel %vm3176_vm5, %v3187_v31, %v3189_v2  ;;  %v10505_v36 = vshrl.u32 %v3463_v51, 5 }
 0x236   :  { %v3118_v63 = vmul.f32 -0.001358992, %v3117_v17  ;;  %v3125_v7 = vmul.f32 -0.00019511016, %v3117_v17  ;;  %v10507_v15 = vand.u32 31, %v3463_v51  ;;  %v10509_v18 = vsub.s32 %v1547_v47, %v1550_v21 }
 0x237   :  { %v10511_v59 = vor.u32 %v3161_v1, %v3160_v25  ;;  %v10513_v60 = vshrl.u32 %v3617_v26, 5  ;;  %v3133_v34 = vand.u32 3, %v3116_v22  ;;  %v10518_v5 = vand.u32 65535, %v10500_v19 }
 0x238   :  { %v3119_v3 = vadd.f32 0.041655596, %v3118_v63  ;;  %v3126_v49 = vadd.f32 0.008332121, %v3125_v7  ;;  %vm1552_vm13 = vcmp.lt.s32.totalorder %v10509_v18, 0  ;;  %v1553_v35 = vsub.s32 0, %v10509_v18 }
 0x239   :  { %16111 = vst [vmem:[#allocation17_spill] sm:$0xff] %v10513_v60  ;;  %v3195_v20 = vshrl.u32 %v3190_v9, 16  ;;  %v10523_v6 = vsel %vm3332_vm15, %v10490_v45, 920167782  ;;  %v10525_v47 = vand.u32 31, %v3617_v26  ;;  %v3183_v14 = vsel %vm3175_vm2, %v10511_v59, %v10455_v61  ;;  %v16113_v7 = vld [vmem:[#allocation16_spill] sm:$0xff] }
 0x23a   :  { %v3120_v62 = vmul.f32 %v3119_v3, %v3117_v17  ;;  %v3127_v11 = vmul.f32 %v3126_v49, %v3117_v17  ;;  %v10529_v27 = vsel %vm3332_vm15, %v3328_v16, 1326507024  ;;  %v1554_v37 = vsel %vm1552_vm13, %v1553_v35, %v10509_v18 }
 0x23b   :  { %16112 = vst [vmem:[#allocation24_spill] sm:$0xff] %v10525_v47  ;;  %v3185_v28 = vsel %vm3177_vm11, %v10457_v57, %v10414_v53  ;;  %v3193_v25 = vshrl.u32 %v10500_v19, 16  ;;  %v3194_v1 = vand.u32 65535, %v3190_v9  ;;  %vm3135_vm10 = vcmp.eq.s32.totalorder %v3133_v34, 0 }
 0x23c   :  { %v3121_v38 = vadd.f32 -0.4999988, %v3120_v62  ;;  %v3128_v54 = vadd.f32 -0.16666654, %v3127_v11  ;;  %vm3138_vm4 = vcmp.eq.s32.totalorder %v3133_v34, 2  ;;  %v1555_v31 = vclz %v1554_v37 }
 0x23d   :  { %v3197_v2 = vmul.u32 %v3195_v20, %v10518_v5  ;;  %vm3134_vm7 = vcmp.lt.s32.totalorder %v3133_v34, 2  ;;  %v1543_v22 = vadd.s32 %v10421_v33, %v10419_v52  ;;  %v3186_v21 = vsel %vm3176_vm5, %v3183_v14, %v3185_v28 }
 0x23e   :  { %v3122_v51 = vmul.f32 %v3121_v38, %v3117_v17  ;;  %v3129_v16 = vmul.f32 %v3128_v54, %v3117_v17  ;;  %vm3132_vm14 = vweird.f32 %v16082_v10  ;;  %v7974_v53 = vadd.s32 4294967294, %v1555_v31 }
 0x23f   :  { %v3159_v26 = vshrl.u32 %v16031_v56, %v9908_v58  ;;  %v3216_v63 = vand.u32 65535, %v3186_v21  ;;  %v3196_v17 = vmul.u32 %v3194_v1, %v10518_v5  ;;  %v3198_v35 = vmul.u32 %v3194_v1, %v3193_v25 }
 0x240   :  { %v3123_v3 = vadd.f32 1.0, %v3122_v51  ;;  %v3130_v49 = vadd.f32 1.0, %v3129_v16  ;;  %vm7975_vm3 = vcmp.lt.s32.totalorder %v7974_v53, 0  ;;  %v3199_v62 = vmul.u32 %v3195_v20, %v3193_v25 }
 0x241   :  { %v3200_v52 = vshll.u32 %v3197_v2, 16  ;;  %v3217_v33 = vshrl.u32 %v3186_v21, 16  ;;  %v1558_v14 = vsel %vm7975_vm3, 0, %v7974_v53  ;;  %v3202_v28 = vshll.u32 %v3198_v35, 16 }
 0x242   :  { %v3131_v11 = vmul.f32 %v3130_v49, %v3115_v4  ;;  %v3139_v37 = vxor.u32 2147483648, %v3123_v3  ;;  %vm1451_vm8 = vcmp.lt.s32.totalorder %v16094_v55, 0  ;;  %v1559_v38 = vsub.s32 32, %v1558_v14 }
 0x243   :  { %v1563_v58 = vsub.s32 4294967266, %v1558_v14  ;;  %v3180_v54 = vsel %vm3178_vm6, %v10457_v57, 2102212464  ;;  %v3201_v31 = vshrl.u32 %v3197_v2, 16  ;;  %v1560_v1 = vshll.u32 %v10509_v18, %v1558_v14 }
 0x244   :  { %v3136_v51 = vxor.u32 2147483648, %v3131_v11  ;;  %vm3204_vm9 = vc.u32 %v3196_v17, %v3200_v52  ;;  %v3206_v20 = vadd.s32 %v3200_v52, %v3196_v17  ;;  %v3140_v16 = vsel %vm3138_vm4, %v3139_v37, %v3131_v11 }
 0x245   :  { %v1561_v4 = vshrl.u32 %v1543_v22, %v1559_v38  ;;  %v1564_v21 = vadd.s32 127, %v1563_v58  ;;  %v3205_v53 = vsel %vm3204_vm9, 1, %v16038_v24  ;;  %v3219_v44 = vmul.u32 %v3217_v33, %v10518_v5  ;;  %v16117_v38 = vld [vmem:[#allocation33_spill] sm:$0xff] }
 0x246   :  { %v3137_v49 = vsel %vm3135_vm10, %v3123_v3, %v3136_v51  ;;  %v3207_v13 = vadd.s32 %v3205_v53, %v3199_v62  ;;  %vm3208_vm12 = vc.u32 %v3206_v20, %v3202_v28  ;;  %v1573_v22 = vsub.s32 4, %v10480_v43 }
 0x247   :  { %v3141_v57 = vsel %vm3134_vm7, %v3137_v49, %v3140_v16  ;;  %v1562_v2 = vor.u32 %v1561_v4, %v1560_v1  ;;  %v1565_v9 = vshll.u32 %v1564_v21, 23  ;;  %v3209_v18 = vsel %vm3208_vm12, 1, %v16038_v24 }
 0x248   :  { %v3142_v17 = vsel %vm3132_vm14, nan, %v3141_v57  ;;  %v3211_v52 = vadd.s32 %v3209_v18, %v3207_v13  ;;  %v3218_v11 = vmul.u32 %v3216_v63, %v10518_v5  ;;  %v16114_v3 = vand.u32 2147483647, %v16094_v55 }
 0x249   :  { %8065 = vmatmul.msk.f32.gmra.mxu2 %vm5311_vm0, %v3142_v17  ;;  %v1566_v34 = vor.u32 4788187, %v1565_v9  ;;  %v3179_v37 = vsel %vm3175_vm2, %v3159_v26, %v10511_v59  ;;  %v3181_v10 = vsel %vm3177_vm11, %v10455_v61, %v3180_v54  ;;  %v3220_v13 = vmul.u32 %v3216_v63, %v3193_v25 }
 0x24a   :  { %vm10569_vm6 = vcmp.le.f32.partialorder %v16114_v3, 0.7853982  ;;  %v3203_v14 = vshrl.u32 %v3198_v35, 16  ;;  %v3221_v5 = vmul.u32 %v3217_v33, %v3193_v25  ;;  %v3222_v28 = vshll.u32 %v3219_v44, 16 }
 0x24b   :  { %v1620_v58 = vshll.u32 %v16031_v56, %v16117_v38  ;;  %v1567_v51 = vand.u32 2147483647, %v1566_v34  ;;  %v1569_v1 = vcvt.s32.f32 %v1562_v2  ;;  %v3212_v20 = vadd.s32 %v3211_v52, %v3201_v31  ;;  %v16119_v31 = vld [vmem:[#allocation35_spill] sm:$0xff] }
 0x24c   :  { %v3224_v16 = vshll.u32 %v3220_v13, 16  ;;  %v1574_v9 = vsel %vm1451_vm8, %v1573_v22, %v10480_v43  ;;  %v3182_v59 = vsel %vm3176_vm5, %v3179_v37, %v3181_v10  ;;  %vm3226_vm2 = vc.u32 %v3218_v11, %v3222_v28  ;;  %v16120_v10 = vld [vmem:[#allocation36_spill] sm:$0xff] }
 0x24d   :  { %v3228_v61 = vadd.s32 %v3222_v28, %v3218_v11  ;;  %v1570_v26 = vmul.f32 %v1569_v1, %v1567_v51  ;;  %v3223_v63 = vshrl.u32 %v3219_v44, 16  ;;  %v3227_v25 = vsel %vm3226_vm2, 1, %v16038_v24  ;;  %v16121_v1 = vld [vmem:[#allocation57_spill] sm:$0xff] }
 0x24e   :  { %v16118_v35 = vand.u32 2147483647, %v16113_v7  ;;  %v3225_v54 = vshrl.u32 %v3220_v13, 16  ;;  %v3229_v4 = vadd.s32 %v3227_v25, %v3221_v5  ;;  %v1621_v21 = vshrl.u32 %v16033_v23, %v16119_v31 }
 0x24f   :  { %vm3230_vm11 = vc.u32 %v3228_v61, %v3224_v16  ;;  %v1571_v53 = vxor.u32 2147483648, %v1570_v26  ;;  %v10591_v43 = vadd.s32 %v3212_v20, %v3203_v14  ;;  %v1623_v49 = vshll.u32 %v16033_v23, %v16117_v38  ;;  %v16122_v20 = vld [vmem:[#allocation45_spill] sm:$0xff] }
 0x250   :  { %v1610_v33 = vand.u32 8388607, %v16118_v35  ;;  %v3231_v41 = vsel %vm3230_vm11, 1, %v16038_v24  ;;  %v10596_v44 = vadd.s32 %v3228_v61, %v3224_v16  ;;  %v10598_v18 = vor.u32 %v1621_v21, %v1620_v58 }
 0x251   :  { %v3233_v57 = vadd.s32 %v3231_v41, %v3229_v4  ;;  %v1572_v17 = vsel %vm1451_vm8, %v1571_v53, %v1570_v26  ;;  %v1624_v22 = vshrl.u32 %v16034_v40, %v16119_v31  ;;  %v1626_v52 = vshll.u32 %v16034_v40, %v16117_v38 }
 0x252   :  { %v1611_v2 = vor.u32 8388608, %v1610_v33  ;;  %v1627_v11 = vshrl.u32 %v15958_v0, %v16119_v31  ;;  %v1575_v3 = vsel %vm10569_vm6, %v16094_v55, %v1572_v17  ;;  %v3236_v37 = vmul.u32 %v10500_v19, %v3182_v59 }
 0x253   :  { %v3234_v34 = vadd.s32 %v3233_v57, %v3223_v63  ;;  %vm1635_vm5 = vcmp.lt.s32.totalorder %v16120_v10, 1  ;;  %v1577_v13 = vmul.f32 %v1575_v3, %v1575_v3  ;;  %v10613_v14 = vor.u32 %v1624_v22, %v1623_v49  ;;  %v16124_v63 = vld [vmem:[#allocation49_spill] sm:$0xff] }
 0x254   :  { %v10615_v5 = vor.u32 %v1627_v11, %v1626_v52  ;;  %vm1637_vm13 = vcmp.lt.s32.totalorder %v16120_v10, 3  ;;  %vm3238_vm10 = vc.u32 %v10591_v43, %v10596_v44  ;;  %vm1636_vm4 = vcmp.lt.s32.totalorder %v16120_v10, 2 }
 0x255   :  { %v3235_v28 = vadd.s32 %v3234_v34, %v3225_v54  ;;  %v10621_v38 = vshll.u32 %v1611_v2, 8  ;;  %v1578_v58 = vmul.f32 -0.001358992, %v1577_v13  ;;  %v1585_v51 = vmul.f32 -0.00019511016, %v1577_v13 }
 0x256   :  { %v1643_v19 = vsel %vm1635_vm5, %v10598_v18, %v10613_v14  ;;  %v1649_v16 = vsel %vm1637_vm13, %v16122_v20, %v16121_v1  ;;  %v16123_v59 = vand.u32 2139095040, %v10269_v32  ;;  %v1645_v25 = vsel %vm1637_vm13, %v10615_v5, %v16124_v63 }
 0x257   :  { %v3239_v26 = vadd.s32 1, %v3235_v28  ;;  %v1647_v35 = vsel %vm1635_vm5, %v10613_v14, %v10615_v5  ;;  %v1576_v33 = vsel %vm10569_vm6, 0, %v1574_v9  ;;  %v1579_v54 = vadd.f32 0.041655596, %v1578_v58 }
 0x258   :  { %v10633_v61 = vshrl.u32 %v16123_v59, 23  ;;  %v1586_v4 = vadd.f32 0.008332121, %v1585_v51  ;;  %v1646_v21 = vsel %vm1636_vm4, %v1643_v19, %v1645_v25  ;;  %v1650_v41 = vsel %vm1636_vm4, %v1647_v35, %v1649_v16 }
 0x259   :  { %v3240_v53 = vsel %vm3238_vm10, %v3239_v26, %v3235_v28  ;;  %v1652_v49 = vand.u32 65535, %v10621_v38  ;;  %v1653_v57 = vshrl.u32 %v10621_v38, 16  ;;  %v1580_v2 = vmul.f32 %v1579_v54, %v1577_v13 }
 0x25a   :  { %v1587_v17 = vmul.f32 %v1586_v4, %v1577_v13  ;;  %v3241_v22 = vadd.s32 %v3240_v53, %v3236_v37  ;;  %v1654_v52 = vand.u32 65535, %v1650_v41  ;;  %v1593_v9 = vand.u32 3, %v1576_v33 }
 0x25b   :  { %v1655_v11 = vshrl.u32 %v1650_v41, 16  ;;  %v1677_v34 = vshrl.u32 %v1646_v21, 16  ;;  %v10653_v58 = vsub.s32 32, %v10507_v15  ;;  %v1581_v28 = vadd.f32 -0.4999988, %v1580_v2 }
 0x25c   :  { %v1588_v51 = vadd.f32 -0.16666654, %v1587_v17  ;;  %v3242_v19 = vadd.s32 536870912, %v3241_v22  ;;  %v1656_v1 = vmul.u32 %v1654_v52, %v1652_v49  ;;  %v10655_v16 = vmul.u32 %v1654_v52, %v1653_v57 }
 0x25d   :  { %v1657_v20 = vmul.u32 %v1655_v11, %v1652_v49  ;;  %v1676_v59 = vand.u32 65535, %v1646_v21  ;;  %v10659_v37 = vshll.u32 %v15958_v0, %v10507_v15  ;;  %v1582_v26 = vmul.f32 %v1581_v28, %v1577_v13 }
 0x25e   :  { %v1589_v63 = vmul.f32 %v1588_v51, %v1577_v13  ;;  %v10661_v25 = vshrl.u32 %v3242_v19, 30  ;;  %vm1592_vm7 = vweird.f32 %v16094_v55  ;;  %vm1594_vm14 = vcmp.lt.s32.totalorder %v1593_v9, 2 }
 0x25f   :  { %v1660_v35 = vshll.u32 %v1657_v20, 16  ;;  %v1662_v33 = vshll.u32 %v10655_v16, 16  ;;  %v10665_v54 = vmul.u32 %v1677_v34, %v1652_v49  ;;  %v1583_v4 = vadd.f32 1.0, %v1582_v26 }
 0x260   :  { %v1590_v53 = vadd.f32 1.0, %v1589_v63  ;;  %vm1595_vm3 = vcmp.eq.s32.totalorder %v1593_v9, 0  ;;  %v3244_v21 = vshll.u32 %v10661_v25, 30  ;;  %v1659_v41 = vmul.u32 %v1655_v11, %v1653_v57 }
 0x261   :  { %vm1664_vm8 = vc.u32 %v1656_v1, %v1660_v35  ;;  %v1666_v2 = vadd.s32 %v1660_v35, %v1656_v1  ;;  %v1678_v17 = vmul.u32 %v1676_v59, %v1652_v49  ;;  %v1599_v52 = vxor.u32 2147483648, %v1583_v4 }
 0x262   :  { %v1591_v13 = vmul.f32 %v1590_v53, %v1575_v3  ;;  %v10668_v28 = vsub.s32 %v3241_v22, %v3244_v21  ;;  %v10670_v51 = vmul.u32 %v1676_v59, %v1653_v57  ;;  %vm1598_vm9 = vcmp.eq.s32.totalorder %v1593_v9, 2 }
 0x263   :  { %v1665_v19 = vsel %vm1664_vm8, 1, %v16038_v24  ;;  %vm1668_vm12 = vc.u32 %v1666_v2, %v1662_v33  ;;  %v1682_v26 = vshll.u32 %v10665_v54, 16  ;;  %v1661_v62 = vshrl.u32 %v1657_v20, 16 }
 0x264   :  { %v1596_v63 = vxor.u32 2147483648, %v1591_v13  ;;  %vm3246_vm6 = vcmp.lt.s32.totalorder %v10668_v28, 0  ;;  %v3247_v11 = vsub.s32 0, %v10668_v28  ;;  %v1600_v1 = vsel %vm1598_vm9, %v1599_v52, %v1591_v13 }
 0x265   :  { %v1667_v49 = vadd.s32 %v1665_v19, %v1659_v41  ;;  %v1669_v3 = vsel %vm1668_vm12, 1, %v16038_v24  ;;  %v1681_v22 = vmul.u32 %v1677_v34, %v1653_v57  ;;  %v1684_v53 = vshll.u32 %v10670_v51, 16 }
 0x266   :  { %v1597_v59 = vsel %vm1595_vm3, %v1583_v4, %v1596_v63  ;;  %v3248_v35 = vsel %vm3246_vm6, %v3247_v11, %v10668_v28  ;;  %vm1686_vm2 = vc.u32 %v1678_v17, %v1682_v26  ;;  %v10684_v20 = vshll.u32 %v15959_v50, %v10507_v15 }
 0x267   :  { %v1601_v33 = vsel %vm1594_vm14, %v1597_v59, %v1600_v1  ;;  %v3249_v21 = vclz %v3248_v35  ;;  %v1671_v2 = vadd.s32 %v1669_v3, %v1667_v49  ;;  %v1687_v12 = vsel %vm1686_vm2, 1, %v16038_v24 }
 0x268   :  { %v1602_v57 = vsel %vm1592_vm7, nan, %v1601_v33  ;;  %v1619_v34 = vshrl.u32 %v16031_v56, %v16119_v31  ;;  %v1688_v4 = vadd.s32 %v1682_v26, %v1678_v17  ;;  %v10691_v41 = vsub.s32 32, %v10525_v47 }
 0x269   :  { %v3631_v9 = vshll.u32 %v15958_v0, %v10525_v47  ;;  %v10697_v13 = vshll.u32 %v15959_v50, %v10525_v47  ;;  %8055 = vmatmul.msk.f32.gmra.mxu0 %vm5311_vm0, %v1602_v57  ;;  %v8007_v52 = vadd.s32 4294967294, %v3249_v21  ;;  %v3478_v55 = vshrl.u32 %v15959_v50, %v10653_v58 }
 0x26a   :  { %16125 = vst [vmem:[#allocation18_spill] sm:$0xff] %v10691_v41  ;;  %vm16126_vm11 = vcmp.lt.s32.totalorder %v16120_v10, 4  ;;  %v1689_v17 = vadd.s32 %v1687_v12, %v1681_v22  ;;  %vm1690_vm10 = vc.u32 %v1688_v4, %v1684_v53  ;;  %v3237_v19 = vadd.s32 %v10596_v44, %v10591_v43 }
 0x26b   :  { %v1640_v31 = vsel %vm16126_vm11, %v10615_v5, 2102212464  ;;  %vm8008_vm7 = vcmp.lt.s32.totalorder %v8007_v52, 0  ;;  %v1663_v26 = vshrl.u32 %v10655_v16, 16  ;;  %v1672_v63 = vadd.s32 %v1671_v2, %v1661_v62 }
 0x26c   :  { %vm3486_vm14 = vcmp.lt.s32.totalorder %v10505_v36, 4  ;;  %v3252_v11 = vsel %vm8008_vm7, 0, %v8007_v52  ;;  %v1639_v1 = vsel %vm1635_vm5, %v1619_v34, %v10598_v18  ;;  %v1683_v49 = vshrl.u32 %v10665_v54, 16 }
 0x26d   :  { %v1691_v5 = vsel %vm1690_vm10, 1, %v16038_v24  ;;  %v3253_v12 = vsub.s32 32, %v3252_v11  ;;  %v3254_v3 = vshll.u32 %v10668_v28, %v3252_v11  ;;  %v3257_v22 = vsub.s32 4294967266, %v3252_v11 }
 0x26e   :  { %v1641_v43 = vsel %vm1637_vm13, %v10613_v14, %v1640_v31  ;;  %v3481_v44 = vshrl.u32 %v15961_v46, %v10653_v58  ;;  %v8018_v62 = vadd.s32 4294967169, %v10633_v61  ;;  %v1685_v16 = vshrl.u32 %v10670_v51, 16 }
 0x26f   :  { %v1693_v18 = vadd.s32 %v1691_v5, %v1689_v17  ;;  %v3255_v59 = vshrl.u32 %v3237_v19, %v3253_v12  ;;  %v3258_v54 = vadd.s32 127, %v3257_v22  ;;  %v10722_v35 = vadd.s32 %v1672_v63, %v1663_v26  ;;  %v16129_v19 = vld [vmem:[#allocation100_spill] sm:$0xff] }
 0x270   :  { %v10724_v33 = vadd.s32 %v1688_v4, %v1684_v53  ;;  %v3632_v28 = vshrl.u32 %v15959_v50, %v10691_v41  ;;  %v16127_v21 = vand.u32 2139095040, %v10494_v39  ;;  %v1642_v2 = vsel %vm1636_vm4, %v1639_v1, %v1641_v43  ;;  %v16128_v4 = vld [vmem:[#allocation8_spill] sm:$0xff] }
 0x271   :  { %v1694_v57 = vadd.s32 %v1693_v18, %v1683_v49  ;;  %v10733_v61 = vor.u32 %v3478_v55, %v10659_v37  ;;  %v3635_v51 = vshrl.u32 %v15961_v46, %v10691_v41  ;;  %v3256_v34 = vor.u32 %v3255_v59, %v3254_v3 }
 0x272   :  { %v3917_v14 = vshrl.u32 %v16127_v21, 23  ;;  %v3259_v52 = vshll.u32 %v3258_v54, 23  ;;  %v3482_v53 = vor.u32 %v3481_v44, %v10684_v20  ;;  %v238_v31 = vmul.f32 %v16128_v4, %v10125_v42  ;;  %v16137_v54 = vld [vmem:[#allocation55_spill] sm:$0xff] }
 0x273   :  { %v1695_v17 = vadd.s32 %v1694_v57, %v1685_v16  ;;  %v15877_v26 = vand.u32 2147483647, %v16129_v19  ;;  %vm3640_vm5 = vcmp.lt.s32.totalorder %v10513_v60, 4  ;;  %v3263_v63 = vcvt.s32.f32 %v3256_v34 }
 0x274   :  { %v3260_v10 = vor.u32 4788187, %v3259_v52  ;;  %v1696_v37 = vmul.u32 %v10621_v38, %v1642_v2  ;;  %vm1698_vm13 = vc.u32 %v10722_v35, %v10724_v33  ;;  %v3769_v55 = vadd.s32 1, %v8018_v62 }
 0x275   :  { %v8021_v11 = vadd.s32 4294967169, %v3917_v14  ;;  %v330_v1 = vsel %vm15892_vm1, %v238_v31, 0.0  ;;  %v1699_v20 = vadd.s32 1, %v1695_v17  ;;  %v10746_v49 = vor.u32 %v3632_v28, %v3631_v9 }
 0x276   :  { %v3261_v5 = vand.u32 2147483647, %v3260_v10  ;;  %v3267_v12 = vsub.s32 4, %v10661_v25  ;;  %331 = vadd.xlane.f32.xlu0 %v330_v1  ;;  %v3317_v3 = vshll.u32 %v16033_v23, %v10205_v8  ;;  %v3304_v38 = vand.u32 8388607, %v15877_v26 }
 0x277   :  { %16130 = vst [vmem:[#allocation22_spill] sm:$0xff] %v10746_v49  ;;  %v1700_v22 = vsel %vm1698_vm13, %v1699_v20, %v1695_v17  ;;  %v3318_v43 = vshrl.u32 %v16034_v40, %v10338_v30  ;;  %v3320_v44 = vshll.u32 %v16034_v40, %v10205_v8  ;;  %v10760_v9 = vsel %vm3486_vm14, %v10733_v61, 920167782 }
 0x278   :  { %v3636_v62 = vor.u32 %v3635_v51, %v10697_v13  ;;  %v3264_v16 = vmul.f32 %v3263_v63, %v3261_v5  ;;  %v1701_v18 = vadd.s32 %v1700_v22, %v1696_v37  ;;  %v16131_v59 = vand.u32 2147483647, %v16106_v48  ;;  %v16136_v22 = vld [vmem:[#allocation29_spill] sm:$0xff] }
 0x279   :  { %vm3145_vm3 = vcmp.lt.s32.totalorder %v16106_v48, 0  ;;  %v10770_v28 = vor.u32 %v3318_v43, %v3317_v3  ;;  %v3321_v21 = vshrl.u32 %v15958_v0, %v10338_v30  ;;  %vm3329_vm8 = vcmp.lt.s32.totalorder %v10203_v29, 1 }
 0x27a   :  { %vm10765_vm4 = vcmp.le.f32.partialorder %v16131_v59, 0.7853982  ;;  %v3265_v14 = vxor.u32 2147483648, %v3264_v16  ;;  %v1702_v2 = vadd.s32 536870912, %v1701_v18  ;;  %vm3331_vm9 = vcmp.lt.s32.totalorder %v10203_v29, 3 }
 0x27b   :  { %v10778_v13 = vsel %vm3486_vm14, %v3482_v53, 1326507024  ;;  %v3268_v57 = vsel %vm3145_vm3, %v3267_v12, %v10661_v25  ;;  %v3305_v51 = vor.u32 8388608, %v3304_v38  ;;  %v10781_v34 = vor.u32 %v3321_v21, %v3320_v44 }
 0x27c   :  { %v3266_v52 = vsel %vm3145_vm3, %v3265_v14, %v3264_v16  ;;  %v10783_v4 = vshrl.u32 %v1702_v2, 30  ;;  %v3314_v31 = vshll.u32 %v16031_v56, %v10205_v8  ;;  %v3315_v17 = vshrl.u32 %v16033_v23, %v10338_v30 }
 0x27d   :  { %v10792_v10 = vsel %vm10765_vm4, %v16106_v48, %v3266_v52  ;;  %vm3330_vm12 = vcmp.lt.s32.totalorder %v10203_v29, 2  ;;  %v3341_v25 = vsel %vm3329_vm8, %v10770_v28, %v10781_v34  ;;  %v3343_v8 = vsel %vm3331_vm9, %v10490_v45, %v10529_v27  ;;  %v16138_v52 = vld [vmem:[#allocation62_spill] sm:$0xff] }
 0x27e   :  { %vm3770_vm6 = vcmp.gt.s32.totalorder %v3769_v55, 0  ;;  %v3270_v53 = vsel %vm10765_vm4, 0, %v3268_v57  ;;  %v3271_v63 = vmul.f32 %v10792_v10, %v10792_v10  ;;  %v1704_v37 = vshll.u32 %v10783_v4, 30 }
 0x27f   :  { %v10811_v1 = vsel %vm3640_vm5, %v10746_v49, 920167782  ;;  %v10815_v20 = vsel %vm3640_vm5, %v3636_v62, 1326507024  ;;  %v10817_v5 = vadd.s32 1, %v8021_v11  ;;  %v10819_v45 = vshll.u32 %v3305_v51, 8 }
 0x280   :  { %16134 = vst [vmem:[#allocation13_spill] sm:$0xff] %v10811_v1  ;;  %v3272_v27 = vmul.f32 -0.001358992, %v3271_v63  ;;  %v3279_v12 = vmul.f32 -0.00019511016, %v3271_v63  ;;  %v3344_v3 = vsel %vm3330_vm12, %v3341_v25, %v3343_v8  ;;  %v10824_v43 = vsel %vm3770_vm6, %v3769_v55, 0 }
 0x281   :  { %16135 = vst [vmem:[#allocation27_spill] sm:$0xff] %v10815_v20  ;;  %v15876_v38 = vand.u32 2147483647, %v16136_v22  ;;  %v10826_v44 = vand.u32 3, %v3270_v53  ;;  %v10828_v16 = vsub.s32 %v1701_v18, %v1704_v37  ;;  %v10830_v59 = vor.u32 %v3315_v17, %v3314_v31 }
 0x282   :  { %v3273_v62 = vadd.f32 0.041655596, %v3272_v27  ;;  %v3280_v11 = vadd.f32 0.008332121, %v3279_v12  ;;  %vm1605_vm2 = vcmp.lt.s32.totalorder %v16113_v7, 0  ;;  %v10835_v21 = vshll.u32 %v16031_v56, %v16137_v54 }
 0x283   :  { %vm1706_vm11 = vcmp.lt.s32.totalorder %v10828_v16, 0  ;;  %v1707_v14 = vsub.s32 0, %v10828_v16  ;;  %v10840_v55 = vand.u32 65535, %v10819_v45  ;;  %v3349_v2 = vshrl.u32 %v3344_v3, 16 }
 0x284   :  { %v3274_v18 = vmul.f32 %v3273_v62, %v3271_v63  ;;  %v3281_v57 = vmul.f32 %v3280_v11, %v3271_v63  ;;  %v10844_v51 = vand.u32 8388607, %v15876_v38  ;;  %v10848_v31 = vshrl.u32 %v16033_v23, %v16138_v52 }
 0x285   :  { %vm3289_vm10 = vcmp.eq.s32.totalorder %v10826_v44, 0  ;;  %vm3292_vm7 = vcmp.eq.s32.totalorder %v10826_v44, 2  ;;  %v1697_v17 = vadd.s32 %v10724_v33, %v10722_v35  ;;  %v1708_v25 = vsel %vm1706_vm11, %v1707_v14, %v10828_v16 }
 0x286   :  { %v3337_v8 = vsel %vm3329_vm8, %v10830_v59, %v10770_v28  ;;  %v3275_v53 = vadd.f32 -0.4999988, %v3274_v18  ;;  %v3282_v37 = vadd.f32 -0.16666654, %v3281_v57  ;;  %vm3288_vm13 = vcmp.lt.s32.totalorder %v10826_v44, 2 }
 0x287   :  { %v10861_v27 = vshrl.u32 %v10819_v45, 16  ;;  %v3348_v12 = vand.u32 65535, %v3344_v3  ;;  %vm3286_vm4 = vweird.f32 %v16106_v48  ;;  %v1709_v62 = vclz %v1708_v25 }
 0x288   :  { %v1727_v35 = vsub.s32 4, %v10783_v4  ;;  %v3339_v33 = vsel %vm3331_vm9, %v10781_v34, %v10523_v6  ;;  %v10870_v11 = vmul.u32 %v3349_v2, %v10840_v55  ;;  %v3276_v14 = vmul.f32 %v3275_v53, %v3271_v63 }
 0x289   :  { %v3283_v18 = vmul.f32 %v3282_v37, %v3271_v63  ;;  %v1777_v3 = vshll.u32 %v16033_v23, %v16137_v54  ;;  %v7977_v38 = vadd.s32 4294967294, %v1709_v62  ;;  %v1778_v25 = vshrl.u32 %v16034_v40, %v16138_v52 }
 0x28a   :  { %v1780_v26 = vshll.u32 %v16034_v40, %v16137_v54  ;;  %v1781_v6 = vshrl.u32 %v15958_v0, %v16138_v52  ;;  %v3277_v42 = vadd.f32 1.0, %v3276_v14  ;;  %v3340_v63 = vsel %vm3330_vm12, %v3337_v8, %v3339_v33 }
 0x28b   :  { %v3284_v39 = vadd.f32 1.0, %v3283_v18  ;;  %v10884_v53 = vmul.u32 %v3348_v12, %v10861_v27  ;;  %v16139_v37 = vand.u32 2147483647, %v16113_v7  ;;  %vm7978_vm6 = vcmp.lt.s32.totalorder %v7977_v38, 0 }
 0x28c   :  { %v10895_v54 = vsel %vm1605_vm2, %v1727_v35, %v10783_v4  ;;  %v3350_v14 = vmul.u32 %v3348_v12, %v10840_v55  ;;  %v3354_v18 = vshll.u32 %v10870_v11, 16  ;;  %v3293_v33 = vxor.u32 2147483648, %v3277_v42 }
 0x28d   :  { %vm10888_vm3 = vcmp.le.f32.partialorder %v16139_v37, 0.7853982  ;;  %v3285_v8 = vmul.f32 %v3284_v39, %v10792_v10  ;;  %v1712_v57 = vsel %vm7978_vm6, 0, %v7977_v38  ;;  %v3353_v32 = vmul.u32 %v3349_v2, %v10861_v27 }
 0x28e   :  { %v1713_v37 = vsub.s32 32, %v1712_v57  ;;  %v1714_v1 = vshll.u32 %v10828_v16, %v1712_v57  ;;  %v1717_v49 = vsub.s32 4294967266, %v1712_v57  ;;  %v3313_v20 = vshrl.u32 %v16031_v56, %v10338_v30 }
 0x28f   :  { %v3290_v60 = vxor.u32 2147483648, %v3285_v8  ;;  %v3294_v4 = vsel %vm3292_vm7, %v3293_v33, %v3285_v8  ;;  %v3334_v12 = vsel %vm3332_vm15, %v10781_v34, 2102212464  ;;  %v3356_v39 = vshll.u32 %v10884_v53, 16 }
 0x290   :  { %v1715_v10 = vshrl.u32 %v1697_v17, %v1713_v37  ;;  %v1718_v38 = vadd.s32 127, %v1717_v49  ;;  %vm3358_vm11 = vc.u32 %v3350_v14, %v3354_v18  ;;  %v3360_v2 = vadd.s32 %v3354_v18, %v3350_v14 }
 0x291   :  { %v3291_v16 = vsel %vm3289_vm10, %v3277_v42, %v3290_v60  ;;  %v3359_v35 = vsel %vm3358_vm11, 1, %v16038_v24  ;;  %v3370_v30 = vand.u32 65535, %v3340_v63  ;;  %v3371_v57 = vshrl.u32 %v3340_v63, 16 }
 0x292   :  { %v3295_v8 = vsel %vm3288_vm13, %v3291_v16, %v3294_v4  ;;  %v1716_v33 = vor.u32 %v1715_v10, %v1714_v1  ;;  %v1719_v41 = vshll.u32 %v1718_v38, 23  ;;  %v3361_v47 = vadd.s32 %v3359_v35, %v3353_v32  ;;  %v16143_v10 = vld [vmem:[#allocation78_spill] sm:$0xff] }
 0x293   :  { %v3296_v34 = vsel %vm3286_vm4, nan, %v3295_v8  ;;  %v3335_v49 = vsel %vm3331_vm9, %v10770_v28, %v3334_v12  ;;  %v3355_v17 = vshrl.u32 %v10870_v11, 16  ;;  %vm3362_vm15 = vc.u32 %v3360_v2, %v3356_v39 }
 0x294   :  { %8066 = vmatmul.msk.f32.gmra.mxu2 %vm5311_vm0, %v3296_v34  ;;  %v1720_v42 = vor.u32 4788187, %v1719_v41  ;;  %v1723_v60 = vcvt.s32.f32 %v1716_v33  ;;  %v3333_v1 = vsel %vm3329_vm8, %v3313_v20, %v10830_v59  ;;  %v3363_v32 = vsel %vm3362_vm15, 1, %v16038_v24  ;;  %v16144_v34 = vld [vmem:[#allocation81_spill] sm:$0xff] }
 0x295   :  { %v3365_v44 = vadd.s32 %v3363_v32, %v3361_v47  ;;  %v3372_v48 = vmul.u32 %v3370_v30, %v10840_v55  ;;  %v3373_v63 = vmul.u32 %v3371_v57, %v10840_v55  ;;  %v3374_v28 = vmul.u32 %v3370_v30, %v10861_v27 }
 0x296   :  { %v1721_v14 = vand.u32 2147483647, %v1720_v42  ;;  %v10931_v11 = vor.u32 %v10848_v31, %v10835_v21  ;;  %v10933_v41 = vor.u32 %v1778_v25, %v1777_v3  ;;  %v10935_v18 = vor.u32 %v1781_v6, %v1780_v26  ;;  %v16142_v21 = vld [vmem:[#allocation59_spill] sm:$0xff] }
 0x297   :  { %v1730_v20 = vsel %vm10888_vm3, 0, %v10895_v54  ;;  %v3375_v47 = vmul.u32 %v3371_v57, %v10861_v27  ;;  %v3376_v59 = vshll.u32 %v3373_v63, 16  ;;  %v3378_v37 = vshll.u32 %v3374_v28, 16 }
 0x298   :  { %v1724_v55 = vmul.f32 %v1723_v60, %v1721_v14  ;;  %v3336_v4 = vsel %vm3330_vm12, %v3333_v1, %v3335_v49  ;;  %v3357_v12 = vshrl.u32 %v10884_v53, 16  ;;  %vm1789_vm8 = vcmp.lt.s32.totalorder %v16142_v21, 1  ;;  %v16145_v49 = vld [vmem:[#allocation72_spill] sm:$0xff] }
 0x299   :  { %v3366_v31 = vadd.s32 %v3365_v44, %v3355_v17  ;;  %vm3380_vm9 = vc.u32 %v3372_v48, %v3376_v59  ;;  %v3382_v26 = vadd.s32 %v3376_v59, %v3372_v48  ;;  %vm1791_vm10 = vcmp.lt.s32.totalorder %v16142_v21, 3 }
 0x29a   :  { %v1725_v3 = vxor.u32 2147483648, %v1724_v55  ;;  %v3377_v25 = vshrl.u32 %v3373_v63, 16  ;;  %v3381_v6 = vsel %vm3380_vm9, 1, %v16038_v24  ;;  %vm1790_vm7 = vcmp.lt.s32.totalorder %v16142_v21, 2 }
 0x29b   :  { %v3379_v27 = vshrl.u32 %v3374_v28, 16  ;;  %v3383_v54 = vadd.s32 %v3381_v6, %v3375_v47  ;;  %vm3384_vm13 = vc.u32 %v3382_v26, %v3378_v37  ;;  %v1797_v29 = vsel %vm1789_vm8, %v10931_v11, %v10933_v41 }
 0x29c   :  { %v1726_v53 = vsel %vm1605_vm2, %v1725_v3, %v1724_v55  ;;  %v3385_v39 = vsel %vm3384_vm13, 1, %v16038_v24  ;;  %v1799_v38 = vsel %vm1791_vm10, %v10935_v18, %v16143_v10  ;;  %v1801_v2 = vsel %vm1789_vm8, %v10933_v41, %v10935_v18 }
 0x29d   :  { %v1729_v16 = vsel %vm10888_vm3, %v16113_v7, %v1726_v53  ;;  %v10966_v35 = vadd.s32 %v3366_v31, %v3357_v12  ;;  %v10968_v30 = vadd.s32 %v3382_v26, %v3378_v37  ;;  %v3387_v57 = vadd.s32 %v3385_v39, %v3383_v54 }
 0x29e   :  { %v1731_v8 = vmul.f32 %v1729_v16, %v1729_v16  ;;  %v1800_v33 = vsel %vm1790_vm7, %v1797_v29, %v1799_v38  ;;  %v1803_v17 = vsel %vm1791_vm10, %v16145_v49, %v16144_v34  ;;  %v16146_v42 = vor.u32 8388608, %v10844_v51 }
 0x29f   :  { %v3388_v62 = vadd.s32 %v3387_v57, %v3377_v25  ;;  %v3390_v1 = vmul.u32 %v10819_v45, %v3336_v4  ;;  %v1804_v32 = vsel %vm1790_vm7, %v1801_v2, %v1803_v17  ;;  %v1831_v44 = vshrl.u32 %v1800_v33, 16 }
 0x2a0   :  { %v10978_v60 = vshll.u32 %v16146_v42, 8  ;;  %v1732_v48 = vmul.f32 -0.001358992, %v1731_v8  ;;  %v1739_v63 = vmul.f32 -0.00019511016, %v1731_v8  ;;  %v1808_v59 = vand.u32 65535, %v1804_v32 }
 0x2a1   :  { %v3389_v47 = vadd.s32 %v3388_v62, %v3379_v27  ;;  %v1809_v37 = vshrl.u32 %v1804_v32, 16  ;;  %v1830_v55 = vand.u32 65535, %v1800_v33  ;;  %vm3392_vm12 = vc.u32 %v10966_v35, %v10968_v30 }
 0x2a2   :  { %v1806_v28 = vand.u32 65535, %v10978_v60  ;;  %v1807_v14 = vshrl.u32 %v10978_v60, 16  ;;  %v1733_v51 = vadd.f32 0.041655596, %v1732_v48  ;;  %v1740_v12 = vadd.f32 0.008332121, %v1739_v63 }
 0x2a3   :  { %v3393_v4 = vadd.s32 1, %v3389_v47  ;;  %v1747_v54 = vand.u32 3, %v1730_v20  ;;  %v1773_v33 = vshrl.u32 %v16031_v56, %v16138_v52  ;;  %vm1746_vm3 = vweird.f32 %v16113_v7 }
 0x2a4   :  { %v10987_v45 = vmul.u32 %v1831_v44, %v1806_v28  ;;  %v1810_v31 = vmul.u32 %v1808_v59, %v1806_v28  ;;  %v1811_v26 = vmul.u32 %v1809_v37, %v1806_v28  ;;  %v10989_v3 = vmul.u32 %v1808_v59, %v1807_v14 }
 0x2a5   :  { %v1734_v25 = vmul.f32 %v1733_v51, %v1731_v8  ;;  %v1741_v6 = vmul.f32 %v1740_v12, %v1731_v8  ;;  %v1813_v29 = vmul.u32 %v1809_v37, %v1807_v14  ;;  %v3394_v27 = vsel %vm3392_vm12, %v3393_v4, %v3389_v47 }
 0x2a6   :  { %v1814_v53 = vshll.u32 %v1811_v26, 16  ;;  %v1816_v39 = vshll.u32 %v10989_v3, 16  ;;  %v10992_v10 = vmul.u32 %v1830_v55, %v1807_v14  ;;  %v3395_v57 = vadd.s32 %v3394_v27, %v3390_v1 }
 0x2a7   :  { %v1735_v38 = vadd.f32 -0.4999988, %v1734_v25  ;;  %v1742_v2 = vadd.f32 -0.16666654, %v1741_v6  ;;  %v1832_v49 = vmul.u32 %v1830_v55, %v1806_v28  ;;  %v1836_v17 = vshll.u32 %v10987_v45, 16 }
 0x2a8   :  { %vm1818_vm2 = vc.u32 %v1810_v31, %v1814_v53  ;;  %v1820_v34 = vadd.s32 %v1814_v53, %v1810_v31  ;;  %vm1748_vm4 = vcmp.lt.s32.totalorder %v1747_v54, 2  ;;  %v3396_v62 = vadd.s32 536870912, %v3395_v57 }
 0x2a9   :  { %v1736_v42 = vmul.f32 %v1735_v38, %v1731_v8  ;;  %v1743_v20 = vmul.f32 %v1742_v2, %v1731_v8  ;;  %v1819_v32 = vsel %vm1818_vm2, 1, %v16038_v24  ;;  %v1815_v48 = vshrl.u32 %v1811_v26, 16 }
 0x2aa   :  { %v1821_v63 = vadd.s32 %v1819_v32, %v1813_v29  ;;  %vm1822_vm6 = vc.u32 %v1820_v34, %v1816_v39  ;;  %v1838_v1 = vshll.u32 %v10992_v10, 16  ;;  %v11000_v59 = vshrl.u32 %v3396_v62, 30 }
 0x2ab   :  { %v1737_v47 = vadd.f32 1.0, %v1736_v42  ;;  %v1744_v52 = vadd.f32 1.0, %v1743_v20  ;;  %v1823_v28 = vsel %vm1822_vm6, 1, %v16038_v24  ;;  %v1835_v55 = vmul.u32 %v1831_v44, %v1807_v14 }
 0x2ac   :  { %v1825_v37 = vadd.s32 %v1823_v28, %v1821_v63  ;;  %vm1840_vm11 = vc.u32 %v1832_v49, %v1836_v17  ;;  %v1842_v8 = vadd.s32 %v1836_v17, %v1832_v49  ;;  %vm1749_vm15 = vcmp.eq.s32.totalorder %v1747_v54, 0  ;;  %v16148_v49 = vld [vmem:[#allocation44_spill] sm:$0xff] }
 0x2ad   :  { %v1745_v51 = vmul.f32 %v1744_v52, %v1729_v16  ;;  %v1753_v12 = vxor.u32 2147483648, %v1737_v47  ;;  %v3398_v4 = vshll.u32 %v11000_v59, 30  ;;  %vm1752_vm9 = vcmp.eq.s32.totalorder %v1747_v54, 2 }
 0x2ae   :  { %v1793_v31 = vsel %vm1789_vm8, %v1773_v33, %v10931_v11  ;;  %v1841_v26 = vsel %vm1840_vm11, 1, %v16038_v24  ;;  %vm1844_vm13 = vc.u32 %v1842_v8, %v1838_v1  ;;  %vm16147_vm12 = vcmp.lt.s32.totalorder %v16142_v21, 4 }
 0x2af   :  { %v1750_v25 = vxor.u32 2147483648, %v1745_v51  ;;  %v3399_v6 = vsub.s32 %v3395_v57, %v3398_v4  ;;  %v1794_v44 = vsel %vm16147_vm12, %v10935_v18, 2102212464  ;;  %v1817_v16 = vshrl.u32 %v10989_v3, 16 }
 0x2b0   :  { %v1826_v14 = vadd.s32 %v1825_v37, %v1815_v48  ;;  %v1837_v29 = vshrl.u32 %v10987_v45, 16  ;;  %v1843_v27 = vadd.s32 %v1841_v26, %v1835_v55  ;;  %v1845_v53 = vsel %vm1844_vm13, 1, %v16038_v24 }
 0x2b1   :  { %v1751_v39 = vsel %vm1749_vm15, %v1737_v47, %v1750_v25  ;;  %v1754_v38 = vsel %vm1752_vm9, %v1753_v12, %v1745_v51  ;;  %vm3400_vm8 = vcmp.lt.s32.totalorder %v3399_v6, 0  ;;  %v3401_v11 = vsub.s32 0, %v3399_v6 }
 0x2b2   :  { %v1755_v2 = vsel %vm1748_vm4, %v1751_v39, %v1754_v38  ;;  %v1795_v57 = vsel %vm1791_vm10, %v10933_v41, %v1794_v44  ;;  %v1839_v18 = vshrl.u32 %v10992_v10, 16  ;;  %v1847_v33 = vadd.s32 %v1845_v53, %v1843_v27 }
 0x2b3   :  { %v11020_v3 = vshrl.u32 %v10824_v43, 5  ;;  %v1756_v45 = vsel %vm1746_vm3, nan, %v1755_v2  ;;  %v3402_v34 = vsel %vm3400_vm8, %v3401_v11, %v3399_v6  ;;  %v3451_v17 = vand.u32 2147483647, %v16148_v49 }
 0x2b4   :  { %8056 = vmatmul.msk.f32.gmra.mxu0 %vm5311_vm0, %v1756_v45  ;;  %v3403_v54 = vclz %v3402_v34  ;;  %v11026_v42 = vadd.s32 %v1826_v14, %v1817_v16  ;;  %v11028_v20 = vadd.s32 %v1842_v8, %v1838_v1  ;;  %v1848_v41 = vadd.s32 %v1847_v33, %v1837_v29 }
 0x2b5   :  { %v11031_v10 = vand.u32 31, %v10824_v43  ;;  %v3391_v62 = vadd.s32 %v10968_v30, %v10966_v35  ;;  %v1796_v7 = vsel %vm1790_vm7, %v1793_v31, %v1795_v57  ;;  %v3471_v32 = vshll.u32 %v16033_v23, %v10507_v15 }
 0x2b6   :  { %v8010_v48 = vadd.s32 4294967294, %v3403_v54  ;;  %v1849_v63 = vadd.s32 %v1848_v41, %v1839_v18  ;;  %v3472_v47 = vshrl.u32 %v16034_v40, %v10653_v58  ;;  %v3474_v1 = vshll.u32 %v16034_v40, %v10507_v15 }
 0x2b7   :  { %v3458_v43 = vand.u32 8388607, %v3451_v17  ;;  %v3468_v35 = vshll.u32 %v16031_v56, %v10507_v15  ;;  %v3469_v21 = vshrl.u32 %v16033_v23, %v10653_v58  ;;  %v3475_v30 = vshrl.u32 %v15958_v0, %v10653_v58 }
 0x2b8   :  { %vm8011_vm10 = vcmp.lt.s32.totalorder %v8010_v48, 0  ;;  %v1850_v52 = vmul.u32 %v10978_v60, %v1796_v7  ;;  %vm1852_vm7 = vc.u32 %v11026_v42, %v11028_v20  ;;  %v1853_v28 = vadd.s32 1, %v1849_v63 }
 0x2b9   :  { %vm3924_vm2 = vcmp.gt.s32.totalorder %v10817_v5, 0  ;;  %v3406_v37 = vsel %vm8011_vm10, 0, %v8010_v48  ;;  %v11055_v55 = vor.u32 %v3472_v47, %v3471_v32  ;;  %v11057_v8 = vor.u32 %v3475_v30, %v3474_v1  ;;  %v16149_v47 = vld [vmem:[#allocation30_spill] sm:$0xff] }
 0x2ba   :  { %v3407_v15 = vsub.s32 32, %v3406_v37  ;;  %v3408_v51 = vshll.u32 %v3399_v6, %v3406_v37  ;;  %v3411_v12 = vsub.s32 4294967266, %v3406_v37  ;;  %vm3483_vm4 = vcmp.lt.s32.totalorder %v10505_v36, 1 }
 0x2bb   :  { %v1854_v4 = vsel %vm1852_vm7, %v1853_v28, %v1849_v63  ;;  %v3459_v31 = vor.u32 8388608, %v3458_v43  ;;  %v11060_v26 = vor.u32 %v3469_v21, %v3468_v35  ;;  %vm3485_vm3 = vcmp.lt.s32.totalorder %v10505_v36, 3 }
 0x2bc   :  { %v3409_v60 = vshrl.u32 %v3391_v62, %v3407_v15  ;;  %v3412_v25 = vadd.s32 127, %v3411_v12  ;;  %v1855_v44 = vadd.s32 %v1854_v4, %v1850_v52  ;;  %vm3484_vm6 = vcmp.lt.s32.totalorder %v10505_v36, 2 }
 0x2bd   :  { %v11065_v16 = vsub.s32 32, %v11031_v10  ;;  %v11070_v6 = vsel %vm3924_vm2, %v10817_v5, 0  ;;  %v3495_v14 = vsel %vm3483_vm4, %v11055_v55, %v11057_v8  ;;  %v3497_v29 = vsel %vm3485_vm3, %v10733_v61, %v10778_v13 }
 0x2be   :  { %v3410_v27 = vor.u32 %v3409_v60, %v3408_v51  ;;  %v3413_v53 = vshll.u32 %v3412_v25, 23  ;;  %v3421_v39 = vsub.s32 4, %v11000_v59  ;;  %v1856_v38 = vadd.s32 536870912, %v1855_v44 }
 0x2bf   :  { %v3491_v5 = vsel %vm3483_vm4, %v11060_v26, %v11055_v55  ;;  %v3493_v11 = vsel %vm3485_vm3, %v11057_v8, %v10760_v9  ;;  %v3498_v2 = vsel %vm3484_vm6, %v3495_v14, %v3497_v29  ;;  %v11091_v57 = vshll.u32 %v3459_v31, 8 }
 0x2c0   :  { %v3414_v61 = vor.u32 4788187, %v3413_v53  ;;  %v3417_v13 = vcvt.s32.f32 %v3410_v27  ;;  %v11093_v18 = vshrl.u32 %v1856_v38, 30  ;;  %v3502_v33 = vand.u32 65535, %v3498_v2 }
 0x2c1   :  { %vm3299_vm11 = vcmp.lt.s32.totalorder %v16129_v19, 0  ;;  %v3500_v45 = vand.u32 65535, %v11091_v57  ;;  %v3501_v34 = vshrl.u32 %v11091_v57, 16  ;;  %v3503_v54 = vshrl.u32 %v3498_v2, 16 }
 0x2c2   :  { %v3415_v41 = vand.u32 2147483647, %v3414_v61  ;;  %v3422_v9 = vsel %vm3299_vm11, %v3421_v39, %v11000_v59  ;;  %v1858_v62 = vshll.u32 %v11093_v18, 30  ;;  %v3494_v7 = vsel %vm3484_vm6, %v3491_v5, %v3493_v11 }
 0x2c3   :  { %v11106_v32 = vshll.u32 %v15958_v0, %v11031_v10  ;;  %v3504_v48 = vmul.u32 %v3502_v33, %v3500_v45  ;;  %v11108_v63 = vmul.u32 %v3503_v54, %v3500_v45  ;;  %v1911_v1 = vand.u32 2147483647, %v16149_v47 }
 0x2c4   :  { %v16150_v43 = vand.u32 2147483647, %v16129_v19  ;;  %v3418_v59 = vmul.f32 %v3417_v13, %v3415_v41  ;;  %v11117_v21 = vsub.s32 %v1855_v44, %v1858_v62  ;;  %v11119_v30 = vmul.u32 %v3502_v33, %v3501_v34 }
 0x2c5   :  { %v11123_v52 = vshll.u32 %v15959_v50, %v11031_v10  ;;  %v3508_v37 = vshll.u32 %v11108_v63, 16  ;;  %v3525_v15 = vshrl.u32 %v3494_v7, 16  ;;  %v3524_v4 = vand.u32 65535, %v3494_v7 }
 0x2c6   :  { %vm11113_vm15 = vcmp.le.f32.partialorder %v16150_v43, 0.7853982  ;;  %v3419_v51 = vxor.u32 2147483648, %v3418_v59  ;;  %vm1860_vm9 = vcmp.lt.s32.totalorder %v11117_v21, 0  ;;  %v1861_v12 = vsub.s32 0, %v11117_v21 }
 0x2c7   :  { %v3424_v28 = vsel %vm11113_vm15, 0, %v3422_v9  ;;  %v1851_v31 = vadd.s32 %v11028_v20, %v11026_v42  ;;  %v3507_v60 = vmul.u32 %v3503_v54, %v3501_v34  ;;  %vm3512_vm13 = vc.u32 %v3504_v48, %v3508_v37 }
 0x2c8   :  { %v11134_v25 = vand.u32 8388607, %v1911_v1  ;;  %v3420_v44 = vsel %vm3299_vm11, %v3419_v51, %v3418_v59  ;;  %v1862_v14 = vsel %vm1860_vm9, %v1861_v12, %v11117_v21  ;;  %v3510_v29 = vshll.u32 %v11119_v30, 16 }
 0x2c9   :  { %v3514_v27 = vadd.s32 %v3508_v37, %v3504_v48  ;;  %v11143_v53 = vsel %vm11113_vm15, %v16129_v19, %v3420_v44  ;;  %v11145_v42 = vand.u32 3, %v3424_v28  ;;  %v1863_v20 = vclz %v1862_v14 }
 0x2ca   :  { %v11147_v39 = vmul.u32 %v3525_v15, %v3500_v45  ;;  %v3425_v38 = vmul.f32 %v11143_v53, %v11143_v53  ;;  %v3509_v5 = vshrl.u32 %v11108_v63, 16  ;;  %v3513_v11 = vsel %vm3512_vm13, 1, %v16038_v24 }
 0x2cb   :  { %v3526_v2 = vmul.u32 %v3524_v4, %v3500_v45  ;;  %v7980_v61 = vadd.s32 4294967294, %v1863_v20  ;;  %v3467_v13 = vshrl.u32 %v16031_v56, %v10653_v58  ;;  %v3515_v33 = vadd.s32 %v3513_v11, %v3507_v60 }
 0x2cc   :  { %v11155_v54 = vmul.u32 %v3524_v4, %v3501_v34  ;;  %v3426_v41 = vmul.f32 -0.001358992, %v3425_v38  ;;  %v3433_v9 = vmul.f32 -0.00019511016, %v3425_v38  ;;  %v3488_v62 = vsel %vm3486_vm14, %v11057_v8, 2102212464 }
 0x2cd   :  { %vm3516_vm12 = vc.u32 %v3514_v27, %v3510_v29  ;;  %vm1759_vm8 = vcmp.lt.s32.totalorder %v16136_v22, 0  ;;  %vm7981_vm10 = vcmp.lt.s32.totalorder %v7980_v61, 0  ;;  %v3511_v7 = vshrl.u32 %v11119_v30, 16 }
 0x2ce   :  { %v3517_v45 = vsel %vm3516_vm12, 1, %v16038_v24  ;;  %v3530_v48 = vshll.u32 %v11147_v39, 16  ;;  %v3427_v58 = vadd.f32 0.041655596, %v3426_v41  ;;  %v3434_v63 = vadd.f32 0.008332121, %v3433_v9 }
 0x2cf   :  { %v1866_v43 = vsel %vm7981_vm10, 0, %v7980_v61  ;;  %v3519_v35 = vadd.s32 %v3517_v45, %v3515_v33  ;;  %vm3446_vm7 = vcmp.eq.s32.totalorder %v11145_v42, 2  ;;  %v3529_v37 = vmul.u32 %v3525_v15, %v3501_v34 }
 0x2d0   :  { %v1867_v59 = vsub.s32 32, %v1866_v43  ;;  %v1868_v28 = vshll.u32 %v11117_v21, %v1866_v43  ;;  %v1871_v8 = vsub.s32 4294967266, %v1866_v43  ;;  %v3428_v51 = vmul.f32 %v3427_v58, %v3425_v38 }
 0x2d1   :  { %v3435_v12 = vmul.f32 %v3434_v63, %v3425_v38  ;;  %v3487_v30 = vsel %vm3483_vm4, %v3467_v13, %v11060_v26  ;;  %v3489_v4 = vsel %vm3485_vm3, %v11055_v55, %v3488_v62  ;;  %vm3443_vm14 = vcmp.eq.s32.totalorder %v11145_v42, 0 }
 0x2d2   :  { %v1869_v60 = vshrl.u32 %v1851_v31, %v1867_v59  ;;  %v1872_v44 = vadd.s32 127, %v1871_v8  ;;  %v3532_v14 = vshll.u32 %v11155_v54, 16  ;;  %vm3534_vm2 = vc.u32 %v3526_v2, %v3530_v48 }
 0x2d3   :  { %v3429_v21 = vadd.f32 -0.4999988, %v3428_v51  ;;  %v3436_v29 = vadd.f32 -0.16666654, %v3435_v12  ;;  %vm3442_vm11 = vcmp.lt.s32.totalorder %v11145_v42, 2  ;;  %v3520_v34 = vadd.s32 %v3519_v35, %v3509_v5  ;;  %v16157_v12 = vld [vmem:[#allocation66_spill] sm:$0xff] }
 0x2d4   :  { %v3535_v15 = vsel %vm3534_vm2, 1, %v16038_v24  ;;  %vm3440_vm4 = vweird.f32 %v16129_v19  ;;  %v1870_v26 = vor.u32 %v1869_v60, %v1868_v28  ;;  %v1873_v27 = vshll.u32 %v1872_v44, 23 }
 0x2d5   :  { %v3536_v20 = vadd.s32 %v3530_v48, %v3526_v2  ;;  %v3537_v55 = vadd.s32 %v3535_v15, %v3529_v37  ;;  %v3430_v11 = vmul.f32 %v3429_v21, %v3425_v38  ;;  %v3437_v61 = vmul.f32 %v3436_v29, %v3425_v38 }
 0x2d6   :  { %v1881_v31 = vsub.s32 4, %v11093_v18  ;;  %v3490_v13 = vsel %vm3484_vm6, %v3487_v30, %v3489_v4  ;;  %v16153_v33 = vand.u32 2147483647, %v16136_v22  ;;  %v1874_v5 = vor.u32 4788187, %v1873_v27 }
 0x2d7   :  { %v1877_v9 = vcvt.s32.f32 %v1870_v26  ;;  %v3531_v62 = vshrl.u32 %v11147_v39, 16  ;;  %vm3538_vm15 = vc.u32 %v3536_v20, %v3532_v14  ;;  %v3431_v2 = vadd.f32 1.0, %v3430_v11 }
 0x2d8   :  { %vm11182_vm3 = vcmp.le.f32.partialorder %v16153_v33, 0.7853982  ;;  %v3438_v45 = vadd.f32 1.0, %v3437_v61  ;;  %v3533_v38 = vshrl.u32 %v11155_v54, 16  ;;  %v3539_v48 = vsel %vm3538_vm15, 1, %v16038_v24  ;;  %v16156_v54 = vld [vmem:[#allocation56_spill] sm:$0xff] }
 0x2d9   :  { %v1875_v58 = vand.u32 2147483647, %v1874_v5  ;;  %v11189_v36 = vadd.s32 %v3520_v34, %v3511_v7  ;;  %v11191_v63 = vadd.s32 %v3536_v20, %v3532_v14  ;;  %v3541_v43 = vadd.s32 %v3539_v48, %v3537_v55  ;;  %v16158_v20 = vld [vmem:[#allocation68_spill] sm:$0xff] }
 0x2da   :  { %v3439_v35 = vmul.f32 %v3438_v45, %v11143_v53  ;;  %v3447_v59 = vxor.u32 2147483648, %v3431_v2  ;;  %v1882_v39 = vsel %vm1759_vm8, %v1881_v31, %v11093_v18  ;;  %v3544_v28 = vmul.u32 %v11091_v57, %v3490_v13 }
 0x2db   :  { %v1878_v8 = vmul.f32 %v1877_v9, %v1875_v58  ;;  %v3542_v37 = vadd.s32 %v3541_v43, %v3531_v62  ;;  %v1928_v51 = vshll.u32 %v16031_v56, %v16156_v54  ;;  %v1929_v7 = vshrl.u32 %v16033_v23, %v16157_v12  ;;  %v16162_v58 = vld [vmem:[#allocation84_spill] sm:$0xff]  ;;  %v16163_v43 = vld [vmem:[#allocation75_spill] sm:$0xff] }
 0x2dc   :  { %v3444_v30 = vxor.u32 2147483648, %v3439_v35  ;;  %v3448_v4 = vsel %vm3446_vm7, %v3447_v59, %v3439_v35  ;;  %v1931_v53 = vshll.u32 %v16033_v23, %v16156_v54  ;;  %v1932_v18 = vshrl.u32 %v16034_v40, %v16157_v12 }
 0x2dd   :  { %v1879_v60 = vxor.u32 2147483648, %v1878_v8  ;;  %v3543_v57 = vadd.s32 %v3542_v37, %v3533_v38  ;;  %vm3546_vm6 = vc.u32 %v11189_v36, %v11191_v63  ;;  %v1934_v44 = vshll.u32 %v16034_v40, %v16156_v54  ;;  %v16161_v38 = vld [vmem:[#allocation83_spill] sm:$0xff] }
 0x2de   :  { %v3445_v14 = vsel %vm3443_vm14, %v3431_v2, %v3444_v30  ;;  %v11214_v21 = vor.u32 %v1929_v7, %v1928_v51  ;;  %v11216_v29 = vor.u32 %v1932_v18, %v1931_v53  ;;  %v1935_v34 = vshrl.u32 %v15958_v0, %v16157_v12 }
 0x2df   :  { %v3449_v15 = vsel %vm3442_vm11, %v3445_v14, %v3448_v4  ;;  %v1880_v26 = vsel %vm1759_vm8, %v1879_v60, %v1878_v8  ;;  %v3547_v27 = vadd.s32 1, %v3543_v57  ;;  %vm1943_vm9 = vcmp.lt.s32.totalorder %v16158_v20, 1 }
 0x2e0   :  { %v3450_v55 = vsel %vm3440_vm4, nan, %v3449_v15  ;;  %v11230_v11 = vsel %vm11182_vm3, %v16136_v22, %v1880_v26  ;;  %v1919_v61 = vor.u32 8388608, %v11134_v25  ;;  %v11233_v31 = vor.u32 %v1935_v34, %v1934_v44 }
 0x2e1   :  { %v11236_v42 = vshrl.u32 %v11070_v6, 5  ;;  %8067 = vmatmul.msk.f32.gmra.mxu2 %vm5311_vm0, %v3450_v55  ;;  %v1885_v13 = vmul.f32 %v11230_v11, %v11230_v11  ;;  %v3548_v19 = vsel %vm3546_vm6, %v3547_v27, %v3543_v57  ;;  %vm1945_vm13 = vcmp.lt.s32.totalorder %v16158_v20, 3 }
 0x2e2   :  { %v1884_v33 = vsel %vm11182_vm3, 0, %v1882_v39  ;;  %v3549_v25 = vadd.s32 %v3548_v19, %v3544_v28  ;;  %vm1944_vm12 = vcmp.lt.s32.totalorder %v16158_v20, 2  ;;  %v1955_v5 = vsel %vm1943_vm9, %v11216_v29, %v11233_v31 }
 0x2e3   :  { %16159 = vst [vmem:[#allocation21_spill] sm:$0xff] %v11236_v42  ;;  %v11253_v9 = vand.u32 31, %v11070_v6  ;;  %v1886_v62 = vmul.f32 -0.001358992, %v1885_v13  ;;  %v1893_v2 = vmul.f32 -0.00019511016, %v1885_v13  ;;  %v1951_v45 = vsel %vm1943_vm9, %v11214_v21, %v11216_v29 }
 0x2e4   :  { %v3550_v41 = vadd.s32 536870912, %v3549_v25  ;;  %v1953_v48 = vsel %vm1945_vm13, %v11233_v31, %v16161_v38  ;;  %v1957_v35 = vsel %vm1945_vm13, %v16163_v43, %v16162_v58  ;;  %v11267_v6 = vshll.u32 %v1919_v61, 8 }
 0x2e5   :  { %16160 = vst [vmem:[#allocation23_spill] sm:$0xff] %v11253_v9  ;;  %v1887_v59 = vadd.f32 0.041655596, %v1886_v62  ;;  %v1894_v39 = vadd.f32 0.008332121, %v1893_v2  ;;  %v11269_v28 = vand.u32 3, %v1884_v33  ;;  %v1958_v8 = vsel %vm1944_vm12, %v1955_v5, %v1957_v35 }
 0x2e6   :  { %v11273_v37 = vshrl.u32 %v3550_v41, 30  ;;  %v1960_v54 = vand.u32 65535, %v11267_v6  ;;  %v1961_v51 = vshrl.u32 %v11267_v6, 16  ;;  %v1962_v7 = vand.u32 65535, %v1958_v8 }
 0x2e7   :  { %v1888_v30 = vmul.f32 %v1887_v59, %v1885_v13  ;;  %v1895_v4 = vmul.f32 %v1894_v39, %v1885_v13  ;;  %v1954_v53 = vsel %vm1944_vm12, %v1951_v45, %v1953_v48  ;;  %v1963_v18 = vshrl.u32 %v1958_v8, 16 }
 0x2e8   :  { %v11281_v60 = vshrl.u32 %v15959_v50, %v11065_v16  ;;  %v11285_v57 = vshrl.u32 %v15961_v46, %v11065_v16  ;;  %v3552_v44 = vshll.u32 %v11273_v37, 30  ;;  %v11288_v14 = vmul.u32 %v1962_v7, %v1961_v51 }
 0x2e9   :  { %v1889_v34 = vadd.f32 -0.4999988, %v1888_v30  ;;  %v1896_v15 = vadd.f32 -0.16666654, %v1895_v4  ;;  %v1964_v26 = vmul.u32 %v1962_v7, %v1960_v54  ;;  %v1965_v27 = vmul.u32 %v1963_v18, %v1960_v54 }
 0x2ea   :  { %vm1903_vm8 = vcmp.eq.s32.totalorder %v11269_v28, 0  ;;  %vm1906_vm10 = vcmp.eq.s32.totalorder %v11269_v28, 2  ;;  %v11292_v55 = vsub.s32 %v3549_v25, %v3552_v44  ;;  %v1984_v61 = vand.u32 65535, %v1954_v53 }
 0x2eb   :  { %v1985_v19 = vshrl.u32 %v1954_v53, 16  ;;  %v1890_v33 = vmul.f32 %v1889_v34, %v1885_v13  ;;  %v1897_v5 = vmul.f32 %v1896_v15, %v1885_v13  ;;  %vm1902_vm7 = vcmp.lt.s32.totalorder %v11269_v28, 2 }
 0x2ec   :  { %v1967_v62 = vmul.u32 %v1963_v18, %v1961_v51  ;;  %v1968_v2 = vshll.u32 %v1965_v27, 16  ;;  %vm1900_vm14 = vweird.f32 %v16136_v22  ;;  %v3545_v45 = vadd.s32 %v11191_v63, %v11189_v36 }
 0x2ed   :  { %vm3554_vm2 = vcmp.lt.s32.totalorder %v11292_v55, 0  ;;  %v3555_v41 = vsub.s32 0, %v11292_v55  ;;  %v1970_v25 = vshll.u32 %v11288_v14, 16  ;;  %v1891_v38 = vadd.f32 1.0, %v1890_v33 }
 0x2ee   :  { %v1898_v48 = vadd.f32 1.0, %v1897_v5  ;;  %vm1972_vm11 = vc.u32 %v1964_v26, %v1968_v2  ;;  %v1974_v58 = vadd.s32 %v1968_v2, %v1964_v26  ;;  %v1986_v35 = vmul.u32 %v1984_v61, %v1960_v54 }
 0x2ef   :  { %v3556_v13 = vsel %vm3554_vm2, %v3555_v41, %v11292_v55  ;;  %v1973_v43 = vsel %vm1972_vm11, 1, %v16038_v24  ;;  %v1987_v59 = vmul.u32 %v1985_v19, %v1960_v54  ;;  %v1907_v8 = vxor.u32 2147483648, %v1891_v38 }
 0x2f0   :  { %v1899_v39 = vmul.f32 %v1898_v48, %v11230_v11  ;;  %v3557_v36 = vclz %v3556_v13  ;;  %v1975_v63 = vadd.s32 %v1973_v43, %v1967_v62  ;;  %v1927_v7 = vshrl.u32 %v16031_v56, %v16157_v12 }
 0x2f1   :  { %vm1976_vm4 = vc.u32 %v1974_v58, %v1970_v25  ;;  %v1988_v30 = vmul.u32 %v1984_v61, %v1961_v51  ;;  %v1990_v4 = vshll.u32 %v1987_v59, 16  ;;  %vm16164_vm3 = vcmp.lt.s32.totalorder %v16158_v20, 4 }
 0x2f2   :  { %v1904_v53 = vxor.u32 2147483648, %v1899_v39  ;;  %v8013_v18 = vadd.s32 4294967294, %v3557_v36  ;;  %v1948_v44 = vsel %vm16164_vm3, %v11233_v31, 2102212464  ;;  %v1977_v34 = vsel %vm1976_vm4, 1, %v16038_v24 }
 0x2f3   :  { %v3575_v54 = vsub.s32 4, %v11273_v37  ;;  %v1969_v11 = vshrl.u32 %v1965_v27, 16  ;;  %v1989_v15 = vmul.u32 %v1985_v19, %v1961_v51  ;;  %vm1994_vm15 = vc.u32 %v1986_v35, %v1990_v4 }
 0x2f4   :  { %vm15897_vm6 = vcmp.lt.s32.totalorder %v11020_v3, 4  ;;  %v1905_v12 = vsel %vm1903_vm8, %v1891_v38, %v1904_v53  ;;  %v1908_v26 = vsel %vm1906_vm10, %v1907_v8, %v1899_v39  ;;  %vm8014_vm2 = vcmp.lt.s32.totalorder %v8013_v18, 0 }
 0x2f5   :  { %v1979_v61 = vadd.s32 %v1977_v34, %v1975_v63  ;;  %v1909_v31 = vsel %vm1902_vm7, %v1905_v12, %v1908_v26  ;;  %v3560_v33 = vsel %vm8014_vm2, 0, %v8013_v18  ;;  %v1992_v5 = vshll.u32 %v1988_v30, 16 }
 0x2f6   :  { %v1995_v62 = vsel %vm1994_vm15, 1, %v16038_v24  ;;  %v1910_v51 = vsel %vm1900_vm14, nan, %v1909_v31  ;;  %v3561_v27 = vsub.s32 32, %v3560_v33  ;;  %v3562_v19 = vshll.u32 %v11292_v55, %v3560_v33 }
 0x2f7   :  { %v3565_v2 = vsub.s32 4294967266, %v3560_v33  ;;  %v11323_v41 = vsub.s32 32, %v11253_v9  ;;  %8057 = vmatmul.msk.f32.gmra.mxu0 %vm5311_vm0, %v1910_v51  ;;  %vm3453_vm8 = vcmp.lt.s32.totalorder %v16148_v49, 0  ;;  %v1971_v28 = vshrl.u32 %v11288_v14, 16  ;;  %v16171_v51 = vld [vmem:[#allocation51_spill] sm:$0xff] }
 0x2f8   :  { %v1996_v25 = vadd.s32 %v1990_v4, %v1986_v35  ;;  %v3563_v38 = vshrl.u32 %v3545_v45, %v3561_v27  ;;  %v1980_v58 = vadd.s32 %v1979_v61, %v1969_v11  ;;  %v1997_v13 = vadd.s32 %v1995_v62, %v1989_v15 }
 0x2f9   :  { %16165 = vst [vmem:[#allocation25_spill] sm:$0xff] %v11323_v41  ;;  %v3566_v48 = vadd.s32 127, %v3565_v2  ;;  %v1947_v22 = vsel %vm1943_vm9, %v1927_v7, %v11214_v21  ;;  %v1949_v55 = vsel %vm1945_vm13, %v11216_v29, %v1948_v44  ;;  %v1991_v43 = vshrl.u32 %v1987_v59, 16  ;;  %v16168_v44 = vld [vmem:[#allocation26_spill] sm:$0xff] }
 0x2fa   :  { %vm1998_vm10 = vc.u32 %v1996_v25, %v1992_v5  ;;  %v3564_v39 = vor.u32 %v3563_v38, %v3562_v19  ;;  %v3576_v14 = vsel %vm3453_vm8, %v3575_v54, %v11273_v37  ;;  %v11340_v35 = vor.u32 %v11281_v60, %v11106_v32 }
 0x2fb   :  { %v3567_v8 = vshll.u32 %v3566_v48, 23  ;;  %v1999_v45 = vsel %vm1998_vm10, 1, %v16038_v24  ;;  %vm11344_vm9 = vcmp.le.f32.partialorder %v3451_v17, 0.7853982  ;;  %v1993_v29 = vshrl.u32 %v1988_v30, 16 }
 0x2fc   :  { %v2001_v59 = vadd.s32 %v1999_v45, %v1997_v13  ;;  %v3571_v63 = vcvt.s32.f32 %v3564_v39  ;;  %v1981_v7 = vadd.s32 %v1980_v58, %v1971_v28  ;;  %v2000_v4 = vadd.s32 %v1996_v25, %v1992_v5  ;;  %v16170_v5 = vld [vmem:[#allocation38_spill] sm:$0xff]  ;;  %v16172_v28 = vld [vmem:[#allocation48_spill] sm:$0xff] }
 0x2fd   :  { %v3568_v36 = vor.u32 4788187, %v3567_v8  ;;  %v11350_v37 = vshll.u32 %v15958_v0, %v11253_v9  ;;  %v3578_v32 = vsel %vm11344_vm9, 0, %v3576_v14  ;;  %v1950_v60 = vsel %vm1944_vm12, %v1947_v22, %v1949_v55  ;;  %v16173_v58 = vld [vmem:[#allocation24_spill] sm:$0xff]  ;;  %v16174_v22 = vld [vmem:[#allocation18_spill] sm:$0xff] }
 0x2fe   :  { %v2002_v17 = vadd.s32 %v2001_v59, %v1991_v43  ;;  %v11360_v30 = vshll.u32 %v15959_v50, %v11253_v9  ;;  %v15890_v34 = vand.u32 2147483647, %v16168_v44  ;;  %v11366_v54 = vsel %vm15897_vm6, %v11340_v35, 920167782 }
 0x2ff   :  { %v3569_v18 = vand.u32 2147483647, %v3568_v36  ;;  %v11370_v20 = vshrl.u32 %v15959_v50, %v11323_v41  ;;  %v11374_v11 = vshrl.u32 %v15961_v46, %v11323_v41  ;;  %v11376_v26 = vand.u32 3, %v3578_v32 }
 0x300   :  { %v2003_v15 = vadd.s32 %v2002_v17, %v1993_v29  ;;  %v2004_v61 = vmul.u32 %v11267_v6, %v1950_v60  ;;  %vm2006_vm13 = vc.u32 %v1981_v7, %v2000_v4  ;;  %v11379_v31 = vadd.s32 %v2000_v4, %v1981_v7  ;;  %v16175_v17 = vld [vmem:[#allocation17_spill] sm:$0xff] }
 0x301   :  { %16169 = vst [vmem:[#allocation34_spill] sm:$0xff] %v11374_v11  ;;  %v3572_v12 = vmul.f32 %v3571_v63, %v3569_v18  ;;  %v15891_v62 = vand.u32 2147483647, %v16170_v5  ;;  %v11384_v27 = vshrl.u32 %v16031_v56, %v16171_v51  ;;  %v11388_v2 = vand.u32 8388607, %v15890_v34 }
 0x302   :  { %v2007_v33 = vadd.s32 1, %v2003_v15  ;;  %v2082_v25 = vshll.u32 %v16031_v56, %v16172_v28  ;;  %v2083_v6 = vshrl.u32 %v16033_v23, %v16171_v51  ;;  %v3622_v13 = vshll.u32 %v16031_v56, %v16173_v58 }
 0x303   :  { %v3573_v19 = vxor.u32 2147483648, %v3572_v12  ;;  %v3612_v48 = vand.u32 8388607, %v15891_v62  ;;  %v3623_v55 = vshrl.u32 %v16033_v23, %v16174_v22  ;;  %v3625_v8 = vshll.u32 %v16033_v23, %v16173_v58 }
 0x304   :  { %v2008_v38 = vsel %vm2006_vm13, %v2007_v33, %v2003_v15  ;;  %v3626_v14 = vshrl.u32 %v16034_v40, %v16174_v22  ;;  %v3628_v59 = vshll.u32 %v16034_v40, %v16173_v58  ;;  %v2085_v36 = vshll.u32 %v16033_v23, %v16172_v28 }
 0x305   :  { %v3574_v43 = vsel %vm3453_vm8, %v3573_v19, %v3572_v12  ;;  %v2009_v39 = vadd.s32 %v2008_v38, %v2004_v61  ;;  %v3613_v29 = vor.u32 8388608, %v3612_v48  ;;  %v3629_v4 = vshrl.u32 %v15958_v0, %v16174_v22 }
 0x306   :  { %v11409_v45 = vsel %vm11344_vm9, %v16148_v49, %v3574_v43  ;;  %v2073_v32 = vor.u32 8388608, %v11388_v2  ;;  %v11420_v60 = vor.u32 %v3623_v55, %v3622_v13  ;;  %v11422_v21 = vor.u32 %v3626_v14, %v3625_v8  ;;  %v16176_v13 = vld [vmem:[#allocation27_spill] sm:$0xff]  ;;  %v16177_v55 = vld [vmem:[#allocation22_spill] sm:$0xff] }
 0x307   :  { %v3579_v63 = vmul.f32 %v11409_v45, %v11409_v45  ;;  %v2010_v7 = vadd.s32 536870912, %v2009_v39  ;;  %vm3637_vm12 = vcmp.lt.s32.totalorder %v16175_v17, 1  ;;  %vm3639_vm7 = vcmp.lt.s32.totalorder %v16175_v17, 3 }
 0x308   :  { %v11426_v61 = vor.u32 %v3629_v4, %v3628_v59  ;;  %vm3638_vm14 = vcmp.lt.s32.totalorder %v16175_v17, 2  ;;  %v11429_v33 = vshll.u32 %v3613_v29, 8  ;;  %v2086_v19 = vshrl.u32 %v16034_v40, %v16171_v51 }
 0x309   :  { %v3580_v18 = vmul.f32 -0.001358992, %v3579_v63  ;;  %v3587_v15 = vmul.f32 -0.00019511016, %v3579_v63  ;;  %v2011_v12 = vshrl.u32 %v2010_v7, 30  ;;  %v2088_v2 = vshll.u32 %v16034_v40, %v16172_v28 }
 0x30a   :  { %vm1913_vm11 = vcmp.lt.s32.totalorder %v16149_v47, 0  ;;  %v3651_v43 = vsel %vm3639_vm7, %v16177_v55, %v16176_v13  ;;  %vm3600_vm4 = vcmp.eq.s32.totalorder %v11376_v26, 2  ;;  %v3645_v8 = vsel %vm3637_vm12, %v11420_v60, %v11422_v21 }
 0x30b   :  { %v3581_v38 = vadd.f32 0.041655596, %v3580_v18  ;;  %v3588_v48 = vadd.f32 0.008332121, %v3587_v15  ;;  %v2012_v58 = vshll.u32 %v2011_v12, 30  ;;  %v3649_v28 = vsel %vm3637_vm12, %v11422_v21, %v11426_v61  ;;  %v16178_v18 = vld [vmem:[#allocation13_spill] sm:$0xff] }
 0x30c   :  { %v2084_v14 = vor.u32 %v2083_v6, %v2082_v25  ;;  %v2089_v29 = vshrl.u32 %v15958_v0, %v16171_v51  ;;  %v3647_v15 = vsel %vm3639_vm7, %v11426_v61, %v16178_v18  ;;  %vm3597_vm3 = vcmp.eq.s32.totalorder %v11376_v26, 0  ;;  %v16179_v6 = vld [vmem:[#allocation54_spill] sm:$0xff] }
 0x30d   :  { %v3582_v59 = vmul.f32 %v3581_v38, %v3579_v63  ;;  %v3589_v7 = vmul.f32 %v3588_v48, %v3579_v63  ;;  %v11451_v4 = vsub.s32 %v2009_v39, %v2012_v58  ;;  %v3652_v13 = vsel %vm3638_vm14, %v3649_v28, %v3651_v43 }
 0x30e   :  { %v3654_v55 = vand.u32 65535, %v11429_v33  ;;  %v11461_v25 = vor.u32 %v2086_v19, %v2085_v36  ;;  %vm2097_vm15 = vcmp.lt.s32.totalorder %v16179_v6, 1  ;;  %vm3596_vm2 = vcmp.lt.s32.totalorder %v11376_v26, 2 }
 0x30f   :  { %v3583_v51 = vadd.f32 -0.4999988, %v3582_v59  ;;  %v3590_v38 = vadd.f32 -0.16666654, %v3589_v7  ;;  %vm2014_vm8 = vcmp.lt.s32.totalorder %v11451_v4, 0  ;;  %v2015_v39 = vsub.s32 0, %v11451_v4 }
 0x310   :  { %vm3594_vm10 = vweird.f32 %v16148_v49  ;;  %v3648_v48 = vsel %vm3638_vm14, %v3645_v8, %v3647_v15  ;;  %v3655_v58 = vshrl.u32 %v11429_v33, 16  ;;  %v3657_v43 = vshrl.u32 %v3652_v13, 16 }
 0x311   :  { %vm2099_vm9 = vcmp.lt.s32.totalorder %v16179_v6, 3  ;;  %v3584_v36 = vmul.f32 %v3583_v51, %v3579_v63  ;;  %v3591_v19 = vmul.f32 %v3590_v38, %v3579_v63  ;;  %v2016_v28 = vsel %vm2014_vm8, %v2015_v39, %v11451_v4  ;;  %v16183_v38 = vld [vmem:[#allocation65_spill] sm:$0xff] }
 0x312   :  { %v3656_v59 = vand.u32 65535, %v3652_v13  ;;  %v2017_v7 = vclz %v2016_v28  ;;  %v2035_v18 = vsub.s32 4, %v2011_v12  ;;  %v11473_v34 = vor.u32 %v2089_v29, %v2088_v2  ;;  %v16182_v13 = vld [vmem:[#allocation74_spill] sm:$0xff] }
 0x313   :  { %v11478_v62 = vsel %vm2097_vm15, %v11384_v27, %v2084_v14  ;;  %v3585_v8 = vadd.f32 1.0, %v3584_v36  ;;  %v3592_v15 = vadd.f32 1.0, %v3591_v19  ;;  %v3659_v53 = vmul.u32 %v3657_v43, %v3654_v55 }
 0x314   :  { %v11483_v51 = vsel %vm2097_vm15, %v2084_v14, %v11461_v25  ;;  %vm11487_vm13 = vcmp.le.f32.partialorder %v1911_v1, 0.7853982  ;;  %v7983_v2 = vadd.s32 4294967294, %v2017_v7  ;;  %v3679_v29 = vshrl.u32 %v3648_v48, 16 }
 0x315   :  { %v11495_v27 = vsel %vm2099_vm9, %v16183_v38, %v16182_v13  ;;  %v11497_v39 = vshll.u32 %v2073_v32, 8  ;;  %v3593_v36 = vmul.f32 %v3592_v15, %v11409_v45  ;;  %v3601_v14 = vxor.u32 2147483648, %v3585_v8 }
 0x316   :  { %v11500_v19 = vmul.u32 %v3656_v59, %v3655_v58  ;;  %v3678_v28 = vand.u32 65535, %v3648_v48  ;;  %vm7984_vm8 = vcmp.lt.s32.totalorder %v7983_v2, 0  ;;  %v11504_v1 = vsel %vm1913_vm11, %v2035_v18, %v2011_v12 }
 0x317   :  { %v3658_v7 = vmul.u32 %v3656_v59, %v3654_v55  ;;  %vm16184_vm1 = vcmp.lt.s32.totalorder %v16179_v6, 4  ;;  %v3598_v13 = vxor.u32 2147483648, %v3593_v36  ;;  %v3602_v32 = vsel %vm3600_vm4, %v3601_v14, %v3593_v36 }
 0x318   :  { %v11509_v46 = vsel %vm16184_vm1, %v11473_v34, 2102212464  ;;  %v2020_v45 = vsel %vm7984_vm8, 0, %v7983_v2  ;;  %v3662_v15 = vshll.u32 %v3659_v53, 16  ;;  %v3681_v41 = vmul.u32 %v3679_v29, %v3654_v55 }
 0x319   :  { %v2021_v38 = vsub.s32 32, %v2020_v45  ;;  %v2022_v48 = vshll.u32 %v11451_v4, %v2020_v45  ;;  %v2025_v50 = vsub.s32 4294967266, %v2020_v45  ;;  %vm2098_vm6 = vcmp.lt.s32.totalorder %v16179_v6, 2 }
 0x31a   :  { %v3599_v12 = vsel %vm3597_vm3, %v3585_v8, %v3598_v13  ;;  %v3661_v59 = vmul.u32 %v3657_v43, %v3655_v58  ;;  %v3664_v18 = vshll.u32 %v11500_v19, 16  ;;  %v3680_v9 = vmul.u32 %v3678_v28, %v3654_v55 }
 0x31b   :  { %v3603_v42 = vsel %vm3596_vm2, %v3599_v12, %v3602_v32  ;;  %v2023_v2 = vshrl.u32 %v11379_v31, %v2021_v38  ;;  %v2026_v36 = vadd.s32 127, %v2025_v50  ;;  %v3682_v14 = vmul.u32 %v3678_v28, %v3655_v58 }
 0x31c   :  { %v3604_v4 = vsel %vm3594_vm10, nan, %v3603_v42  ;;  %v3621_v45 = vshrl.u32 %v16031_v56, %v16174_v22  ;;  %vm3666_vm1 = vc.u32 %v3658_v7, %v3662_v15  ;;  %v3668_v11 = vadd.s32 %v3662_v15, %v3658_v7 }
 0x31d   :  { %8068 = vmatmul.msk.f32.gmra.mxu2 %vm5311_vm0, %v3604_v4  ;;  %v2024_v43 = vor.u32 %v2023_v2, %v2022_v48  ;;  %v2027_v8 = vshll.u32 %v2026_v36, 23  ;;  %v3667_v55 = vsel %vm3666_vm1, 1, %v16038_v24  ;;  %v3684_v26 = vshll.u32 %v3681_v41, 16  ;;  %v16185_v2 = vld [vmem:[#allocation71_spill] sm:$0xff] }
 0x31e   :  { %v3663_v13 = vshrl.u32 %v3659_v53, 16  ;;  %v3669_v32 = vadd.s32 %v3667_v55, %v3661_v59  ;;  %vm3670_vm4 = vc.u32 %v3668_v11, %v3664_v18  ;;  %v3683_v50 = vmul.u32 %v3679_v29, %v3655_v58 }
 0x31f   :  { %v2028_v31 = vor.u32 4788187, %v2027_v8  ;;  %v2031_v28 = vcvt.s32.f32 %v2024_v43  ;;  %v3642_v49 = vsel %vm3640_vm5, %v11426_v61, 2102212464  ;;  %v3671_v42 = vsel %vm3670_vm4, 1, %v16038_v24 }
 0x320   :  { %v2038_v22 = vsel %vm11487_vm13, 0, %v11504_v1  ;;  %v3673_v7 = vadd.s32 %v3671_v42, %v3669_v32  ;;  %v3686_v15 = vshll.u32 %v3682_v14, 16  ;;  %vm3688_vm3 = vc.u32 %v3680_v9, %v3684_v26 }
 0x321   :  { %v2029_v38 = vand.u32 2147483647, %v2028_v31  ;;  %v3641_v53 = vsel %vm3637_vm12, %v3621_v45, %v11420_v60  ;;  %v3689_v11 = vsel %vm3688_vm3, 1, %v16038_v24  ;;  %v3690_v58 = vadd.s32 %v3684_v26, %v3680_v9 }
 0x322   :  { %v3643_v61 = vsel %vm3639_vm7, %v11422_v21, %v3642_v49  ;;  %v3665_v29 = vshrl.u32 %v11500_v19, 16  ;;  %v3674_v48 = vadd.s32 %v3673_v7, %v3663_v13  ;;  %v3691_v12 = vadd.s32 %v3689_v11, %v3683_v50 }
 0x323   :  { %v2032_v59 = vmul.f32 %v2031_v28, %v2029_v38  ;;  %v3685_v18 = vshrl.u32 %v3681_v41, 16  ;;  %vm3692_vm5 = vc.u32 %v3690_v58, %v3686_v15  ;;  %v2107_v36 = vsel %vm2099_vm9, %v11473_v34, %v16185_v2 }
 0x324   :  { %v3687_v60 = vshrl.u32 %v3682_v14, 16  ;;  %v3693_v4 = vsel %vm3692_vm5, 1, %v16038_v24  ;;  %v2108_v9 = vsel %vm2098_vm6, %v11483_v51, %v2107_v36  ;;  %v2109_v21 = vsel %vm2097_vm15, %v11461_v25, %v11473_v34 }
 0x325   :  { %v2033_v19 = vxor.u32 2147483648, %v2032_v59  ;;  %v3695_v41 = vadd.s32 %v3693_v4, %v3691_v12  ;;  %v2112_v45 = vsel %vm2098_vm6, %v2109_v21, %v11495_v27  ;;  %v2114_v43 = vand.u32 65535, %v11497_v39 }
 0x326   :  { %v11558_v14 = vadd.s32 %v3674_v48, %v3665_v29  ;;  %v11560_v8 = vadd.s32 %v3690_v58, %v3686_v15  ;;  %v2115_v55 = vshrl.u32 %v11497_v39, 16  ;;  %v2116_v51 = vand.u32 65535, %v2112_v45 }
 0x327   :  { %v2034_v26 = vsel %vm1913_vm11, %v2033_v19, %v2032_v59  ;;  %v3644_v34 = vsel %vm3638_vm14, %v3641_v53, %v3643_v61  ;;  %v3696_v13 = vadd.s32 %v3695_v41, %v3685_v18  ;;  %v2117_v32 = vshrl.u32 %v2112_v45, 16 }
 0x328   :  { %v2037_v27 = vsel %vm11487_vm13, %v16149_v47, %v2034_v26  ;;  %v11570_v50 = vmul.u32 %v2116_v51, %v2115_v55  ;;  %v2138_v31 = vand.u32 65535, %v2108_v9  ;;  %v2139_v28 = vshrl.u32 %v2108_v9, 16 }
 0x329   :  { %v2039_v49 = vmul.f32 %v2037_v27, %v2037_v27  ;;  %v3697_v42 = vadd.s32 %v3696_v13, %v3687_v60  ;;  %v2118_v7 = vmul.u32 %v2116_v51, %v2114_v43  ;;  %v2119_v15 = vmul.u32 %v2117_v32, %v2114_v43 }
 0x32a   :  { %v3698_v38 = vmul.u32 %v11429_v33, %v3644_v34  ;;  %vm3700_vm12 = vc.u32 %v11558_v14, %v11560_v8  ;;  %v2121_v17 = vmul.u32 %v2117_v32, %v2115_v55  ;;  %v2141_v53 = vmul.u32 %v2139_v28, %v2114_v43 }
 0x32b   :  { %v2040_v11 = vmul.f32 -0.001358992, %v2039_v49  ;;  %v2047_v58 = vmul.f32 -0.00019511016, %v2039_v49  ;;  %v3701_v61 = vadd.s32 1, %v3697_v42  ;;  %v2122_v29 = vshll.u32 %v2119_v15, 16 }
 0x32c   :  { %v2124_v48 = vshll.u32 %v11570_v50, 16  ;;  %v2140_v12 = vmul.u32 %v2138_v31, %v2114_v43  ;;  %v2142_v59 = vmul.u32 %v2138_v31, %v2115_v55  ;;  %v2144_v18 = vshll.u32 %v2141_v53, 16 }
 0x32d   :  { %v2041_v2 = vadd.f32 0.041655596, %v2040_v11  ;;  %v2048_v36 = vadd.f32 0.008332121, %v2047_v58  ;;  %v3702_v60 = vsel %vm3700_vm12, %v3701_v61, %v3697_v42  ;;  %vm2126_vm7 = vc.u32 %v2118_v7, %v2122_v29 }
 0x32e   :  { %v3703_v4 = vadd.s32 %v3702_v60, %v3698_v38  ;;  %v2127_v33 = vsel %vm2126_vm7, 1, %v16038_v24  ;;  %v2128_v9 = vadd.s32 %v2122_v29, %v2118_v7  ;;  %v2143_v21 = vmul.u32 %v2139_v28, %v2115_v55 }
 0x32f   :  { %v2042_v19 = vmul.f32 %v2041_v2, %v2039_v49  ;;  %v2049_v41 = vmul.f32 %v2048_v36, %v2039_v49  ;;  %v2123_v45 = vshrl.u32 %v2119_v15, 16  ;;  %v2129_v51 = vadd.s32 %v2127_v33, %v2121_v17 }
 0x330   :  { %v3704_v26 = vadd.s32 536870912, %v3703_v4  ;;  %vm2130_vm14 = vc.u32 %v2128_v9, %v2124_v48  ;;  %v2146_v34 = vshll.u32 %v2142_v59, 16  ;;  %vm2148_vm11 = vc.u32 %v2140_v12, %v2144_v18  ;;  %v91_v48 = vpop.f32.mrf.mxu1 }
 0x331   :  { %v2043_v43 = vadd.f32 -0.4999988, %v2042_v19  ;;  %v2050_v13 = vadd.f32 -0.16666654, %v2049_v41  ;;  %v2131_v32 = vsel %vm2130_vm14, 1, %v16038_v24  ;;  %v2149_v31 = vsel %vm2148_vm11, 1, %v16038_v24 }
 0x332   :  { %v3705_v42 = vshrl.u32 %v3704_v26, 30  ;;  %v2133_v38 = vadd.s32 %v2131_v32, %v2129_v51  ;;  %v2150_v11 = vadd.s32 %v2144_v18, %v2140_v12  ;;  %v2151_v58 = vadd.s32 %v2149_v31, %v2143_v21  ;;  %v16192_v31 = vld [vmem:[#allocation60_spill] sm:$0xff] }
 0x333   :  { %v2044_v7 = vmul.f32 %v2043_v43, %v2039_v49  ;;  %v2051_v55 = vmul.f32 %v2050_v13, %v2039_v49  ;;  %v2103_v28 = vsel %vm2099_vm9, %v11461_v25, %v11509_v46  ;;  %v2125_v15 = vshrl.u32 %v11570_v50, 16  ;;  %v16191_v13 = vld [vmem:[#allocation31_spill] sm:$0xff] }
 0x334   :  { %v3706_v17 = vshll.u32 %v3705_v42, 30  ;;  %v2134_v61 = vadd.s32 %v2133_v38, %v2123_v45  ;;  %v2145_v29 = vshrl.u32 %v2141_v53, 16  ;;  %vm2152_vm15 = vc.u32 %v2150_v11, %v2146_v34 }
 0x335   :  { %v2045_v2 = vadd.f32 1.0, %v2044_v7  ;;  %v2052_v36 = vadd.f32 1.0, %v2051_v55  ;;  %v2055_v12 = vand.u32 3, %v2038_v22  ;;  %v2153_v49 = vsel %vm2152_vm15, 1, %v16038_v24 }
 0x336   :  { %v11589_v18 = vsub.s32 %v3703_v4, %v3706_v17  ;;  %v2104_v46 = vsel %vm2098_vm6, %v11478_v62, %v2103_v28  ;;  %v2147_v25 = vshrl.u32 %v2142_v59, 16  ;;  %v2155_v50 = vadd.s32 %v2153_v49, %v2151_v58 }
 0x337   :  { %v2053_v53 = vmul.f32 %v2052_v36, %v2037_v27  ;;  %v2061_v60 = vxor.u32 2147483648, %v2045_v2  ;;  %v2135_v33 = vadd.s32 %v2134_v61, %v2125_v15  ;;  %v2154_v9 = vadd.s32 %v2150_v11, %v2146_v34  ;;  %v16193_v11 = vld [vmem:[#allocation67_spill] sm:$0xff] }
 0x338   :  { %v16186_v63 = vor.u32 %v11285_v57, %v11123_v52  ;;  %vm16187_vm2 = vcmp.lt.s32.totalorder %v11020_v3, 4  ;;  %vm3708_vm10 = vcmp.lt.s32.totalorder %v11589_v18, 0  ;;  %v3709_v22 = vsub.s32 0, %v11589_v18  ;;  %v115_v7 = vpop.f32.mrf.mxu1 }
 0x339   :  { %v2156_v4 = vadd.s32 %v2155_v50, %v2145_v29  ;;  %vm2056_vm9 = vcmp.lt.s32.totalorder %v2055_v12, 2  ;;  %vm2057_vm6 = vcmp.eq.s32.totalorder %v2055_v12, 0  ;;  %v2058_v62 = vxor.u32 2147483648, %v2053_v53 }
 0x33a   :  { %v11599_v1 = vsel %vm16187_vm2, %v16186_v63, 1326507024  ;;  %vm2060_vm13 = vcmp.eq.s32.totalorder %v2055_v12, 2  ;;  %v3710_v6 = vsel %vm3708_vm10, %v3709_v22, %v11589_v18  ;;  %v3729_v27 = vsub.s32 4, %v3705_v42 }
 0x33b   :  { %v2157_v59 = vadd.s32 %v2156_v4, %v2147_v25  ;;  %v2158_v21 = vmul.u32 %v11497_v39, %v2104_v46  ;;  %v2059_v52 = vsel %vm2057_vm6, %v2045_v2, %v2058_v62  ;;  %v2062_v57 = vsel %vm2060_vm13, %v2061_v60, %v2053_v53  ;;  %v16194_v62 = vld [vmem:[#allocation73_spill] sm:$0xff] }
 0x33c   :  { %v3711_v19 = vclz %v3710_v6  ;;  %vm2160_vm8 = vc.u32 %v2135_v33, %v2154_v9  ;;  %vm2054_vm1 = vweird.f32 %v16149_v47  ;;  %v2063_v41 = vsel %vm2056_vm9, %v2059_v52, %v2062_v57 }
 0x33d   :  { %v16188_v45 = vand.u32 2147483647, %v16170_v5  ;;  %v2161_v26 = vadd.s32 1, %v2157_v59  ;;  %v2064_v34 = vsel %vm2054_vm1, nan, %v2063_v41  ;;  %vm3607_vm3 = vcmp.lt.s32.totalorder %v16170_v5, 0 }
 0x33e   :  { %v8016_v43 = vadd.s32 4294967294, %v3711_v19  ;;  %v2219_v39 = vand.u32 2147483647, %v16191_v13  ;;  %8058 = vmatmul.msk.f32.gmra.mxu0 %vm5311_vm0, %v2064_v34  ;;  %v3699_v32 = vadd.s32 %v11560_v8, %v11558_v14  ;;  %v2242_v38 = vshll.u32 %v16034_v40, %v16192_v31  ;;  %v16196_v34 = vld [vmem:[#allocation14_spill] sm:$0xff] }
 0x33f   :  { %vm11608_vm4 = vcmp.le.f32.partialorder %v16188_v45, 0.7853982  ;;  %v2162_v47 = vsel %vm2160_vm8, %v2161_v26, %v2157_v59  ;;  %v2243_v58 = vshrl.u32 %v15958_v0, %v16193_v11  ;;  %v3730_v55 = vsel %vm3607_vm3, %v3729_v27, %v3705_v42 }
 0x340   :  { %vm8017_vm5 = vcmp.lt.s32.totalorder %v8016_v43, 0  ;;  %v2163_v28 = vadd.s32 %v2162_v47, %v2158_v21  ;;  %v2236_v15 = vshll.u32 %v16031_v56, %v16192_v31  ;;  %v2237_v14 = vshrl.u32 %v16033_v23, %v16193_v11 }
 0x341   :  { %v3714_v17 = vsel %vm8017_vm5, 0, %v8016_v43  ;;  %v2239_v8 = vshll.u32 %v16033_v23, %v16192_v31  ;;  %v2240_v61 = vshrl.u32 %v16034_v40, %v16193_v11  ;;  %v11634_v42 = vand.u32 8388607, %v2219_v39  ;;  %v16197_v31 = vld [vmem:[#allocation88_spill] sm:$0xff] }
 0x342   :  { %v3715_v29 = vsub.s32 32, %v3714_v17  ;;  %v3716_v2 = vshll.u32 %v11589_v18, %v3714_v17  ;;  %v3719_v36 = vsub.s32 4294967266, %v3714_v17  ;;  %v116_v12 = vadd.f32 %v115_v7, %v91_v48  ;;  %v16199_v7 = vld [vmem:[#allocation77_spill] sm:$0xff] }
 0x343   :  { %v3732_v49 = vsel %vm11608_vm4, 0, %v3730_v55  ;;  %v2164_v46 = vadd.s32 536870912, %v2163_v28  ;;  %v2244_v25 = vor.u32 %v2243_v58, %v2242_v38  ;;  %v11638_v60 = vadd.s32 %v2154_v9, %v2135_v33  ;;  %v8134_v33 = vld [vmem:[%s15710_s5] ss:$0 sm:$0xff] }
 0x344   :  { %v3717_v50 = vshrl.u32 %v3699_v32, %v3715_v29  ;;  %v3720_v53 = vadd.s32 127, %v3719_v36  ;;  %v2235_v63 = vshrl.u32 %v16031_v56, %v16193_v11  ;;  %v2238_v18 = vor.u32 %v2237_v14, %v2236_v15  ;;  %v16198_v58 = vld [vmem:[#allocation89_spill] sm:$0xff] }
 0x345   :  { %v2165_v22 = vshrl.u32 %v2164_v46, 30  ;;  %v2241_v4 = vor.u32 %v2240_v61, %v2239_v8  ;;  %vm16195_vm12 = vcmp.lt.s32.totalorder %v16194_v62, 4  ;;  %v2227_v59 = vor.u32 8388608, %v11634_v42 }
 0x346   :  { %v2256_v6 = vsel %vm16195_vm12, %v2244_v25, 2102212464  ;;  %v3718_v27 = vor.u32 %v3717_v50, %v3716_v2  ;;  %v3721_v48 = vshll.u32 %v3720_v53, 23  ;;  %vm2251_vm7 = vcmp.lt.s32.totalorder %v16194_v62, 1 }
 0x347   :  { %v11646_v21 = vand.u32 3, %v3732_v49  ;;  %v2166_v9 = vshll.u32 %v2165_v22, 30  ;;  %vm2252_vm14 = vcmp.lt.s32.totalorder %v16194_v62, 2  ;;  %vm2253_vm11 = vcmp.lt.s32.totalorder %v16194_v62, 3 }
 0x348   :  { %v3722_v52 = vor.u32 4788187, %v3721_v48  ;;  %v3725_v57 = vcvt.s32.f32 %v3718_v27  ;;  %vm2067_vm15 = vcmp.lt.s32.totalorder %v16168_v44, 0  ;;  %v2255_v19 = vsel %vm2251_vm7, %v2235_v63, %v2238_v18 }
 0x349   :  { %v2257_v41 = vsel %vm2253_vm11, %v2241_v4, %v2256_v6  ;;  %v11656_v45 = vadd.f32 %v8134_v33, %v116_v12  ;;  %v11658_v26 = vsub.s32 %v2163_v28, %v2166_v9  ;;  %v3759_v43 = vand.u32 2147483647, %v16196_v34 }
 0x34a   :  { %v2259_v32 = vsel %vm2251_vm7, %v2238_v18, %v2241_v4  ;;  %v3723_v47 = vand.u32 2147483647, %v3722_v52  ;;  %v2261_v38 = vsel %vm2253_vm11, %v2244_v25, %v16197_v31  ;;  %v2263_v11 = vsel %vm2251_vm7, %v2241_v4, %v2244_v25 }
 0x34b   :  { %v2265_v55 = vsel %vm2253_vm11, %v16199_v7, %v16198_v58  ;;  %vm16200_vm2 = vcmask 261120   ;;  %vm2168_vm10 = vcmp.lt.s32.totalorder %v11658_v26, 0  ;;  %v2169_v28 = vsub.s32 0, %v11658_v26 }
 0x34c   :  { %v126_v15 = vsel %vm16200_vm2, %v11656_v45, 0.0  ;;  %v11674_v17 = vsel %vm2252_vm14, %v2255_v19, %v2257_v41  ;;  %v3726_v14 = vmul.f32 %v3725_v57, %v3723_v47  ;;  %v16201_v8 = vand.u32 2147483647, %v16168_v44 }
 0x34d   :  { %127 = vadd.xlane.f32.xlu0 %v126_v15  ;;  %v3766_v29 = vand.u32 8388607, %v3759_v43  ;;  %v3776_v2 = vshll.u32 %v16031_v56, %v11031_v10  ;;  %v3777_v36 = vshrl.u32 %v16033_v23, %v11065_v16  ;;  %v2170_v12 = vsel %vm2168_vm10, %v2169_v28, %v11658_v26 }
 0x34e   :  { %vm11678_vm9 = vcmp.le.f32.partialorder %v16201_v8, 0.7853982  ;;  %v2189_v49 = vsub.s32 4, %v2165_v22  ;;  %v11691_v46 = vsel %vm2252_vm14, %v2259_v32, %v2261_v38  ;;  %v11695_v25 = vsel %vm2252_vm14, %v2263_v11, %v2265_v55 }
 0x34f   :  { %v3727_v50 = vxor.u32 2147483648, %v3726_v14  ;;  %v2171_v53 = vclz %v2170_v12  ;;  %v3767_v63 = vor.u32 8388608, %v3766_v29  ;;  %v11697_v18 = vor.u32 %v3777_v36, %v3776_v2 }
 0x350   :  { %v3779_v4 = vshll.u32 %v16033_v23, %v11031_v10  ;;  %v3780_v6 = vshrl.u32 %v16034_v40, %v11065_v16  ;;  %v3782_v27 = vshll.u32 %v16034_v40, %v11031_v10  ;;  %v3783_v48 = vshrl.u32 %v15958_v0, %v11065_v16 }
 0x351   :  { %v3728_v62 = vsel %vm3607_vm3, %v3727_v50, %v3726_v14  ;;  %v7986_v33 = vadd.s32 4294967294, %v2171_v53  ;;  %vm3791_vm6 = vcmp.lt.s32.totalorder %v11020_v3, 1  ;;  %vm3792_vm13 = vcmp.lt.s32.totalorder %v11020_v3, 2 }
 0x352   :  { %v11714_v9 = vsel %vm11608_vm4, %v16170_v5, %v3728_v62  ;;  %v3781_v52 = vor.u32 %v3780_v6, %v3779_v4  ;;  %v3784_v57 = vor.u32 %v3783_v48, %v3782_v27  ;;  %vm3793_vm8 = vcmp.lt.s32.totalorder %v11020_v3, 3 }
 0x353   :  { %v3733_v10 = vmul.f32 %v11714_v9, %v11714_v9  ;;  %vm7987_vm1 = vcmp.lt.s32.totalorder %v7986_v33, 0  ;;  %v3805_v19 = vsel %vm3793_vm8, %v11340_v35, %v11599_v1  ;;  %v11723_v41 = vshll.u32 %v3767_v63, 8 }
 0x354   :  { %v2174_v32 = vsel %vm7987_vm1, 0, %v7986_v33  ;;  %v11727_v51 = vsel %vm2067_vm15, %v2189_v49, %v2165_v22  ;;  %v3799_v47 = vsel %vm3791_vm6, %v11697_v18, %v3781_v52  ;;  %v3803_v31 = vsel %vm3791_vm6, %v3781_v52, %v3784_v57 }
 0x355   :  { %v3734_v38 = vmul.f32 -0.001358992, %v3733_v10  ;;  %v3741_v11 = vmul.f32 -0.00019511016, %v3733_v10  ;;  %v2175_v58 = vsub.s32 32, %v2174_v32  ;;  %v2176_v7 = vshll.u32 %v11658_v26, %v2174_v32 }
 0x356   :  { %v2179_v35 = vsub.s32 4294967266, %v2174_v32  ;;  %v3801_v1 = vsel %vm3793_vm8, %v3784_v57, %v11366_v54  ;;  %v3806_v22 = vsel %vm3792_vm13, %v3803_v31, %v3805_v19  ;;  %v3808_v55 = vand.u32 65535, %v11723_v41 }
 0x357   :  { %v3735_v15 = vadd.f32 0.041655596, %v3734_v38  ;;  %v3742_v28 = vadd.f32 0.008332121, %v3741_v11  ;;  %v2177_v14 = vshrl.u32 %v11638_v60, %v2175_v58  ;;  %v3809_v8 = vshrl.u32 %v11723_v41, 16 }
 0x358   :  { %vm3754_vm4 = vcmp.eq.s32.totalorder %v11646_v21, 2  ;;  %v2180_v29 = vadd.s32 127, %v2179_v35  ;;  %v2192_v26 = vsel %vm11678_vm9, 0, %v11727_v51  ;;  %v3810_v2 = vand.u32 65535, %v3806_v22 }
 0x359   :  { %v3811_v54 = vshrl.u32 %v3806_v22, 16  ;;  %v3736_v36 = vmul.f32 %v3735_v15, %v3733_v10  ;;  %v3743_v12 = vmul.f32 %v3742_v28, %v3733_v10  ;;  %v2178_v49 = vor.u32 %v2177_v14, %v2176_v7 }
 0x35a   :  { %v11749_v50 = vshll.u32 %v2227_v59, 8  ;;  %vm3751_vm3 = vcmp.eq.s32.totalorder %v11646_v21, 0  ;;  %v2181_v60 = vshll.u32 %v2180_v29, 23  ;;  %v3802_v53 = vsel %vm3792_vm13, %v3799_v47, %v3801_v1 }
 0x35b   :  { %v3813_v63 = vmul.u32 %v3811_v54, %v3808_v55  ;;  %v2271_v4 = vshrl.u32 %v11695_v25, 16  ;;  %v3737_v6 = vadd.f32 -0.4999988, %v3736_v36  ;;  %v3744_v27 = vadd.f32 -0.16666654, %v3743_v12 }
 0x35c   :  { %vm3750_vm5 = vcmp.lt.s32.totalorder %v11646_v21, 2  ;;  %v3812_v48 = vmul.u32 %v3810_v2, %v3808_v55  ;;  %v3814_v62 = vmul.u32 %v3810_v2, %v3809_v8  ;;  %vm3748_vm12 = vweird.f32 %v16170_v5 }
 0x35d   :  { %v2182_v42 = vor.u32 4788187, %v2181_v60  ;;  %v2185_v59 = vcvt.s32.f32 %v2178_v49  ;;  %v3775_v33 = vshrl.u32 %v16031_v56, %v11065_v16  ;;  %vm16204_vm7 = vcmp.lt.s32.totalorder %v11020_v3, 4 }
 0x35e   :  { %v3796_v19 = vsel %vm16204_vm7, %v3784_v57, 2102212464  ;;  %v3738_v32 = vmul.f32 %v3737_v6, %v3733_v10  ;;  %v3745_v47 = vmul.f32 %v3744_v27, %v3733_v10  ;;  %v3832_v31 = vand.u32 65535, %v3802_v53 }
 0x35f   :  { %v3833_v38 = vshrl.u32 %v3802_v53, 16  ;;  %v2183_v11 = vand.u32 2147483647, %v2182_v42  ;;  %v3797_v58 = vsel %vm3793_vm8, %v3781_v52, %v3796_v19  ;;  %v3815_v7 = vmul.u32 %v3811_v54, %v3809_v8 }
 0x360   :  { %v3816_v35 = vshll.u32 %v3813_v63, 16  ;;  %v3739_v1 = vadd.f32 1.0, %v3738_v32  ;;  %v3746_v22 = vadd.f32 1.0, %v3745_v47  ;;  %v3795_v15 = vsel %vm3791_vm6, %v3775_v33, %v11697_v18 }
 0x361   :  { %v3818_v16 = vshll.u32 %v3814_v62, 16  ;;  %v2186_v28 = vmul.f32 %v2185_v59, %v2183_v11  ;;  %v3817_v14 = vshrl.u32 %v3813_v63, 16  ;;  %v3834_v36 = vmul.u32 %v3832_v31, %v3808_v55 }
 0x362   :  { %vm3820_vm14 = vc.u32 %v3812_v48, %v3816_v35  ;;  %v3822_v57 = vadd.s32 %v3816_v35, %v3812_v48  ;;  %v3747_v10 = vmul.f32 %v3746_v22, %v11714_v9  ;;  %v3755_v29 = vxor.u32 2147483648, %v3739_v1 }
 0x363   :  { %v3821_v2 = vsel %vm3820_vm14, 1, %v16038_v24  ;;  %v2187_v52 = vxor.u32 2147483648, %v2186_v28  ;;  %v3835_v12 = vmul.u32 %v3833_v38, %v3808_v55  ;;  %v3836_v53 = vmul.u32 %v3832_v31, %v3809_v8 }
 0x364   :  { %v3823_v54 = vadd.s32 %v3821_v2, %v3815_v7  ;;  %vm3824_vm11 = vc.u32 %v3822_v57, %v3818_v16  ;;  %v3752_v49 = vxor.u32 2147483648, %v3747_v10  ;;  %v3756_v60 = vsel %vm3754_vm4, %v3755_v29, %v3747_v10 }
 0x365   :  { %v3825_v18 = vsel %vm3824_vm11, 1, %v16038_v24  ;;  %v2188_v63 = vsel %vm2067_vm15, %v2187_v52, %v2186_v28  ;;  %v3819_v6 = vshrl.u32 %v3814_v62, 16  ;;  %v3838_v27 = vshll.u32 %v3835_v12, 16 }
 0x366   :  { %v3827_v9 = vadd.s32 %v3825_v18, %v3823_v54  ;;  %v3753_v48 = vsel %vm3751_vm3, %v3739_v1, %v3752_v49  ;;  %v2191_v55 = vsel %vm11678_vm9, %v16168_v44, %v2188_v63  ;;  %v3837_v42 = vmul.u32 %v3833_v38, %v3809_v8 }
 0x367   :  { %v3840_v59 = vshll.u32 %v3836_v53, 16  ;;  %v3757_v33 = vsel %vm3750_vm5, %v3753_v48, %v3756_v60  ;;  %v2193_v19 = vmul.f32 %v2191_v55, %v2191_v55  ;;  %v3798_v32 = vsel %vm3792_vm13, %v3795_v15, %v3797_v58 }
 0x368   :  { %v3828_v47 = vadd.s32 %v3827_v9, %v3817_v14  ;;  %v3758_v62 = vsel %vm3748_vm12, nan, %v3757_v33  ;;  %v3839_v31 = vshrl.u32 %v3835_v12, 16  ;;  %vm3842_vm15 = vc.u32 %v3834_v36, %v3838_v27 }
 0x369   :  { %v3844_v11 = vadd.s32 %v3838_v27, %v3834_v36  ;;  %8069 = vmatmul.msk.f32.gmra.mxu2 %vm5311_vm0, %v3758_v62  ;;  %v2194_v7 = vmul.f32 -0.001358992, %v2193_v19  ;;  %v2201_v35 = vmul.f32 -0.00019511016, %v2193_v19  ;;  %v3843_v21 = vsel %vm3842_vm15, 1, %v16038_v24 }
 0x36a   :  { %v11785_v8 = vadd.s32 %v3828_v47, %v3819_v6  ;;  %v3845_v38 = vadd.s32 %v3843_v21, %v3837_v42  ;;  %v2268_v3 = vand.u32 65535, %v11749_v50  ;;  %v2269_v15 = vshrl.u32 %v11749_v50, 16 }
 0x36b   :  { %vm3846_vm2 = vc.u32 %v3844_v11, %v3840_v59  ;;  %v11788_v1 = vadd.s32 %v3844_v11, %v3840_v59  ;;  %v2195_v58 = vadd.f32 0.041655596, %v2194_v7  ;;  %v2202_v5 = vadd.f32 0.008332121, %v2201_v35 }
 0x36c   :  { %v3847_v22 = vsel %vm3846_vm2, 1, %v16038_v24  ;;  %v2209_v16 = vand.u32 3, %v2192_v26  ;;  %v3841_v28 = vshrl.u32 %v3836_v53, 16  ;;  %v2270_v57 = vand.u32 65535, %v11695_v25 }
 0x36d   :  { %v3849_v14 = vadd.s32 %v3847_v22, %v3845_v38  ;;  %v2196_v10 = vmul.f32 %v2195_v58, %v2193_v19  ;;  %v2203_v29 = vmul.f32 %v2202_v5, %v2193_v19  ;;  %v3852_v2 = vmul.u32 %v11723_v41, %v3798_v32 }
 0x36e   :  { %v2273_v36 = vmul.u32 %v2271_v4, %v2268_v3  ;;  %vm3854_vm10 = vc.u32 %v11785_v8, %v11788_v1  ;;  %v2272_v54 = vmul.u32 %v2270_v57, %v2268_v3  ;;  %v2274_v61 = vmul.u32 %v2270_v57, %v2269_v15 }
 0x36f   :  { %v3850_v52 = vadd.s32 %v3849_v14, %v3839_v31  ;;  %v2197_v12 = vadd.f32 -0.4999988, %v2196_v10  ;;  %v2204_v51 = vadd.f32 -0.16666654, %v2203_v29  ;;  %v2275_v26 = vmul.u32 %v2271_v4, %v2269_v15 }
 0x370   :  { %v2276_v49 = vshll.u32 %v2273_v36, 16  ;;  %v2278_v18 = vshll.u32 %v2274_v61, 16  ;;  %v2292_v53 = vand.u32 65535, %v11691_v46  ;;  %v2293_v41 = vshrl.u32 %v11691_v46, 16 }
 0x371   :  { %v3851_v60 = vadd.s32 %v3850_v52, %v3841_v28  ;;  %v2198_v63 = vmul.f32 %v2197_v12, %v2193_v19  ;;  %v2205_v6 = vmul.f32 %v2204_v51, %v2193_v19  ;;  %vm2208_vm6 = vweird.f32 %v16168_v44  ;;  %v16210_v44 = vld [vmem:[#allocation92_spill] sm:$0xff] }
 0x372   :  { %vm2280_vm9 = vc.u32 %v2272_v54, %v2276_v49  ;;  %v2282_v9 = vadd.s32 %v2276_v49, %v2272_v54  ;;  %v2277_v48 = vshrl.u32 %v2273_v36, 16  ;;  %v2295_v59 = vmul.u32 %v2293_v41, %v2268_v3  ;;  %v16205_v49 = vld [vmem:[#allocation43_spill] sm:$0xff] }
 0x373   :  { %v3855_v27 = vadd.s32 1, %v3851_v60  ;;  %v2281_v42 = vsel %vm2280_vm9, 1, %v16038_v24  ;;  %v2199_v25 = vadd.f32 1.0, %v2198_v63  ;;  %v2206_v4 = vadd.f32 1.0, %v2205_v6  ;;  %v16209_v63 = vld [vmem:[#allocation99_spill] sm:$0xff] }
 0x374   :  { %v2283_v33 = vadd.s32 %v2281_v42, %v2275_v26  ;;  %vm2284_vm13 = vc.u32 %v2282_v9, %v2278_v18  ;;  %v2294_v19 = vmul.u32 %v2292_v53, %v2268_v3  ;;  %v2296_v47 = vmul.u32 %v2292_v53, %v2269_v15  ;;  %v16206_v18 = vld [vmem:[#allocation96_spill] sm:$0xff] }
 0x375   :  { %v3856_v32 = vsel %vm3854_vm10, %v3855_v27, %v3851_v60  ;;  %v2285_v46 = vsel %vm2284_vm13, 1, %v16038_v24  ;;  %v2207_v62 = vmul.f32 %v2206_v4, %v2191_v55  ;;  %v2215_v31 = vxor.u32 2147483648, %v2199_v25 }
 0x376   :  { %v3857_v11 = vadd.s32 %v3856_v32, %v3852_v2  ;;  %v2287_v7 = vadd.s32 %v2285_v46, %v2283_v33  ;;  %vm2210_vm8 = vcmp.lt.s32.totalorder %v2209_v16, 2  ;;  %v2297_v35 = vmul.u32 %v2293_v41, %v2269_v15  ;;  %v16208_v41 = vld [vmem:[#allocation98_spill] sm:$0xff] }
 0x377   :  { %v2298_v21 = vshll.u32 %v2295_v59, 16  ;;  %v2300_v38 = vshll.u32 %v2296_v47, 16  ;;  %vm2211_vm1 = vcmp.eq.s32.totalorder %v2209_v16, 0  ;;  %v2212_v58 = vxor.u32 2147483648, %v2207_v62 }
 0x378   :  { %vm2214_vm4 = vcmp.eq.s32.totalorder %v2209_v16, 2  ;;  %v3858_v5 = vadd.s32 536870912, %v3857_v11  ;;  %v2279_v22 = vshrl.u32 %v2274_v61, 16  ;;  %v2288_v28 = vadd.s32 %v2287_v7, %v2277_v48  ;;  %v16207_v16 = vld [vmem:[#allocation97_spill] sm:$0xff]  ;;  %v16211_v48 = vld [vmem:[#allocation34_spill] sm:$0xff] }
 0x379   :  { %vm2302_vm3 = vc.u32 %v2294_v19, %v2298_v21  ;;  %v2304_v14 = vadd.s32 %v2298_v21, %v2294_v19  ;;  %v2213_v57 = vsel %vm2211_vm1, %v2199_v25, %v2212_v58  ;;  %v2216_v10 = vsel %vm2214_vm4, %v2215_v31, %v2207_v62  ;;  %v16214_v62 = vld [vmem:[#allocation91_spill] sm:$0xff]  ;;  %v16215_v21 = vld [vmem:[#allocation82_spill] sm:$0xff] }
 0x37a   :  { %v3859_v3 = vshrl.u32 %v3858_v5, 30  ;;  %v2303_v55 = vsel %vm2302_vm3, 1, %v16038_v24  ;;  %v2217_v29 = vsel %vm2210_vm8, %v2213_v57, %v2216_v10  ;;  %v2299_v2 = vshrl.u32 %v2295_v59, 16  ;;  %v16212_v59 = vld [vmem:[#allocation21_spill] sm:$0xff] }
 0x37b   :  { %v2305_v36 = vadd.s32 %v2303_v55, %v2297_v35  ;;  %vm2306_vm5 = vc.u32 %v2304_v14, %v2300_v38  ;;  %v2218_v15 = vsel %vm2208_vm6, nan, %v2217_v29  ;;  %v2301_v54 = vshrl.u32 %v2296_v47, 16  ;;  %v16213_v47 = vld [vmem:[#allocation80_spill] sm:$0xff] }
 0x37c   :  { %v3860_v52 = vshll.u32 %v3859_v3, 30  ;;  %v2307_v61 = vsel %vm2306_vm5, 1, %v16038_v24  ;;  %8059 = vmatmul.msk.f32.gmra.mxu0 %vm5311_vm0, %v2218_v15  ;;  %v2289_v12 = vadd.s32 %v2288_v28, %v2279_v22  ;;  %v2308_v51 = vadd.s32 %v2304_v14, %v2300_v38  ;;  %v16216_v38 = vld [vmem:[#allocation87_spill] sm:$0xff] }
 0x37d   :  { %v2309_v26 = vadd.s32 %v2307_v61, %v2305_v36  ;;  %v15901_v60 = vand.u32 2147483647, %v16205_v49  ;;  %v11822_v53 = vor.u32 %v16207_v16, %v16206_v18  ;;  %v2404_v6 = vor.u32 %v16209_v63, %v16208_v41 }
 0x37e   :  { %vm2408_vm12 = vcmp.lt.s32.totalorder %v16210_v44, 4  ;;  %v3861_v9 = vsub.s32 %v3857_v11, %v3860_v52  ;;  %v11829_v27 = vor.u32 %v11370_v20, %v11350_v37  ;;  %v3944_v42 = vor.u32 %v16211_v48, %v11360_v30 }
 0x37f   :  { %vm3948_vm7 = vcmp.lt.s32.totalorder %v16212_v59, 4  ;;  %v2310_v25 = vadd.s32 %v2309_v26, %v2299_v2  ;;  %v3883_v33 = vsub.s32 4, %v3859_v3  ;;  %v2312_v32 = vmul.u32 %v11749_v50, %v11674_v17 }
 0x380   :  { %vm3862_vm14 = vcmp.lt.s32.totalorder %v3861_v9, 0  ;;  %v3863_v4 = vsub.s32 0, %v3861_v9  ;;  %vm2314_vm11 = vc.u32 %v2289_v12, %v2308_v51  ;;  %v2380_v19 = vand.u32 8388607, %v15901_v60 }
 0x381   :  { %v2311_v46 = vadd.s32 %v2310_v25, %v2301_v54  ;;  %v2390_v37 = vshll.u32 %v16031_v56, %v16213_v47  ;;  %v2391_v30 = vshrl.u32 %v16033_v23, %v16214_v62  ;;  %v2393_v31 = vshll.u32 %v16033_v23, %v16213_v47 }
 0x382   :  { %v3864_v20 = vsel %vm3862_vm14, %v3863_v4, %v3861_v9  ;;  %v2394_v11 = vshrl.u32 %v16034_v40, %v16214_v62  ;;  %v2396_v50 = vshll.u32 %v16034_v40, %v16213_v47  ;;  %v2397_v35 = vshrl.u32 %v15958_v0, %v16214_v62 }
 0x383   :  { %v3865_v7 = vclz %v3864_v20  ;;  %v2315_v17 = vadd.s32 1, %v2311_v46  ;;  %v11852_v58 = vor.u32 %v16216_v38, %v16215_v21  ;;  %v2414_v5 = vsel %vm2408_vm12, %v11822_v53, 920167782 }
 0x384   :  { %v2418_v22 = vsel %vm2408_vm12, %v2404_v6, 1326507024  ;;  %v11862_v28 = vsel %vm3948_vm7, %v11829_v27, 920167782  ;;  %v11866_v14 = vsel %vm3948_vm7, %v3944_v42, 1326507024  ;;  %v3853_v55 = vadd.s32 %v11788_v1, %v11785_v8 }
 0x385   :  { %vm3761_vm15 = vcmp.lt.s32.totalorder %v16196_v34, 0  ;;  %v8019_v57 = vadd.s32 4294967294, %v3865_v7  ;;  %v2316_v10 = vsel %vm2314_vm11, %v2315_v17, %v2311_v46  ;;  %v2381_v36 = vor.u32 8388608, %v2380_v19  ;;  %v16219_v19 = vld [vmem:[#allocation15_spill] sm:$0xff] }
 0x386   :  { %v3884_v29 = vsel %vm3761_vm15, %v3883_v33, %v3859_v3  ;;  %v2317_v2 = vadd.s32 %v2316_v10, %v2312_v32  ;;  %v11874_v15 = vor.u32 %v2391_v30, %v2390_v37  ;;  %v11876_v52 = vor.u32 %v2394_v11, %v2393_v31 }
 0x387   :  { %vm8020_vm2 = vcmp.lt.s32.totalorder %v8019_v57, 0  ;;  %v2398_v54 = vor.u32 %v2397_v35, %v2396_v50  ;;  %vm2405_vm10 = vcmp.lt.s32.totalorder %v16210_v44, 1  ;;  %vm2407_vm9 = vcmp.lt.s32.totalorder %v16210_v44, 3  ;;  %v16222_v50 = vld [vmem:[#allocation23_spill] sm:$0xff] }
 0x388   :  { %v3868_v61 = vsel %vm8020_vm2, 0, %v8019_v57  ;;  %v2318_v26 = vadd.s32 536870912, %v2317_v2  ;;  %vm11882_vm6 = vcmp.le.f32.partialorder %v3759_v43, 0.7853982  ;;  %vm2406_vm13 = vcmp.lt.s32.totalorder %v16210_v44, 2 }
 0x389   :  { %v3869_v1 = vsub.s32 32, %v3868_v61  ;;  %v3870_v3 = vshll.u32 %v3861_v9, %v3868_v61  ;;  %v3873_v18 = vsub.s32 4294967266, %v3868_v61  ;;  %v3886_v16 = vsel %vm11882_vm6, 0, %v3884_v29 }
 0x38a   :  { %v2319_v41 = vshrl.u32 %v2318_v26, 30  ;;  %v11889_v63 = vshll.u32 %v2381_v36, 8  ;;  %vm2221_vm8 = vcmp.lt.s32.totalorder %v16191_v13, 0  ;;  %v2413_v43 = vsel %vm2405_vm10, %v11874_v15, %v11876_v52 }
 0x38b   :  { %v3871_v6 = vshrl.u32 %v3853_v55, %v3869_v1  ;;  %v3874_v48 = vadd.s32 127, %v3873_v18  ;;  %v2415_v9 = vsel %vm2407_vm9, %v2398_v54, %v2414_v5  ;;  %v11898_v42 = vadd.s32 %v2308_v51, %v2289_v12  ;;  %v16223_v5 = vld [vmem:[#allocation25_spill] sm:$0xff] }
 0x38c   :  { %v2320_v25 = vshll.u32 %v2319_v41, 30  ;;  %v11902_v4 = vshrl.u32 %v16031_v56, %v16214_v62  ;;  %v2417_v33 = vsel %vm2405_vm10, %v11876_v52, %v2398_v54  ;;  %v15902_v47 = vand.u32 2147483647, %v16219_v19 }
 0x38d   :  { %v3872_v32 = vor.u32 %v3871_v6, %v3870_v3  ;;  %v3875_v46 = vshll.u32 %v3874_v48, 23  ;;  %v2419_v37 = vsel %vm2407_vm9, %v11822_v53, %v2418_v22  ;;  %v11911_v20 = vand.u32 3, %v3886_v16 }
 0x38e   :  { %v11913_v12 = vsub.s32 %v2317_v2, %v2320_v25  ;;  %v11917_v51 = vsel %vm2408_vm12, %v2398_v54, 2102212464  ;;  %v11921_v62 = vsel %vm2406_vm13, %v2413_v43, %v2415_v9  ;;  %vm11925_vm1 = vcmp.le.f32.partialorder %v2219_v39, 0.7853982 }
 0x38f   :  { %v3876_v30 = vor.u32 4788187, %v3875_v46  ;;  %v3879_v31 = vcvt.s32.f32 %v3872_v32  ;;  %v3920_v53 = vand.u32 8388607, %v15902_v47  ;;  %v11932_v7 = vand.u32 65535, %v11889_v63 }
 0x390   :  { %vm2322_vm4 = vcmp.lt.s32.totalorder %v11913_v12, 0  ;;  %v2323_v17 = vsub.s32 0, %v11913_v12  ;;  %v3930_v35 = vshll.u32 %v16031_v56, %v16222_v50  ;;  %v2420_v21 = vsel %vm2406_vm13, %v2417_v33, %v2419_v37 }
 0x391   :  { %v3877_v39 = vand.u32 2147483647, %v3876_v30  ;;  %v2343_v38 = vsub.s32 4, %v2319_v41  ;;  %v3931_v22 = vshrl.u32 %v16033_v23, %v16223_v5  ;;  %v3933_v57 = vshll.u32 %v16033_v23, %v16222_v50 }
 0x392   :  { %v2324_v10 = vsel %vm2322_vm4, %v2323_v17, %v11913_v12  ;;  %v3921_v55 = vor.u32 8388608, %v3920_v53  ;;  %v11946_v29 = vshrl.u32 %v11889_v63, 16  ;;  %v2424_v2 = vand.u32 65535, %v2420_v21 }
 0x393   :  { %v3880_v36 = vmul.f32 %v3879_v31, %v3877_v39  ;;  %v2325_v54 = vclz %v2324_v10  ;;  %v11948_v61 = vor.u32 %v3931_v22, %v3930_v35  ;;  %v3934_v26 = vshrl.u32 %v16034_v40, %v16223_v5 }
 0x394   :  { %v3936_v1 = vshll.u32 %v16034_v40, %v16222_v50  ;;  %v3937_v3 = vshrl.u32 %v15958_v0, %v16223_v5  ;;  %vm3945_vm3 = vcmp.lt.s32.totalorder %v16212_v59, 1  ;;  %v2425_v18 = vshrl.u32 %v2420_v21, 16 }
 0x395   :  { %v3881_v16 = vxor.u32 2147483648, %v3880_v36  ;;  %v7989_v6 = vadd.s32 4294967294, %v2325_v54  ;;  %v11957_v48 = vor.u32 %v3934_v26, %v3933_v57  ;;  %vm3947_vm5 = vcmp.lt.s32.totalorder %v16212_v59, 3 }
 0x396   :  { %v2344_v43 = vsel %vm2221_vm8, %v2343_v38, %v2319_v41  ;;  %v3938_v9 = vor.u32 %v3937_v3, %v3936_v1  ;;  %vm3946_vm12 = vcmp.lt.s32.totalorder %v16212_v59, 2  ;;  %v3959_v25 = vsel %vm3947_vm5, %v11829_v27, %v11866_v14 }
 0x397   :  { %v3882_v33 = vsel %vm3761_vm15, %v3881_v16, %v3880_v36  ;;  %vm7990_vm14 = vcmp.lt.s32.totalorder %v7989_v6, 0  ;;  %v3953_v32 = vsel %vm3945_vm3, %v11948_v61, %v11957_v48  ;;  %v11973_v46 = vshll.u32 %v3921_v55, 8 }
 0x398   :  { %v11978_v41 = vsel %vm11882_vm6, %v16196_v34, %v3882_v33  ;;  %v2328_v37 = vsel %vm7990_vm14, 0, %v7989_v6  ;;  %v3955_v27 = vsel %vm3947_vm5, %v3938_v9, %v11862_v28  ;;  %v3957_v14 = vsel %vm3945_vm3, %v11957_v48, %v3938_v9 }
 0x399   :  { %v3887_v30 = vmul.f32 %v11978_v41, %v11978_v41  ;;  %v2329_v31 = vsub.s32 32, %v2328_v37  ;;  %v2330_v53 = vshll.u32 %v11913_v12, %v2328_v37  ;;  %v2333_v17 = vsub.s32 4294967266, %v2328_v37 }
 0x39a   :  { %v2346_v8 = vsel %vm11925_vm1, 0, %v2344_v43  ;;  %v3960_v50 = vsel %vm3946_vm12, %v3957_v14, %v3959_v25  ;;  %v11994_v35 = vmul.u32 %v2424_v2, %v11932_v7  ;;  %v11997_v28 = vmul.u32 %v2424_v2, %v11946_v29 }
 0x39b   :  { %v3888_v21 = vmul.f32 -0.001358992, %v3887_v30  ;;  %v3895_v39 = vmul.f32 -0.00019511016, %v3887_v30  ;;  %v2331_v38 = vshrl.u32 %v11898_v42, %v2329_v31  ;;  %v2334_v22 = vadd.s32 127, %v2333_v17 }
 0x39c   :  { %v3956_v12 = vsel %vm3946_vm12, %v3953_v32, %v3955_v27  ;;  %v3962_v57 = vand.u32 65535, %v11973_v46  ;;  %v3964_v10 = vand.u32 65535, %v3960_v50  ;;  %v3965_v55 = vshrl.u32 %v3960_v50, 16 }
 0x39d   :  { %v3889_v36 = vadd.f32 0.041655596, %v3888_v21  ;;  %v3896_v54 = vadd.f32 0.008332121, %v3895_v39  ;;  %v2332_v26 = vor.u32 %v2331_v38, %v2330_v53  ;;  %v2335_v1 = vshll.u32 %v2334_v22, 23 }
 0x39e   :  { %vm3908_vm11 = vcmp.eq.s32.totalorder %v11911_v20, 2  ;;  %v12004_v2 = vand.u32 3, %v2346_v8  ;;  %v3963_v3 = vshrl.u32 %v11973_v46, 16  ;;  %v12008_v42 = vmul.u32 %v2425_v18, %v11932_v7 }
 0x39f   :  { %v12011_v16 = vmul.u32 %v2425_v18, %v11946_v29  ;;  %v3890_v6 = vmul.f32 %v3889_v36, %v3887_v30  ;;  %v3897_v43 = vmul.f32 %v3896_v54, %v3887_v30  ;;  %v2336_v25 = vor.u32 4788187, %v2335_v1 }
 0x3a0   :  { %v2339_v33 = vcvt.s32.f32 %v2332_v26  ;;  %vm3905_vm15 = vcmp.eq.s32.totalorder %v11911_v20, 0  ;;  %v3966_v32 = vmul.u32 %v3964_v10, %v3962_v57  ;;  %v3967_v37 = vmul.u32 %v3965_v55, %v3962_v57 }
 0x3a1   :  { %v3986_v27 = vand.u32 65535, %v3956_v12  ;;  %v3987_v14 = vshrl.u32 %v3956_v12, 16  ;;  %v3891_v31 = vadd.f32 -0.4999988, %v3890_v6  ;;  %v3898_v53 = vadd.f32 -0.16666654, %v3897_v43 }
 0x3a2   :  { %vm3904_vm2 = vcmp.lt.s32.totalorder %v11911_v20, 2  ;;  %v2337_v17 = vand.u32 2147483647, %v2336_v25  ;;  %v3929_v8 = vshrl.u32 %v16031_v56, %v16223_v5  ;;  %vm3902_vm6 = vweird.f32 %v16196_v34 }
 0x3a3   :  { %v3950_v18 = vsel %vm3948_vm7, %v3938_v9, 2102212464  ;;  %v3968_v50 = vmul.u32 %v3964_v10, %v3963_v3  ;;  %v3969_v21 = vmul.u32 %v3965_v55, %v3963_v3  ;;  %v3970_v39 = vshll.u32 %v3967_v37, 16 }
 0x3a4   :  { %v3892_v38 = vmul.f32 %v3891_v31, %v3887_v30  ;;  %v3899_v22 = vmul.f32 %v3898_v53, %v3887_v30  ;;  %v2340_v36 = vmul.f32 %v2339_v33, %v2337_v17  ;;  %v3971_v12 = vshrl.u32 %v3967_v37, 16 }
 0x3a5   :  { %v3972_v54 = vshll.u32 %v3968_v50, 16  ;;  %vm3974_vm4 = vc.u32 %v3966_v32, %v3970_v39  ;;  %v3976_v26 = vadd.s32 %v3970_v39, %v3966_v32  ;;  %v3988_v1 = vmul.u32 %v3986_v27, %v3962_v57 }
 0x3a6   :  { %v3893_v6 = vadd.f32 1.0, %v3892_v38  ;;  %v3900_v43 = vadd.f32 1.0, %v3899_v22  ;;  %v2341_v25 = vxor.u32 2147483648, %v2340_v36  ;;  %v3975_v5 = vsel %vm3974_vm4, 1, %v16038_v24 }
 0x3a7   :  { %v3977_v60 = vadd.s32 %v3975_v5, %v3969_v21  ;;  %vm3978_vm14 = vc.u32 %v3976_v26, %v3972_v54  ;;  %v3989_v47 = vmul.u32 %v3987_v14, %v3962_v57  ;;  %v3990_v9 = vmul.u32 %v3986_v27, %v3963_v3 }
 0x3a8   :  { %v3901_v10 = vmul.f32 %v3900_v43, %v11978_v41  ;;  %v3909_v55 = vxor.u32 2147483648, %v3893_v6  ;;  %v2342_v30 = vsel %vm2221_vm8, %v2341_v25, %v2340_v36  ;;  %v3979_v33 = vsel %vm3978_vm14, 1, %v16038_v24 }
 0x3a9   :  { %v12028_v32 = vsel %vm11925_vm1, %v16191_v13, %v2342_v30  ;;  %v3981_v37 = vadd.s32 %v3979_v33, %v3977_v60  ;;  %v3991_v31 = vmul.u32 %v3987_v14, %v3963_v3  ;;  %v3992_v53 = vshll.u32 %v3989_v47, 16 }
 0x3aa   :  { %v3906_v17 = vxor.u32 2147483648, %v3901_v10  ;;  %v3910_v57 = vsel %vm3908_vm11, %v3909_v55, %v3901_v10  ;;  %v2347_v41 = vmul.f32 %v12028_v32, %v12028_v32  ;;  %v3949_v27 = vsel %vm3945_vm3, %v3929_v8, %v11948_v61 }
 0x3ab   :  { %v3951_v11 = vsel %vm3947_vm5, %v11957_v48, %v3950_v18  ;;  %v3973_v21 = vshrl.u32 %v3968_v50, 16  ;;  %v3994_v39 = vshll.u32 %v3990_v9, 16  ;;  %vm3996_vm7 = vc.u32 %v3988_v1, %v3992_v53 }
 0x3ac   :  { %v3907_v60 = vsel %vm3905_vm15, %v3893_v6, %v3906_v17  ;;  %v2348_v3 = vmul.f32 -0.001358992, %v2347_v41  ;;  %v2355_v14 = vmul.f32 -0.00019511016, %v2347_v41  ;;  %v3997_v38 = vsel %vm3996_vm7, 1, %v16038_v24 }
 0x3ad   :  { %v3911_v22 = vsel %vm3904_vm2, %v3907_v60, %v3910_v57  ;;  %v3982_v36 = vadd.s32 %v3981_v37, %v3971_v12  ;;  %v3998_v54 = vadd.s32 %v3992_v53, %v3988_v1  ;;  %v3999_v61 = vadd.s32 %v3997_v38, %v3991_v31 }
 0x3ae   :  { %v3912_v8 = vsel %vm3902_vm6, nan, %v3911_v22  ;;  %v2349_v48 = vadd.f32 0.041655596, %v2348_v3  ;;  %v2356_v18 = vadd.f32 0.008332121, %v2355_v14  ;;  %v3952_v50 = vsel %vm3946_vm12, %v3949_v27, %v3951_v11 }
 0x3af   :  { %8070 = vmatmul.msk.f32.gmra.mxu2 %vm5311_vm0, %v3912_v8  ;;  %v3993_v26 = vshrl.u32 %v3989_v47, 16  ;;  %v3995_v6 = vshrl.u32 %v3990_v9, 16  ;;  %vm4000_vm8 = vc.u32 %v3998_v54, %v3994_v39  ;;  %v2430_v43 = vshll.u32 %v12008_v42, 16 }
 0x3b0   :  { %v2350_v20 = vmul.f32 %v2349_v48, %v2347_v41  ;;  %v2357_v25 = vmul.f32 %v2356_v18, %v2347_v41  ;;  %v4001_v12 = vsel %vm4000_vm8, 1, %v16038_v24  ;;  %v2432_v1 = vshll.u32 %v11997_v28, 16 }
 0x3b1   :  { %v12053_v34 = vadd.s32 %v3982_v36, %v3973_v21  ;;  %v12055_v5 = vadd.s32 %v3998_v54, %v3994_v39  ;;  %v4003_v10 = vadd.s32 %v4001_v12, %v3999_v61  ;;  %v4006_v59 = vmul.u32 %v11973_v46, %v3952_v50  ;;  %v16224_v61 = vld [vmem:[#allocation79_spill] sm:$0xff] }
 0x3b2   :  { %v2351_v55 = vadd.f32 -0.4999988, %v2350_v20  ;;  %v2358_v30 = vadd.f32 -0.16666654, %v2357_v25  ;;  %vm2434_vm1 = vc.u32 %v11994_v35, %v2430_v43  ;;  %v2436_v47 = vadd.s32 %v2430_v43, %v11994_v35 }
 0x3b3   :  { %vm2365_vm3 = vcmp.eq.s32.totalorder %v12004_v2, 0  ;;  %v4004_v9 = vadd.s32 %v4003_v10, %v3993_v26  ;;  %v2435_v33 = vsel %vm2434_vm1, 1, %v16038_v24  ;;  %v2446_v37 = vand.u32 65535, %v11921_v62 }
 0x3b4   :  { %v2447_v31 = vshrl.u32 %v11921_v62, 16  ;;  %v2352_v53 = vmul.f32 %v2351_v55, %v2347_v41  ;;  %v2359_v17 = vmul.f32 %v2358_v30, %v2347_v41  ;;  %vm2364_vm5 = vcmp.lt.s32.totalorder %v12004_v2, 2  ;;  %v16225_v30 = vld [vmem:[#allocation37_spill] sm:$0xff] }
 0x3b5   :  { %v2437_v46 = vadd.s32 %v2435_v33, %v12011_v16  ;;  %vm2438_vm12 = vc.u32 %v2436_v47, %v2432_v1  ;;  %vm2362_vm11 = vweird.f32 %v16191_v13  ;;  %v4005_v57 = vadd.s32 %v4004_v9, %v3995_v6  ;;  %v16226_v47 = vld [vmem:[#allocation85_spill] sm:$0xff]  ;;  %v16227_v9 = vld [vmem:[#allocation90_spill] sm:$0xff] }
 0x3b6   :  { %v2439_v35 = vsel %vm2438_vm12, 1, %v16038_v24  ;;  %v2448_v27 = vmul.u32 %v2446_v37, %v11932_v7  ;;  %v2449_v11 = vmul.u32 %v2447_v31, %v11932_v7  ;;  %v2353_v21 = vadd.f32 1.0, %v2352_v53 }
 0x3b7   :  { %v2360_v39 = vadd.f32 1.0, %v2359_v17  ;;  %vm4008_vm15 = vc.u32 %v12053_v34, %v12055_v5  ;;  %v2450_v62 = vmul.u32 %v2446_v37, %v11946_v29  ;;  %v4009_v41 = vadd.s32 1, %v4005_v57  ;;  %v16228_v37 = vld [vmem:[#allocation70_spill] sm:$0xff]  ;;  %v16229_v17 = vld [vmem:[#allocation93_spill] sm:$0xff] }
 0x3b8   :  { %v2431_v16 = vshrl.u32 %v12008_v42, 16  ;;  %v2441_v60 = vadd.s32 %v2439_v35, %v2437_v46  ;;  %v2452_v3 = vshll.u32 %v2449_v11, 16  ;;  %v2369_v38 = vxor.u32 2147483648, %v2353_v21 }
 0x3b9   :  { %v2361_v14 = vmul.f32 %v2360_v39, %v12028_v32  ;;  %v2451_v22 = vmul.u32 %v2447_v31, %v11946_v29  ;;  %v2454_v36 = vshll.u32 %v2450_v62, 16  ;;  %vm2368_vm2 = vcmp.eq.s32.totalorder %v12004_v2, 2 }
 0x3ba   :  { %v4010_v7 = vsel %vm4008_vm15, %v4009_v41, %v4005_v57  ;;  %vm2456_vm6 = vc.u32 %v2448_v27, %v2452_v3  ;;  %v2458_v54 = vadd.s32 %v2452_v3, %v2448_v27  ;;  %vm2562_vm4 = vcmp.lt.s32.totalorder %v16224_v61, 4  ;;  %v16230_v57 = vld [vmem:[#allocation76_spill] sm:$0xff] }
 0x3bb   :  { %v2366_v8 = vxor.u32 2147483648, %v2361_v14  ;;  %v4011_v48 = vadd.s32 %v4010_v7, %v4006_v59  ;;  %v2433_v18 = vshrl.u32 %v11997_v28, 16  ;;  %v2453_v42 = vshrl.u32 %v2449_v11, 16 }
 0x3bc   :  { %v2370_v50 = vsel %vm2368_vm2, %v2369_v38, %v2361_v14  ;;  %v2442_v26 = vadd.s32 %v2441_v60, %v2431_v16  ;;  %v2457_v32 = vsel %vm2456_vm6, 1, %v16038_v24  ;;  %vm2460_vm14 = vc.u32 %v2458_v54, %v2454_v36 }
 0x3bd   :  { %v2367_v29 = vsel %vm2365_vm3, %v2353_v21, %v2366_v8  ;;  %v4012_v6 = vadd.s32 536870912, %v4011_v48  ;;  %v2459_v43 = vadd.s32 %v2457_v32, %v2451_v22  ;;  %v2461_v20 = vsel %vm2460_vm14, 1, %v16038_v24 }
 0x3be   :  { %v2371_v25 = vsel %vm2364_vm5, %v2367_v29, %v2370_v50  ;;  %v2409_v28 = vsel %vm2405_vm10, %v11902_v4, %v11874_v15  ;;  %v2411_v12 = vsel %vm2407_vm9, %v11876_v52, %v11917_v51  ;;  %v2455_v1 = vshrl.u32 %v2450_v62, 16 }
 0x3bf   :  { %v2372_v10 = vsel %vm2362_vm11, nan, %v2371_v25  ;;  %v12095_v59 = vshrl.u32 %v4012_v6, 30  ;;  %v2463_v55 = vadd.s32 %v2461_v20, %v2459_v43  ;;  %v2527_v2 = vand.u32 2147483647, %v16225_v30 }
 0x3c0   :  { %v2558_v33 = vor.u32 %v16227_v9, %v16226_v47  ;;  %8060 = vmatmul.msk.f32.gmra.mxu0 %vm5311_vm0, %v2372_v10  ;;  %v12101_v15 = vadd.s32 %v2442_v26, %v2433_v18  ;;  %v12103_v4 = vadd.s32 %v2458_v54, %v2454_v36  ;;  %v2547_v52 = vshll.u32 %v16033_v23, %v16228_v37 }
 0x3c1   :  { %v4014_v13 = vshll.u32 %v12095_v59, 30  ;;  %v2412_v51 = vsel %vm2406_vm13, %v2409_v28, %v2411_v12  ;;  %v2464_v31 = vadd.s32 %v2463_v55, %v2453_v42  ;;  %v2534_v53 = vand.u32 8388607, %v2527_v2 }
 0x3c2   :  { %v2691_v46 = vadd.s32 1, %v16229_v17  ;;  %v2548_v35 = vshrl.u32 %v16034_v40, %v16230_v57  ;;  %v2550_v27 = vshll.u32 %v16034_v40, %v16228_v37  ;;  %v2551_v11 = vshrl.u32 %v15958_v0, %v16230_v57 }
 0x3c3   :  { %v4015_v21 = vsub.s32 %v4011_v48, %v4014_v13  ;;  %v2465_v39 = vadd.s32 %v2464_v31, %v2455_v1  ;;  %v2544_v44 = vshll.u32 %v16031_v56, %v16228_v37  ;;  %v2545_v62 = vshrl.u32 %v16033_v23, %v16230_v57 }
 0x3c4   :  { %v2466_v41 = vmul.u32 %v11889_v63, %v2412_v51  ;;  %vm2468_vm10 = vc.u32 %v12101_v15, %v12103_v4  ;;  %v2535_v16 = vor.u32 8388608, %v2534_v53  ;;  %v12126_v60 = vor.u32 %v2548_v35, %v2547_v52 }
 0x3c5   :  { %vm4016_vm9 = vcmp.lt.s32.totalorder %v4015_v21, 0  ;;  %v4017_v3 = vsub.s32 0, %v4015_v21  ;;  %v2469_v14 = vadd.s32 1, %v2465_v39  ;;  %v2552_v38 = vor.u32 %v2551_v11, %v2550_v27 }
 0x3c6   :  { %v2572_v22 = vsel %vm2562_vm4, %v2558_v33, 1326507024  ;;  %vm2692_vm13 = vcmp.gt.s32.totalorder %v2691_v46, 0  ;;  %vm2559_vm7 = vcmp.lt.s32.totalorder %v16224_v61, 1  ;;  %vm2561_vm8 = vcmp.lt.s32.totalorder %v16224_v61, 3 }
 0x3c7   :  { %v4018_v36 = vsel %vm4016_vm9, %v4017_v3, %v4015_v21  ;;  %v2470_v63 = vsel %vm2468_vm10, %v2469_v14, %v2465_v39  ;;  %v2546_v7 = vor.u32 %v2545_v62, %v2544_v44  ;;  %vm2560_vm1 = vcmp.lt.s32.totalorder %v16224_v61, 2 }
 0x3c8   :  { %v2568_v54 = vsel %vm2562_vm4, %v11852_v58, 920167782  ;;  %v4019_v8 = vclz %v4018_v36  ;;  %v2471_v48 = vadd.s32 %v2470_v63, %v2466_v41  ;;  %v12136_v18 = vsel %vm2692_vm13, %v2691_v46, 0 }
 0x3c9   :  { %v2571_v42 = vsel %vm2559_vm7, %v12126_v60, %v2552_v38  ;;  %v2573_v50 = vsel %vm2561_vm8, %v11852_v58, %v2572_v22  ;;  %v12144_v26 = vshll.u32 %v2535_v16, 8  ;;  %v4007_v32 = vadd.s32 %v12055_v5, %v12053_v34 }
 0x3ca   :  { %v8022_v29 = vadd.s32 4294967294, %v4019_v8  ;;  %v2472_v6 = vadd.s32 536870912, %v2471_v48  ;;  %v2574_v43 = vsel %vm2560_vm1, %v2571_v42, %v2573_v50  ;;  %v2567_v20 = vsel %vm2559_vm7, %v2546_v7, %v12126_v60 }
 0x3cb   :  { %v2576_v25 = vand.u32 65535, %v12144_v26  ;;  %v2578_v28 = vand.u32 65535, %v2574_v43  ;;  %v2579_v12 = vshrl.u32 %v2574_v43, 16  ;;  %v2569_v1 = vsel %vm2561_vm8, %v2552_v38, %v2568_v54 }
 0x3cc   :  { %vm8023_vm3 = vcmp.lt.s32.totalorder %v8022_v29, 0  ;;  %v12154_v58 = vshrl.u32 %v2472_v6, 30  ;;  %v2577_v34 = vshrl.u32 %v12144_v26, 16  ;;  %v12162_v33 = vand.u32 31, %v12136_v18 }
 0x3cd   :  { %v4022_v5 = vsel %vm8023_vm3, 0, %v8022_v29  ;;  %v12159_v10 = vmul.u32 %v2579_v12, %v2576_v25  ;;  %v2570_v52 = vsel %vm2560_vm1, %v2567_v20, %v2569_v1  ;;  %v2580_v13 = vmul.u32 %v2578_v28, %v2576_v25 }
 0x3ce   :  { %v4023_v55 = vsub.s32 32, %v4022_v5  ;;  %v4024_v47 = vshll.u32 %v4015_v21, %v4022_v5  ;;  %v4027_v9 = vsub.s32 4294967266, %v4022_v5  ;;  %v2474_v37 = vshll.u32 %v12154_v58, 30 }
 0x3cf   :  { %v12167_v53 = vmul.u32 %v2578_v28, %v2577_v34  ;;  %v2584_v17 = vshll.u32 %v12159_v10, 16  ;;  %vm3915_vm5 = vcmp.lt.s32.totalorder %v16219_v19, 0  ;;  %v4037_v46 = vsub.s32 4, %v12095_v59 }
 0x3d0   :  { %v4025_v51 = vshrl.u32 %v4007_v32, %v4023_v55  ;;  %v4028_v31 = vadd.s32 127, %v4027_v9  ;;  %v2475_v35 = vsub.s32 %v2471_v48, %v2474_v37  ;;  %v2543_v27 = vshrl.u32 %v16031_v56, %v16230_v57 }
 0x3d1   :  { %v16231_v11 = vand.u32 2147483647, %v16219_v19  ;;  %v2600_v62 = vand.u32 65535, %v2570_v52  ;;  %v2601_v41 = vshrl.u32 %v2570_v52, 16  ;;  %v2583_v3 = vmul.u32 %v2579_v12, %v2577_v34 }
 0x3d2   :  { %v4026_v39 = vor.u32 %v4025_v51, %v4024_v47  ;;  %v4029_v44 = vshll.u32 %v4028_v31, 23  ;;  %vm2476_vm11 = vcmp.lt.s32.totalorder %v2475_v35, 0  ;;  %v2477_v16 = vsub.s32 0, %v2475_v35 }
 0x3d3   :  { %vm12176_vm12 = vcmp.le.f32.partialorder %v16231_v11, 0.7853982  ;;  %vm2588_vm15 = vc.u32 %v2580_v13, %v2584_v17  ;;  %v2586_v36 = vshll.u32 %v12167_v53, 16  ;;  %v12185_v63 = vsel %vm3915_vm5, %v4037_v46, %v12095_v59 }
 0x3d4   :  { %v4030_v14 = vor.u32 4788187, %v4029_v44  ;;  %v4033_v22 = vcvt.s32.f32 %v4026_v39  ;;  %v2589_v57 = vsel %vm2588_vm15, 1, %v16038_v24  ;;  %v2467_v54 = vadd.s32 %v12103_v4, %v12101_v15 }
 0x3d5   :  { %v2478_v8 = vsel %vm2476_vm11, %v2477_v16, %v2475_v35  ;;  %v2564_v48 = vsel %vm2562_vm4, %v2552_v38, 2102212464  ;;  %v2563_v32 = vsel %vm2559_vm7, %v2543_v27, %v2546_v7  ;;  %v2590_v29 = vadd.s32 %v2584_v17, %v2580_v13 }
 0x3d6   :  { %v4031_v42 = vand.u32 2147483647, %v4030_v14  ;;  %v2479_v50 = vclz %v2478_v8  ;;  %v2591_v6 = vadd.s32 %v2589_v57, %v2583_v3  ;;  %v2602_v43 = vmul.u32 %v2600_v62, %v2576_v25  ;;  %v16234_v14 = vld [vmem:[#allocation12_spill] sm:$0xff] }
 0x3d7   :  { %v2603_v20 = vmul.u32 %v2601_v41, %v2576_v25  ;;  %v2604_v28 = vmul.u32 %v2600_v62, %v2577_v34  ;;  %v2565_v15 = vsel %vm2561_vm8, %v12126_v60, %v2564_v48  ;;  %vm2592_vm2 = vc.u32 %v2590_v29, %v2586_v36 }
 0x3d8   :  { %v4034_v12 = vmul.f32 %v4033_v22, %v4031_v42  ;;  %v7992_v59 = vadd.s32 4294967294, %v2479_v50  ;;  %v2585_v4 = vshrl.u32 %v12159_v10, 16  ;;  %v2593_v38 = vsel %vm2592_vm2, 1, %v16038_v24  ;;  %v16235_v22 = vld [vmem:[#allocation10_spill] sm:$0xff] }
 0x3d9   :  { %v2606_v1 = vshll.u32 %v2603_v20, 16  ;;  %v2608_v5 = vshll.u32 %v2604_v28, 16  ;;  %v2595_v7 = vadd.s32 %v2593_v38, %v2591_v6  ;;  %v2605_v47 = vmul.u32 %v2601_v41, %v2577_v34 }
 0x3da   :  { %v4035_v55 = vxor.u32 2147483648, %v4034_v12  ;;  %vm7993_vm6 = vcmp.lt.s32.totalorder %v7992_v59, 0  ;;  %v2587_v25 = vshrl.u32 %v12167_v53, 16  ;;  %v2566_v11 = vsel %vm2560_vm1, %v2563_v32, %v2565_v15 }
 0x3db   :  { %v2482_v9 = vsel %vm7993_vm6, 0, %v7992_v59  ;;  %vm2610_vm4 = vc.u32 %v2602_v43, %v2606_v1  ;;  %v2612_v37 = vadd.s32 %v2606_v1, %v2602_v43  ;;  %v2596_v31 = vadd.s32 %v2595_v7, %v2585_v4 }
 0x3dc   :  { %v4036_v52 = vsel %vm3915_vm5, %v4035_v55, %v4034_v12  ;;  %v2483_v60 = vsub.s32 32, %v2482_v9  ;;  %v2484_v13 = vshll.u32 %v2475_v35, %v2482_v9  ;;  %v2487_v51 = vsub.s32 4294967266, %v2482_v9 }
 0x3dd   :  { %v4039_v10 = vsel %vm12176_vm12, %v16219_v19, %v4036_v52  ;;  %v2611_v17 = vsel %vm2610_vm4, 1, %v16038_v24  ;;  %vm2614_vm14 = vc.u32 %v2612_v37, %v2608_v5  ;;  %v2607_v39 = vshrl.u32 %v2603_v20, 16 }
 0x3de   :  { %v4041_v34 = vmul.f32 %v4039_v10, %v4039_v10  ;;  %v2485_v46 = vshrl.u32 %v2467_v54, %v2483_v60  ;;  %v2488_v27 = vadd.s32 127, %v2487_v51  ;;  %v2613_v53 = vadd.s32 %v2611_v17, %v2605_v47 }
 0x3df   :  { %v2609_v44 = vshrl.u32 %v2604_v28, 16  ;;  %v2615_v35 = vsel %vm2614_vm14, 1, %v16038_v24  ;;  %v239_v36 = vmul.f32 %v16235_v22, %v16234_v14  ;;  %v12210_v57 = vadd.s32 %v2596_v31, %v2587_v25 }
 0x3e0   :  { %v4042_v62 = vmul.f32 -0.001358992, %v4041_v34  ;;  %v4049_v41 = vmul.f32 -0.00019511016, %v4041_v34  ;;  %v2486_v16 = vor.u32 %v2485_v46, %v2484_v13  ;;  %v2489_v3 = vshll.u32 %v2488_v27, 23 }
 0x3e1   :  { %v12212_v8 = vadd.s32 %v2612_v37, %v2608_v5  ;;  %v2617_v54 = vadd.s32 %v2615_v35, %v2613_v53  ;;  %v12215_v32 = vshrl.u32 %v12136_v18, 5  ;;  %v12218_v29 = vsub.s32 32, %v12162_v33 }
 0x3e2   :  { %v4043_v48 = vadd.f32 0.041655596, %v4042_v62  ;;  %v4050_v42 = vadd.f32 0.008332121, %v4049_v41  ;;  %v2490_v61 = vor.u32 4788187, %v2489_v3  ;;  %v2493_v50 = vcvt.s32.f32 %v2486_v16 }
 0x3e3   :  { %vm16236_vm10 = vcmask 261120   ;;  %v2618_v43 = vadd.s32 %v2617_v54, %v2607_v39  ;;  %v4040_v20 = vsel %vm12176_vm12, 0, %v12185_v63  ;;  %v2707_v15 = vshll.u32 %v15958_v0, %v12162_v33 }
 0x3e4   :  { %v333_v6 = vsel %vm16236_vm10, %v239_v36, 0.0  ;;  %v4044_v28 = vmul.f32 %v4043_v48, %v4041_v34  ;;  %v4051_v12 = vmul.f32 %v4050_v42, %v4041_v34  ;;  %v2491_v59 = vand.u32 2147483647, %v2490_v61 }
 0x3e5   :  { %334 = vadd.xlane.f32.xlu1 %v333_v6  ;;  %v16237_v18 = vmov 920167782   ;;  %v2619_v38 = vadd.s32 %v2618_v43, %v2609_v44  ;;  %v2620_v1 = vmul.u32 %v12144_v26, %v2566_v11  ;;  %vm2622_vm9 = vc.u32 %v12210_v57, %v12212_v8 }
 0x3e6   :  { %v2710_v4 = vshll.u32 %v16237_v18, %v12162_v33  ;;  %v4045_v5 = vadd.f32 -0.4999988, %v4044_v28  ;;  %v4052_v55 = vadd.f32 -0.16666654, %v4051_v12  ;;  %v2494_v7 = vmul.f32 %v2493_v50, %v2491_v59  ;;  %v16242_v50 = vld [vmem:[#allocation69_spill] sm:$0xff] }
 0x3e7   :  { %v2708_v21 = vshrl.u32 %v16237_v18, %v12218_v29  ;;  %v4057_v63 = vand.u32 3, %v4040_v20  ;;  %v2497_v47 = vsub.s32 4, %v12154_v58  ;;  %v2623_v9 = vadd.s32 1, %v2619_v38 }
 0x3e8   :  { %v4046_v25 = vmul.f32 %v4045_v5, %v4041_v34  ;;  %v4053_v37 = vmul.f32 %v4052_v55, %v4041_v34  ;;  %vm2375_vm13 = vcmp.lt.s32.totalorder %v16205_v49, 0  ;;  %v2495_v52 = vxor.u32 2147483648, %v2494_v7 }
 0x3e9   :  { %v16238_v26 = vmov 1326507024   ;;  %vm2716_vm7 = vcmp.lt.s32.totalorder %v12215_v32, 4  ;;  %v16239_v13 = vand.u32 2147483647, %v16205_v49  ;;  %v2624_v31 = vsel %vm2622_vm9, %v2623_v9, %v2619_v38  ;;  %v314_v38 = vpop.xlane.xlu0 %313 }
 0x3ea   :  { %v2711_v60 = vshrl.u32 %v16238_v26, %v12218_v29  ;;  %v4047_v17 = vadd.f32 1.0, %v4046_v25  ;;  %v4054_v46 = vadd.f32 1.0, %v4053_v37  ;;  %v2496_v27 = vsel %vm2375_vm13, %v2495_v52, %v2494_v7  ;;  %v16243_v52 = vld [vmem:[#allocation11_spill] sm:$0xff] }
 0x3eb   :  { %vm12240_vm8 = vcmp.le.f32.partialorder %v16239_v13, 0.7853982  ;;  %v2625_v53 = vadd.s32 %v2624_v31, %v2620_v1  ;;  %v12244_v34 = vor.u32 %v2708_v21, %v2707_v15  ;;  %vm4062_vm1 = vcmp.eq.s32.totalorder %v4057_v63, 2 }
 0x3ec   :  { %v2498_v11 = vsel %vm2375_vm13, %v2497_v47, %v12154_v58  ;;  %v2499_v39 = vsel %vm12240_vm8, %v16205_v49, %v2496_v27  ;;  %v4055_v44 = vmul.f32 %v4054_v46, %v4039_v10  ;;  %v4063_v35 = vxor.u32 2147483648, %v4047_v17 }
 0x3ed   :  { %v2501_v62 = vmul.f32 %v2499_v39, %v2499_v39  ;;  %v2626_v41 = vadd.s32 536870912, %v2625_v53  ;;  %v2712_v16 = vor.u32 %v2711_v60, %v2710_v4  ;;  %vm4058_vm3 = vcmp.lt.s32.totalorder %v4057_v63, 2 }
 0x3ee   :  { %vm4059_vm5 = vcmp.eq.s32.totalorder %v4057_v63, 0  ;;  %v4060_v3 = vxor.u32 2147483648, %v4055_v44  ;;  %v4064_v14 = vsel %vm4062_vm1, %v4063_v35, %v4055_v44  ;;  %v2722_v54 = vsel %vm2716_vm7, %v12244_v34, 920167782 }
 0x3ef   :  { %v2502_v22 = vmul.f32 -0.001358992, %v2501_v62  ;;  %v2509_v36 = vmul.f32 -0.00019511016, %v2501_v62  ;;  %vm4056_vm12 = vweird.f32 %v16219_v19  ;;  %v2500_v58 = vsel %vm12240_vm8, 0, %v2498_v11 }
 0x3f0   :  { %v12256_v10 = vshrl.u32 %v2626_v41, 30  ;;  %v4061_v48 = vsel %vm4059_vm5, %v4047_v17, %v4060_v3  ;;  %v2681_v6 = vand.u32 2147483647, %v16242_v50  ;;  %v2698_v28 = vshll.u32 %v16031_v56, %v12162_v33 }
 0x3f1   :  { %v2503_v42 = vadd.f32 0.041655596, %v2502_v22  ;;  %v2510_v61 = vadd.f32 0.008332121, %v2509_v36  ;;  %v4065_v43 = vsel %vm4058_vm3, %v4061_v48, %v4064_v14  ;;  %v2699_v12 = vshrl.u32 %v16033_v23, %v12218_v29 }
 0x3f2   :  { %v2628_v20 = vshll.u32 %v12256_v10, 30  ;;  %v4066_v19 = vsel %vm4056_vm12, nan, %v4065_v43  ;;  %v2701_v4 = vshll.u32 %v16033_v23, %v12162_v33  ;;  %v2702_v5 = vshrl.u32 %v16034_v40, %v12218_v29 }
 0x3f3   :  { %v2504_v59 = vmul.f32 %v2503_v42, %v2501_v62  ;;  %v2511_v15 = vmul.f32 %v2510_v61, %v2501_v62  ;;  %8071 = vmatmul.msk.f32.gmra.mxu2 %vm5311_vm0, %v4066_v19  ;;  %v2704_v55 = vshll.u32 %v16034_v40, %v12162_v33  ;;  %v2705_v7 = vshrl.u32 %v15958_v0, %v12218_v29 }
 0x3f4   :  { %v2629_v1 = vsub.s32 %v2625_v53, %v2628_v20  ;;  %v2726_v21 = vsel %vm2716_vm7, %v2712_v16, 1326507024  ;;  %v2517_v9 = vand.u32 3, %v2500_v58  ;;  %v2688_v37 = vand.u32 8388607, %v2681_v6 }
 0x3f5   :  { %v2505_v63 = vadd.f32 -0.4999988, %v2504_v59  ;;  %v2512_v47 = vadd.f32 -0.16666654, %v2511_v15  ;;  %v12278_v60 = vmul.f32 %v16243_v52, %v314_v38  ;;  %v2700_v33 = vor.u32 %v2699_v12, %v2698_v28 }
 0x3f6   :  { %vm2630_vm11 = vcmp.lt.s32.totalorder %v2629_v1, 0  ;;  %v2631_v25 = vsub.s32 0, %v2629_v1  ;;  %vm2516_vm15 = vweird.f32 %v16205_v49  ;;  %v12281_v17 = vor.u32 %v2702_v5, %v2701_v4 }
 0x3f7   :  { %v2506_v13 = vmul.f32 %v2505_v63, %v2501_v62  ;;  %v2513_v51 = vmul.f32 %v2512_v47, %v2501_v62  ;;  %v2706_v46 = vor.u32 %v2705_v7, %v2704_v55  ;;  %vm2713_vm2 = vcmp.lt.s32.totalorder %v12215_v32, 1 }
 0x3f8   :  { %v2632_v31 = vsel %vm2630_vm11, %v2631_v25, %v2629_v1  ;;  %vm2715_vm6 = vcmp.lt.s32.totalorder %v12215_v32, 3  ;;  %vm2518_vm4 = vcmp.lt.s32.totalorder %v2517_v9, 2  ;;  %vm2519_vm14 = vcmp.eq.s32.totalorder %v2517_v9, 0 }
 0x3f9   :  { %v2507_v27 = vadd.f32 1.0, %v2506_v13  ;;  %v2514_v53 = vadd.f32 1.0, %v2513_v51  ;;  %v2633_v11 = vclz %v2632_v31  ;;  %v2689_v44 = vor.u32 8388608, %v2688_v37 }
 0x3fa   :  { %vm2714_vm10 = vcmp.lt.s32.totalorder %v12215_v32, 2  ;;  %vm2522_vm9 = vcmp.eq.s32.totalorder %v2517_v9, 2  ;;  %v2621_v16 = vadd.s32 %v12212_v8, %v12210_v57  ;;  %v2697_v3 = vshrl.u32 %v16031_v56, %v12218_v29 }
 0x3fb   :  { %v2515_v35 = vmul.f32 %v2514_v53, %v2499_v39  ;;  %v2523_v62 = vxor.u32 2147483648, %v2507_v27  ;;  %v7995_v41 = vadd.s32 4294967294, %v2633_v11  ;;  %v2721_v14 = vsel %vm2713_vm2, %v2700_v33, %v12281_v17 }
 0x3fc   :  { %v2723_v22 = vsel %vm2715_vm6, %v2706_v46, %v2722_v54  ;;  %v2725_v57 = vsel %vm2713_vm2, %v12281_v17, %v2706_v46  ;;  %v2727_v8 = vsel %vm2715_vm6, %v12244_v34, %v2726_v21  ;;  %v12303_v29 = vshll.u32 %v2689_v44, 8 }
 0x3fd   :  { %v2520_v36 = vxor.u32 2147483648, %v2515_v35  ;;  %v2524_v58 = vsel %vm2522_vm9, %v2523_v62, %v2515_v35  ;;  %vm7996_vm13 = vcmp.lt.s32.totalorder %v7995_v41, 0  ;;  %v2724_v39 = vsel %vm2714_vm10, %v2721_v14, %v2723_v22 }
 0x3fe   :  { %v2636_v48 = vsel %vm7996_vm13, 0, %v7995_v41  ;;  %v2728_v28 = vsel %vm2714_vm10, %v2725_v57, %v2727_v8  ;;  %v2730_v12 = vand.u32 65535, %v12303_v29  ;;  %v2731_v19 = vshrl.u32 %v12303_v29, 16 }
 0x3ff   :  { %v2521_v42 = vsel %vm2519_vm14, %v2507_v27, %v2520_v36  ;;  %v2637_v54 = vsub.s32 32, %v2636_v48  ;;  %v2638_v61 = vshll.u32 %v2629_v1, %v2636_v48  ;;  %v2641_v43 = vsub.s32 4294967266, %v2636_v48 }
 0x400   :  { %v2525_v20 = vsel %vm2518_vm4, %v2521_v42, %v2524_v58  ;;  %v2732_v4 = vand.u32 65535, %v2728_v28  ;;  %v2733_v38 = vshrl.u32 %v2728_v28, 16  ;;  %v2754_v1 = vand.u32 65535, %v2724_v39 }
 0x401   :  { %v2526_v59 = vsel %vm2516_vm15, nan, %v2525_v20  ;;  %v2639_v34 = vshrl.u32 %v2621_v16, %v2637_v54  ;;  %v2642_v15 = vadd.s32 127, %v2641_v43  ;;  %v2755_v5 = vshrl.u32 %v2724_v39, 16 }
 0x402   :  { %8061 = vmatmul.msk.f32.gmra.mxu0 %vm5311_vm0, %v2526_v59  ;;  %v4070_v55 = vand.u32 2139095040, %v12278_v60  ;;  %v2736_v63 = vmul.u32 %v2732_v4, %v2731_v19  ;;  %vm2529_vm8 = vcmp.lt.s32.totalorder %v16225_v30, 0  ;;  %v2734_v47 = vmul.u32 %v2732_v4, %v2730_v12 }
 0x403   :  { %v2640_v7 = vor.u32 %v2639_v34, %v2638_v61  ;;  %v2643_v21 = vshll.u32 %v2642_v15, 23  ;;  %v2735_v9 = vmul.u32 %v2733_v38, %v2730_v12  ;;  %v2757_v25 = vmul.u32 %v2755_v5, %v2730_v12 }
 0x404   :  { %v2717_v13 = vsel %vm2713_vm2, %v2697_v3, %v2700_v33  ;;  %v2756_v51 = vmul.u32 %v2754_v1, %v2730_v12  ;;  %v2737_v31 = vmul.u32 %v2733_v38, %v2731_v19  ;;  %v2740_v53 = vshll.u32 %v2736_v63, 16 }
 0x405   :  { %v2644_v49 = vor.u32 4788187, %v2643_v21  ;;  %v2647_v37 = vcvt.s32.f32 %v2640_v7  ;;  %v2738_v27 = vshll.u32 %v2735_v9, 16  ;;  %v2758_v11 = vmul.u32 %v2754_v1, %v2731_v19 }
 0x406   :  { %v2718_v35 = vsel %vm2716_vm7, %v2706_v46, 2102212464  ;;  %v2759_v62 = vmul.u32 %v2755_v5, %v2731_v19  ;;  %v2760_v41 = vshll.u32 %v2757_v25, 16  ;;  %v2739_v16 = vshrl.u32 %v2735_v9, 16 }
 0x407   :  { %v2645_v44 = vand.u32 2147483647, %v2644_v49  ;;  %vm2742_vm1 = vc.u32 %v2734_v47, %v2738_v27  ;;  %v2744_v14 = vadd.s32 %v2738_v27, %v2734_v47  ;;  %v2762_v22 = vshll.u32 %v2758_v11, 16 }
 0x408   :  { %v2743_v58 = vsel %vm2742_vm1, 1, %v16038_v24  ;;  %vm2764_vm3 = vc.u32 %v2756_v51, %v2760_v41  ;;  %v2766_v33 = vadd.s32 %v2760_v41, %v2756_v51  ;;  %v2761_v39 = vshrl.u32 %v2757_v25, 16 }
 0x409   :  { %v2648_v36 = vmul.f32 %v2647_v37, %v2645_v44  ;;  %v2745_v3 = vadd.s32 %v2743_v58, %v2737_v31  ;;  %vm2746_vm5 = vc.u32 %v2744_v14, %v2740_v53  ;;  %v2765_v48 = vsel %vm2764_vm3, 1, %v16038_v24 }
 0x40a   :  { %v2747_v8 = vsel %vm2746_vm5, 1, %v16038_v24  ;;  %v2767_v46 = vadd.s32 %v2765_v48, %v2759_v62  ;;  %vm2768_vm7 = vc.u32 %v2766_v33, %v2762_v22  ;;  %v2719_v42 = vsel %vm2715_vm6, %v12281_v17, %v2718_v35 }
 0x40b   :  { %v2649_v57 = vxor.u32 2147483648, %v2648_v36  ;;  %v2741_v54 = vshrl.u32 %v2736_v63, 16  ;;  %v2749_v61 = vadd.s32 %v2747_v8, %v2745_v3  ;;  %v2769_v43 = vsel %vm2768_vm7, 1, %v16038_v24 }
 0x40c   :  { %vm12329_vm12 = vcmp.le.f32.partialorder %v2527_v2, 0.7853982  ;;  %v2763_v12 = vshrl.u32 %v2758_v11, 16  ;;  %v2771_v19 = vadd.s32 %v2769_v43, %v2767_v46  ;;  %v2770_v34 = vadd.s32 %v2766_v33, %v2762_v22  ;;  %v317_v22 = vpop.xlane.xlu1 %316 }
 0x40d   :  { %v2650_v28 = vsel %vm2529_vm8, %v2649_v57, %v2648_v36  ;;  %v2750_v17 = vadd.s32 %v2749_v61, %v2739_v16  ;;  %v4071_v15 = vshrl.u32 %v4070_v55, 23  ;;  %v2720_v38 = vsel %vm2714_vm10, %v2717_v13, %v2719_v42 }
 0x40e   :  { %v2653_v59 = vsel %vm12329_vm12, %v16225_v30, %v2650_v28  ;;  %v2772_v2 = vadd.s32 %v2771_v19, %v2761_v39  ;;  %v2651_v63 = vsub.s32 4, %v12256_v10  ;;  %v2774_v47 = vmul.u32 %v12303_v29, %v2720_v38 }
 0x40f   :  { %v2655_v4 = vmul.f32 %v2653_v59, %v2653_v59  ;;  %v2751_v1 = vadd.s32 %v2750_v17, %v2741_v54  ;;  %v8024_v9 = vadd.s32 4294967169, %v4071_v15  ;;  %v12351_v48 = vmul.f32 %v16243_v52, %v317_v22 }
 0x410   :  { %v2773_v21 = vadd.s32 %v2772_v2, %v2763_v12  ;;  %v2652_v32 = vsel %vm2529_vm8, %v2651_v63, %v12256_v10  ;;  %vm2670_vm10 = vweird.f32 %v16225_v30  ;;  %vm16247_vm8 = vcmask 261120  }
 0x411   :  { %v2656_v5 = vmul.f32 -0.001358992, %v2655_v4  ;;  %v2663_v7 = vmul.f32 -0.00019511016, %v2655_v4  ;;  %vm2776_vm11 = vc.u32 %v2751_v1, %v2770_v34  ;;  %v4077_v27 = vadd.s32 1, %v8024_v9 }
 0x412   :  { %v2777_v37 = vadd.s32 1, %v2773_v21  ;;  %v2654_v29 = vsel %vm12329_vm12, 0, %v2652_v32  ;;  %v4224_v12 = vand.u32 2139095040, %v12351_v48  ;;  %v2775_v17 = vadd.s32 %v2770_v34, %v2751_v1 }
 0x413   :  { %v2657_v25 = vadd.f32 0.041655596, %v2656_v5  ;;  %v2664_v49 = vadd.f32 0.008332121, %v2663_v7  ;;  %vm4078_vm15 = vcmp.gt.s32.totalorder %v4077_v27, 0  ;;  %v2671_v36 = vand.u32 3, %v2654_v29 }
 0x414   :  { %v2778_v31 = vsel %vm2776_vm11, %v2777_v37, %v2773_v21  ;;  %v4079_v3 = vsel %vm4078_vm15, %v4077_v27, 0  ;;  %vm2683_vm5 = vcmp.lt.s32.totalorder %v16242_v50, 0  ;;  %vm12400_vm12 = vcmp.le.f32.partialorder %v2681_v6, 0.7853982 }
 0x415   :  { %v2658_v51 = vmul.f32 %v2657_v25, %v2655_v4  ;;  %v2665_v55 = vmul.f32 %v2664_v49, %v2655_v4  ;;  %v2779_v13 = vadd.s32 %v2778_v31, %v2774_v47  ;;  %vm2673_vm2 = vcmp.eq.s32.totalorder %v2671_v36, 0 }
 0x416   :  { %vm2676_vm6 = vcmp.eq.s32.totalorder %v2671_v36, 2  ;;  %v4081_v46 = vand.u32 31, %v4079_v3  ;;  %vm2672_vm14 = vcmp.lt.s32.totalorder %v2671_v36, 2  ;;  %v12361_v21 = vshrl.u32 %v4079_v3, 5 }
 0x417   :  { %v2659_v53 = vadd.f32 -0.4999988, %v2658_v51  ;;  %v2666_v11 = vadd.f32 -0.16666654, %v2665_v55  ;;  %v2780_v44 = vadd.s32 536870912, %v2779_v13  ;;  %v5425_v55 = vpop.f32.mrf.mxu0 }
 0x418   :  { %v12356_v19 = vsub.s32 32, %v4081_v46  ;;  %v4096_v15 = vshll.u32 %v16237_v18, %v4081_v46  ;;  %v4093_v63 = vshll.u32 %v15958_v0, %v4081_v46  ;;  %vm4102_vm13 = vcmp.lt.s32.totalorder %v12361_v21, 4  ;;  %v12370_v51 = vld [vmem:[%s15714_s9] ss:$0 sm:$0xff] }
 0x419   :  { %v2660_v35 = vmul.f32 %v2659_v53, %v2655_v4  ;;  %v2667_v62 = vmul.f32 %v2666_v11, %v2655_v4  ;;  %v12347_v41 = vshrl.u32 %v2780_v44, 30  ;;  %v4225_v4 = vshrl.u32 %v4224_v12, 23 }
 0x41a   :  { %v4097_v30 = vshrl.u32 %v16238_v26, %v12356_v19  ;;  %v4094_v47 = vshrl.u32 %v16237_v18, %v12356_v19  ;;  %v4067_v31 = vand.u32 2147483647, %v12278_v60  ;;  %v12374_v11 = vadd.f32 %v12370_v51, %v5425_v55 }
 0x41b   :  { %v2661_v16 = vadd.f32 1.0, %v2660_v35  ;;  %v2668_v14 = vadd.f32 1.0, %v2667_v62  ;;  %v2782_v58 = vshll.u32 %v12347_v41, 30  ;;  %v8027_v1 = vadd.s32 4294967169, %v4225_v4 }
 0x41c   :  { %v4098_v25 = vor.u32 %v4097_v30, %v4096_v15  ;;  %v4095_v32 = vor.u32 %v4094_v47, %v4093_v63  ;;  %16246 = vst [vmem:[#allocation28_spill] sm:$0xff] %v12374_v11  ;;  %v4074_v44 = vand.u32 8388607, %v4067_v31  ;;  %v4087_v29 = vshll.u32 %v16033_v23, %v4081_v46 }
 0x41d   :  { %v2669_v10 = vmul.f32 %v2668_v14, %v2653_v59  ;;  %v2677_v33 = vxor.u32 2147483648, %v2661_v16  ;;  %v2783_v39 = vsub.s32 %v2779_v13, %v2782_v58  ;;  %v4231_v53 = vadd.s32 1, %v8027_v1 }
 0x41e   :  { %v4112_v35 = vsel %vm4102_vm13, %v4098_v25, 1326507024  ;;  %v4088_v14 = vshrl.u32 %v16034_v40, %v12356_v19  ;;  %v5523_v22 = vsel %vm16247_vm8, %v12374_v11, 0.0  ;;  %v4075_v36 = vor.u32 8388608, %v4074_v44 }
 0x41f   :  { %v2674_v57 = vxor.u32 2147483648, %v2669_v10  ;;  %vm2784_vm4 = vcmp.lt.s32.totalorder %v2783_v39, 0  ;;  %v2785_v8 = vsub.s32 0, %v2783_v39  ;;  %v2678_v54 = vsel %vm2676_vm6, %v2677_v33, %v2669_v10  ;;  %5524 = vadd.xlane.f32.xlu0 %v5523_v22 }
 0x420   :  { %v4090_v58 = vshll.u32 %v16034_v40, %v4081_v46  ;;  %v4091_v10 = vshrl.u32 %v15958_v0, %v12356_v19  ;;  %v4085_v3 = vshrl.u32 %v16033_v23, %v12356_v19  ;;  %vm4099_vm1 = vcmp.lt.s32.totalorder %v12361_v21, 1 }
 0x421   :  { %v2675_v42 = vsel %vm2673_vm2, %v2661_v16, %v2674_v57  ;;  %v2786_v43 = vsel %vm2784_vm4, %v2785_v8, %v2783_v39  ;;  %v4084_v16 = vshll.u32 %v16031_v56, %v4081_v46  ;;  %vm4232_vm3 = vcmp.gt.s32.totalorder %v4231_v53, 0 }
 0x422   :  { %v2679_v61 = vsel %vm2672_vm14, %v2675_v42, %v2678_v54  ;;  %v2787_v28 = vclz %v2786_v43  ;;  %v12395_v57 = vor.u32 %v4091_v10, %v4090_v58  ;;  %vm4101_vm7 = vcmp.lt.s32.totalorder %v12361_v21, 3 }
 0x423   :  { %v2680_v20 = vsel %vm2670_vm10, nan, %v2679_v61  ;;  %vm4100_vm11 = vcmp.lt.s32.totalorder %v12361_v21, 2  ;;  %v4113_v42 = vsel %vm4101_vm7, %v4095_v32, %v4112_v35  ;;  %v12411_v61 = vshll.u32 %v4075_v36, 8 }
 0x424   :  { %8062 = vmatmul.msk.f32.gmra.mxu0 %vm5311_vm0, %v2680_v20  ;;  %v7998_v59 = vadd.s32 4294967294, %v2787_v28  ;;  %v4233_v43 = vsel %vm4232_vm3, %v4231_v53, 0  ;;  %v12415_v20 = vor.u32 %v4085_v3, %v4084_v16  ;;  %v4108_v28 = vsel %vm4102_vm13, %v4095_v32, 920167782 }
 0x425   :  { %v4116_v4 = vand.u32 65535, %v12411_v61  ;;  %v12427_v30 = vand.u32 31, %v4233_v43  ;;  %v12444_v53 = vshrl.u32 %v4233_v43, 5  ;;  %v4083_v43 = vshrl.u32 %v16031_v56, %v12356_v19 }
 0x426   :  { %vm7999_vm9 = vcmp.lt.s32.totalorder %v7998_v59, 0  ;;  %v4104_v19 = vsel %vm4102_vm13, %v12395_v57, 2102212464  ;;  %vm2824_vm13 = vweird.f32 %v16242_v50 }
 0x427   :  { %v2790_v38 = vsel %vm7999_vm9, 0, %v7998_v59  ;;  %v12442_v32 = vsub.s32 32, %v12427_v30  ;;  %vm4256_vm8 = vcmp.lt.s32.totalorder %v12444_v53, 4  ;;  %vm4253_vm3 = vcmp.lt.s32.totalorder %v12444_v53, 1 }
 0x428   :  { %v2791_v2 = vsub.s32 32, %v2790_v38  ;;  %v2792_v5 = vshll.u32 %v2783_v39, %v2790_v38  ;;  %v2795_v7 = vsub.s32 4294967266, %v2790_v38  ;;  %v12391_v39 = vor.u32 %v4088_v14, %v4087_v29 }
 0x429   :  { %v4117_v38 = vshrl.u32 %v12411_v61, 16  ;;  %v4247_v14 = vshll.u32 %v15958_v0, %v12427_v30  ;;  %v4248_v10 = vshrl.u32 %v16237_v18, %v12442_v32 }
 0x42a   :  { %v2793_v9 = vshrl.u32 %v2775_v17, %v2791_v2  ;;  %v2796_v34 = vadd.s32 127, %v2795_v7  ;;  %v4111_v54 = vsel %vm4099_vm1, %v12391_v39, %v12395_v57  ;;  %v2805_v17 = vsub.s32 4, %v12347_v41 }
 0x42b   :  { %v4114_v59 = vsel %vm4100_vm11, %v4111_v54, %v4113_v42  ;;  %v4107_v47 = vsel %vm4099_vm1, %v12415_v20, %v12391_v39 }
 0x42c   :  { %v2794_v49 = vor.u32 %v2793_v9, %v2792_v5  ;;  %v2797_v37 = vshll.u32 %v2796_v34, 23  ;;  %v4118_v2 = vand.u32 65535, %v4114_v59  ;;  %v4119_v5 = vshrl.u32 %v4114_v59, 16 }
 0x42d   :  { %v4109_v9 = vsel %vm4101_vm7, %v12395_v57, %v4108_v28  ;;  %v4105_v57 = vsel %vm4101_vm7, %v12391_v39, %v4104_v19  ;;  %vm4254_vm7 = vcmp.lt.s32.totalorder %v12444_v53, 2 }
 0x42e   :  { %v2798_v13 = vor.u32 4788187, %v2797_v37  ;;  %v2801_v27 = vcvt.s32.f32 %v2794_v49  ;;  %v4120_v34 = vmul.u32 %v4118_v2, %v4116_v4  ;;  %v4121_v1 = vmul.u32 %v4119_v5, %v4116_v4 }
 0x42f   :  { %v12436_v25 = vmul.u32 %v4118_v2, %v4117_v38  ;;  %v2806_v49 = vsel %vm2683_vm5, %v2805_v17, %v12347_v41  ;;  %v4110_v35 = vsel %vm4100_vm11, %v4107_v47, %v4109_v9 }
 0x430   :  { %v2799_v62 = vand.u32 2147483647, %v2798_v13  ;;  %v4123_v13 = vmul.u32 %v4119_v5, %v4117_v38  ;;  %v4140_v41 = vand.u32 65535, %v4110_v35  ;;  %v4125_v5 = vshrl.u32 %v4121_v1, 16 }
 0x431   :  { %v4126_v16 = vshll.u32 %v12436_v25, 16 }
 0x432   :  { %v2802_v33 = vmul.f32 %v2801_v27, %v2799_v62  ;;  %v4124_v27 = vshll.u32 %v4121_v1, 16  ;;  %v2808_v62 = vsel %vm12400_vm12, 0, %v2806_v49  ;;  %v4144_v59 = vmul.u32 %v4140_v41, %v4117_v38 }
 0x433   :  { %v2825_v54 = vand.u32 3, %v2808_v62  ;;  %v4127_v1 = vshrl.u32 %v12436_v25, 16 }
 0x434   :  { %v2803_v46 = vxor.u32 2147483648, %v2802_v33  ;;  %vm4128_vm15 = vc.u32 %v4120_v34, %v4124_v27  ;;  %v4149_v62 = vshrl.u32 %v4144_v59, 16 }
 0x435   :  { %v4129_v58 = vsel %vm4128_vm15, 1, %v16038_v24  ;;  %vm2826_vm6 = vcmp.lt.s32.totalorder %v2825_v54, 2  ;;  %vm2827_vm4 = vcmp.eq.s32.totalorder %v2825_v54, 0  ;;  %vm2830_vm14 = vcmp.eq.s32.totalorder %v2825_v54, 2 }
 0x436   :  { %v2804_v6 = vsel %vm2683_vm5, %v2803_v46, %v2802_v33  ;;  %v4130_v33 = vadd.s32 %v4124_v27, %v4120_v34  ;;  %v4131_v3 = vadd.s32 %v4129_v58, %v4123_v13  ;;  %v4141_v46 = vshrl.u32 %v4110_v35, 16 }
 0x437   :  { %v2807_v12 = vsel %vm12400_vm12, %v16242_v50, %v2804_v6  ;;  %v4142_v6 = vmul.u32 %v4140_v41, %v4116_v4  ;;  %v4148_v34 = vshll.u32 %v4144_v59, 16  ;;  %v4251_v58 = vshrl.u32 %v16238_v26, %v12442_v32 }
 0x438   :  { %v2809_v15 = vmul.f32 %v2807_v12, %v2807_v12  ;;  %vm4132_vm2 = vc.u32 %v4130_v33, %v4126_v16  ;;  %v4143_v28 = vmul.u32 %v4141_v46, %v4116_v4  ;;  %v4145_v47 = vmul.u32 %v4141_v46, %v4117_v38 }
 0x439   :  { %v4249_v33 = vor.u32 %v4248_v10, %v4247_v14  ;;  %v4221_v54 = vand.u32 2147483647, %v12351_v48  ;;  %v4238_v14 = vshll.u32 %v16031_v56, %v12427_v30  ;;  %v4242_v59 = vshrl.u32 %v16034_v40, %v12442_v32 }
 0x43a   :  { %v2810_v7 = vmul.f32 -0.001358992, %v2809_v15  ;;  %v2817_v63 = vmul.f32 -0.00019511016, %v2809_v15  ;;  %v4146_v9 = vshll.u32 %v4143_v28, 16  ;;  %v4147_v38 = vshrl.u32 %v4143_v28, 16 }
 0x43b   :  { %v4228_v21 = vand.u32 8388607, %v4221_v54  ;;  %v4241_v28 = vshll.u32 %v16033_v23, %v12427_v30  ;;  %vm4255_vm5 = vcmp.lt.s32.totalorder %v12444_v53, 3 }
 0x43c   :  { %v2811_v37 = vadd.f32 0.041655596, %v2810_v7  ;;  %v2818_v55 = vadd.f32 0.008332121, %v2817_v63  ;;  %v4133_v7 = vsel %vm4132_vm2, 1, %v16038_v24  ;;  %vm4150_vm10 = vc.u32 %v4142_v6, %v4146_v9 }
 0x43d   :  { %v4135_v63 = vadd.s32 %v4133_v7, %v4131_v3  ;;  %v4152_v4 = vadd.s32 %v4146_v9, %v4142_v6  ;;  %v4151_v13 = vsel %vm4150_vm10, 1, %v16038_v24  ;;  %v12509_v9 = vor.u32 %v4242_v59, %v4241_v28 }
 0x43e   :  { %v2812_v44 = vmul.f32 %v2811_v37, %v2809_v15  ;;  %v2819_v29 = vmul.f32 %v2818_v55, %v2809_v15  ;;  %v4153_v27 = vadd.s32 %v4151_v13, %v4145_v47 }
 0x43f   :  { %v4136_v55 = vadd.s32 %v4135_v63, %v4125_v5  ;;  %vm4154_vm9 = vc.u32 %v4152_v4, %v4148_v34  ;;  %v4229_v5 = vor.u32 8388608, %v4228_v21  ;;  %v4245_v63 = vshrl.u32 %v15958_v0, %v12442_v32 }
 0x440   :  { %v2813_v22 = vadd.f32 -0.4999988, %v2812_v44  ;;  %v2820_v36 = vadd.f32 -0.16666654, %v2819_v29  ;;  %v4155_v35 = vsel %vm4154_vm9, 1, %v16038_v24  ;;  %vm4069_vm9 = vcmp.lt.s32.totalorder %v12278_v60, 0 }
 0x441   :  { %v4157_v16 = vadd.s32 %v4155_v35, %v4153_v27 }
 0x442   :  { %v2814_v42 = vmul.f32 %v2813_v22, %v2809_v15  ;;  %v2821_v8 = vmul.f32 %v2820_v36, %v2809_v15  ;;  %v12473_v22 = vadd.s32 %v4136_v55, %v4127_v1  ;;  %v4250_v36 = vshll.u32 %v16237_v18, %v12427_v30 }
 0x443   :  { %v4158_v39 = vadd.s32 %v4157_v16, %v4147_v38 }
 0x444   :  { %v2815_v17 = vadd.f32 1.0, %v2814_v42  ;;  %v2822_v2 = vadd.f32 1.0, %v2821_v8  ;;  %v4252_v42 = vor.u32 %v4251_v58, %v4250_v36 }
 0x445   :  { %v4159_v3 = vadd.s32 %v4158_v39, %v4149_v62 }
 0x446   :  { %v2823_v49 = vmul.f32 %v2822_v2, %v2807_v12  ;;  %v2831_v15 = vxor.u32 2147483648, %v2815_v17  ;;  %v4103_v12 = vsel %vm4099_vm1, %v4083_v43, %v12415_v20  ;;  %v12475_v20 = vadd.s32 %v4152_v4, %v4148_v34  ;;  %v320_v4 = vpop.xlane.xlu2 %319 }
 0x447   :  { %v4106_v50 = vsel %vm4100_vm11, %v4103_v12, %v4105_v57  ;;  %v4163_v8 = vadd.s32 1, %v4159_v3  ;;  %v4262_v43 = vsel %vm4256_vm8, %v4249_v33, 920167782  ;;  %v4266_v2 = vsel %vm4256_vm8, %v4252_v42, 1326507024 }
 0x448   :  { %v2828_v37 = vxor.u32 2147483648, %v2823_v49  ;;  %v2832_v29 = vsel %vm2830_vm14, %v2831_v15, %v2823_v49  ;;  %v4160_v46 = vmul.u32 %v12411_v61, %v4106_v50  ;;  %vm4162_vm1 = vc.u32 %v12473_v22, %v12475_v20 }
 0x449   :  { %v4164_v6 = vsel %vm4162_vm1, %v4163_v8, %v4159_v3  ;;  %v4239_v61 = vshrl.u32 %v16033_v23, %v12442_v32  ;;  %v4267_v19 = vsel %vm4255_vm5, %v4249_v33, %v4266_v2  ;;  %v12537_v35 = vmul.f32 %v16243_v52, %v320_v4 }
 0x44a   :  { %v2829_v44 = vsel %vm2827_vm4, %v2815_v17, %v2828_v37  ;;  %v4165_v10 = vadd.s32 %v4164_v6, %v4160_v46  ;;  %v4244_v17 = vshll.u32 %v16034_v40, %v12427_v30  ;;  %v12514_v30 = vshll.u32 %v4229_v5, 8 }
 0x44b   :  { %v2833_v25 = vsel %vm2826_vm6, %v2829_v44, %v2832_v29  ;;  %v12505_v7 = vor.u32 %v4239_v61, %v4238_v14  ;;  %v4378_v42 = vand.u32 2139095040, %v12537_v35 }
 0x44c   :  { %v2834_v41 = vsel %vm2824_vm13, nan, %v2833_v25  ;;  %v4166_v47 = vadd.s32 536870912, %v4165_v10  ;;  %v4246_v34 = vor.u32 %v4245_v63, %v4244_v17  ;;  %v4270_v55 = vand.u32 65535, %v12514_v30 }
 0x44d   :  { %8063 = vmatmul.msk.f32.gmra.mxu0 %vm5311_vm0, %v2834_v41  ;;  %v4261_v15 = vsel %vm4253_vm3, %v12505_v7, %v12509_v9  ;;  %v4271_v27 = vshrl.u32 %v12514_v30, 16  ;;  %v4379_v2 = vshrl.u32 %v4378_v42, 23  ;;  %v4161_v63 = vadd.s32 %v12475_v20, %v12473_v22 }
 0x44e   :  { %v12516_v49 = vshrl.u32 %v4166_v47, 30  ;;  %v4263_v37 = vsel %vm4255_vm5, %v4246_v34, %v4262_v43  ;;  %v4265_v1 = vsel %vm4253_vm3, %v12509_v9, %v4246_v34  ;;  %vm12574_vm13 = vcmp.le.f32.partialorder %v4067_v31, 0.7853982 }
 0x44f   :  { %v4264_v12 = vsel %vm4254_vm7, %v4261_v15, %v4263_v37  ;;  %v4268_v38 = vsel %vm4254_vm7, %v4265_v1, %v4267_v19  ;;  %v323_v1 = vpop.xlane.xlu0 %322 }
 0x450   :  { %v4168_v13 = vshll.u32 %v12516_v49, 30  ;;  %v4273_v44 = vshrl.u32 %v4268_v38, 16  ;;  %v4294_v29 = vand.u32 65535, %v4264_v12  ;;  %v4295_v57 = vshrl.u32 %v4264_v12, 16 }
 0x451   :  { %v4272_v62 = vand.u32 65535, %v4268_v38  ;;  %v4237_v38 = vshrl.u32 %v16031_v56, %v12442_v32 }
 0x452   :  { %v4169_v25 = vsub.s32 %v4165_v10, %v4168_v13  ;;  %v4275_v16 = vmul.u32 %v4273_v44, %v4270_v55  ;;  %v4296_v41 = vmul.u32 %v4294_v29, %v4270_v55  ;;  %v4297_v36 = vmul.u32 %v4295_v57, %v4270_v55 }
 0x453   :  { %v4274_v50 = vmul.u32 %v4272_v62, %v4270_v55  ;;  %v4276_v39 = vmul.u32 %v4272_v62, %v4271_v27  ;;  %v4298_v3 = vmul.u32 %v4294_v29, %v4271_v27  ;;  %v4277_v43 = vmul.u32 %v4273_v44, %v4271_v27 }
 0x454   :  { %vm4170_vm12 = vcmp.lt.s32.totalorder %v4169_v25, 0  ;;  %v4171_v58 = vsub.s32 0, %v4169_v25  ;;  %v4278_v33 = vshll.u32 %v4275_v16, 16  ;;  %v4300_v46 = vshll.u32 %v4297_v36, 16 }
 0x455   :  { %v4280_v6 = vshll.u32 %v4276_v39, 16  ;;  %v4302_v10 = vshll.u32 %v4298_v3, 16  ;;  %v4279_v47 = vshrl.u32 %v4275_v16, 16  ;;  %v4299_v4 = vmul.u32 %v4295_v57, %v4271_v27 }
 0x456   :  { %v4172_v8 = vsel %vm4170_vm12, %v4171_v58, %v4169_v25  ;;  %vm4282_vm11 = vc.u32 %v4274_v50, %v4278_v33  ;;  %v4284_v14 = vadd.s32 %v4278_v33, %v4274_v50  ;;  %v4306_v28 = vadd.s32 %v4300_v46, %v4296_v41 }
 0x457   :  { %v4173_v21 = vclz %v4172_v8  ;;  %v4283_v61 = vsel %vm4282_vm11, 1, %v16038_v24  ;;  %vm4304_vm2 = vc.u32 %v4296_v41, %v4300_v46  ;;  %v8030_v44 = vadd.s32 4294967169, %v4379_v2 }
 0x458   :  { %v4285_v17 = vadd.s32 %v4283_v61, %v4277_v43  ;;  %vm4286_vm15 = vc.u32 %v4284_v14, %v4280_v6  ;;  %v4305_v37 = vsel %vm4304_vm2, 1, %v16038_v24  ;;  %vm4308_vm4 = vc.u32 %v4306_v28, %v4302_v10  ;;  %v12563_v6 = vpop.f32.mrf.mxu0 }
 0x459   :  { %v8025_v59 = vadd.s32 4294967294, %v4173_v21  ;;  %v4287_v5 = vsel %vm4286_vm15, 1, %v16038_v24  ;;  %v4258_v29 = vsel %vm4256_vm8, %v4246_v34, 2102212464  ;;  %v4281_v62 = vshrl.u32 %v4276_v39, 16 }
 0x45a   :  { %v4289_v15 = vadd.s32 %v4287_v5, %v4285_v17  ;;  %v12550_v27 = vmul.f32 %v16243_v52, %v323_v1  ;;  %v4301_v57 = vshrl.u32 %v4297_v36, 16  ;;  %v4307_v41 = vadd.s32 %v4305_v37, %v4299_v4  ;;  %v326_v37 = vpop.xlane.xlu1 %325 }
 0x45b   :  { %vm8026_vm6 = vcmp.lt.s32.totalorder %v8025_v59, 0  ;;  %v4309_v58 = vsel %vm4308_vm4, 1, %v16038_v24  ;;  %v4257_v32 = vsel %vm4253_vm3, %v4237_v38, %v12505_v7  ;;  %v4259_v34 = vsel %vm4255_vm5, %v12509_v9, %v4258_v29 }
 0x45c   :  { %v4176_v19 = vsel %vm8026_vm6, 0, %v8025_v59  ;;  %v4290_v16 = vadd.s32 %v4289_v15, %v4279_v47  ;;  %v4303_v33 = vshrl.u32 %v4298_v3, 16  ;;  %v4311_v39 = vadd.s32 %v4309_v58, %v4307_v41 }
 0x45d   :  { %v4177_v55 = vsub.s32 32, %v4176_v19  ;;  %v4178_v13 = vshll.u32 %v4169_v25, %v4176_v19  ;;  %v4181_v12 = vsub.s32 4294967266, %v4176_v19  ;;  %v12561_v36 = vadd.s32 %v4306_v28, %v4302_v10 }
 0x45e   :  { %v12559_v8 = vadd.s32 %v4290_v16, %v4281_v62  ;;  %v4385_v43 = vadd.s32 1, %v8030_v44  ;;  %v4532_v21 = vand.u32 2139095040, %v12550_v27  ;;  %v4260_v7 = vsel %vm4254_vm7, %v4257_v32, %v4259_v34 }
 0x45f   :  { %v4179_v22 = vshrl.u32 %v4161_v63, %v4177_v55  ;;  %v4182_v20 = vadd.s32 127, %v4181_v12  ;;  %v4312_v14 = vadd.s32 %v4311_v39, %v4301_v57  ;;  %v4314_v3 = vmul.u32 %v12514_v30, %v4260_v7 }
 0x460   :  { %vm4316_vm14 = vc.u32 %v12559_v8, %v12561_v36  ;;  %vm4386_vm10 = vcmp.gt.s32.totalorder %v4385_v43, 0  ;;  %v4533_v10 = vshrl.u32 %v4532_v21, 23  ;;  %v4191_v15 = vsub.s32 4, %v12516_v49  ;;  %v12586_v55 = vpop.f32.mrf.mxu0 }
 0x461   :  { %v4180_v25 = vor.u32 %v4179_v22, %v4178_v13  ;;  %v4183_v50 = vshll.u32 %v4182_v20, 23  ;;  %v4313_v59 = vadd.s32 %v4312_v14, %v4303_v33  ;;  %v4387_v5 = vsel %vm4386_vm10, %v4385_v43, 0 }
 0x462   :  { %v8033_v47 = vadd.s32 4294967169, %v4533_v10  ;;  %v12584_v1 = vand.u32 31, %v4387_v5  ;;  %v4192_v44 = vsel %vm4069_vm9, %v4191_v15, %v12516_v49  ;;  %v12592_v29 = vmul.f32 %v16243_v52, %v326_v37 }
 0x463   :  { %v4184_v46 = vor.u32 4788187, %v4183_v50  ;;  %v4187_v42 = vcvt.s32.f32 %v4180_v25  ;;  %v4317_v28 = vadd.s32 1, %v4313_v59  ;;  %v4194_v41 = vsel %vm12574_vm13, 0, %v4192_v44 }
 0x464   :  { %v4539_v38 = vadd.s32 1, %v8033_v47  ;;  %v12597_v16 = vsub.s32 32, %v12584_v1  ;;  %v12602_v50 = vshrl.u32 %v4387_v5, 5  ;;  %v4686_v49 = vand.u32 2139095040, %v12592_v29 }
 0x465   :  { %v4185_v61 = vand.u32 2147483647, %v4184_v46  ;;  %v4318_v2 = vsel %vm4316_vm14, %v4317_v28, %v4313_v59  ;;  %v4404_v34 = vshll.u32 %v16237_v18, %v12584_v1  ;;  %vm4210_vm5 = vweird.f32 %v12278_v60 }
 0x466   :  { %v4319_v63 = vadd.s32 %v4318_v2, %v4314_v3  ;;  %vm4540_vm8 = vcmp.gt.s32.totalorder %v4539_v38, 0  ;;  %v4405_v46 = vshrl.u32 %v16238_v26, %v12597_v16  ;;  %vm4410_vm3 = vcmp.lt.s32.totalorder %v12602_v50, 4 }
 0x467   :  { %v4188_v9 = vmul.f32 %v4187_v42, %v4185_v61  ;;  %v4211_v42 = vand.u32 3, %v4194_v41  ;;  %v4541_v21 = vsel %vm4540_vm8, %v4539_v38, 0  ;;  %v4401_v61 = vshll.u32 %v15958_v0, %v12584_v1 }
 0x468   :  { %v4320_v31 = vadd.s32 536870912, %v4319_v63  ;;  %v12612_v59 = vpop.f32.mrf.mxu0  ;;  %v4402_v10 = vshrl.u32 %v16237_v18, %v12597_v16  ;;  %v4406_v2 = vor.u32 %v4405_v46, %v4404_v34  ;;  %v12616_v5 = vand.u32 31, %v4541_v21 }
 0x469   :  { %v4189_v53 = vxor.u32 2147483648, %v4188_v9  ;;  %vm4216_vm7 = vcmp.eq.s32.totalorder %v4211_v42, 2  ;;  %vm4212_vm12 = vcmp.lt.s32.totalorder %v4211_v42, 2  ;;  %vm4213_vm11 = vcmp.eq.s32.totalorder %v4211_v42, 0 }
 0x46a   :  { %v12594_v22 = vshrl.u32 %v4320_v31, 30  ;;  %v15903_v37 = vand.u32 2147483647, %v12537_v35  ;;  %v4398_v44 = vshll.u32 %v16034_v40, %v12584_v1  ;;  %v4403_v46 = vor.u32 %v4402_v10, %v4401_v61 }
 0x46b   :  { %v4190_v30 = vsel %vm4069_vm9, %v4189_v53, %v4188_v9  ;;  %v4687_v9 = vshrl.u32 %v4686_v49, 23  ;;  %v12634_v49 = vsub.s32 32, %v12616_v5  ;;  %vm4407_vm2 = vcmp.lt.s32.totalorder %v12602_v50, 1 }
 0x46c   :  { %v4193_v19 = vsel %vm12574_vm13, %v12278_v60, %v4190_v30  ;;  %v4322_v57 = vshll.u32 %v12594_v22, 30  ;;  %vm4409_vm6 = vcmp.lt.s32.totalorder %v12602_v50, 3  ;;  %v12647_v60 = vshrl.u32 %v4541_v21, 5 }
 0x46d   :  { %v4195_v4 = vmul.f32 %v4193_v19, %v4193_v19  ;;  %v8036_v15 = vadd.s32 4294967169, %v4687_v9  ;;  %v4555_v61 = vshll.u32 %v15958_v0, %v12616_v5  ;;  %v4556_v10 = vshrl.u32 %v16237_v18, %v12634_v49 }
 0x46e   :  { %v4323_v32 = vsub.s32 %v4319_v63, %v4322_v57  ;;  %vm4408_vm14 = vcmp.lt.s32.totalorder %v12602_v50, 2  ;;  %vm16253_vm10 = vcmask 261120   ;;  %vm4564_vm9 = vcmp.lt.s32.totalorder %v12647_v60, 4 }
 0x46f   :  { %v4196_v13 = vmul.f32 -0.001358992, %v4195_v4  ;;  %v4203_v12 = vmul.f32 -0.00019511016, %v4195_v4  ;;  %vm4223_vm13 = vcmp.lt.s32.totalorder %v12351_v48, 0 }
 0x470   :  { %vm4324_vm1 = vcmp.lt.s32.totalorder %v4323_v32, 0  ;;  %v4325_v43 = vsub.s32 0, %v4323_v32  ;;  %vm12684_vm8 = vcmp.le.f32.partialorder %v4221_v54, 0.7853982  ;;  %v4416_v54 = vsel %vm4410_vm3, %v4403_v46, 920167782 }
 0x471   :  { %v4197_v20 = vadd.f32 0.041655596, %v4196_v13  ;;  %v4204_v62 = vadd.f32 0.008332121, %v4203_v12  ;;  %v4395_v12 = vshll.u32 %v16033_v23, %v12584_v1 }
 0x472   :  { %v4326_v3 = vsel %vm4324_vm1, %v4325_v43, %v4323_v32  ;;  %v4420_v43 = vsel %vm4410_vm3, %v4406_v2, 1326507024  ;;  %v5473_v2 = vpop.f32.mrf.mxu2  ;;  %vm16259_vm1 = vmmov %vm16253_vm10 }
 0x473   :  { %v4198_v58 = vmul.f32 %v4197_v20, %v4195_v4  ;;  %v4205_v25 = vmul.f32 %v4204_v62, %v4195_v4  ;;  %v4327_v53 = vclz %v4326_v3  ;;  %v4399_v20 = vshrl.u32 %v15958_v0, %v12597_v16 }
 0x475   :  { %v4199_v33 = vadd.f32 -0.4999988, %v4198_v58  ;;  %v4206_v39 = vadd.f32 -0.16666654, %v4205_v25  ;;  %v8028_v47 = vadd.s32 4294967294, %v4327_v53  ;;  %v4693_v58 = vadd.s32 1, %v8036_v15 }
 0x476   :  { %v4382_v25 = vand.u32 8388607, %v15903_v37 }
 0x477   :  { %v4200_v7 = vmul.f32 %v4199_v33, %v4195_v4  ;;  %v4207_v14 = vmul.f32 %v4206_v39, %v4195_v4  ;;  %v4315_v4 = vadd.s32 %v12561_v36, %v12559_v8  ;;  %vm8029_vm15 = vcmp.lt.s32.totalorder %v8028_v47, 0 }
 0x478   :  { %v4330_v38 = vsel %vm8029_vm15, 0, %v8028_v47  ;;  %vm4694_vm4 = vcmp.gt.s32.totalorder %v4693_v58, 0  ;;  %v4383_v3 = vor.u32 8388608, %v4382_v25  ;;  %v4559_v47 = vshrl.u32 %v16238_v26, %v12634_v49 }
 0x479   :  { %v4201_v28 = vadd.f32 1.0, %v4200_v7  ;;  %v4208_v17 = vadd.f32 1.0, %v4207_v14  ;;  %v4331_v8 = vsub.s32 32, %v4330_v38  ;;  %v4332_v36 = vshll.u32 %v4323_v32, %v4330_v38  ;;  %v5437_v32 = vpop.f32.mrf.mxu0 }
 0x47a   :  { %v4335_v57 = vsub.s32 4294967266, %v4330_v38  ;;  %v12643_v7 = vor.u32 %v4399_v20, %v4398_v44  ;;  %v4695_v15 = vsel %vm4694_vm4, %v4693_v58, 0  ;;  %v12676_v44 = vor.u32 %v4556_v10, %v4555_v61  ;;  %vm16265_vm4 = vmmov %vm16259_vm1 }
 0x47b   :  { %v4209_v30 = vmul.f32 %v4208_v17, %v4193_v19  ;;  %v4217_v63 = vxor.u32 2147483648, %v4201_v28  ;;  %v4396_v19 = vshrl.u32 %v16034_v40, %v12597_v16  ;;  %v4333_v33 = vshrl.u32 %v4315_v4, %v4331_v8 }
 0x47c   :  { %v4336_v39 = vadd.s32 127, %v4335_v57  ;;  %v12679_v20 = vand.u32 31, %v4695_v15  ;;  %v4392_v58 = vshll.u32 %v16031_v56, %v12584_v1  ;;  %v4393_v25 = vshrl.u32 %v16033_v23, %v12597_v16 }
 0x47d   :  { %v4214_v31 = vxor.u32 2147483648, %v4209_v30  ;;  %v4218_v13 = vsel %vm4216_vm7, %v4217_v63, %v4209_v30  ;;  %v12641_v42 = vor.u32 %v4396_v19, %v4395_v12  ;;  %v4334_v14 = vor.u32 %v4333_v33, %v4332_v36 }
 0x47e   :  { %v4337_v9 = vshll.u32 %v4336_v39, 23  ;;  %v12656_v30 = vadd.f32 %v12370_v51, %v5473_v2  ;;  %v4421_v63 = vsel %vm4409_vm6, %v4403_v46, %v4420_v43  ;;  %v12670_v12 = vshll.u32 %v4383_v3, 8  ;;  %v5476_v43 = vpop.f32.mrf.mxu2 }
 0x47f   :  { %v4215_v62 = vsel %vm4213_vm11, %v4201_v28, %v4214_v31  ;;  %v4558_v28 = vshll.u32 %v16237_v18, %v12616_v5  ;;  %v4341_v53 = vcvt.s32.f32 %v4334_v14  ;;  %v4419_v21 = vsel %vm4407_vm2, %v12641_v42, %v12643_v7 }
 0x480   :  { %v4219_v41 = vsel %vm4212_vm12, %v4215_v62, %v4218_v13  ;;  %v4338_v17 = vor.u32 4788187, %v4337_v9  ;;  %16252 = vst [vmem:[#allocation32_spill] sm:$0xff] %v12656_v30  ;;  %v4345_v31 = vsub.s32 4, %v12594_v22  ;;  %v5571_v13 = vsel %vm16253_vm10, %v12656_v30, 0.0  ;;  %vm16266_vm10 = vmmov %vm16259_vm1 }
 0x481   :  { %v4220_v34 = vsel %vm4210_vm5, nan, %v4219_v41  ;;  %5572 = vadd.xlane.f32.xlu1 %v5571_v13  ;;  %v12674_v19 = vsel %vm4408_vm14, %v4419_v21, %v4421_v63  ;;  %v4560_v62 = vor.u32 %v4559_v47, %v4558_v28  ;;  %v12689_v41 = vpop.f32.mrf.mxu0  ;;  %v12703_v39 = vadd.f32 %v12370_v51, %v12563_v6 }
 0x482   :  { %8072 = vmatmul.msk.f32.gmra.mxu2 %vm5311_vm0, %v4220_v34  ;;  %v4339_v4 = vand.u32 2147483647, %v4338_v17  ;;  %v4346_v57 = vsel %vm4223_vm13, %v4345_v31, %v12594_v22  ;;  %v12696_v34 = vand.u32 65535, %v12670_v12  ;;  %v4427_v33 = vshrl.u32 %v12674_v19, 16 }
 0x483   :  { %16256 = vst [vmem:[#allocation19_spill] sm:$0xff] %v12703_v39  ;;  %v12707_v1 = vadd.f32 %v12370_v51, %v12586_v55  ;;  %v12710_v14 = vsub.s32 32, %v12679_v20  ;;  %v12718_v46 = vadd.f32 %v12370_v51, %v5476_v43  ;;  %v12723_v6 = vsel %vm4564_vm9, %v12676_v44, 920167782 }
 0x484   :  { %v4342_v38 = vmul.f32 %v4341_v53, %v4339_v4  ;;  %v12727_v55 = vsel %vm4564_vm9, %v4560_v62, 1326507024  ;;  %v4348_v61 = vsel %vm12684_vm8, 0, %v4346_v57  ;;  %v12735_v28 = vor.u32 %v4393_v25, %v4392_v58 }
 0x485   :  { %16257 = vst [vmem:[#allocation39_spill] sm:$0xff] %v12707_v1  ;;  %v5574_v10 = vsel %vm16259_vm1, %v12718_v46, 0.0  ;;  %v4426_v17 = vand.u32 65535, %v12674_v19  ;;  %v12739_v53 = vmul.u32 %v4427_v33, %v12696_v34  ;;  %v12743_v2 = vadd.f32 %v12370_v51, %v12612_v59 }
 0x486   :  { %v4343_v36 = vxor.u32 2147483648, %v4342_v38  ;;  %16258 = vst [vmem:[#allocation42_spill] sm:$0xff] %v12718_v46  ;;  %v12746_v21 = vadd.f32 %v12370_v51, %v5437_v32  ;;  %5575 = vadd.xlane.f32.xlu2 %v5574_v10  ;;  %v4709_v4 = vshll.u32 %v15958_v0, %v12679_v20  ;;  %v4710_v31 = vshrl.u32 %v16237_v18, %v12710_v14  ;;  %v332_v10 = vpop.xlane.xlu0 %331 }
 0x487   :  { %16260 = vst [vmem:[#allocation41_spill] sm:$0xff] %v12743_v2  ;;  %v12752_v13 = vand.u32 3, %v4348_v61  ;;  %v12755_v19 = vshrl.u32 %v12670_v12, 16  ;;  %v12757_v59 = vshrl.u32 %v4695_v15, 5  ;;  %v12761_v32 = vshll.u32 %v16237_v18, %v12679_v20 }
 0x488   :  { %v4344_v22 = vsel %vm4223_vm13, %v4343_v36, %v4342_v38  ;;  %16261 = vst [vmem:[#allocation61_spill] sm:$0xff] %v12746_v21  ;;  %v329_v38 = vpop.xlane.xlu2 %328  ;;  %v4415_v36 = vsel %vm4407_vm2, %v12735_v28, %v12641_v42  ;;  %v4417_v57 = vsel %vm4409_vm6, %v12643_v7, %v4416_v54  ;;  %v4428_v58 = vmul.u32 %v4426_v17, %v12696_v34 }
 0x489   :  { %v12715_v9 = vsel %vm12684_vm8, %v12351_v48, %v4344_v22  ;;  %v4432_v15 = vshll.u32 %v12739_v53, 16  ;;  %v12774_v25 = vshrl.u32 %v16238_v26, %v12710_v14  ;;  %v12777_v61 = vmul.f32 %v16243_v52, %v329_v38  ;;  %v12783_v54 = vpop.f32.mrf.mxu0  ;;  %vm16269_vm8 = vmmov %vm16259_vm1 }
 0x48a   :  { %v4349_v3 = vmul.f32 %v12715_v9, %v12715_v9  ;;  %vm4367_vm5 = vcmp.eq.s32.totalorder %v12752_v13, 0  ;;  %vm4370_vm7 = vcmp.eq.s32.totalorder %v12752_v13, 2  ;;  %16263 = vst [vmem:[#allocation58_spill] sm:$0xff] %v12783_v54  ;;  %v12786_v37 = vmul.u32 %v4426_v17, %v12755_v19 }
 0x48b   :  { %16262 = vst [vmem:[#allocation52_spill] sm:$0xff] %v12777_v61  ;;  %vm4366_vm12 = vcmp.lt.s32.totalorder %v12752_v13, 2  ;;  %v4418_v38 = vsel %vm4408_vm14, %v4415_v36, %v4417_v57  ;;  %vm4364_vm11 = vweird.f32 %v12351_v48  ;;  %vm4436_vm15 = vc.u32 %v4428_v58, %v4432_v15 }
 0x48c   :  { %v4350_v63 = vmul.f32 -0.001358992, %v4349_v3  ;;  %v4357_v47 = vmul.f32 -0.00019511016, %v4349_v3  ;;  %v8447_v36 = vmov 32.0   ;;  %v4434_v57 = vshll.u32 %v12786_v37, 16 }
 0x48d   :  { %8144 = vrcp.f32 %v8447_v36 }
 0x48e   :  { %v4351_v62 = vadd.f32 0.041655596, %v4350_v63  ;;  %v4358_v8 = vadd.f32 0.008332121, %v4357_v47  ;;  %v5479_v63 = vpop.f32.mrf.mxu2  ;;  %v12779_v47 = vor.u32 %v4710_v31, %v4709_v4  ;;  %v12793_v4 = vmul.f32 %v16243_v52, %v332_v10 }
 0x48f   :  { %v12796_v31 = vadd.f32 %v12370_v51, %v5479_v63  ;;  %v4449_v10 = vshrl.u32 %v4418_v38, 16  ;;  %v4437_v63 = vsel %vm4436_vm15, 1, %v16038_v24 }
 0x490   :  { %v4352_v22 = vmul.f32 %v4351_v62, %v4349_v3  ;;  %v4359_v43 = vmul.f32 %v4358_v8, %v4349_v3  ;;  %v4431_v62 = vmul.u32 %v4427_v33, %v12755_v19  ;;  %v4438_v33 = vadd.s32 %v4432_v15, %v4428_v58 }
 0x491   :  { %16264 = vst [vmem:[#allocation47_spill] sm:$0xff] %v12796_v31  ;;  %v5577_v54 = vsel %vm16265_vm4, %v12796_v31, 0.0  ;;  %v4412_v58 = vsel %vm4410_vm3, %v12643_v7, 2102212464  ;;  %v4451_v15 = vmul.u32 %v4449_v10, %v12696_v34 }
 0x492   :  { %v4353_v46 = vadd.f32 -0.4999988, %v4352_v22  ;;  %v4360_v30 = vadd.f32 -0.16666654, %v4359_v43  ;;  %v4840_v22 = vand.u32 2139095040, %v12777_v61  ;;  %v4448_v43 = vand.u32 65535, %v4418_v38  ;;  %5578 = vadd.xlane.f32.xlu1 %v5577_v54 }
 0x493   :  { %v4439_v31 = vadd.s32 %v4437_v63, %v4431_v62  ;;  %vm4440_vm13 = vc.u32 %v4438_v33, %v4434_v57  ;;  %v12822_v62 = vpop.eup %8144  ;;  %v4453_v63 = vmul.u32 %v4449_v10, %v12755_v19  ;;  %v4454_v33 = vshll.u32 %v4451_v15, 16 }
 0x494   :  { %v4354_v17 = vmul.f32 %v4353_v46, %v4349_v3  ;;  %v4361_v8 = vmul.f32 %v4360_v30, %v4349_v3  ;;  %v4994_v46 = vand.u32 2139095040, %v12793_v4  ;;  %v5529_v30 = vsel %vm16266_vm10, %v12707_v1, 0.0 }
 0x495   :  { %v4391_v3 = vshrl.u32 %v16031_v56, %v12597_v16  ;;  %v4841_v39 = vshrl.u32 %v4840_v22, 23  ;;  %v4452_v57 = vmul.u32 %v4448_v43, %v12755_v19  ;;  %v130_v19 = vmul.f32 32.0, %v12822_v62 }
 0x496   :  { %v4355_v52 = vadd.f32 1.0, %v4354_v17  ;;  %v4362_v11 = vadd.f32 1.0, %v4361_v8  ;;  %v5482_v38 = vpop.f32.mrf.mxu2  ;;  %v4433_v17 = vshrl.u32 %v12739_v53, 16  ;;  %v12824_v53 = vpop.f32.mrf.mxu0  ;;  %vm134_vm15 = vweird.f32 %v12822_v62 }
 0x497   :  { %v12812_v54 = vadd.f32 %v12370_v51, %v5482_v38  ;;  %16268 = vst [vmem:[#allocation86_spill] sm:$0xff] %v12824_v53  ;;  %v4411_v7 = vsel %vm4407_vm2, %v4391_v3, %v12735_v28  ;;  %v12840_v38 = vshrl.u32 %v4994_v46, 23  ;;  %v4435_v28 = vshrl.u32 %v12786_v37, 16 }
 0x498   :  { %v4363_v36 = vmul.f32 %v4362_v11, %v12715_v9  ;;  %v4371_v61 = vxor.u32 2147483648, %v4355_v52  ;;  %v4441_v11 = vsel %vm4440_vm13, 1, %v16038_v24  ;;  %v4450_v9 = vmul.u32 %v4448_v43, %v12696_v34 }
 0x499   :  { %16267 = vst [vmem:[#allocation7_spill] sm:$0xff] %v12812_v54  ;;  %v5580_v51 = vsel %vm16269_vm8, %v12812_v54, 0.0  ;;  %v4443_v22 = vadd.s32 %v4441_v11, %v4439_v31  ;;  %v4413_v34 = vsel %vm4409_vm6, %v12641_v42, %v4412_v58  ;;  %v4456_v31 = vshll.u32 %v4452_v57, 16 }
 0x49a   :  { %v4368_v8 = vxor.u32 2147483648, %v4363_v36  ;;  %v4372_v16 = vsel %vm4370_vm7, %v4371_v61, %v4363_v36  ;;  %5581 = vadd.xlane.f32.xlu0 %v5580_v51  ;;  %5530 = vadd.xlane.f32.xlu1 %v5529_v30  ;;  %vm4458_vm3 = vc.u32 %v4450_v9, %v4454_v33  ;;  %v4460_v3 = vadd.s32 %v4454_v33, %v4450_v9 }
 0x49b   :  { %v8039_v42 = vadd.s32 4294967169, %v4841_v39  ;;  %v4414_v13 = vsel %vm4408_vm14, %v4411_v7, %v4413_v34  ;;  %v4459_v10 = vsel %vm4458_vm3, 1, %v16038_v24  ;;  %v4455_v46 = vshrl.u32 %v4451_v15, 16 }
 0x49c   :  { %v4369_v61 = vsel %vm4367_vm5, %v4355_v52, %v4368_v8  ;;  %v4444_v52 = vadd.s32 %v4443_v22, %v4433_v17  ;;  %v4457_v37 = vshrl.u32 %v4452_v57, 16  ;;  %v4461_v58 = vadd.s32 %v4459_v10, %v4453_v63 }
 0x49d   :  { %v4373_v36 = vsel %vm4366_vm12, %v4369_v61, %v4372_v16  ;;  %vm4462_vm2 = vc.u32 %v4460_v3, %v4456_v31  ;;  %vm4718_vm6 = vcmp.lt.s32.totalorder %v12757_v59, 4  ;;  %v5532_v30 = vsel %vm16259_vm1, %v12743_v2, 0.0 }
 0x49e   :  { %v4374_v43 = vsel %vm4364_vm11, nan, %v4373_v36  ;;  %v4463_v48 = vsel %vm4462_vm2, 1, %v16038_v24  ;;  %v15913_v39 = vand.u32 2147483647, %v12550_v27  ;;  %v4546_v17 = vshll.u32 %v16031_v56, %v12616_v5  ;;  %v12876_v34 = vpop.f32.mrf.mxu0  ;;  %vm16271_vm11 = vmmov %vm16259_vm1 }
 0x49f   :  { %8073 = vmatmul.msk.f32.gmra.mxu2 %vm5311_vm0, %v4374_v43  ;;  %v12857_v50 = vadd.s32 %v4444_v52, %v4435_v28  ;;  %v12859_v8 = vadd.s32 %v4460_v3, %v4456_v31  ;;  %v4465_v15 = vadd.s32 %v4463_v48, %v4461_v58  ;;  %v4547_v16 = vshrl.u32 %v16033_v23, %v12634_v49 }
 0x4a0   :  { %v4536_v11 = vand.u32 8388607, %v15913_v39  ;;  %v4549_v9 = vshll.u32 %v16033_v23, %v12616_v5  ;;  %v4550_v51 = vshrl.u32 %v16034_v40, %v12634_v49  ;;  %v4552_v7 = vshll.u32 %v16034_v40, %v12616_v5  ;;  %16270 = vst [vmem:[#allocation94_spill] sm:$0xff] %v12876_v34 }
 0x4a1   :  { %v4466_v22 = vadd.s32 %v4465_v15, %v4455_v46  ;;  %v12871_v57 = vor.u32 %v4547_v16, %v4546_v17  ;;  %v4553_v61 = vshrl.u32 %v15958_v0, %v12634_v49  ;;  %vm4561_vm14 = vcmp.lt.s32.totalorder %v12647_v60, 1 }
 0x4a2   :  { %5533 = vadd.xlane.f32.xlu0 %v5532_v30  ;;  %v131_v63 = vsub.f32 1.0, %v130_v19  ;;  %v4537_v33 = vor.u32 8388608, %v4536_v11  ;;  %v12878_v36 = vor.u32 %v4550_v51, %v4549_v9  ;;  %vm4563_vm5 = vcmp.lt.s32.totalorder %v12647_v60, 3 }
 0x4a3   :  { %v4467_v28 = vadd.s32 %v4466_v22, %v4457_v37  ;;  %v4554_v31 = vor.u32 %v4553_v61, %v4552_v7  ;;  %vm4562_vm7 = vcmp.lt.s32.totalorder %v12647_v60, 2  ;;  %v4575_v5 = vsel %vm4563_vm5, %v12676_v44, %v12727_v55 }
 0x4a4   :  { %v4468_v43 = vmul.u32 %v12670_v12, %v4414_v13  ;;  %vm4470_vm12 = vc.u32 %v12857_v50, %v12859_v8  ;;  %v4569_v52 = vsel %vm4561_vm14, %v12871_v57, %v12878_v36  ;;  %v12893_v3 = vshll.u32 %v4537_v33, 8 }
 0x4a5   :  { %v12895_v19 = vadd.s32 1, %v8039_v42  ;;  %v4471_v10 = vadd.s32 1, %v4467_v28  ;;  %v4571_v46 = vsel %vm4563_vm5, %v4554_v31, %v12723_v6  ;;  %v4573_v12 = vsel %vm4561_vm14, %v12878_v36, %v4554_v31 }
 0x4a6   :  { %v4572_v44 = vsel %vm4562_vm7, %v4569_v52, %v4571_v46  ;;  %v4576_v55 = vsel %vm4562_vm7, %v4573_v12, %v4575_v5  ;;  %v4578_v13 = vand.u32 65535, %v12893_v3  ;;  %v4579_v42 = vshrl.u32 %v12893_v3, 16  ;;  %v12923_v5 = vpop.f32.mrf.mxu0 }
 0x4a7   :  { %v132_v37 = vmul.f32 %v12822_v62, %v131_v63  ;;  %v4472_v58 = vsel %vm4470_vm12, %v4471_v10, %v4467_v28  ;;  %v4580_v48 = vand.u32 65535, %v4576_v55  ;;  %v4581_v30 = vshrl.u32 %v4576_v55, 16  ;;  %16272 = vst [vmem:[#allocation101_spill] sm:$0xff] %v12923_v5 }
 0x4a8   :  { %v4473_v6 = vadd.s32 %v4472_v58, %v4468_v43  ;;  %v5535_v17 = vsel %vm16271_vm11, %v12746_v21, 0.0  ;;  %v4602_v15 = vand.u32 65535, %v4572_v44  ;;  %v4603_v16 = vshrl.u32 %v4572_v44, 16 }
 0x4a9   :  { %v4714_v11 = vor.u32 %v12774_v25, %v12761_v32  ;;  %v12917_v9 = vsel %vm4718_vm6, %v12779_v47, 920167782  ;;  %v4582_v51 = vmul.u32 %v4580_v48, %v4578_v13  ;;  %v4583_v7 = vmul.u32 %v4581_v30, %v4578_v13 }
 0x4aa   :  { %5536 = vadd.xlane.f32.xlu0 %v5535_v17  ;;  %v8042_v22 = vadd.s32 4294967169, %v12840_v38  ;;  %v4474_v61 = vadd.s32 536870912, %v4473_v6  ;;  %v4584_v63 = vmul.u32 %v4580_v48, %v4579_v42  ;;  %vm4848_vm4 = vcmp.gt.s32.totalorder %v12895_v19, 0 }
 0x4ab   :  { %v133_v33 = vadd.f32 %v12822_v62, %v132_v37  ;;  %v4585_v28 = vmul.u32 %v4581_v30, %v4579_v42  ;;  %v4586_v32 = vshll.u32 %v4583_v7, 16  ;;  %v4605_v25 = vmul.u32 %v4603_v16, %v4578_v13 }
 0x4ac   :  { %v12925_v43 = vshrl.u32 %v4474_v61, 30  ;;  %v4588_v52 = vshll.u32 %v4584_v63, 16  ;;  %v4604_v10 = vmul.u32 %v4602_v15, %v4578_v13  ;;  %v4606_v46 = vmul.u32 %v4602_v15, %v4579_v42 }
 0x4ad   :  { %v4545_v38 = vshrl.u32 %v16031_v56, %v12634_v49  ;;  %vm4590_vm10 = vc.u32 %v4582_v51, %v4586_v32  ;;  %v4592_v12 = vadd.s32 %v4586_v32, %v4582_v51  ;;  %v4608_v44 = vshll.u32 %v4605_v25, 16 }
 0x4ae   :  { %v4476_v55 = vshll.u32 %v12925_v43, 30  ;;  %v4566_v37 = vsel %vm4564_vm9, %v4554_v31, 2102212464  ;;  %v4591_v58 = vsel %vm4590_vm10, 1, %v16038_v24  ;;  %v4607_v48 = vmul.u32 %v4603_v16, %v4579_v42 }
 0x4af   :  { %v4587_v30 = vshrl.u32 %v4583_v7, 16  ;;  %v4593_v17 = vadd.s32 %v4591_v58, %v4585_v28  ;;  %vm4594_vm13 = vc.u32 %v4592_v12, %v4588_v52  ;;  %v4610_v61 = vshll.u32 %v4606_v46, 16  ;;  %v12967_v58 = vpop.f32.mrf.mxu0 }
 0x4b0   :  { %v12936_v13 = vsel %vm134_vm15, %v12822_v62, %v133_v33  ;;  %v12938_v49 = vsub.s32 %v4473_v6, %v4476_v55  ;;  %v4595_v15 = vsel %vm4594_vm13, 1, %v16038_v24  ;;  %vm4612_vm8 = vc.u32 %v4604_v10, %v4608_v44  ;;  %v128_v33 = vpop.xlane.xlu0 %127  ;;  %16274 = vst [vmem:[#allocation102_spill] sm:$0xff] %v12967_v58 }
 0x4b1   :  { %v4565_v31 = vsel %vm4561_vm14, %v4545_v38, %v12871_v57  ;;  %v4597_v51 = vadd.s32 %v4595_v15, %v4593_v17  ;;  %v4613_v42 = vsel %vm4612_vm8, 1, %v16038_v24  ;;  %v4614_v16 = vadd.s32 %v4608_v44, %v4604_v10  ;;  %v12955_v10 = vld [vmem:[%s15714_s9] ss:$0 sm:$0xff] }
 0x4b2   :  { %vm4478_vm9 = vcmp.lt.s32.totalorder %v12938_v49, 0  ;;  %v4479_v7 = vsub.s32 0, %v12938_v49  ;;  %v4567_v62 = vsel %vm4563_vm5, %v12878_v36, %v4566_v37  ;;  %v4615_v6 = vadd.s32 %v4613_v42, %v4607_v48  ;;  %v12969_v48 = vpop.f32.mrf.mxu2 }
 0x4b3   :  { %v4589_v28 = vshrl.u32 %v4584_v63, 16  ;;  %v4598_v32 = vadd.s32 %v4597_v51, %v4587_v30  ;;  %v4609_v52 = vshrl.u32 %v4605_v25, 16  ;;  %vm4616_vm3 = vc.u32 %v4614_v16, %v4610_v61 }
 0x4b4   :  { %v4728_v57 = vsel %vm4718_vm6, %v4714_v11, 1326507024  ;;  %v12959_v38 = vadd.f32 %v12955_v10, %v12689_v41  ;;  %v4480_v36 = vsel %vm4478_vm9, %v4479_v7, %v12938_v49  ;;  %v4617_v12 = vsel %vm4616_vm3, 1, %v16038_v24 }
 0x4b5   :  { %v5001_v63 = vadd.s32 1, %v8042_v22  ;;  %v4481_v44 = vclz %v4480_v36  ;;  %v4611_v25 = vshrl.u32 %v4606_v46, 16  ;;  %v4619_v55 = vadd.s32 %v4617_v12, %v4615_v6 }
 0x4b6   :  { %16273 = vst [vmem:[#allocation104_spill] sm:$0xff] %v12959_v38  ;;  %v4849_v11 = vsel %vm4848_vm4, %v12895_v19, 0  ;;  %v136_v37 = vmul.f32 %v12936_v13, %v128_v33  ;;  %v4568_v41 = vsel %vm4562_vm7, %v4565_v31, %v4567_v62  ;;  %v15912_v30 = vand.u32 2147483647, %v12592_v29 }
 0x4b7   :  { %v8031_v17 = vadd.s32 4294967294, %v4481_v44  ;;  %v12974_v22 = vadd.s32 %v4598_v32, %v4589_v28  ;;  %v12976_v46 = vadd.s32 %v4614_v16, %v4610_v61  ;;  %v4620_v15 = vadd.s32 %v4619_v55, %v4609_v52 }
 0x4b8   :  { %v4703_v19 = vshll.u32 %v16033_v23, %v12679_v20  ;;  %v4704_v51 = vshrl.u32 %v16034_v40, %v12710_v14  ;;  %v4706_v42 = vshll.u32 %v16034_v40, %v12679_v20  ;;  %v4707_v60 = vshrl.u32 %v15958_v0, %v12710_v14 }
 0x4b9   :  { %vm5002_vm2 = vcmp.gt.s32.totalorder %v5001_v63, 0  ;;  %v4469_v31 = vadd.s32 %v12859_v8, %v12857_v50  ;;  %vm8032_vm1 = vcmp.lt.s32.totalorder %v8031_v17, 0  ;;  %v4621_v61 = vadd.s32 %v4620_v15, %v4611_v25 }
 0x4ba   :  { %v12988_v16 = vand.u32 31, %v4849_v11  ;;  %v4484_v7 = vsel %vm8032_vm1, 0, %v8031_v17  ;;  %v4622_v62 = vmul.u32 %v12893_v3, %v4568_v41  ;;  %v4690_v6 = vand.u32 8388607, %v15912_v30 }
 0x4bb   :  { %v4485_v33 = vsub.s32 32, %v4484_v7  ;;  %v4486_v28 = vshll.u32 %v12938_v49, %v4484_v7  ;;  %v4489_v32 = vsub.s32 4294967266, %v4484_v7  ;;  %vm4624_vm14 = vc.u32 %v12974_v22, %v12976_v46 }
 0x4bc   :  { %v12997_v52 = vsub.f32 %v11656_v45, %v136_v37  ;;  %vm4377_vm5 = vcmp.lt.s32.totalorder %v12537_v35, 0  ;;  %v4625_v50 = vadd.s32 1, %v4621_v61  ;;  %v13000_v8 = vor.u32 %v4704_v51, %v4703_v19  ;;  %v13020_v51 = vpop.f32.mrf.mxu0 }
 0x4bd   :  { %v13002_v36 = vor.u32 %v4707_v60, %v4706_v42  ;;  %v4487_v3 = vshrl.u32 %v4469_v31, %v4485_v33  ;;  %v4490_v12 = vadd.s32 127, %v4489_v32  ;;  %vm4715_vm7 = vcmp.lt.s32.totalorder %v12757_v59, 1  ;;  %16279 = vst [vmem:[#allocation20_spill] sm:$0xff] %v13020_v51 }
 0x4be   :  { %16275 = vst [vmem:[#allocation103_spill] sm:$0xff] %v12997_v52  ;;  %vm4717_vm12 = vcmp.lt.s32.totalorder %v12757_v59, 3  ;;  %v13006_v49 = vshrl.u32 %v4849_v11, 5  ;;  %v5003_v44 = vsel %vm5002_vm2, %v5001_v63, 0  ;;  %v4626_v25 = vsel %vm4624_vm14, %v4625_v50, %v4621_v61  ;;  %v13022_v63 = vpop.f32.mrf.mxu2 }
 0x4bf   :  { %v4691_v45 = vor.u32 8388608, %v4690_v6  ;;  %v13010_v55 = vsub.s32 32, %v12988_v16  ;;  %v16276_v37 = vand.u32 2147483647, %v12537_v35  ;;  %v4488_v17 = vor.u32 %v4487_v3, %v4486_v28 }
 0x4c0   :  { %v4491_v15 = vshll.u32 %v4490_v12, 23  ;;  %v4627_v19 = vadd.s32 %v4626_v25, %v4622_v62  ;;  %v138_v11 = vmul.f32 %v12997_v52, %v12997_v52  ;;  %vm4716_vm15 = vcmp.lt.s32.totalorder %v12757_v59, 2 }
 0x4c1   :  { %vm13014_vm11 = vcmp.le.f32.partialorder %v16276_v37, 0.7853982  ;;  %v4727_v42 = vsel %vm4715_vm7, %v13000_v8, %v13002_v36  ;;  %v4729_v60 = vsel %vm4717_vm12, %v12779_v47, %v4728_v57  ;;  %v4863_v31 = vshll.u32 %v15958_v0, %v12988_v16 }
 0x4c2   :  { %v4492_v61 = vor.u32 4788187, %v4491_v15  ;;  %v4495_v7 = vcvt.s32.f32 %v4488_v17  ;;  %v4499_v62 = vsub.s32 4, %v12925_v43  ;;  %v13035_v6 = vand.u32 31, %v5003_v44 }
 0x4c3   :  { %vm16280_vm4 = vcmask 261120   ;;  %v4628_v28 = vadd.s32 536870912, %v4627_v19  ;;  %v13038_v32 = vshll.u32 %v4691_v45, 8  ;;  %v4864_v50 = vshrl.u32 %v16237_v18, %v13010_v55 }
 0x4c4   :  { %v139_v33 = vsel %vm16280_vm4, %v138_v11, 0.0  ;;  %v4866_v47 = vshll.u32 %v16237_v18, %v12988_v16  ;;  %v4493_v57 = vand.u32 2147483647, %v4492_v61  ;;  %v13046_v3 = vsel %vm4716_vm15, %v4727_v42, %v4729_v60  ;;  %vm16281_vm13 = vmmov %vm16280_vm4 }
 0x4c5   :  { %140 = vadd.xlane.f32.xlu1 %v139_v33  ;;  %vm4872_vm10 = vcmp.lt.s32.totalorder %v13006_v49, 4  ;;  %v13049_v12 = vshrl.u32 %v4628_v28, 30  ;;  %v4700_v25 = vshll.u32 %v16031_v56, %v12679_v20  ;;  %v4701_v45 = vshrl.u32 %v16033_v23, %v12710_v14  ;;  %vm16285_vm9 = vmmov %vm16280_vm4 }
 0x4c6   :  { %v4867_v37 = vshrl.u32 %v16238_v26, %v13010_v55  ;;  %v13057_v17 = vshrl.u32 %v5003_v44, 5  ;;  %v4496_v15 = vmul.f32 %v4495_v7, %v4493_v57  ;;  %v4500_v11 = vsel %vm4377_vm5, %v4499_v62, %v12925_v43  ;;  %v13084_v57 = vpop.f32.mrf.mxu0  ;;  %v5491_v30 = vpop.f32.mrf.mxu2  ;;  %vm16288_vm2 = vmmov %vm16280_vm4 }
 0x4c7   :  { %v13063_v42 = vsub.s32 32, %v13035_v6  ;;  %v4630_v60 = vshll.u32 %v13049_v12, 30  ;;  %v13067_v20 = vand.u32 65535, %v13038_v32  ;;  %v13070_v33 = vor.u32 %v4864_v50, %v4863_v31  ;;  %16282 = vst [vmem:[#allocation40_spill] sm:$0xff] %v13084_v57  ;;  %vm16292_vm4 = vmmov %vm16288_vm2 }
 0x4c8   :  { %v13074_v44 = vshll.u32 %v15958_v0, %v13035_v6  ;;  %v13078_v7 = vshll.u32 %v16237_v18, %v13035_v6  ;;  %v4497_v43 = vxor.u32 2147483648, %v4496_v15  ;;  %v4502_v62 = vsel %vm13014_vm11, 0, %v4500_v11 }
 0x4c9   :  { %v5538_v28 = vsel %vm16281_vm13, %v12959_v38, 0.0  ;;  %v13086_v31 = vsub.s32 %v4627_v19, %v4630_v60  ;;  %v13088_v50 = vor.u32 %v4701_v45, %v4700_v25  ;;  %v13093_v61 = vadd.f32 %v12955_v10, %v5491_v30 }
 0x4ca   :  { %v4498_v39 = vsel %vm4377_vm5, %v4497_v43, %v4496_v15  ;;  %v13096_v51 = vshrl.u32 %v13038_v32, 16  ;;  %v4734_v11 = vand.u32 65535, %v13046_v3  ;;  %v16284_v25 = vshrl.u32 %v13046_v3, 16 }
 0x4cb   :  { %16283 = vst [vmem:[#allocation46_spill] sm:$0xff] %v13093_v61  ;;  %v13102_v57 = vsel %vm13014_vm11, %v12537_v35, %v4498_v39  ;;  %vm4632_vm8 = vcmp.lt.s32.totalorder %v13086_v31, 0  ;;  %v4633_v19 = vsub.s32 0, %v13086_v31  ;;  %v4868_v30 = vor.u32 %v4867_v37, %v4866_v47 }
 0x4cc   :  { %v13109_v45 = vmul.u32 %v16284_v25, %v13067_v20  ;;  %v13113_v15 = vshrl.u32 %v16237_v18, %v13063_v42  ;;  %v4503_v60 = vmul.f32 %v13102_v57, %v13102_v57  ;;  %v5589_v39 = vsel %vm16285_vm9, %v13093_v61, 0.0 }
 0x4cd   :  { %5539 = vadd.xlane.f32.xlu1 %v5538_v28  ;;  %v13119_v41 = vand.u32 3, %v4502_v62  ;;  %5590 = vadd.xlane.f32.xlu0 %v5589_v39  ;;  %v4634_v43 = vsel %vm4632_vm8, %v4633_v19, %v13086_v31  ;;  %v4723_v47 = vsel %vm4715_vm7, %v13088_v50, %v13000_v8  ;;  %v4725_v37 = vsel %vm4717_vm12, %v13002_v36, %v12917_v9 }
 0x4ce   :  { %v13132_v28 = vshrl.u32 %v16238_v26, %v13063_v42  ;;  %v4504_v25 = vmul.f32 -0.001358992, %v4503_v60  ;;  %v4511_v62 = vmul.f32 -0.00019511016, %v4503_v60  ;;  %v4635_v61 = vclz %v4634_v43  ;;  %v13153_v5 = vpop.f32.mrf.mxu0  ;;  %v5494_v34 = vpop.f32.mrf.mxu2 }
 0x4cf   :  { %v13137_v19 = vsel %vm4872_vm10, %v13070_v33, 920167782  ;;  %v4736_v39 = vmul.u32 %v4734_v11, %v13067_v20  ;;  %v13141_v52 = vmul.u32 %v4734_v11, %v13096_v51  ;;  %v4740_v21 = vshll.u32 %v13109_v45, 16  ;;  %16286 = vst [vmem:[#allocation50_spill] sm:$0xff] %v13153_v5  ;;  %v16287_v11 = vld [vmem:[#allocation19_spill] sm:$0xff] }
 0x4d0   :  { %v4505_v9 = vadd.f32 0.041655596, %v4504_v25  ;;  %v4512_v38 = vadd.f32 0.008332121, %v4511_v62  ;;  %v8034_v2 = vadd.s32 4294967294, %v4635_v61  ;;  %v13146_v58 = vsel %vm4716_vm15, %v4723_v47, %v4725_v37 }
 0x4d1   :  { %v13150_v43 = vsel %vm4872_vm10, %v4868_v30, 1326507024  ;;  %vm4524_vm3 = vcmp.eq.s32.totalorder %v13119_v41, 2  ;;  %v13157_v54 = vsel %vm16288_vm2, %v16287_v11, 0.0  ;;  %v4756_v25 = vand.u32 65535, %v13146_v58 }
 0x4d2   :  { %v4506_v61 = vmul.f32 %v4505_v9, %v4503_v60  ;;  %v4513_v62 = vmul.f32 %v4512_v38, %v4503_v60  ;;  %v13161_v47 = vadd.f32 %v12955_v10, %v5494_v34  ;;  %v4623_v30 = vadd.s32 %v12976_v46, %v12974_v22 }
 0x4d3   :  { %vm4521_vm1 = vcmp.eq.s32.totalorder %v13119_v41, 0  ;;  %vm8035_vm14 = vcmp.lt.s32.totalorder %v8034_v2, 0  ;;  %v4742_v37 = vshll.u32 %v13141_v52, 16  ;;  %vm13167_vm5 = vc.u32 %v4736_v39, %v4740_v21 }
 0x4d4   :  { %16289 = vst [vmem:[#allocation64_spill] sm:$0xff] %v13161_v47  ;;  %v4746_v11 = vadd.s32 %v4740_v21, %v4736_v39  ;;  %v4507_v1 = vadd.f32 -0.4999988, %v4506_v61  ;;  %v4514_v53 = vadd.f32 -0.16666654, %v4513_v62  ;;  %vm4520_vm11 = vcmp.lt.s32.totalorder %v13119_v41, 2 }
 0x4d5   :  { %v5592_v34 = vsel %vm16292_vm4, %v13161_v47, 0.0  ;;  %v4638_v38 = vsel %vm8035_vm14, 0, %v8034_v2  ;;  %vm4518_vm13 = vweird.f32 %v12537_v35  ;;  %v4699_v9 = vshrl.u32 %v16031_v56, %v12710_v14 }
 0x4d6   :  { %5593 = vadd.xlane.f32.xlu0 %v5592_v34  ;;  %v4639_v22 = vsub.s32 32, %v4638_v38  ;;  %v4640_v46 = vshll.u32 %v13086_v31, %v4638_v38  ;;  %v16293_v21 = vshrl.u32 %v13046_v3, 16  ;;  %v4508_v61 = vmul.f32 %v4507_v1, %v4503_v60  ;;  %v13195_v5 = vpop.f32.mrf.mxu0 }
 0x4d7   :  { %v4515_v62 = vmul.f32 %v4514_v53, %v4503_v60  ;;  %v4643_v26 = vsub.s32 4294967266, %v4638_v38  ;;  %v4745_v2 = vsel %vm13167_vm5, 1, %v16038_v24  ;;  %vm4531_vm8 = vcmp.lt.s32.totalorder %v12550_v27, 0 }
 0x4d8   :  { %v4739_v39 = vmul.u32 %v16293_v21, %v13096_v51  ;;  %v4641_v34 = vshrl.u32 %v4623_v30, %v4639_v22  ;;  %v4653_v47 = vsub.s32 4, %v13049_v12  ;;  %v4720_v14 = vsel %vm4718_vm6, %v13002_v36, 2102212464 }
 0x4d9   :  { %v4509_v31 = vadd.f32 1.0, %v4508_v61  ;;  %v4516_v18 = vadd.f32 1.0, %v4515_v62  ;;  %v16294_v3 = vand.u32 2147483647, %v12550_v27  ;;  %v4644_v53 = vadd.s32 127, %v4643_v26 }
 0x4da   :  { %vm4748_vm2 = vc.u32 %v4746_v11, %v4742_v37  ;;  %v4642_v60 = vor.u32 %v4641_v34, %v4640_v46  ;;  %v4719_v30 = vsel %vm4715_vm7, %v4699_v9, %v13088_v50  ;;  %v4747_v38 = vadd.s32 %v4745_v2, %v4739_v39  ;;  %v5525_v37 = vpop.xlane.xlu0 %5524  ;;  %vm16298_vm7 = vmmov %vm16292_vm4 }
 0x4db   :  { %vm13191_vm9 = vcmp.le.f32.partialorder %v16294_v3, 0.7853982  ;;  %v4757_v36 = vshrl.u32 %v13146_v58, 16  ;;  %v4517_v22 = vmul.f32 %v4516_v18, %v13102_v57  ;;  %v4525_v21 = vxor.u32 2147483648, %v4509_v31 }
 0x4dc   :  { %v4645_v61 = vshll.u32 %v4644_v53, 23  ;;  %v4721_v62 = vsel %vm4717_vm12, %v13000_v8, %v4720_v14  ;;  %v4649_v26 = vcvt.s32.f32 %v4642_v60  ;;  %v4654_v11 = vsel %vm4531_vm8, %v4653_v47, %v13049_v12  ;;  %v16297_v47 = vld [vmem:[#allocation28_spill] sm:$0xff] }
 0x4dd   :  { %v4741_v46 = vshrl.u32 %v13109_v45, 16  ;;  %v4749_v50 = vsel %vm4748_vm2, 1, %v16038_v24  ;;  %v4522_v9 = vxor.u32 2147483648, %v4517_v22  ;;  %v4526_v18 = vsel %vm4524_vm3, %v4525_v21, %v4517_v22 }
 0x4de   :  { %v4646_v58 = vor.u32 4788187, %v4645_v61  ;;  %v5619_v57 = vmul.f32 %v5525_v37, %v12936_v13  ;;  %v4751_v39 = vadd.s32 %v4749_v50, %v4747_v38  ;;  %v4758_v8 = vmul.u32 %v4756_v25, %v13067_v20  ;;  %v5470_v61 = vpop.f32.mrf.mxu0 }
 0x4df   :  { %v4759_v2 = vmul.u32 %v4757_v36, %v13067_v20  ;;  %v4760_v34 = vmul.u32 %v4756_v25, %v13096_v51  ;;  %v4523_v12 = vsel %vm4521_vm1, %v4509_v31, %v4522_v9  ;;  %v4743_v3 = vshrl.u32 %v13141_v52, 16 }
 0x4e0   :  { %v4647_v45 = vand.u32 2147483647, %v4646_v58  ;;  %v13219_v14 = vsub.f32 %v16297_v47, %v5619_v57  ;;  %v4527_v53 = vsel %vm4520_vm11, %v4523_v12, %v4526_v18  ;;  %v4752_v60 = vadd.s32 %v4751_v39, %v4741_v46 }
 0x4e1   :  { %v4761_v38 = vmul.u32 %v4757_v36, %v13096_v51  ;;  %v4762_v22 = vshll.u32 %v4759_v2, 16  ;;  %v4528_v20 = vsel %vm4518_vm13, nan, %v4527_v53  ;;  %v4764_v21 = vshll.u32 %v4760_v34, 16 }
 0x4e2   :  { %v4650_v25 = vmul.f32 %v4649_v26, %v4647_v45  ;;  %v5683_v31 = vmul.f32 %v13219_v14, %v13219_v14  ;;  %8074 = vmatmul.msk.f32.gmra.mxu2 %vm5311_vm0, %v4528_v20  ;;  %v4656_v52 = vsel %vm13191_vm9, 0, %v4654_v11  ;;  %v4722_v41 = vsel %vm4716_vm15, %v4719_v30, %v4721_v62  ;;  %vm16299_vm15 = vmmov %vm16292_vm4  ;;  %v16300_v11 = vld [vmem:[#allocation52_spill] sm:$0xff] }
 0x4e3   :  { %vm4766_vm6 = vc.u32 %v4758_v8, %v4762_v22  ;;  %v4768_v51 = vadd.s32 %v4762_v22, %v4758_v8  ;;  %v13235_v35 = vadd.f32 %v12955_v10, %v5470_v61  ;;  %v13239_v46 = vadd.s32 %v4752_v60, %v4743_v3 }
 0x4e4   :  { %v4651_v36 = vxor.u32 2147483648, %v4650_v25  ;;  %v5715_v26 = vsel %vm16298_vm7, %v5683_v31, 0.0  ;;  %v4767_v37 = vsel %vm4766_vm6, 1, %v16038_v24  ;;  %v4763_v50 = vshrl.u32 %v4759_v2, 16 }
 0x4e5   :  { %5716 = vadd.xlane.f32.xlu1 %v5715_v26  ;;  %v4769_v9 = vadd.s32 %v4767_v37, %v4761_v38  ;;  %vm4770_vm12 = vc.u32 %v4768_v51, %v4764_v21  ;;  %v5568_v30 = vsel %vm16299_vm15, %v13235_v35, 0.0  ;;  %v4837_v18 = vand.u32 2147483647, %v16300_v11 }
 0x4e6   :  { %v4652_v59 = vsel %vm4531_vm8, %v4651_v36, %v4650_v25  ;;  %v4771_v62 = vsel %vm4770_vm12, 1, %v16038_v24  ;;  %5569 = vadd.xlane.f32.xlu2 %v5568_v30  ;;  %v4765_v57 = vshrl.u32 %v4760_v34, 16  ;;  %v13252_v39 = vadd.s32 %v4768_v51, %v4764_v21 }
 0x4e7   :  { %v13250_v58 = vsel %vm13191_vm9, %v12550_v27, %v4652_v59  ;;  %v4773_v8 = vadd.s32 %v4771_v62, %v4769_v9  ;;  %v13256_v12 = vand.u32 3, %v4656_v52  ;;  %v4844_v45 = vand.u32 8388607, %v4837_v18 }
 0x4e8   :  { %v4657_v2 = vmul.f32 %v13250_v58, %v13250_v58  ;;  %v4854_v47 = vshll.u32 %v16031_v56, %v12988_v16  ;;  %v4855_v1 = vshrl.u32 %v16033_v23, %v13010_v55  ;;  %v4857_v34 = vshll.u32 %v16033_v23, %v12988_v16 }
 0x4e9   :  { %v4774_v3 = vadd.s32 %v4773_v8, %v4763_v50  ;;  %v4858_v53 = vshrl.u32 %v16034_v40, %v13010_v55  ;;  %v4776_v22 = vmul.u32 %v13038_v32, %v4722_v41  ;;  %v4860_v20 = vshll.u32 %v16034_v40, %v12988_v16 }
 0x4ea   :  { %v4658_v60 = vmul.f32 -0.001358992, %v4657_v2  ;;  %v4665_v38 = vmul.f32 -0.00019511016, %v4657_v2  ;;  %vm4778_vm3 = vc.u32 %v13239_v46, %v13252_v39  ;;  %v4861_v21 = vshrl.u32 %v15958_v0, %v13010_v55 }
 0x4eb   :  { %v4775_v25 = vadd.s32 %v4774_v3, %v4765_v57  ;;  %v13273_v31 = vor.u32 %v4858_v53, %v4857_v34  ;;  %v4845_v51 = vor.u32 8388608, %v4844_v45  ;;  %vm4869_vm1 = vcmp.lt.s32.totalorder %v13006_v49, 1 }
 0x4ec   :  { %v4659_v52 = vadd.f32 0.041655596, %v4658_v60  ;;  %v4666_v61 = vadd.f32 0.008332121, %v4665_v38  ;;  %v13278_v26 = vor.u32 %v4855_v1, %v4854_v47  ;;  %v4862_v32 = vor.u32 %v4861_v21, %v4860_v20 }
 0x4ed   :  { %v4779_v36 = vadd.s32 1, %v4775_v25  ;;  %vm4871_vm14 = vcmp.lt.s32.totalorder %v13006_v49, 3  ;;  %vm4870_vm5 = vcmp.lt.s32.totalorder %v13006_v49, 2  ;;  %v13288_v50 = vor.u32 %v13113_v15, %v13074_v44 }
 0x4ee   :  { %v4660_v16 = vmul.f32 %v4659_v52, %v4657_v2  ;;  %v4667_v41 = vmul.f32 %v4666_v61, %v4657_v2  ;;  %v4883_v37 = vsel %vm4871_vm14, %v13070_v33, %v13150_v43  ;;  %v13292_v9 = vadd.f32 %v12955_v10, %v12969_v48  ;;  %5527 = vadd.xlane.f32.xlu2 %v13157_v54 }
 0x4ef   :  { %v4780_v59 = vsel %vm4778_vm3, %v4779_v36, %v4775_v25  ;;  %v4881_v30 = vsel %vm4869_vm1, %v13273_v31, %v4862_v32  ;;  %vm4674_vm11 = vcmp.lt.s32.totalorder %v13256_v12, 2  ;;  %vm4675_vm4 = vcmp.eq.s32.totalorder %v13256_v12, 0 }
 0x4f0   :  { %v4661_v62 = vadd.f32 -0.4999988, %v4660_v16  ;;  %v4668_v33 = vadd.f32 -0.16666654, %v4667_v41  ;;  %v4781_v44 = vadd.s32 %v4780_v59, %v4776_v22  ;;  %vm4672_vm13 = vweird.f32 %v12550_v27 }
 0x4f1   :  { %v4877_v54 = vsel %vm4869_vm1, %v13278_v26, %v13273_v31  ;;  %v4879_v48 = vsel %vm4871_vm14, %v4862_v32, %v13137_v19  ;;  %v4884_v15 = vsel %vm4870_vm5, %v4881_v30, %v4883_v37  ;;  %v13313_v43 = vshll.u32 %v4845_v51, 8 }
 0x4f2   :  { %v4662_v57 = vmul.f32 %v4661_v62, %v4657_v2  ;;  %v4669_v8 = vmul.f32 %v4668_v33, %v4657_v2  ;;  %v4782_v45 = vadd.s32 536870912, %v4781_v44  ;;  %v4888_v47 = vand.u32 65535, %v4884_v15 }
 0x4f3   :  { %vm4678_vm8 = vcmp.eq.s32.totalorder %v13256_v12, 2  ;;  %v4886_v3 = vand.u32 65535, %v13313_v43  ;;  %v4887_v1 = vshrl.u32 %v13313_v43, 16  ;;  %v4889_v34 = vshrl.u32 %v4884_v15, 16 }
 0x4f4   :  { %v4663_v53 = vadd.f32 1.0, %v4662_v57  ;;  %v4670_v60 = vadd.f32 1.0, %v4669_v8  ;;  %v13318_v38 = vshrl.u32 %v4782_v45, 30  ;;  %v4880_v19 = vsel %vm4870_vm5, %v4877_v54, %v4879_v48 }
 0x4f5   :  { %v4890_v22 = vmul.u32 %v4888_v47, %v4886_v3  ;;  %v4891_v20 = vmul.u32 %v4889_v34, %v4886_v3  ;;  %v4892_v25 = vmul.u32 %v4888_v47, %v4887_v1  ;;  %v4910_v2 = vand.u32 65535, %v4880_v19 }
 0x4f6   :  { %v4671_v21 = vmul.f32 %v4670_v60, %v13250_v58  ;;  %v4679_v52 = vxor.u32 2147483648, %v4663_v53  ;;  %v4784_v61 = vshll.u32 %v13318_v38, 30  ;;  %v4853_v51 = vshrl.u32 %v16031_v56, %v13010_v55 }
 0x4f7   :  { %v4874_v36 = vsel %vm4872_vm10, %v4862_v32, 2102212464  ;;  %v4893_v16 = vmul.u32 %v4889_v34, %v4887_v1  ;;  %v4894_v41 = vshll.u32 %v4891_v20, 16  ;;  %v4896_v37 = vshll.u32 %v4892_v25, 16  ;;  %vm16301_vm10 = vmmov %vm16298_vm7 }
 0x4f8   :  { %v4676_v59 = vxor.u32 2147483648, %v4671_v21  ;;  %v4680_v30 = vsel %vm4678_vm8, %v4679_v52, %v4671_v21  ;;  %v4785_v62 = vsub.s32 %v4781_v44, %v4784_v61  ;;  %v4911_v33 = vshrl.u32 %v4880_v19, 16 }
 0x4f9   :  { %v4895_v54 = vshrl.u32 %v4891_v20, 16  ;;  %vm4898_vm9 = vc.u32 %v4890_v22, %v4894_v41  ;;  %v4900_v58 = vadd.s32 %v4894_v41, %v4890_v22  ;;  %v4912_v48 = vmul.u32 %v4910_v2, %v4886_v3 }
 0x4fa   :  { %v4677_v15 = vsel %vm4675_vm4, %v4663_v53, %v4676_v59  ;;  %vm4786_vm2 = vcmp.lt.s32.totalorder %v4785_v62, 0  ;;  %v4787_v55 = vsub.s32 0, %v4785_v62  ;;  %v4899_v32 = vsel %vm4898_vm9, 1, %v16038_v24 }
 0x4fb   :  { %v4681_v57 = vsel %vm4674_vm11, %v4677_v15, %v4680_v30  ;;  %v5583_v8 = vsel %vm16301_vm10, %v13292_v9, 0.0  ;;  %v4901_v45 = vadd.s32 %v4899_v32, %v4893_v16  ;;  %vm4902_vm6 = vc.u32 %v4900_v58, %v4896_v37 }
 0x4fc   :  { %v4682_v44 = vsel %vm4672_vm13, nan, %v4681_v57  ;;  %v4788_v47 = vsel %vm4786_vm2, %v4787_v55, %v4785_v62  ;;  %5584 = vadd.xlane.f32.xlu2 %v5583_v8  ;;  %v4903_v34 = vsel %vm4902_vm6, 1, %v16038_v24  ;;  %v4913_v53 = vmul.u32 %v4911_v33, %v4886_v3  ;;  %v335_v3 = vpop.xlane.xlu1 %334 }
 0x4fd   :  { %v5022_v60 = vor.u32 %v13132_v28, %v13078_v7  ;;  %8075 = vmatmul.msk.f32.gmra.mxu2 %vm5311_vm0, %v4682_v44  ;;  %v4789_v12 = vclz %v4788_v47  ;;  %v4905_v19 = vadd.s32 %v4903_v34, %v4901_v45  ;;  %v4914_v22 = vmul.u32 %v4910_v2, %v4887_v1 }
 0x4fe   :  { %vm5026_vm7 = vcmp.lt.s32.totalorder %v13057_v17, 4  ;;  %v4873_v27 = vsel %vm4869_vm1, %v4853_v51, %v13278_v26  ;;  %v4875_v20 = vsel %vm4871_vm14, %v13273_v31, %v4874_v36  ;;  %v4916_v21 = vshll.u32 %v4913_v53, 16  ;;  %v16302_v51 = vld [vmem:[#allocation11_spill] sm:$0xff] }
 0x4ff   :  { %v8037_v52 = vadd.s32 4294967294, %v4789_v12  ;;  %v4897_v61 = vshrl.u32 %v4892_v25, 16  ;;  %v4915_v7 = vmul.u32 %v4911_v33, %v4887_v1  ;;  %v4991_v28 = vand.u32 2147483647, %v12793_v4 }
 0x500   :  { %v4906_v16 = vadd.s32 %v4905_v19, %v4895_v54  ;;  %v4918_v41 = vshll.u32 %v4914_v22, 16  ;;  %vm4920_vm12 = vc.u32 %v4912_v48, %v4916_v21  ;;  %v4922_v2 = vadd.s32 %v4916_v21, %v4912_v48 }
 0x501   :  { %v5032_v37 = vsel %vm5026_vm7, %v13288_v50, 920167782  ;;  %v5036_v26 = vsel %vm5026_vm7, %v5022_v60, 1326507024  ;;  %v4777_v31 = vadd.s32 %v13252_v39, %v13239_v46  ;;  %vm8038_vm15 = vcmp.lt.s32.totalorder %v8037_v52, 0 }
 0x502   :  { %v13359_v25 = vmul.f32 %v16302_v51, %v335_v3  ;;  %v4792_v1 = vsel %vm8038_vm15, 0, %v8037_v52  ;;  %v4876_v36 = vsel %vm4870_vm5, %v4873_v27, %v4875_v20  ;;  %v4921_v59 = vsel %vm4920_vm12, 1, %v16038_v24 }
 0x503   :  { %v4793_v30 = vsub.s32 32, %v4792_v1  ;;  %v4794_v33 = vshll.u32 %v4785_v62, %v4792_v1  ;;  %v4797_v54 = vsub.s32 4294967266, %v4792_v1  ;;  %v4998_v58 = vand.u32 8388607, %v4991_v28 }
 0x504   :  { %v13366_v48 = vadd.s32 %v4906_v16, %v4897_v61  ;;  %v4917_v15 = vshrl.u32 %v4913_v53, 16  ;;  %v4923_v46 = vadd.s32 %v4921_v59, %v4915_v7  ;;  %vm4924_vm3 = vc.u32 %v4922_v2, %v4918_v41 }
 0x505   :  { %v4795_v39 = vshrl.u32 %v4777_v31, %v4793_v30  ;;  %v4798_v55 = vadd.s32 127, %v4797_v54  ;;  %v4925_v32 = vsel %vm4924_vm3, 1, %v16038_v24  ;;  %v13369_v57 = vadd.s32 %v4922_v2, %v4918_v41 }
 0x506   :  { %v4919_v49 = vshrl.u32 %v4914_v22, 16  ;;  %v4927_v8 = vadd.s32 %v4925_v32, %v4923_v46  ;;  %v5008_v62 = vshll.u32 %v16031_v56, %v13035_v6  ;;  %v5009_v45 = vshrl.u32 %v16033_v23, %v13063_v42 }
 0x507   :  { %v4796_v44 = vor.u32 %v4795_v39, %v4794_v33  ;;  %v4799_v47 = vshll.u32 %v4798_v55, 23  ;;  %v4930_v34 = vmul.u32 %v13313_v43, %v4876_v36  ;;  %v4999_v53 = vor.u32 8388608, %v4998_v58 }
 0x508   :  { %v4928_v60 = vadd.s32 %v4927_v8, %v4917_v15  ;;  %vm4932_vm1 = vc.u32 %v13366_v48, %v13369_v57  ;;  %v5011_v12 = vshll.u32 %v16033_v23, %v13035_v6  ;;  %v5012_v19 = vshrl.u32 %v16034_v40, %v13063_v42 }
 0x509   :  { %v4800_v22 = vor.u32 4788187, %v4799_v47  ;;  %v4803_v27 = vcvt.s32.f32 %v4796_v44  ;;  %v5014_v20 = vshll.u32 %v16034_v40, %v13035_v6  ;;  %v5015_v21 = vshrl.u32 %v15958_v0, %v13063_v42 }
 0x50a   :  { %v4929_v43 = vadd.s32 %v4928_v60, %v4919_v49  ;;  %v13386_v3 = vor.u32 %v5009_v45, %v5008_v62  ;;  %v13388_v52 = vor.u32 %v5012_v19, %v5011_v12  ;;  %vm5023_vm14 = vcmp.lt.s32.totalorder %v13057_v17, 1 }
 0x50b   :  { %v4801_v61 = vand.u32 2147483647, %v4800_v22  ;;  %v13391_v7 = vor.u32 %v5015_v21, %v5014_v20  ;;  %vm5024_vm5 = vcmp.lt.s32.totalorder %v13057_v17, 2  ;;  %vm5025_vm11 = vcmp.lt.s32.totalorder %v13057_v17, 3 }
 0x50c   :  { %v4807_v16 = vsub.s32 4, %v13318_v38  ;;  %v4933_v6 = vadd.s32 1, %v4929_v43  ;;  %v5037_v41 = vsel %vm5025_vm11, %v13288_v50, %v5036_v26  ;;  %v13399_v2 = vshll.u32 %v4999_v53, 8 }
 0x50d   :  { %v5148_v31 = vand.u32 2139095040, %v13359_v25  ;;  %vm4685_vm4 = vcmp.lt.s32.totalorder %v12592_v29, 0  ;;  %v4804_v51 = vmul.f32 %v4803_v27, %v4801_v61  ;;  %v5035_v1 = vsel %vm5023_vm14, %v13388_v52, %v13391_v7 }
 0x50e   :  { %v4934_v36 = vsel %vm4932_vm1, %v4933_v6, %v4929_v43  ;;  %v5031_v50 = vsel %vm5023_vm14, %v13386_v3, %v13388_v52  ;;  %v5033_v26 = vsel %vm5025_vm11, %v13391_v7, %v5032_v37  ;;  %v5038_v59 = vsel %vm5024_vm5, %v5035_v1, %v5037_v41 }
 0x50f   :  { %v16303_v30 = vand.u32 2147483647, %v12592_v29  ;;  %v4805_v54 = vxor.u32 2147483648, %v4804_v51  ;;  %v4935_v58 = vadd.s32 %v4934_v36, %v4930_v34  ;;  %v5040_v15 = vand.u32 65535, %v13399_v2  ;;  %v16306_v34 = vld [vmem:[#allocation58_spill] sm:$0xff] }
 0x510   :  { %v4808_v46 = vsel %vm4685_vm4, %v4807_v16, %v13318_v38  ;;  %v5041_v39 = vshrl.u32 %v13399_v2, 16  ;;  %v5042_v37 = vand.u32 65535, %v5038_v59  ;;  %v5043_v55 = vshrl.u32 %v5038_v59, 16 }
 0x511   :  { %vm13421_vm13 = vcmp.le.f32.partialorder %v16303_v30, 0.7853982  ;;  %v5149_v32 = vshrl.u32 %v5148_v31, 23  ;;  %v4806_v49 = vsel %vm4685_vm4, %v4805_v54, %v4804_v51  ;;  %v4936_v8 = vadd.s32 536870912, %v4935_v58 }
 0x512   :  { %v5034_v62 = vsel %vm5024_vm5, %v5031_v50, %v5033_v26  ;;  %v13437_v45 = vsel %vm13421_vm13, %v12592_v29, %v4806_v49  ;;  %v5044_v44 = vmul.u32 %v5042_v37, %v5040_v15  ;;  %v13439_v47 = vmul.u32 %v5043_v55, %v5040_v15 }
 0x513   :  { %v13441_v38 = vmul.u32 %v5042_v37, %v5041_v39  ;;  %v13445_v53 = vadd.f32 %v12955_v10, %v16306_v34  ;;  %v4810_v60 = vsel %vm13421_vm13, 0, %v4808_v46  ;;  %v4811_v12 = vmul.f32 %v13437_v45, %v13437_v45 }
 0x514   :  { %v13451_v19 = vshrl.u32 %v4936_v8, 30  ;;  %v13455_v22 = vadd.f32 %v12955_v10, %v13022_v63  ;;  %v5048_v27 = vshll.u32 %v13439_v47, 16  ;;  %v5065_v21 = vshrl.u32 %v5034_v62, 16 }
 0x515   :  { %v5050_v20 = vshll.u32 %v13441_v38, 16  ;;  %v13459_v43 = vadd.s32 4294967169, %v5149_v32  ;;  %v4812_v61 = vmul.f32 -0.001358992, %v4811_v12  ;;  %v4819_v16 = vmul.f32 -0.00019511016, %v4811_v12 }
 0x516   :  { %v4938_v6 = vshll.u32 %v13451_v19, 30  ;;  %v13462_v41 = vand.u32 3, %v4810_v60  ;;  %vm5052_vm8 = vc.u32 %v5044_v44, %v5048_v27  ;;  %v5054_v31 = vadd.s32 %v5048_v27, %v5044_v44 }
 0x517   :  { %v5064_v51 = vand.u32 65535, %v5034_v62  ;;  %v4813_v1 = vadd.f32 0.041655596, %v4812_v61  ;;  %v4820_v36 = vadd.f32 0.008332121, %v4819_v16  ;;  %v5047_v63 = vmul.u32 %v5043_v55, %v5041_v39 }
 0x518   :  { %v13464_v10 = vsub.s32 %v4935_v58, %v4938_v6  ;;  %v5007_v50 = vshrl.u32 %v16031_v56, %v13063_v42  ;;  %v5053_v26 = vsel %vm5052_vm8, 1, %v16038_v24  ;;  %vm13469_vm9 = vc.u32 %v5054_v31, %v5050_v20 }
 0x519   :  { %v13473_v30 = vmul.u32 %v5065_v21, %v5040_v15  ;;  %v4814_v33 = vmul.f32 %v4813_v1, %v4811_v12  ;;  %v4821_v54 = vmul.f32 %v4820_v36, %v4811_v12  ;;  %vm4829_vm10 = vcmp.eq.s32.totalorder %v13462_v41, 0 }
 0x51a   :  { %vm4940_vm2 = vcmp.lt.s32.totalorder %v13464_v10, 0  ;;  %v4941_v46 = vsub.s32 0, %v13464_v10  ;;  %vm4832_vm6 = vcmp.eq.s32.totalorder %v13462_v41, 2  ;;  %vm16309_vm12 = vcmask 261120  }
 0x51b   :  { %v5586_v42 = vsel %vm16309_vm12, %v13455_v22, 0.0  ;;  %v5066_v58 = vmul.u32 %v5064_v51, %v5040_v15  ;;  %v4815_v37 = vadd.f32 -0.4999988, %v4814_v33  ;;  %v4822_v55 = vadd.f32 -0.16666654, %v4821_v54 }
 0x51c   :  { %vm4828_vm15 = vcmp.lt.s32.totalorder %v13462_v41, 2  ;;  %v4942_v32 = vsel %vm4940_vm2, %v4941_v46, %v13464_v10  ;;  %5587 = vadd.xlane.f32.xlu2 %v5586_v42  ;;  %v5055_v49 = vadd.s32 %v5053_v26, %v5047_v63  ;;  %vm4826_vm3 = vweird.f32 %v12592_v29 }
 0x51d   :  { %v4943_v8 = vclz %v4942_v32  ;;  %v5057_v62 = vsel %vm13469_vm9, 1, %v16038_v24  ;;  %v5068_v44 = vmul.u32 %v5064_v51, %v5041_v39  ;;  %v5070_v34 = vshll.u32 %v13473_v30, 16 }
 0x51e   :  { %v4816_v60 = vmul.f32 %v4815_v37, %v4811_v12  ;;  %v4823_v15 = vmul.f32 %v4822_v55, %v4811_v12  ;;  %v4931_v27 = vadd.s32 %v13369_v57, %v13366_v48  ;;  %v5027_v20 = vsel %vm5023_vm14, %v5007_v50, %v13386_v3  ;;  %vm16310_vm14 = vmmov %vm16309_vm12 }
 0x51f   :  { %v8040_v61 = vadd.s32 4294967294, %v4943_v8  ;;  %v5049_v16 = vshrl.u32 %v13439_v47, 16  ;;  %v5069_v6 = vmul.u32 %v5065_v21, %v5041_v39  ;;  %vm5074_vm1 = vc.u32 %v5066_v58, %v5070_v34 }
 0x520   :  { %v4817_v31 = vadd.f32 1.0, %v4816_v60  ;;  %v4824_v1 = vadd.f32 1.0, %v4823_v15  ;;  %v5059_v36 = vadd.s32 %v5057_v62, %v5055_v49  ;;  %v5075_v51 = vsel %vm5074_vm1, 1, %v16038_v24 }
 0x521   :  { %vm8041_vm4 = vcmp.lt.s32.totalorder %v8040_v61, 0  ;;  %v5028_v12 = vsel %vm5026_vm7, %v13391_v7, 2102212464  ;;  %v5072_v48 = vshll.u32 %v5068_v44, 16  ;;  %v5076_v57 = vadd.s32 %v5070_v34, %v5066_v58 }
 0x522   :  { %v4825_v63 = vmul.f32 %v4824_v1, %v13437_v45  ;;  %v4833_v3 = vxor.u32 2147483648, %v4817_v31  ;;  %v4946_v50 = vsel %vm8041_vm4, 0, %v8040_v61  ;;  %v5541_v39 = vsel %vm16310_vm14, %v13445_v53, 0.0 }
 0x523   :  { %v4947_v47 = vsub.s32 32, %v4946_v50  ;;  %v4948_v21 = vshll.u32 %v13464_v10, %v4946_v50  ;;  %v4951_v26 = vsub.s32 4294967266, %v4946_v50  ;;  %v5077_v59 = vadd.s32 %v5075_v51, %v5069_v6 }
 0x524   :  { %v4830_v33 = vxor.u32 2147483648, %v4825_v63  ;;  %v4834_v54 = vsel %vm4832_vm6, %v4833_v3, %v4825_v63  ;;  %v5051_v7 = vshrl.u32 %v13441_v38, 16  ;;  %v5060_v46 = vadd.s32 %v5059_v36, %v5049_v16  ;;  %5542 = vadd.xlane.f32.xlu2 %v5541_v39 }
 0x525   :  { %v4949_v42 = vshrl.u32 %v4931_v27, %v4947_v47  ;;  %v4952_v45 = vadd.s32 127, %v4951_v26  ;;  %v5071_v58 = vshrl.u32 %v13473_v30, 16  ;;  %vm5078_vm7 = vc.u32 %v5076_v57, %v5072_v48 }
 0x526   :  { %v4831_v37 = vsel %vm4829_vm10, %v4817_v31, %v4830_v33  ;;  %v5029_v10 = vsel %vm5025_vm11, %v13388_v52, %v5028_v12  ;;  %v5073_v55 = vshrl.u32 %v5068_v44, 16  ;;  %v5079_v32 = vsel %vm5078_vm7, 1, %v16038_v24 }
 0x527   :  { %v4835_v38 = vsel %vm4828_vm15, %v4831_v37, %v4834_v54  ;;  %v4950_v49 = vor.u32 %v4949_v42, %v4948_v21  ;;  %v4953_v8 = vshll.u32 %v4952_v45, 23  ;;  %v5081_v62 = vadd.s32 %v5079_v32, %v5077_v59 }
 0x528   :  { %v5155_v34 = vadd.s32 1, %v13459_v43  ;;  %v4836_v30 = vsel %vm4826_vm3, nan, %v4835_v38  ;;  %v5061_v60 = vadd.s32 %v5060_v46, %v5051_v7  ;;  %v5080_v15 = vadd.s32 %v5076_v57, %v5072_v48 }
 0x529   :  { %8076 = vmatmul.msk.f32.gmra.mxu2 %vm5311_vm0, %v4836_v30  ;;  %v4954_v27 = vor.u32 4788187, %v4953_v8  ;;  %v4957_v52 = vcvt.s32.f32 %v4950_v49  ;;  %v5030_v44 = vsel %vm5024_vm5, %v5027_v20, %v5029_v10  ;;  %v5082_v61 = vadd.s32 %v5081_v62, %v5071_v58 }
 0x52a   :  { %vm5156_vm11 = vcmp.gt.s32.totalorder %v5155_v34, 0  ;;  %v5084_v6 = vmul.u32 %v13399_v2, %v5030_v44  ;;  %vm5086_vm13 = vc.u32 %v5061_v60, %v5080_v15  ;;  %vm4839_vm8 = vcmp.lt.s32.totalorder %v16300_v11, 0 }
 0x52b   :  { %v4955_v41 = vand.u32 2147483647, %v4954_v27  ;;  %v5083_v16 = vadd.s32 %v5082_v61, %v5073_v55  ;;  %v5157_v29 = vsel %vm5156_vm11, %v5155_v34, 0  ;;  %vm13524_vm9 = vcmp.le.f32.partialorder %v4837_v18, 0.7853982 }
 0x52c   :  { %v4961_v12 = vsub.s32 4, %v13451_v19  ;;  %v5159_v48 = vand.u32 31, %v5157_v29  ;;  %v13540_v7 = vshrl.u32 %v5157_v29, 5  ;;  %v16313_v45 = vmov 920167782  }
 0x52d   :  { %v4958_v43 = vmul.f32 %v4957_v52, %v4955_v41  ;;  %v5087_v31 = vadd.s32 1, %v5083_v16  ;;  %vm4980_vm3 = vweird.f32 %v16300_v11  ;;  %vm4993_vm7 = vcmp.lt.s32.totalorder %v12793_v4, 0 }
 0x52e   :  { %v4962_v18 = vsel %vm4839_vm8, %v4961_v12, %v13451_v19  ;;  %v13535_v47 = vsub.s32 32, %v5159_v48  ;;  %v5174_v58 = vshll.u32 %v16313_v45, %v5159_v48  ;;  %v16314_v19 = vmov 1326507024  }
 0x52f   :  { %v4959_v17 = vxor.u32 2147483648, %v4958_v43  ;;  %v5088_v20 = vsel %vm5086_vm13, %v5087_v31, %v5083_v16  ;;  %v4964_v33 = vsel %vm13524_vm9, 0, %v4962_v18  ;;  %v5171_v30 = vshll.u32 %v15958_v0, %v5159_v48 }
 0x530   :  { %v5089_v36 = vadd.s32 %v5088_v20, %v5084_v6  ;;  %v5175_v37 = vshrl.u32 %v16314_v19, %v13535_v47  ;;  %v4981_v38 = vand.u32 3, %v4964_v33  ;;  %v5172_v27 = vshrl.u32 %v16313_v45, %v13535_v47 }
 0x531   :  { %v4960_v51 = vsel %vm4839_vm8, %v4959_v17, %v4958_v43  ;;  %vm5180_vm2 = vcmp.lt.s32.totalorder %v13540_v7, 4  ;;  %v5085_v16 = vadd.s32 %v5080_v15, %v5061_v60  ;;  %v5145_v6 = vand.u32 2147483647, %v13359_v25 }
 0x532   :  { %v4963_v2 = vsel %vm13524_vm9, %v16300_v11, %v4960_v51  ;;  %v5090_v57 = vadd.s32 536870912, %v5089_v36  ;;  %v5176_v52 = vor.u32 %v5175_v37, %v5174_v58  ;;  %vm4982_vm10 = vcmp.lt.s32.totalorder %v4981_v38, 2 }
 0x533   :  { %v4965_v63 = vmul.f32 %v4963_v2, %v4963_v2  ;;  %vm4986_vm6 = vcmp.eq.s32.totalorder %v4981_v38, 2  ;;  %v5162_v43 = vshll.u32 %v16031_v56, %v5159_v48  ;;  %v5163_v1 = vshrl.u32 %v16033_v23, %v13535_v47 }
 0x534   :  { %v13532_v3 = vshrl.u32 %v5090_v57, 30  ;;  %vm4983_vm15 = vcmp.eq.s32.totalorder %v4981_v38, 0  ;;  %v5165_v20 = vshll.u32 %v16033_v23, %v5159_v48  ;;  %v5173_v57 = vor.u32 %v5172_v27, %v5171_v30 }
 0x535   :  { %v4966_v50 = vmul.f32 -0.001358992, %v4965_v63  ;;  %v4973_v39 = vmul.f32 -0.00019511016, %v4965_v63  ;;  %v5168_v23 = vshll.u32 %v16034_v40, %v5159_v48  ;;  %v5169_v33 = vshrl.u32 %v15958_v0, %v13535_v47  ;;  %v5573_v0 = vpop.xlane.xlu1 %5572 }
 0x536   :  { %v5092_v21 = vshll.u32 %v13532_v3, 30  ;;  %v5190_v11 = vsel %vm5180_vm2, %v5176_v52, 1326507024  ;;  %vm5177_vm1 = vcmp.lt.s32.totalorder %v13540_v7, 1  ;;  %vm5179_vm4 = vcmp.lt.s32.totalorder %v13540_v7, 3 }
 0x537   :  { %v4967_v26 = vadd.f32 0.041655596, %v4966_v50  ;;  %v4974_v59 = vadd.f32 0.008332121, %v4973_v39  ;;  %v13559_v39 = vor.u32 %v5163_v1, %v5162_v43  ;;  %v13572_v48 = vor.u32 %v5169_v33, %v5168_v23 }
 0x538   :  { %v5093_v54 = vsub.s32 %v5089_v36, %v5092_v21  ;;  %v5166_v36 = vshrl.u32 %v16034_v40, %v13535_v47  ;;  %v5115_v40 = vsub.s32 4, %v13532_v3  ;;  %v5186_v45 = vsel %vm5180_vm2, %v5173_v57, 920167782 }
 0x539   :  { %v4968_v46 = vmul.f32 %v4967_v26, %v4965_v63  ;;  %v4975_v42 = vmul.f32 %v4974_v59, %v4965_v63  ;;  %vm5178_vm14 = vcmp.lt.s32.totalorder %v13540_v7, 2  ;;  %v5187_v27 = vsel %vm5179_vm4, %v13572_v48, %v5186_v45  ;;  %v16321_v45 = vld [vmem:[#allocation47_spill] sm:$0xff] }
 0x53a   :  { %vm5094_vm5 = vcmp.lt.s32.totalorder %v5093_v54, 0  ;;  %v5095_v10 = vsub.s32 0, %v5093_v54  ;;  %v13563_v59 = vor.u32 %v5166_v36, %v5165_v20  ;;  %vm13598_vm11 = vcmp.le.f32.partialorder %v4991_v28, 0.7853982 }
 0x53b   :  { %v4969_v55 = vadd.f32 -0.4999988, %v4968_v46  ;;  %v4976_v32 = vadd.f32 -0.16666654, %v4975_v42  ;;  %vm16319_vm13 = vcmask 261120   ;;  %v5161_v33 = vshrl.u32 %v16031_v56, %v13535_v47 }
 0x53c   :  { %v5096_v49 = vsel %vm5094_vm5, %v5095_v10, %v5093_v54  ;;  %v5635_v10 = vmul.f32 %v5573_v0, %v12936_v13  ;;  %vm16322_vm8 = vmmov %vm16319_vm13 }
 0x53d   :  { %v4970_v8 = vmul.f32 %v4969_v55, %v4965_v63  ;;  %v4977_v62 = vmul.f32 %v4976_v32, %v4965_v63  ;;  %v5097_v34 = vclz %v5096_v49  ;;  %v5152_v63 = vand.u32 8388607, %v5145_v6  ;;  %v5576_v55 = vpop.xlane.xlu2 %5575  ;;  %vm16323_vm5 = vmmov %vm16322_vm8 }
 0x53e   :  { %v5185_v32 = vsel %vm5177_vm1, %v13559_v39, %v13563_v59  ;;  %v5636_v38 = vmul.f32 %v5576_v55, %v12936_v13  ;;  %v5191_v49 = vsel %vm5179_vm4, %v5173_v57, %v5190_v11  ;;  %v16320_v57 = vld [vmem:[#allocation86_spill] sm:$0xff] }
 0x53f   :  { %v4971_v44 = vadd.f32 1.0, %v4970_v8  ;;  %v4978_v61 = vadd.f32 1.0, %v4977_v62  ;;  %v8043_v41 = vadd.s32 4294967294, %v5097_v34  ;;  %v5153_v58 = vor.u32 8388608, %v5152_v63  ;;  %v16315_v34 = vld [vmem:[#allocation32_spill] sm:$0xff]  ;;  %v5579_v63 = vpop.xlane.xlu1 %5578 }
 0x540   :  { %v5116_v62 = vsel %vm4993_vm7, %v5115_v40, %v13532_v3  ;;  %v13591_v30 = vsub.f32 %v16315_v34, %v5635_v10  ;;  %v5189_v3 = vsel %vm5177_vm1, %v13563_v59, %v13572_v48 }
 0x541   :  { %v4979_v31 = vmul.f32 %v4978_v61, %v4963_v2  ;;  %v4987_v29 = vxor.u32 2147483648, %v4971_v44  ;;  %vm8044_vm12 = vcmp.lt.s32.totalorder %v8043_v41, 0  ;;  %v5192_v28 = vsel %vm5178_vm14, %v5189_v3, %v5191_v49 }
 0x542   :  { %v5100_v17 = vsel %vm8044_vm12, 0, %v8043_v41  ;;  %v5188_v41 = vsel %vm5178_vm14, %v5185_v32, %v5187_v27  ;;  %v5699_v43 = vmul.f32 %v13591_v30, %v13591_v30  ;;  %v5197_v20 = vshrl.u32 %v5192_v28, 16 }
 0x543   :  { %v4984_v51 = vxor.u32 2147483648, %v4979_v31  ;;  %v4988_v12 = vsel %vm4986_vm6, %v4987_v29, %v4979_v31  ;;  %v5101_v60 = vsub.s32 32, %v5100_v17  ;;  %v5102_v15 = vshll.u32 %v5093_v54, %v5100_v17 }
 0x544   :  { %v5105_v2 = vsub.s32 4294967266, %v5100_v17  ;;  %v13615_v31 = vshll.u32 %v5153_v58, 8  ;;  %v5118_v29 = vsel %vm13598_vm11, 0, %v5116_v62  ;;  %v5196_v17 = vand.u32 65535, %v5192_v28 }
 0x545   :  { %v4985_v18 = vsel %vm4983_vm15, %v4971_v44, %v4984_v51  ;;  %v5103_v50 = vshrl.u32 %v5085_v16, %v5101_v60  ;;  %v16318_v44 = vld [vmem:[#allocation42_spill] sm:$0xff]  ;;  %v5763_v51 = vsel %vm16319_vm13, %v5699_v43, 0.0 }
 0x546   :  { %v4989_v21 = vsel %vm4982_vm10, %v4985_v18, %v4988_v12  ;;  %v5106_v26 = vadd.s32 127, %v5105_v2  ;;  %v13603_v61 = vsub.f32 %v16318_v44, %v5636_v38  ;;  %v5194_v12 = vand.u32 65535, %v13615_v31  ;;  %5764 = vadd.xlane.f32.xlu2 %v5763_v51 }
 0x547   :  { %v4990_v54 = vsel %vm4980_vm3, nan, %v4989_v21  ;;  %v5104_v46 = vor.u32 %v5103_v50, %v5102_v15  ;;  %v5195_v60 = vshrl.u32 %v13615_v31, 16  ;;  %v13627_v15 = vld [vmem:[%s15714_s9] ss:$0 sm:$0xff]  ;;  %v5218_v18 = vand.u32 65535, %v5188_v41 }
 0x548   :  { %8077 = vmatmul.msk.f32.gmra.mxu2 %vm5311_vm0, %v4990_v54  ;;  %v5107_v42 = vshll.u32 %v5106_v26, 23  ;;  %v5700_v1 = vmul.f32 %v13603_v61, %v13603_v61  ;;  %v13631_v2 = vadd.f32 %v13627_v15, %v16320_v57  ;;  %v5219_v50 = vshrl.u32 %v5188_v41, 16 }
 0x549   :  { %v5111_v37 = vcvt.s32.f32 %v5104_v46  ;;  %v13635_v21 = vand.u32 3, %v5118_v29  ;;  %v5637_v26 = vmul.f32 %v5579_v63, %v12936_v13  ;;  %v5198_v54 = vmul.u32 %v5196_v17, %v5194_v12 }
 0x54a   :  { %v5108_v19 = vor.u32 4788187, %v5107_v42  ;;  %v5199_v46 = vmul.u32 %v5197_v20, %v5194_v12  ;;  %v5200_v42 = vmul.u32 %v5196_v17, %v5195_v60  ;;  %v5766_v58 = vsel %vm16322_vm8, %v5700_v1, 0.0 }
 0x54b   :  { %v13644_v0 = vsub.f32 %v16321_v45, %v5637_v26  ;;  %v5220_v32 = vmul.u32 %v5218_v18, %v5194_v12  ;;  %v5222_v49 = vmul.u32 %v5218_v18, %v5195_v60  ;;  %v5182_v1 = vsel %vm5180_vm2, %v13572_v48, 2102212464  ;;  %vm16324_vm2 = vmmov %vm16323_vm5 }
 0x54c   :  { %v5109_v8 = vand.u32 2147483647, %v5108_v19  ;;  %v5221_v19 = vmul.u32 %v5219_v50, %v5194_v12  ;;  %v5202_v10 = vshll.u32 %v5199_v46, 16  ;;  %v5204_v55 = vshll.u32 %v5200_v42, 16  ;;  %vm16326_vm13 = vmmov %vm16324_vm2 }
 0x54d   :  { %v5701_v47 = vmul.f32 %v13644_v0, %v13644_v0  ;;  %v5226_v43 = vshll.u32 %v5222_v49, 16  ;;  %v5205_v63 = vshrl.u32 %v5200_v42, 16  ;;  %v5544_v45 = vsel %vm16324_vm2, %v13631_v2, 0.0 }
 0x54e   :  { %v5112_v16 = vmul.f32 %v5111_v37, %v5109_v8  ;;  %v5201_v37 = vmul.u32 %v5197_v20, %v5195_v60  ;;  %v5203_v8 = vshrl.u32 %v5199_v46, 16  ;;  %vm5206_vm9 = vc.u32 %v5198_v54, %v5202_v10  ;;  %5767 = vadd.xlane.f32.xlu2 %v5766_v58 }
 0x54f   :  { %v5208_v62 = vadd.s32 %v5202_v10, %v5198_v54  ;;  %v5224_v34 = vshll.u32 %v5221_v19, 16  ;;  %v5769_v44 = vsel %vm16323_vm5, %v5701_v47, 0.0  ;;  %v5207_v41 = vsel %vm5206_vm9, 1, %v16038_v24  ;;  %vm16329_vm5 = vmmov %vm16324_vm2 }
 0x550   :  { %v5113_v36 = vxor.u32 2147483648, %v5112_v16  ;;  %5770 = vadd.xlane.f32.xlu0 %v5769_v44  ;;  %v5209_v3 = vadd.s32 %v5207_v41, %v5201_v37  ;;  %v5181_v20 = vsel %vm5177_vm1, %v5161_v33, %v13559_v39  ;;  %v5183_v54 = vsel %vm5179_vm4, %v13563_v59, %v5182_v1 }
 0x551   :  { %vm5210_vm10 = vc.u32 %v5208_v62, %v5204_v55  ;;  %vm5228_vm6 = vc.u32 %v5220_v32, %v5224_v34  ;;  %v5230_v51 = vadd.s32 %v5224_v34, %v5220_v32  ;;  %v5227_v33 = vshrl.u32 %v5222_v49, 16 }
 0x552   :  { %v5114_v23 = vsel %vm4993_vm7, %v5113_v36, %v5112_v16  ;;  %v5223_v16 = vmul.u32 %v5219_v50, %v5195_v60  ;;  %v5211_v17 = vsel %vm5210_vm10, 1, %v16038_v24  ;;  %v5229_v60 = vsel %vm5228_vm6, 1, %v16038_v24  ;;  %vm16331_vm10 = vmmov %vm16324_vm2 }
 0x553   :  { %v5117_v11 = vsel %vm13598_vm11, %v12793_v4, %v5114_v23  ;;  %v5213_v36 = vadd.s32 %v5211_v17, %v5209_v3  ;;  %v5225_v50 = vshrl.u32 %v5221_v19, 16  ;;  %vm5232_vm12 = vc.u32 %v5230_v51, %v5226_v43  ;;  %v5531_v3 = vpop.xlane.xlu1 %5530  ;;  %vm16332_vm6 = vmmov %vm16324_vm2 }
 0x554   :  { %v5119_v40 = vmul.f32 %v5117_v11, %v5117_v11  ;;  %v5231_v23 = vadd.s32 %v5229_v60, %v5223_v16  ;;  %v5233_v39 = vsel %vm5232_vm12, 1, %v16038_v24  ;;  %v5234_v10 = vadd.s32 %v5230_v51, %v5226_v43  ;;  %v16325_v51 = vld [vmem:[#allocation39_spill] sm:$0xff] }
 0x555   :  { %v5214_v18 = vadd.s32 %v5213_v36, %v5203_v8  ;;  %vm5140_vm15 = vcmp.eq.s32.totalorder %v13635_v21, 2  ;;  %vm5136_vm3 = vcmp.lt.s32.totalorder %v13635_v21, 2  ;;  %vm5137_vm1 = vcmp.eq.s32.totalorder %v13635_v21, 0  ;;  %v13673_v21 = vpop.f32.mrf.mxu2 }
 0x556   :  { %v5120_v38 = vmul.f32 -0.001358992, %v5119_v40  ;;  %v5127_v56 = vmul.f32 -0.00019511016, %v5119_v40  ;;  %v5235_v46 = vadd.s32 %v5233_v39, %v5231_v23  ;;  %vm5134_vm7 = vweird.f32 %v12793_v4 }
 0x557   :  { %v5215_v37 = vadd.s32 %v5214_v18, %v5205_v63  ;;  %v5621_v43 = vmul.f32 %v5531_v3, %v12936_v13  ;;  %vm5147_vm8 = vcmp.lt.s32.totalorder %v13359_v25, 0  ;;  %vm13690_vm9 = vcmp.le.f32.partialorder %v5145_v6, 0.7853982  ;;  %v16330_v3 = vld [vmem:[#allocation19_spill] sm:$0xff] }
 0x558   :  { %v5121_v27 = vadd.f32 0.041655596, %v5120_v38  ;;  %v5128_v52 = vadd.f32 0.008332121, %v5127_v56  ;;  %v5236_v19 = vadd.s32 %v5235_v46, %v5225_v50  ;;  %5545 = vadd.xlane.f32.xlu0 %v5544_v45 }
 0x559   :  { %vm5240_vm4 = vc.u32 %v5215_v37, %v5234_v10  ;;  %v5570_v45 = vpop.xlane.xlu2 %5569 }
 0x55a   :  { %v5122_v28 = vmul.f32 %v5121_v27, %v5119_v40  ;;  %v5129_v29 = vmul.f32 %v5128_v52, %v5119_v40  ;;  %v5237_v24 = vadd.s32 %v5236_v19, %v5227_v33 }
 0x55b   :  { %v141_v50 = vpop.xlane.xlu1 %140 }
 0x55c   :  { %v5123_v12 = vadd.f32 -0.4999988, %v5122_v28  ;;  %v5130_v57 = vadd.f32 -0.16666654, %v5129_v29  ;;  %v5241_v47 = vadd.s32 1, %v5237_v24  ;;  %v5239_v29 = vadd.s32 %v5234_v10, %v5215_v37 }
 0x55d   :  { %v13676_v28 = vpop.f32.mrf.mxu2  ;;  %v5634_v10 = vmul.f32 %v5570_v45, %v12936_v13 }
 0x55e   :  { %v5124_v26 = vmul.f32 %v5123_v12, %v5119_v40  ;;  %v5131_v48 = vmul.f32 %v5130_v57, %v5119_v40  ;;  %v5184_v40 = vsel %vm5178_vm14, %v5181_v20, %v5183_v54  ;;  %v5242_v8 = vsel %vm5240_vm4, %v5241_v47, %v5237_v24  ;;  %vm16335_vm4 = vmmov %vm16329_vm5 }
 0x55f   :  { %v5238_v56 = vmul.u32 %v13615_v31, %v5184_v40  ;;  %v13679_v12 = vsub.f32 %v16325_v51, %v5621_v43  ;;  %v13703_v6 = vsub.f32 %v13235_v35, %v5634_v10  ;;  %v13732_v45 = vadd.f32 %v13627_v15, %v13676_v28 }
 0x560   :  { %v5125_v42 = vadd.f32 1.0, %v5124_v26  ;;  %v5132_v58 = vadd.f32 1.0, %v5131_v48 }
 0x561   :  { %v5243_v34 = vadd.s32 %v5242_v8, %v5238_v56  ;;  %v5685_v23 = vmul.f32 %v13679_v12, %v13679_v12  ;;  %v5528_v8 = vpop.xlane.xlu2 %5527 }
 0x562   :  { %v5133_v55 = vmul.f32 %v5132_v58, %v5117_v11  ;;  %v5141_v59 = vxor.u32 2147483648, %v5125_v42 }
 0x563   :  { %v5244_v11 = vadd.s32 536870912, %v5243_v34  ;;  %v5721_v39 = vsel %vm16326_vm13, %v5685_v23, 0.0  ;;  %v13695_v40 = vpop.xlane.xlu1 %5539  ;;  %v142_v23 = vmul.f32 %v141_v50, %v12936_v13  ;;  %vm16343_vm13 = vmmov %vm16335_vm4 }
 0x564   :  { %v5138_v32 = vxor.u32 2147483648, %v5133_v55  ;;  %v5142_v38 = vsel %vm5140_vm15, %v5141_v59, %v5133_v55  ;;  %5722 = vadd.xlane.f32.xlu0 %v5721_v39  ;;  %vm16334_vm15 = vmmov %vm16329_vm5 }
 0x565   :  { %v5245_v27 = vshrl.u32 %v5244_v11, 30  ;;  %v5503_v54 = vpop.f32.mrf.mxu2  ;;  %v5620_v11 = vmul.f32 %v5528_v8, %v12936_v13  ;;  %v13739_v10 = vadd.f32 1e-05, %v142_v23  ;;  %v6484_v23 = vld [vmem:[%s15717_s12 + $0x18] sm:$0xff] }
 0x566   :  { %v5139_v49 = vsel %vm5137_vm1, %v5125_v42, %v5138_v32  ;;  %v13685_v46 = vadd.f32 %v13627_v15, %v5503_v54  ;;  %vm5288_vm1 = vweird.f32 %v13359_v25  ;;  %6597 = vmatpush.msra.mxu1 %v6484_v23  ;;  %8120 = vmatpush.msra.mxu3 %v6484_v23 }
 0x567   :  { %v5143_v7 = vsel %vm5136_vm3, %v5139_v49, %v5142_v38  ;;  %v5246_v52 = vshll.u32 %v5245_v27, 30  ;;  %v5269_v59 = vsub.s32 4, %v5245_v27 }
 0x568   :  { %v5144_v62 = vsel %vm5134_vm7, nan, %v5143_v7  ;;  %v5601_v19 = vsel %vm16329_vm5, %v13685_v46, 0.0  ;;  %vm16336_vm7 = vmmov %vm16335_vm4 }
 0x569   :  { %8078 = vmatmul.msk.f32.gmra.mxu2 %vm5311_vm0, %v5144_v62  ;;  %v5247_v44 = vsub.s32 %v5243_v34, %v5246_v52  ;;  %v5270_v47 = vsel %vm5147_vm8, %v5269_v59, %v5245_v27  ;;  %v5698_v62 = vmul.f32 %v13703_v6, %v13703_v6  ;;  %vm16347_vm5 = vmmov %vm16335_vm4 }
 0x56a   :  { %v5272_v52 = vsel %vm13690_vm9, 0, %v5270_v47 }
 0x56b   :  { %vm5248_vm14 = vcmp.lt.s32.totalorder %v5247_v44, 0  ;;  %v5249_v41 = vsub.s32 0, %v5247_v44  ;;  %v5717_v34 = vpop.xlane.xlu1 %5716  ;;  %v5760_v27 = vsel %vm16331_vm10, %v5698_v62, 0.0 }
 0x56c   :  { %5602 = vadd.xlane.f32.xlu0 %v5601_v19  ;;  %v5811_v35 = vmul.f32 %v5717_v34, %v12936_v13  ;;  %5761 = vadd.xlane.f32.xlu1 %v5760_v27  ;;  %v16340_v27 = vld [vmem:[#allocation101_spill] sm:$0xff] }
 0x56d   :  { %v5250_v31 = vsel %vm5248_vm14, %v5249_v41, %v5247_v44  ;;  %vm16338_vm14 = vmmov %vm16335_vm4 }
 0x56e   :  { %v5251_v16 = vclz %v5250_v31  ;;  %v5582_v31 = vpop.xlane.xlu0 %5581 }
 0x570   :  { %v8046_v4 = vadd.s32 4294967294, %v5251_v16  ;;  %v13712_v16 = vsub.f32 %v16330_v3, %v5620_v11 }
 0x572   :  { %vm8047_vm11 = vcmp.lt.s32.totalorder %v8046_v4, 0 }
 0x573   :  { %v5254_v1 = vsel %vm8047_vm11, 0, %v8046_v4  ;;  %vm16339_vm11 = vmmov %vm16335_vm4 }
 0x574   :  { %v5255_v17 = vsub.s32 32, %v5254_v1  ;;  %v5256_v20 = vshll.u32 %v5247_v44, %v5254_v1  ;;  %v5259_v36 = vsub.s32 4294967266, %v5254_v1  ;;  %v5289_v1 = vand.u32 3, %v5272_v52  ;;  %v16337_v52 = vld [vmem:[#allocation94_spill] sm:$0xff] }
 0x576   :  { %v5257_v57 = vshrl.u32 %v5239_v29, %v5255_v17  ;;  %v5260_v63 = vadd.s32 127, %v5259_v36  ;;  %v13715_v29 = vadd.f32 1e-05, %v5811_v35  ;;  %v5684_v17 = vmul.f32 %v13712_v16, %v13712_v16 }
 0x577   :  { %vm5294_vm12 = vcmp.eq.s32.totalorder %v5289_v1, 2  ;;  %vm5291_vm2 = vcmp.eq.s32.totalorder %v5289_v1, 0  ;;  %vm5290_vm3 = vcmp.lt.s32.totalorder %v5289_v1, 2 }
 0x578   :  { %v5258_v60 = vor.u32 %v5257_v57, %v5256_v20  ;;  %v5261_v18 = vshll.u32 %v5260_v63, 23  ;;  %v5638_v20 = vmul.f32 %v5582_v31, %v12936_v13  ;;  %8146 = vrsqrt.f32 %v13715_v29 }
 0x579   :  { %v13723_v57 = vadd.f32 %v13627_v15, %v13673_v21  ;;  %v5718_v63 = vsel %vm16332_vm6, %v5684_v17, 0.0  ;;  %8148 = vrsqrt.f32 %v13739_v10  ;;  %vm5881_vm10 = vweird.f32 %v13715_v29 }
 0x57a   :  { %v5262_v26 = vor.u32 4788187, %v5261_v18  ;;  %v5265_v48 = vcvt.s32.f32 %v5258_v60  ;;  %5719 = vadd.xlane.f32.xlu2 %v5718_v63 }
 0x57c   :  { %v5263_v33 = vand.u32 2147483647, %v5262_v26  ;;  %v5585_v26 = vpop.xlane.xlu2 %5584 }
 0x57d   :  { %v5639_v21 = vmul.f32 %v5585_v26, %v12936_v13 }
 0x57e   :  { %v5266_v42 = vmul.f32 %v5265_v48, %v5263_v33  ;;  %v16333_v48 = vld [vmem:[#allocation7_spill] sm:$0xff]  ;;  %v13737_v58 = vpop.eup %8146 }
 0x57f   :  { %v13728_v54 = vsub.f32 %v16333_v48, %v5638_v20  ;;  %v5876_v28 = vmul.f32 %v13737_v58, %v13715_v29  ;;  %v8149_v34 = vpop.eup %8148  ;;  %v16342_v20 = vld [vmem:[#allocation41_spill] sm:$0xff] }
 0x580   :  { %v5267_v37 = vxor.u32 2147483648, %v5266_v42  ;;  %v145_v3 = vmul.f32 %v8149_v34, %v13739_v10  ;;  %v13814_v29 = vld [vmem:[%s15715_s10] ss:$0 sm:$0xff] }
 0x582   :  { %v5268_v55 = vsel %vm5147_vm8, %v5267_v37, %v5266_v42  ;;  %v5595_v42 = vsel %vm16334_vm15, %v13723_v57, 0.0  ;;  %vm5882_vm8 = vweird.f32 %v13737_v58 }
 0x583   :  { %v5271_v24 = vsel %vm13690_vm9, %v13359_v25, %v5268_v55  ;;  %5596 = vadd.xlane.f32.xlu1 %v5595_v42  ;;  %v5534_v55 = vpop.xlane.xlu0 %5533  ;;  %vm16344_vm9 = vmmov %vm16335_vm4 }
 0x584   :  { %v5273_v32 = vmul.f32 %v5271_v24, %v5271_v24  ;;  %vm5883_vm6 = vmor %vm5881_vm10, %vm5882_vm8 }
 0x586   :  { %v5274_v38 = vmul.f32 -0.001358992, %v5273_v32  ;;  %v5281_v56 = vmul.f32 -0.00019511016, %v5273_v32 }
 0x588   :  { %v5275_v49 = vadd.f32 0.041655596, %v5274_v38  ;;  %v5282_v7 = vadd.f32 0.008332121, %v5281_v56  ;;  %v5702_v38 = vmul.f32 %v13728_v54, %v13728_v54 }
 0x58a   :  { %v5276_v44 = vmul.f32 %v5275_v49, %v5273_v32  ;;  %v5283_v41 = vmul.f32 %v5282_v7, %v5273_v32  ;;  %v5877_v49 = vmul.f32 %v13737_v58, %v5876_v28  ;;  %v5772_v7 = vsel %vm16336_vm7, %v5702_v38, 0.0 }
 0x58b   :  { %5773 = vadd.xlane.f32.xlu1 %v5772_v7  ;;  %v5537_v31 = vpop.xlane.xlu0 %5536  ;;  %v5506_v7 = vpop.f32.mrf.mxu2 }
 0x58c   :  { %v5277_v4 = vadd.f32 -0.4999988, %v5276_v44  ;;  %v5284_v43 = vadd.f32 -0.16666654, %v5283_v41  ;;  %v5878_v11 = vmul.f32 0.5, %v5877_v49  ;;  %v13765_v44 = vadd.f32 %v13627_v15, %v16337_v52  ;;  %v16351_v52 = vld [vmem:[#allocation103_spill] sm:$0xff] }
 0x58d   :  { %v5622_v41 = vmul.f32 %v5534_v55, %v12936_v13  ;;  %v5623_v63 = vmul.f32 %v5537_v31, %v12936_v13 }
 0x58e   :  { %v5278_v36 = vmul.f32 %v5277_v4, %v5273_v32  ;;  %v5285_v51 = vmul.f32 %v5284_v43, %v5273_v32  ;;  %v5598_v32 = vsel %vm16335_vm4, %v13732_v45, 0.0  ;;  %v13773_v4 = vadd.f32 %v13627_v15, %v16340_v27  ;;  %v16341_v43 = vld [vmem:[#allocation102_spill] sm:$0xff] }
 0x58f   :  { %v5588_v47 = vpop.xlane.xlu2 %5587  ;;  %5599 = vadd.xlane.f32.xlu2 %v5598_v32  ;;  %v13777_v1 = vadd.f32 %v13627_v15, %v16341_v43  ;;  %v5879_v17 = vsub.f32 1.5, %v5878_v11  ;;  %v8136_v11 = vld [vmem:[%s15711_s6] ss:$0 sm:$0xff] }
 0x590   :  { %v5279_v60 = vadd.f32 1.0, %v5278_v36  ;;  %v5286_v18 = vadd.f32 1.0, %v5285_v51  ;;  %v5640_v25 = vmul.f32 %v5588_v47, %v12936_v13  ;;  %v13780_v36 = vsub.f32 %v16342_v20, %v5622_v41 }
 0x591   :  { %v5624_v51 = vmul.f32 %v13695_v40, %v12936_v13  ;;  %v5880_v26 = vmul.f32 %v13737_v58, %v5879_v17  ;;  %v5550_v48 = vsel %vm16344_vm9, %v13773_v4, 0.0  ;;  %v16345_v40 = vld [vmem:[#allocation104_spill] sm:$0xff]  ;;  %v5553_v42 = vsel %vm16347_vm5, %v13777_v1, 0.0  ;;  %v16352_v17 = vld [vmem:[#allocation46_spill] sm:$0xff] }
 0x592   :  { %v5287_v39 = vmul.f32 %v5286_v18, %v5271_v24  ;;  %v5295_v33 = vxor.u32 2147483648, %v5279_v60  ;;  %v13745_v24 = vsub.f32 %v13292_v9, %v5639_v21  ;;  %v13756_v9 = vsub.f32 %v13455_v22, %v5640_v25  ;;  %v13823_v25 = vld [vmem:[%s15716_s11] ss:$0 sm:$0xff] }
 0x593   :  { %v146_v18 = vmul.f32 %v8149_v34, %v145_v3 }
 0x594   :  { %v5292_v50 = vxor.u32 2147483648, %v5287_v39  ;;  %v5296_v37 = vsel %vm5294_vm12, %v5295_v33, %v5287_v39  ;;  %v5703_v8 = vmul.f32 %v13745_v24, %v13745_v24  ;;  %v5704_v62 = vmul.f32 %v13756_v9, %v13756_v9  ;;  %v16346_v33 = vld [vmem:[#allocation61_spill] sm:$0xff]  ;;  %vm16348_vm12 = vmmov %vm16335_vm4 }
 0x595   :  { %v13795_v39 = vsub.f32 %v16345_v40, %v5624_v51  ;;  %v13798_v21 = vsub.f32 %v16346_v33, %v5623_v63  ;;  %v16354_v33 = vld [vmem:[#allocation64_spill] sm:$0xff] }
 0x596   :  { %v5293_v19 = vsel %vm5291_vm2, %v5279_v60, %v5292_v50  ;;  %v5775_v22 = vsel %vm16338_vm14, %v5703_v8, 0.0  ;;  %v5778_v35 = vsel %vm16339_vm11, %v5704_v62, 0.0  ;;  %v5547_v60 = vsel %vm16343_vm13, %v13765_v44, 0.0  ;;  %vm16349_vm2 = vmmov %vm16335_vm4 }
 0x597   :  { %v5297_v59 = vsel %vm5290_vm3, %v5293_v19, %v5296_v37  ;;  %5776 = vadd.xlane.f32.xlu2 %v5775_v22  ;;  %5779 = vadd.xlane.f32.xlu0 %v5778_v35  ;;  %v5686_v50 = vmul.f32 %v13780_v36, %v13780_v36  ;;  %v147_v37 = vmul.f32 0.5, %v146_v18  ;;  %v5884_v19 = vsel %vm5883_vm6, %v13737_v58, %v5880_v26  ;;  %vm16350_vm15 = vmmov %vm16349_vm2  ;;  %v8137_v35 = vld [vmem:[%s15712_s7] ss:$0 sm:$0xff] }
 0x598   :  { %v5298_v56 = vsel %vm5288_vm1, nan, %v5297_v59  ;;  %5548 = vadd.xlane.f32.xlu1 %v5547_v60  ;;  %v5688_v28 = vmul.f32 %v13795_v39, %v13795_v39  ;;  %v5687_v59 = vmul.f32 %v13798_v21, %v13798_v21  ;;  %v6195_v38 = vmul.f32 %v5884_v19, %v13219_v14  ;;  %v5591_v14 = vpop.xlane.xlu0 %5590  ;;  %vm16353_vm7 = vmmov %vm16349_vm2 }
 0x599   :  { %8079 = vmatmul.msk.f32.gmra.mxu2 %vm5311_vm0, %v5298_v56  ;;  %v5724_v55 = vsel %vm16348_vm12, %v5686_v50, 0.0  ;;  %v148_v32 = vsub.f32 1.5, %v147_v37  ;;  %vm150_vm3 = vweird.f32 %v13739_v10  ;;  %vm151_vm1 = vweird.f32 %v8149_v34  ;;  %v6483_v50 = vld [vmem:[%s15717_s12 + $0x10] sm:$0xff]  ;;  %v6482_v37 = vld [vmem:[%s15717_s12 + $0x8] sm:$0xff]  ;;  %vm16355_vm14 = vmmov %vm16349_vm2 }
 0x59a   :  { %v5730_v56 = vsel %vm16349_vm2, %v5688_v28, 0.0  ;;  %v5727_v58 = vsel %vm16350_vm15, %v5687_v59, 0.0  ;;  %v6230_v49 = vmul.f32 %v13814_v29, %v6195_v38  ;;  %vm152_vm4 = vmor %vm150_vm3, %vm151_vm1  ;;  %v5641_v3 = vmul.f32 %v5591_v14, %v12936_v13  ;;  %6598 = vmatpush.msra.mxu1 %v6483_v50  ;;  %8121 = vmatpush.msra.mxu3 %v6483_v50  ;;  %v16359_v14 = vld [vmem:[#allocation20_spill] sm:$0xff] }
 0x59b   :  { %v149_v47 = vmul.f32 %v8149_v34, %v148_v32  ;;  %vm16356_vm11 = vmmov %vm16349_vm2  ;;  %v6481_v32 = vld [vmem:[%s15717_s12] sm:$0xff] }
 0x59c   :  { %v6265_v62 = vadd.f32 %v13823_v25, %v6230_v49  ;;  %v13839_v20 = vsub.f32 %v16352_v17, %v5641_v3  ;;  %6599 = vmatpush.msra.mxu1 %v6482_v37  ;;  %vm16357_vm13 = vmmov %vm16349_vm2  ;;  %8122 = vmatpush.msra.mxu3 %v6482_v37 }
 0x59d   :  { %v153_v8 = vsel %vm152_vm4, %v8149_v34, %v149_v47  ;;  %v13836_v34 = vadd.f32 %v13627_v15, %v5506_v7  ;;  %v5543_v47 = vpop.xlane.xlu2 %5542  ;;  %vm16358_vm8 = vmmov %vm16349_vm2 }
 0x59e   :  { %v154_v10 = vmul.f32 %v153_v8, %v16351_v52  ;;  %v6297_v41 = vmul.f32 0.5, %v6265_v62  ;;  %v5705_v40 = vmul.f32 %v13839_v20, %v13839_v20  ;;  %6600 = vmatpush.msra.mxu1 %v6481_v32  ;;  %8123 = vmatpush.msra.mxu3 %v6481_v32  ;;  %v13880_v8 = vadd.f32 %v13627_v15, %v16359_v14  ;;  %vm16360_vm9 = vmmov %vm16349_vm2 }
 0x59f   :  { %5551 = vadd.xlane.f32.xlu2 %v5550_v48  ;;  %5554 = vadd.xlane.f32.xlu0 %v5553_v42  ;;  %v5604_v51 = vsel %vm16353_vm7, %v13836_v34, 0.0  ;;  %v5625_v62 = vmul.f32 %v5543_v47, %v12936_v13  ;;  %vm16361_vm5 = vmmov %vm16349_vm2 }
 0x5a0   :  { %5725 = vadd.xlane.f32.xlu1 %v5724_v55  ;;  %v158_v31 = vmul.f32 %v8136_v11, %v154_v10  ;;  %8150 = vtanh.f32 %v6297_v41  ;;  %v5594_v27 = vpop.xlane.xlu0 %5593  ;;  %vm16363_vm10 = vmmov %vm16349_vm2 }
 0x5a1   :  { %v5642_v63 = vmul.f32 %v5594_v27, %v12936_v13  ;;  %v13886_v41 = vsub.f32 %v13445_v53, %v5625_v62  ;;  %vm16364_vm6 = vmmov %vm16349_vm2 }
 0x5a2   :  { %v162_v43 = vadd.f32 %v8137_v35, %v158_v31  ;;  %v16362_v35 = vld [vmem:[#allocation40_spill] sm:$0xff]  ;;  %vm16365_vm12 = vmmov %vm16349_vm2 }
 0x5a3   :  { %v13855_v42 = vsub.f32 %v16354_v33, %v5642_v63  ;;  %v13892_v31 = vadd.f32 %v13627_v15, %v16362_v35  ;;  %v5689_v27 = vmul.f32 %v13886_v41, %v13886_v41 }
 0x5a4   :  { %v13847_v23 = vmax.f32 %v162_v43, 0.0 }
 0x5a5   :  { %v5706_v7 = vmul.f32 %v13855_v42, %v13855_v42  ;;  %v5559_v43 = vsel %vm16363_vm10, %v13892_v31, 0.0  ;;  %v5733_v17 = vsel %vm16364_vm6, %v5689_v27, 0.0 }
 0x5a6   :  { %v8151_v18 = vpop.eup %8150 }
 0x5a7   :  { %5731 = vadd.xlane.f32.xlu0 %v5730_v56  ;;  %5728 = vadd.xlane.f32.xlu2 %v5727_v58  ;;  %v6361_v19 = vadd.f32 1.0, %v8151_v18  ;;  %v13871_v56 = vperm.slane %v13847_v23, 0  ;;  %v5781_v58 = vsel %vm16357_vm13, %v5705_v40, 0.0  ;;  %v5784_v11 = vsel %vm16360_vm9, %v5706_v7, 0.0  ;;  %vm16370_vm13 = vmmov %vm16349_vm2 }
 0x5a8   :  { %5605 = vadd.xlane.f32.xlu1 %v5604_v51 }
 0x5a9   :  { %v6393_v38 = vmul.f32 0.5, %v6361_v19 }
 0x5ab   :  { %v6449_v49 = vmul.f32 %v13871_v56, %v6393_v38 }
 0x5ac   :  { %v5509_v22 = vpop.f32.mrf.mxu2 }
 0x5ad   :  { %v13845_v60 = vadd.f32 %v13627_v15, %v5509_v22  ;;  %8080 = vmatmul.msk.f32.vlgmr.msra.gmra.mxu1 %vm16358_vm8, %v6449_v49  ;;  %v5556_v22 = vsel %vm16361_vm5, %v13880_v8, 0.0 }
 0x5af   :  { %v5607_v55 = vsel %vm16355_vm14, %v13845_v60, 0.0 }
 0x5b0   :  { %5608 = vadd.xlane.f32.xlu2 %v5607_v55  ;;  %5782 = vadd.xlane.f32.xlu1 %v5781_v58 }
 0x5b8   :  { %5785 = vadd.xlane.f32.xlu2 %v5784_v11  ;;  %5557 = vadd.xlane.f32.xlu1 %v5556_v22 }
 0x5b9   :  { %v5765_v33 = vpop.xlane.xlu2 %5764 }
 0x5ba   :  { %v5827_v50 = vmul.f32 %v5765_v33, %v12936_v13 }
 0x5bc   :  { %v5859_v19 = vadd.f32 1e-05, %v5827_v50 }
 0x5be   :  { %vm6041_vm7 = vweird.f32 %v5859_v19 }
 0x5c0   :  { %5560 = vadd.xlane.f32.xlu2 %v5559_v43  ;;  %5734 = vadd.xlane.f32.xlu1 %v5733_v17 }
 0x5c1   :  { %v5768_v55 = vpop.xlane.xlu2 %5767 }
 0x5c2   :  { %v5828_v32 = vmul.f32 %v5768_v55, %v12936_v13 }
 0x5c3   :  { %v5771_v28 = vpop.xlane.xlu0 %5770 }
 0x5c4   :  { %v13913_v38 = vadd.f32 1e-05, %v5828_v32 }
 0x5c6   :  { %vm6051_vm10 = vweird.f32 %v13913_v38 }
 0x5cb   :  { %v5512_v26 = vpop.f32.mrf.mxu2  ;;  %v5546_v52 = vpop.xlane.xlu0 %5545 }
 0x5cc   :  { %v13850_v48 = vadd.f32 %v13627_v15, %v5512_v26  ;;  %v5626_v10 = vmul.f32 %v5546_v52, %v12936_v13 }
 0x5ce   :  { %v5610_v59 = vsel %vm16356_vm11, %v13850_v48, 0.0  ;;  %v13895_v3 = vsub.f32 %v13631_v2, %v5626_v10  ;;  %v5829_v2 = vmul.f32 %v5771_v28, %v12936_v13  ;;  %vm16369_vm11 = vmmov %vm16349_vm2 }
 0x5cf   :  { %5611 = vadd.xlane.f32.xlu0 %v5610_v59 }
 0x5d0   :  { %v5690_v53 = vmul.f32 %v13895_v3, %v13895_v3  ;;  %v5861_v40 = vadd.f32 1e-05, %v5829_v2 }
 0x5d2   :  { %v5736_v51 = vsel %vm16365_vm12, %v5690_v53, 0.0  ;;  %8152 = vrsqrt.f32 %v5861_v40  ;;  %vm6061_vm3 = vweird.f32 %v5861_v40 }
 0x5d3   :  { %5737 = vadd.xlane.f32.xlu2 %v5736_v51  ;;  %8154 = vrsqrt.f32 %v5859_v19 }
 0x5d4   :  { %8156 = vrsqrt.f32 %v13913_v38 }
 0x5d7   :  { %v5723_v49 = vpop.xlane.xlu0 %5722 }
 0x5d8   :  { %v8153_v37 = vpop.eup %8152  ;;  %v5813_v62 = vmul.f32 %v5723_v49, %v12936_v13 }
 0x5d9   :  { %v6056_v59 = vmul.f32 %v8153_v37, %v5861_v40  ;;  %v13915_v47 = vpop.eup %8154  ;;  %vm6062_vm15 = vweird.f32 %v8153_v37 }
 0x5da   :  { %v6036_v7 = vmul.f32 %v13915_v47, %v5859_v19  ;;  %v13921_v10 = vadd.f32 1e-05, %v5813_v62  ;;  %v13923_v22 = vpop.eup %8156  ;;  %vm6063_vm1 = vmor %vm6061_vm3, %vm6062_vm15  ;;  %vm6042_vm4 = vweird.f32 %v13915_v47 }
 0x5db   :  { %v6057_v28 = vmul.f32 %v8153_v37, %v6056_v59  ;;  %v6046_v51 = vmul.f32 %v13923_v22, %v13913_v38  ;;  %vm13953_vm14 = vmor %vm6041_vm7, %vm6042_vm4  ;;  %vm6052_vm9 = vweird.f32 %v13923_v22 }
 0x5dc   :  { %v6037_v11 = vmul.f32 %v13915_v47, %v6036_v7  ;;  %8158 = vrsqrt.f32 %v13921_v10  ;;  %vm13994_vm12 = vmor %vm6051_vm10, %vm6052_vm9  ;;  %vm5901_vm7 = vweird.f32 %v13921_v10 }
 0x5dd   :  { %v6058_v58 = vmul.f32 0.5, %v6057_v28  ;;  %v6047_v55 = vmul.f32 %v13923_v22, %v6046_v51  ;;  %vm16374_vm15 = vmmov %vm16349_vm2 }
 0x5de   :  { %v6038_v17 = vmul.f32 0.5, %v6037_v11  ;;  %vm16375_vm3 = vmmov %vm16349_vm2 }
 0x5df   :  { %v6059_v14 = vsub.f32 1.5, %v6058_v58  ;;  %v5762_v35 = vpop.xlane.xlu1 %5761  ;;  %v5603_v40 = vpop.xlane.xlu0 %5602  ;;  %vm16376_vm4 = vmmov %vm16349_vm2 }
 0x5e0   :  { %v5826_v43 = vmul.f32 %v5762_v35, %v12936_v13  ;;  %v6039_v50 = vsub.f32 1.5, %v6038_v17  ;;  %vm16381_vm10 = vmmov %vm16349_vm2 }
 0x5e1   :  { %v6060_v52 = vmul.f32 %v8153_v37, %v6059_v14 }
 0x5e2   :  { %v5858_v2 = vadd.f32 1e-05, %v5826_v43  ;;  %v13935_v59 = vpop.eup %8158  ;;  %v6040_v7 = vmul.f32 %v13915_v47, %v6039_v50 }
 0x5e3   :  { %v5896_v62 = vmul.f32 %v13935_v59, %v13921_v10 }
 0x5e4   :  { %8160 = vrsqrt.f32 %v5858_v2  ;;  %vm6031_vm5 = vweird.f32 %v5858_v2 }
 0x5e5   :  { %v5897_v50 = vmul.f32 %v13935_v59, %v5896_v62 }
 0x5ea   :  { %v8161_v14 = vpop.eup %8160 }
 0x5eb   :  { %vm6032_vm8 = vweird.f32 %v8161_v14 }
 0x5ec   :  { %v5515_v63 = vpop.f32.mrf.mxu2  ;;  %vm6033_vm6 = vmor %vm6031_vm5, %vm6032_vm8 }
 0x5ed   :  { %v13907_v18 = vadd.f32 %v13627_v15, %v5515_v63  ;;  %v5720_v27 = vpop.xlane.xlu2 %5719  ;;  %v6064_v63 = vsel %vm6063_vm1, %v8153_v37, %v6060_v52  ;;  %vm5902_vm1 = vweird.f32 %v13935_v59  ;;  %vm16380_vm5 = vmmov %vm16349_vm2 }
 0x5ee   :  { %v5812_v53 = vmul.f32 %v5720_v27, %v12936_v13  ;;  %v6213_v33 = vmul.f32 %v6064_v63, %v13644_v0  ;;  %v6048_v0 = vmul.f32 0.5, %v6047_v55  ;;  %v6026_v27 = vmul.f32 %v8161_v14, %v5858_v2 }
 0x5ef   :  { %v5613_v26 = vsel %vm16349_vm2, %v13907_v18, 0.0  ;;  %v5645_v55 = vmul.f32 %v5603_v40, %v12936_v13  ;;  %v13980_v40 = vadd.f32 %v13627_v15, %v13195_v5 }
 0x5f0   :  { %5614 = vadd.xlane.f32.xlu1 %v5613_v26  ;;  %v13930_v26 = vadd.f32 1e-05, %v5812_v53  ;;  %v6248_v49 = vmul.f32 %v13814_v29, %v6213_v33  ;;  %v6049_v19 = vsub.f32 1.5, %v6048_v0  ;;  %v6027_v63 = vmul.f32 %v8161_v14, %v6026_v27 }
 0x5f1   :  { %v5898_v27 = vmul.f32 0.5, %v5897_v50  ;;  %v13986_v53 = vsub.f32 %v13685_v46, %v5645_v55  ;;  %v5565_v50 = vsel %vm16375_vm3, %v13980_v40, 0.0 }
 0x5f2   :  { %8162 = vrsqrt.f32 %v13930_v26  ;;  %v6283_v35 = vadd.f32 %v13823_v25, %v6248_v49  ;;  %vm5891_vm8 = vweird.f32 %v13930_v26 }
 0x5f4   :  { %v6315_v33 = vmul.f32 0.5, %v6283_v35  ;;  %v6050_v35 = vmul.f32 %v13923_v22, %v6049_v19 }
 0x5f6   :  { %v5597_v32 = vpop.xlane.xlu1 %5596  ;;  %8164 = vtanh.f32 %v6315_v33  ;;  %v6054_v33 = vsel %vm13994_vm12, %v13923_v22, %v6050_v35  ;;  %vm16383_vm12 = vmmov %vm16349_vm2 }
 0x5f7   :  { %v5643_v37 = vmul.f32 %v5597_v32, %v12936_v13  ;;  %v6212_v35 = vmul.f32 %v6054_v33, %v13603_v61 }
 0x5f8   :  { %v13951_v43 = vpop.eup %8162 }
 0x5f9   :  { %v13945_v11 = vsub.f32 %v13723_v57, %v5643_v37  ;;  %v6028_v37 = vmul.f32 0.5, %v6027_v63 }
 0x5fb   :  { %v5707_v17 = vmul.f32 %v13945_v11, %v13945_v11  ;;  %v6029_v62 = vsub.f32 1.5, %v6028_v37 }
 0x5fd   :  { %v5787_v32 = vsel %vm16369_vm11, %v5707_v17, 0.0  ;;  %vm16379_vm11 = vmmov %vm16349_vm2 }
 0x5fe   :  { %5788 = vadd.xlane.f32.xlu0 %v5787_v32  ;;  %v5774_v49 = vpop.xlane.xlu1 %5773  ;;  %v8165_v32 = vpop.eup %8164 }
 0x5ff   :  { %v5830_v5 = vmul.f32 %v5774_v49, %v12936_v13 }
 0x602   :  { %v5600_v28 = vpop.xlane.xlu2 %5599 }
 0x603   :  { %v5644_v58 = vmul.f32 %v5600_v28, %v12936_v13 }
 0x605   :  { %v13948_v52 = vsub.f32 %v13732_v45, %v5644_v58  ;;  %v6044_v45 = vsel %vm13953_vm14, %v13915_v47, %v6040_v7  ;;  %v5886_v58 = vmul.f32 %v13951_v43, %v13930_v26  ;;  %v16371_v47 = vld [vmem:[#allocation50_spill] sm:$0xff]  ;;  %vm14038_vm14 = vmor %vm5901_vm7, %vm5902_vm1 }
 0x606   :  { %v13976_v7 = vadd.f32 %v13627_v15, %v16371_v47  ;;  %v6211_v0 = vmul.f32 %v6044_v45, %v13591_v30 }
 0x607   :  { %16366 = vst [vmem:[#allocation53_spill] sm:$0xff] %v13948_v52  ;;  %v5708_v57 = vmul.f32 %v13948_v52, %v13948_v52  ;;  %v5887_v63 = vmul.f32 %v13951_v43, %v5886_v58  ;;  %v14011_v58 = vadd.f32 1e-05, %v5830_v5  ;;  %v6379_v5 = vadd.f32 1.0, %v8165_v32 }
 0x608   :  { %v5562_v46 = vsel %vm16349_vm2, %v13976_v7, 0.0  ;;  %v6246_v2 = vmul.f32 %v13814_v29, %v6211_v0 }
 0x609   :  { %v5790_v28 = vsel %vm16370_vm13, %v5708_v57, 0.0  ;;  %v6030_v57 = vmul.f32 %v8161_v14, %v6029_v62  ;;  %v5888_v37 = vmul.f32 0.5, %v5887_v63  ;;  %5563 = vadd.xlane.f32.xlu0 %v5562_v46  ;;  %v6429_v63 = vrot.slane %v13847_v23, 4 }
 0x60a   :  { %v13961_v51 = vpop.xlane.xlu0 %5779  ;;  %v13972_v52 = vpop.xlane.xlu2 %5776  ;;  %5791 = vadd.xlane.f32.xlu1 %v5790_v28  ;;  %v5709_v28 = vmul.f32 %v13986_v53, %v13986_v53  ;;  %8166 = vrsqrt.f32 %v14011_v58  ;;  %vm5892_vm13 = vweird.f32 %v13951_v43  ;;  %vm6071_vm1 = vweird.f32 %v14011_v58 }
 0x60b   :  { %v6034_v19 = vsel %vm6033_vm6, %v8161_v14, %v6030_v57  ;;  %v5899_v14 = vsub.f32 1.5, %v5898_v27  ;;  %v5549_v22 = vpop.xlane.xlu1 %5548  ;;  %v6281_v27 = vadd.f32 %v13823_v25, %v6246_v2  ;;  %v5889_v46 = vsub.f32 1.5, %v5888_v37  ;;  %vm5893_vm9 = vmor %vm5891_vm8, %vm5892_vm13 }
 0x60c   :  { %v5627_v47 = vmul.f32 %v5549_v22, %v12936_v13  ;;  %v14047_v10 = vperm.slane %v6429_v63, 0  ;;  %vm16382_vm6 = vmmov %vm16349_vm2 }
 0x60d   :  { %v5900_v45 = vmul.f32 %v13935_v59, %v5899_v14  ;;  %v5890_v14 = vmul.f32 %v13951_v43, %v5889_v46  ;;  %vm16390_vm13 = vmmov %vm16380_vm5 }
 0x60e   :  { %vm16391_vm8 = vmmov %vm16380_vm5 }
 0x60f   :  { %v5904_v32 = vsel %vm14038_vm14, %v13935_v59, %v5900_v45 }
 0x612   :  { %v5555_v55 = vpop.xlane.xlu0 %5554  ;;  %v5552_v49 = vpop.xlane.xlu2 %5551  ;;  %5566 = vadd.xlane.f32.xlu1 %v5565_v50 }
 0x613   :  { %v5629_v0 = vmul.f32 %v5555_v55, %v12936_v13 }
 0x615   :  { %v14034_v2 = vsub.f32 %v13777_v1, %v5629_v0  ;;  %v5726_v1 = vpop.xlane.xlu1 %5725  ;;  %v6197_v0 = vmul.f32 %v5904_v32, %v13679_v12 }
 0x617   :  { %v5693_v22 = vmul.f32 %v14034_v2, %v14034_v2 }
 0x619   :  { %v5745_v26 = vsel %vm16381_vm10, %v5693_v22, 0.0  ;;  %vm16393_vm10 = vmmov %vm16380_vm5 }
 0x61a   :  { %v14075_v46 = vpop.xlane.xlu2 %5728 }
 0x61c   :  { %v5518_v17 = vpop.f32.mrf.mxu2 }
 0x61d   :  { %v13992_v30 = vadd.f32 %v13627_v15, %v5518_v17  ;;  %v6210_v15 = vmul.f32 %v6034_v19, %v13703_v6  ;;  %v5628_v6 = vmul.f32 %v5552_v49, %v12936_v13  ;;  %v14020_v17 = vsub.f32 %v13765_v44, %v5627_v47  ;;  %v14056_v49 = vpop.eup %8166 }
 0x61e   :  { %v5793_v19 = vsel %vm16376_vm4, %v5709_v28, 0.0  ;;  %v5814_v28 = vmul.f32 %v5726_v1, %v12936_v13  ;;  %v6066_v63 = vmul.f32 %v14056_v49, %v14011_v58  ;;  %vm6072_vm2 = vweird.f32 %v14056_v49 }
 0x61f   :  { %v5616_v38 = vsel %vm16374_vm15, %v13992_v30, 0.0  ;;  %v6245_v62 = vmul.f32 %v13814_v29, %v6210_v15  ;;  %v14029_v61 = vsub.f32 %v13773_v4, %v5628_v6  ;;  %v5691_v44 = vmul.f32 %v14020_v17, %v14020_v17  ;;  %vm16384_vm15 = vmmov %vm16375_vm3 }
 0x620   :  { %5617 = vadd.xlane.f32.xlu2 %v5616_v38  ;;  %v6313_v38 = vmul.f32 0.5, %v6281_v27  ;;  %v6247_v15 = vmul.f32 %v13814_v29, %v6212_v35  ;;  %v6411_v4 = vmul.f32 0.5, %v6379_v5  ;;  %v14059_v47 = vadd.f32 1e-05, %v5814_v28  ;;  %vm14127_vm4 = vmor %vm6071_vm1, %vm6072_vm2 }
 0x621   :  { %v6280_v57 = vadd.f32 %v13823_v25, %v6245_v62  ;;  %v5739_v55 = vsel %vm16379_vm11, %v5691_v44, 0.0  ;;  %v5692_v37 = vmul.f32 %v14029_v61, %v14029_v61  ;;  %v6428_v62 = vrot.slane %v13847_v23, 3  ;;  %v14078_v44 = vpop.xlane.xlu0 %5731  ;;  %vm16389_vm11 = vmmov %vm16380_vm5 }
 0x622   :  { %5740 = vadd.xlane.f32.xlu0 %v5739_v55  ;;  %v6282_v59 = vadd.f32 %v13823_v25, %v6247_v15  ;;  %v14062_v6 = vmul.f32 %v14047_v10, %v6411_v4  ;;  %v5894_v35 = vsel %vm5893_vm9, %v13951_v43, %v5890_v14  ;;  %v6232_v43 = vmul.f32 %v13814_v29, %v6197_v0  ;;  %vm16392_vm9 = vmmov %vm16380_vm5 }
 0x623   :  { %v6312_v33 = vmul.f32 0.5, %v6280_v57  ;;  %v5742_v27 = vsel %vm16380_vm5, %v5692_v37, 0.0  ;;  %v6067_v15 = vmul.f32 %v14056_v49, %v6066_v63  ;;  %v5832_v55 = vmul.f32 %v13961_v51, %v12936_v13  ;;  %v5606_v37 = vpop.xlane.xlu1 %5605 }
 0x624   :  { %v6314_v5 = vmul.f32 0.5, %v6282_v59  ;;  %v6267_v14 = vadd.f32 %v13823_v25, %v6232_v43  ;;  %v5831_v28 = vmul.f32 %v13972_v52, %v12936_v13  ;;  %v5646_v51 = vmul.f32 %v5606_v37, %v12936_v13 }
 0x625   :  { %8168 = vtanh.f32 %v6312_v33  ;;  %v6068_v22 = vmul.f32 0.5, %v6067_v15  ;;  %vm5911_vm7 = vweird.f32 %v14059_v47 }
 0x626   :  { %8170 = vtanh.f32 %v6313_v38  ;;  %v14080_v38 = vperm.slane %v6428_v62, 0  ;;  %v14098_v62 = vadd.f32 1e-05, %v5832_v55  ;;  %v6299_v52 = vmul.f32 0.5, %v6267_v14 }
 0x627   :  { %8172 = vrsqrt.f32 %v14059_v47 }
 0x628   :  { %5794 = vadd.xlane.f32.xlu2 %v5793_v19  ;;  %v6196_v19 = vmul.f32 %v5894_v35, %v13712_v16  ;;  %8174 = vtanh.f32 %v6314_v5  ;;  %v14103_v5 = vadd.f32 1e-05, %v5831_v28 }
 0x62a   :  { %5743 = vadd.xlane.f32.xlu0 %v5742_v27  ;;  %v6231_v1 = vmul.f32 %v13814_v29, %v6196_v19  ;;  %v5609_v19 = vpop.xlane.xlu2 %5608  ;;  %vm6081_vm1 = vweird.f32 %v14103_v5 }
 0x62b   :  { %v8169_v57 = vpop.eup %8168 }
 0x62c   :  { %v6376_v45 = vadd.f32 1.0, %v8169_v57  ;;  %v8171_v12 = vpop.eup %8170  ;;  %v6266_v0 = vadd.f32 %v13823_v25, %v6231_v1  ;;  %v14101_v57 = vsub.f32 %v13836_v34, %v5646_v51  ;;  %v5783_v1 = vpop.xlane.xlu1 %5782 }
 0x62d   :  { %v14083_v50 = vpop.eup %8172  ;;  %v6377_v4 = vadd.f32 1.0, %v8171_v12 }
 0x62e   :  { %v6408_v33 = vmul.f32 0.5, %v6376_v45  ;;  %v5906_v32 = vmul.f32 %v14083_v50, %v14059_v47  ;;  %v8175_v27 = vpop.eup %8174  ;;  %v6298_v63 = vmul.f32 0.5, %v6266_v0  ;;  %v6069_v45 = vsub.f32 1.5, %v6068_v22 }
 0x62f   :  { %v6409_v35 = vmul.f32 0.5, %v6377_v4  ;;  %v5710_v43 = vmul.f32 %v14101_v57, %v14101_v57  ;;  %v6378_v34 = vadd.f32 1.0, %v8175_v27  ;;  %vm5912_vm3 = vweird.f32 %v14083_v50 }
 0x630   :  { %5746 = vadd.xlane.f32.xlu2 %v5745_v26  ;;  %v6464_v16 = vmul.f32 %v14080_v38, %v6408_v33  ;;  %v5907_v59 = vmul.f32 %v14083_v50, %v5906_v32  ;;  %8176 = vtanh.f32 %v6298_v63  ;;  %v5647_v33 = vmul.f32 %v5609_v19, %v12936_v13  ;;  %vm14136_vm14 = vmor %vm5911_vm7, %vm5912_vm3 }
 0x631   :  { %8178 = vrsqrt.f32 %v14098_v62  ;;  %v6465_v55 = vmul.f32 %v14047_v10, %v6409_v35  ;;  %v6070_v14 = vmul.f32 %v14056_v49, %v6069_v45  ;;  %vm6091_vm3 = vweird.f32 %v14098_v62 }
 0x632   :  { %8095 = vmatmul.msk.f32.vlgmr.msra.gmra.mxu3 %vm16382_vm6, %v6464_v16  ;;  %v5908_v26 = vmul.f32 0.5, %v5907_v59  ;;  %v5796_v16 = vsel %vm16383_vm12, %v5710_v43, 0.0  ;;  %8180 = vtanh.f32 %v6299_v52  ;;  %v14115_v32 = vsub.f32 %v13845_v60, %v5647_v33  ;;  %v5786_v45 = vpop.xlane.xlu2 %5785  ;;  %vm16394_vm6 = vmmov %vm16380_vm5 }
 0x633   :  { %8182 = vrsqrt.f32 %v14103_v5  ;;  %5797 = vadd.xlane.f32.xlu1 %v5796_v16  ;;  %v6410_v60 = vmul.f32 0.5, %v6378_v34  ;;  %v6074_v63 = vsel %vm14127_vm4, %v14056_v49, %v6070_v14  ;;  %v5816_v52 = vmul.f32 %v14078_v44, %v12936_v13  ;;  %vm16395_vm12 = vmmov %vm16380_vm5 }
 0x634   :  { %v5909_v12 = vsub.f32 1.5, %v5908_v26  ;;  %v5711_v22 = vmul.f32 %v14115_v32, %v14115_v32  ;;  %v5558_v34 = vpop.xlane.xlu1 %5557 }
 0x635   :  { %v6466_v33 = vmul.f32 %v14047_v10, %v6410_v60  ;;  %v14163_v14 = vadd.f32 1e-05, %v5816_v52 }
 0x636   :  { %v5910_v28 = vmul.f32 %v14083_v50, %v5909_v12  ;;  %v8177_v59 = vpop.eup %8176  ;;  %v5799_v27 = vsel %vm16389_vm11, %v5711_v22, 0.0  ;;  %vm16397_vm11 = vmmov %vm16380_vm5 }
 0x637   :  { %v14134_v35 = vpop.eup %8178  ;;  %v6362_v58 = vadd.f32 1.0, %v8177_v59  ;;  %5800 = vadd.xlane.f32.xlu0 %v5799_v27  ;;  %8184 = vrsqrt.f32 %v14163_v14 }
 0x638   :  { %v8181_v26 = vpop.eup %8180  ;;  %v5914_v47 = vsel %vm14136_vm14, %v14083_v50, %v5910_v28  ;;  %v6086_v49 = vmul.f32 %v14134_v35, %v14098_v62  ;;  %v6214_v50 = vmul.f32 %v6074_v63, %v13728_v54  ;;  %v5630_v28 = vmul.f32 %v5558_v34, %v12936_v13  ;;  %vm16396_vm14 = vmmov %vm16380_vm5 }
 0x639   :  { %v14150_v19 = vpop.eup %8182  ;;  %v6394_v43 = vmul.f32 0.5, %v6362_v58  ;;  %v6198_v44 = vmul.f32 %v5914_v47, %v13780_v36  ;;  %v6363_v16 = vadd.f32 1.0, %v8181_v26  ;;  %v5833_v58 = vmul.f32 %v5783_v1, %v12936_v13 }
 0x63a   :  { %8096 = vmatmul.msk.f32.gmra.mxu3 %vm16384_vm15, %v6465_v55  ;;  %v14171_v36 = vsub.f32 %v13880_v8, %v5630_v28  ;;  %v6249_v59 = vmul.f32 %v13814_v29, %v6214_v50  ;;  %vm6082_vm2 = vweird.f32 %v14150_v19  ;;  %vm6092_vm15 = vweird.f32 %v14134_v35 }
 0x63b   :  { %v6450_v55 = vmul.f32 %v13871_v56, %v6394_v43  ;;  %v6395_v22 = vmul.f32 0.5, %v6363_v16  ;;  %v6233_v60 = vmul.f32 %v13814_v29, %v6198_v44  ;;  %v5834_v28 = vmul.f32 %v5786_v45, %v12936_v13  ;;  %vm6093_vm4 = vmor %vm6091_vm3, %vm6092_vm15 }
 0x63c   :  { %v6284_v26 = vadd.f32 %v13823_v25, %v6249_v59  ;;  %v5735_v34 = vpop.xlane.xlu1 %5734  ;;  %vm6083_vm7 = vmor %vm6081_vm1, %vm6082_vm2 }
 0x63d   :  { %8081 = vmatmul.msk.f32.gmra.mxu1 %vm16392_vm9, %v6450_v55  ;;  %v6268_v8 = vadd.f32 %v13823_v25, %v6233_v60  ;;  %v6451_v52 = vmul.f32 %v13871_v56, %v6395_v22  ;;  %v14196_v50 = vpop.eup %8184  ;;  %vm16399_vm1 = vmmov %vm16397_vm11 }
 0x63e   :  { %v6316_v43 = vmul.f32 0.5, %v6284_v26  ;;  %v5926_v59 = vmul.f32 %v14196_v50, %v14163_v14  ;;  %vm5932_vm9 = vweird.f32 %v14196_v50 }
 0x63f   :  { %v6300_v1 = vmul.f32 0.5, %v6268_v8 }
 0x640   :  { %v5927_v62 = vmul.f32 %v14196_v50, %v5926_v59 }
 0x642   :  { %v5612_v15 = vpop.xlane.xlu0 %5611  ;;  %8097 = vmatmul.msk.f32.gmra.mxu3 %vm16391_vm8, %v6466_v33 }
 0x643   :  { %v5648_v4 = vmul.f32 %v5612_v15, %v12936_v13  ;;  %v5815_v15 = vmul.f32 %v14075_v46, %v12936_v13  ;;  %v6087_v46 = vmul.f32 %v14134_v35, %v6086_v49  ;;  %v14191_v49 = vadd.f32 1e-05, %v5833_v58 }
 0x645   :  { %v14122_v37 = vsub.f32 %v13850_v48, %v5648_v4  ;;  %v6076_v4 = vmul.f32 %v14150_v19, %v14103_v5  ;;  %v14168_v54 = vadd.f32 1e-05, %v5815_v15  ;;  %v5561_v48 = vpop.xlane.xlu2 %5560  ;;  %v6088_v63 = vmul.f32 0.5, %v6087_v46  ;;  %8082 = vmatmul.msk.f32.gmra.mxu1 %vm16394_vm6, %v6451_v52 }
 0x646   :  { %v5631_v27 = vmul.f32 %v5561_v48, %v12936_v13  ;;  %vm6101_vm15 = vweird.f32 %v14191_v49 }
 0x647   :  { %v5712_v0 = vmul.f32 %v14122_v37, %v14122_v37  ;;  %v6077_v51 = vmul.f32 %v14150_v19, %v6076_v4  ;;  %8186 = vrsqrt.f32 %v14168_v54  ;;  %v6089_v44 = vsub.f32 1.5, %v6088_v63 }
 0x648   :  { %8188 = vtanh.f32 %v6300_v1 }
 0x649   :  { %v5802_v12 = vsel %vm16390_vm13, %v5712_v0, 0.0  ;;  %v5694_v0 = vmul.f32 %v14171_v36, %v14171_v36  ;;  %v6078_v33 = vmul.f32 0.5, %v6077_v51  ;;  %8190 = vtanh.f32 %v6316_v43  ;;  %vm16398_vm13 = vmmov %vm16380_vm5 }
 0x64a   :  { %5803 = vadd.xlane.f32.xlu2 %v5802_v12  ;;  %v14187_v12 = vsub.f32 %v13892_v31, %v5631_v27  ;;  %8098 = vmatmul.msk.f32.gmra.mxu3 %vm16393_vm10, %v14062_v6  ;;  %8192 = vrsqrt.f32 %v14191_v49  ;;  %v6090_v4 = vmul.f32 %v14134_v35, %v6089_v44  ;;  %v14218_v27 = vadd.f32 1e-05, %v5834_v28 }
 0x64b   :  { %v5748_v47 = vsel %vm16380_vm5, %v5694_v0, 0.0  ;;  %v6079_v6 = vsub.f32 1.5, %v6078_v33  ;;  %vm5931_vm5 = vweird.f32 %v14163_v14  ;;  %vm5921_vm10 = vweird.f32 %v14168_v54 }
 0x64c   :  { %5749 = vadd.xlane.f32.xlu1 %v5748_v47  ;;  %v5695_v15 = vmul.f32 %v14187_v12, %v14187_v12  ;;  %v6094_v45 = vsel %vm6093_vm4, %v14134_v35, %v6090_v4  ;;  %8194 = vrsqrt.f32 %v14218_v27  ;;  %vm5933_vm6 = vmor %vm5931_vm5, %vm5932_vm9  ;;  %v6430_v14 = vrot.slane %v13847_v23, 5 }
 0x64d   :  { %v14199_v55 = vpop.eup %8186  ;;  %v6080_v22 = vmul.f32 %v14150_v19, %v6079_v6  ;;  %v6216_v52 = vmul.f32 %v6094_v45, %v13756_v9  ;;  %v5738_v28 = vpop.xlane.xlu2 %5737  ;;  %vm16401_vm5 = vmmov %vm16399_vm1 }
 0x64e   :  { %v5751_v31 = vsel %vm16395_vm12, %v5695_v15, 0.0  ;;  %v8189_v16 = vpop.eup %8188  ;;  %v5916_v60 = vmul.f32 %v14199_v55, %v14168_v54  ;;  %vm5922_vm8 = vweird.f32 %v14199_v55 }
 0x64f   :  { %5752 = vadd.xlane.f32.xlu0 %v5751_v31  ;;  %v8191_v46 = vpop.eup %8190  ;;  %v6364_v51 = vadd.f32 1.0, %v8189_v16  ;;  %v6084_v26 = vsel %vm6083_vm7, %v14150_v19, %v6080_v22  ;;  %v5817_v19 = vmul.f32 %v5735_v34, %v12936_v13  ;;  %v6251_v6 = vmul.f32 %v13814_v29, %v6216_v52  ;;  %vm5923_vm12 = vmor %vm5921_vm10, %vm5922_vm8 }
 0x650   :  { %v6380_v0 = vadd.f32 1.0, %v8191_v46  ;;  %v14213_v58 = vpop.eup %8192  ;;  %v5917_v63 = vmul.f32 %v14199_v55, %v5916_v60  ;;  %v6215_v35 = vmul.f32 %v6084_v26, %v13745_v24  ;;  %vm6111_vm7 = vweird.f32 %v14218_v27 }
 0x651   :  { %v6396_v48 = vmul.f32 0.5, %v6364_v51  ;;  %v6096_v1 = vmul.f32 %v14213_v58, %v14191_v49  ;;  %v14238_v44 = vadd.f32 1e-05, %v5817_v19  ;;  %v6286_v22 = vadd.f32 %v13823_v25, %v6251_v6 }
 0x652   :  { %v6412_v8 = vmul.f32 0.5, %v6380_v0  ;;  %v6250_v31 = vmul.f32 %v13814_v29, %v6215_v35  ;;  %v14244_v4 = vpop.eup %8194  ;;  %vm6102_vm2 = vweird.f32 %v14213_v58 }
 0x653   :  { %v6452_v5 = vmul.f32 %v13871_v56, %v6396_v48  ;;  %v5918_v56 = vmul.f32 0.5, %v5917_v63  ;;  %v6097_v15 = vmul.f32 %v14213_v58, %v6096_v1  ;;  %8196 = vrsqrt.f32 %v14238_v44  ;;  %vm6103_vm3 = vmor %vm6101_vm15, %vm6102_vm2 }
 0x654   :  { %v6468_v47 = vmul.f32 %v14047_v10, %v6412_v8  ;;  %v5928_v10 = vmul.f32 0.5, %v5927_v62  ;;  %v6318_v51 = vmul.f32 0.5, %v6286_v22  ;;  %v6106_v45 = vmul.f32 %v14244_v4, %v14218_v27  ;;  %vm16402_vm2 = vmmov %vm16399_vm1 }
 0x655   :  { %8083 = vmatmul.msk.f32.gmra.mxu1 %vm16396_vm14, %v6452_v5  ;;  %v5919_v34 = vsub.f32 1.5, %v5918_v56  ;;  %v6098_v60 = vmul.f32 0.5, %v6097_v15  ;;  %v5818_v8 = vmul.f32 %v5738_v28, %v12936_v13  ;;  %vm6112_vm4 = vweird.f32 %v14244_v4  ;;  %vm16403_vm15 = vmmov %vm16399_vm1 }
 0x656   :  { %8099 = vmatmul.msk.f32.gmra.mxu3 %vm16397_vm11, %v6468_v47  ;;  %v5929_v16 = vsub.f32 1.5, %v5928_v10  ;;  %v6107_v5 = vmul.f32 %v14244_v4, %v6106_v45  ;;  %v14277_v10 = vperm.slane %v6430_v14, 0  ;;  %vm6113_vm14 = vmor %vm6111_vm7, %vm6112_vm4  ;;  %vm5941_vm8 = vweird.f32 %v14238_v44 }
 0x657   :  { %v5920_v0 = vmul.f32 %v14199_v55, %v5919_v34  ;;  %v6099_v26 = vsub.f32 1.5, %v6098_v60  ;;  %v14264_v47 = vadd.f32 1e-05, %v5818_v8  ;;  %vm16400_vm11 = vmmov %vm16399_vm1 }
 0x658   :  { %v5930_v48 = vmul.f32 %v14196_v50, %v5929_v16  ;;  %vm16405_vm4 = vmmov %vm16399_vm1 }
 0x659   :  { %v5924_v63 = vsel %vm5923_vm12, %v14199_v55, %v5920_v0  ;;  %v14266_v52 = vpop.eup %8196  ;;  %v6100_v35 = vmul.f32 %v14213_v58, %v6099_v26  ;;  %v6108_v55 = vmul.f32 0.5, %v6107_v5  ;;  %vm16406_vm7 = vmmov %vm16399_vm1 }
 0x65a   :  { %v5934_v62 = vsel %vm5933_vm6, %v14196_v50, %v5930_v48  ;;  %v6199_v54 = vmul.f32 %v5924_v63, %v13798_v21  ;;  %v5936_v50 = vmul.f32 %v14266_v52, %v14238_v44  ;;  %v6426_v63 = vrot.slane %v13847_v23, 1 }
 0x65b   :  { %vm5951_vm6 = vweird.f32 %v14264_v47 }
 0x65c   :  { %v6234_v21 = vmul.f32 %v13814_v29, %v6199_v54 }
 0x65e   :  { %v6269_v16 = vadd.f32 %v13823_v25, %v6234_v21 }
 0x663   :  { %v5615_v43 = vpop.xlane.xlu1 %5614 }
 0x664   :  { %v5649_v33 = vmul.f32 %v5615_v43, %v12936_v13  ;;  %v6200_v43 = vmul.f32 %v5934_v62, %v13795_v39  ;;  %v6104_v39 = vsel %vm6103_vm3, %v14213_v58, %v6100_v35  ;;  %v14306_v35 = vperm.slane %v6426_v63, 0  ;;  %vm16404_vm3 = vmmov %vm16399_vm1 }
 0x665   :  { %v6217_v58 = vmul.f32 %v6104_v39, %v13839_v20 }
 0x666   :  { %v14235_v9 = vsub.f32 %v13907_v18, %v5649_v33  ;;  %v6285_v18 = vadd.f32 %v13823_v25, %v6250_v31  ;;  %v6235_v15 = vmul.f32 %v13814_v29, %v6200_v43  ;;  %v5937_v31 = vmul.f32 %v14266_v52, %v5936_v50 }
 0x667   :  { %v6252_v0 = vmul.f32 %v13814_v29, %v6217_v58 }
 0x668   :  { %v5713_v24 = vmul.f32 %v14235_v9, %v14235_v9  ;;  %v6317_v59 = vmul.f32 0.5, %v6285_v18  ;;  %v6270_v49 = vadd.f32 %v13823_v25, %v6235_v15  ;;  %v5938_v60 = vmul.f32 0.5, %v5937_v31 }
 0x669   :  { %v6287_v26 = vadd.f32 %v13823_v25, %v6252_v0 }
 0x66a   :  { %v5805_v46 = vsel %vm16398_vm13, %v5713_v24, 0.0  ;;  %8198 = vtanh.f32 %v6317_v59  ;;  %v6109_v24 = vsub.f32 1.5, %v6108_v55  ;;  %v6302_v18 = vmul.f32 0.5, %v6270_v49 }
 0x66b   :  { %5806 = vadd.xlane.f32.xlu1 %v5805_v46  ;;  %8200 = vtanh.f32 %v6318_v51  ;;  %v6301_v46 = vmul.f32 0.5, %v6269_v16  ;;  %v5939_v48 = vsub.f32 1.5, %v5938_v60  ;;  %v6319_v5 = vmul.f32 0.5, %v6287_v26  ;;  %v14329_v16 = vld [vmem:[%s15716_s11] ss:$0 sm:$0xff] }
 0x66c   :  { %8202 = vrsqrt.f32 %v14264_v47  ;;  %v6110_v22 = vmul.f32 %v14244_v4, %v6109_v24  ;;  %vm5942_vm13 = vweird.f32 %v14266_v52 }
 0x66d   :  { %8204 = vtanh.f32 %v6301_v46  ;;  %v5940_v14 = vmul.f32 %v14266_v52, %v5939_v48  ;;  %vm5943_vm9 = vmor %vm5941_vm8, %vm5942_vm13 }
 0x66e   :  { %8206 = vtanh.f32 %v6302_v18  ;;  %v6114_v20 = vsel %vm6113_vm14, %v14244_v4, %v6110_v22  ;;  %vm16407_vm14 = vmmov %vm16399_vm1 }
 0x66f   :  { %v6218_v27 = vmul.f32 %v6114_v20, %v13855_v42  ;;  %8208 = vtanh.f32 %v6319_v5  ;;  %v5944_v50 = vsel %vm5943_vm9, %v14266_v52, %v5940_v14  ;;  %vm16408_vm13 = vmmov %vm16399_vm1 }
 0x670   :  { %v8199_v1 = vpop.eup %8198  ;;  %v6201_v21 = vmul.f32 %v5944_v50, %v13886_v41 }
 0x671   :  { %v6381_v19 = vadd.f32 1.0, %v8199_v1  ;;  %v8201_v33 = vpop.eup %8200  ;;  %v6253_v55 = vmul.f32 %v13814_v29, %v6218_v27 }
 0x672   :  { %v6382_v34 = vadd.f32 1.0, %v8201_v33  ;;  %v14286_v28 = vpop.eup %8202 }
 0x673   :  { %v6413_v56 = vmul.f32 0.5, %v6381_v19  ;;  %v5946_v51 = vmul.f32 %v14286_v28, %v14264_v47  ;;  %v8205_v62 = vpop.eup %8204  ;;  %vm5952_vm10 = vweird.f32 %v14286_v28 }
 0x674   :  { %v6414_v59 = vmul.f32 0.5, %v6382_v34  ;;  %v6365_v4 = vadd.f32 1.0, %v8205_v62  ;;  %v8207_v1 = vpop.eup %8206  ;;  %vm5953_vm12 = vmor %vm5951_vm6, %vm5952_vm10 }
 0x675   :  { %v6469_v6 = vmul.f32 %v14277_v10, %v6413_v56  ;;  %v5947_v8 = vmul.f32 %v14286_v28, %v5946_v51  ;;  %v6366_v19 = vadd.f32 1.0, %v8207_v1  ;;  %v6288_v56 = vadd.f32 %v13823_v25, %v6253_v55  ;;  %v8209_v39 = vpop.eup %8208  ;;  %v14320_v25 = vld [vmem:[%s15715_s10] ss:$0 sm:$0xff] }
 0x676   :  { %v6470_v45 = vmul.f32 %v14277_v10, %v6414_v59  ;;  %v6397_v43 = vmul.f32 0.5, %v6365_v4  ;;  %v6383_v24 = vadd.f32 1.0, %v8209_v39  ;;  %v6236_v52 = vmul.f32 %v14320_v25, %v6201_v21  ;;  %v5789_v59 = vpop.xlane.xlu0 %5788 }
 0x677   :  { %8100 = vmatmul.msk.f32.gmra.mxu3 %vm16399_vm1, %v6469_v6  ;;  %v5948_v54 = vmul.f32 0.5, %v5947_v8  ;;  %v6320_v44 = vmul.f32 0.5, %v6288_v56  ;;  %v6398_v15 = vmul.f32 0.5, %v6366_v19  ;;  %v5835_v20 = vmul.f32 %v5789_v59, %v12936_v13 }
 0x678   :  { %v6453_v42 = vmul.f32 %v14306_v35, %v6397_v43  ;;  %v6415_v29 = vmul.f32 0.5, %v6383_v24  ;;  %v6271_v47 = vadd.f32 %v14329_v16, %v6236_v52 }
 0x679   :  { %v5949_v33 = vsub.f32 1.5, %v5948_v54  ;;  %8210 = vtanh.f32 %v6320_v44  ;;  %v6454_v41 = vmul.f32 %v14306_v35, %v6398_v15  ;;  %v5867_v26 = vadd.f32 1e-05, %v5835_v20 }
 0x67a   :  { %8084 = vmatmul.msk.f32.gmra.mxu1 %vm16401_vm5, %v6453_v42  ;;  %v6471_v6 = vmul.f32 %v14277_v10, %v6415_v29  ;;  %v6303_v58 = vmul.f32 0.5, %v6271_v47  ;;  %v6602_v47 = vpop.f32.mrf.mxu1  ;;  %vm16409_vm5 = vmmov %vm16399_vm1 }
 0x67b   :  { %v5950_v31 = vmul.f32 %v14286_v28, %v5949_v33  ;;  %vm6121_vm8 = vweird.f32 %v5867_v26 }
 0x67c   :  { %8212 = vtanh.f32 %v6303_v58 }
 0x67d   :  { %v5954_v34 = vsel %vm5953_vm12, %v14286_v28, %v5950_v31  ;;  %v5792_v51 = vpop.xlane.xlu1 %5791  ;;  %8214 = vrsqrt.f32 %v5867_v26 }
 0x67e   :  { %v6202_v46 = vmul.f32 %v5954_v34, %v13895_v3  ;;  %v5836_v48 = vmul.f32 %v5792_v51, %v12936_v13  ;;  %v5564_v54 = vpop.xlane.xlu0 %5563 }
 0x67f   :  { %8101 = vmatmul.msk.f32.gmra.mxu3 %vm16400_vm11, %v6470_v45  ;;  %v8211_v49 = vpop.eup %8210 }
 0x680   :  { %v6384_v18 = vadd.f32 1.0, %v8211_v49  ;;  %v6237_v60 = vmul.f32 %v14320_v25, %v6202_v46  ;;  %v14342_v63 = vadd.f32 1e-05, %v5836_v48 }
 0x682   :  { %8085 = vmatmul.msk.f32.gmra.mxu1 %vm16402_vm2, %v6454_v41  ;;  %v6416_v22 = vmul.f32 0.5, %v6384_v18  ;;  %v6272_v3 = vadd.f32 %v14329_v16, %v6237_v60  ;;  %v8213_v8 = vpop.eup %8212  ;;  %vm6131_vm12 = vweird.f32 %v14342_v63 }
 0x683   :  { %v6367_v62 = vadd.f32 1.0, %v8213_v8  ;;  %v8215_v19 = vpop.eup %8214 }
 0x684   :  { %v6472_v28 = vmul.f32 %v14277_v10, %v6416_v22  ;;  %v6304_v27 = vmul.f32 0.5, %v6272_v3  ;;  %v6116_v44 = vmul.f32 %v8215_v19, %v5867_v26  ;;  %vm6122_vm11 = vweird.f32 %v8215_v19 }
 0x685   :  { %v6399_v14 = vmul.f32 0.5, %v6367_v62  ;;  %v5567_v43 = vpop.xlane.xlu1 %5566  ;;  %vm6123_vm9 = vmor %vm6121_vm8, %vm6122_vm11 }
 0x686   :  { %8216 = vtanh.f32 %v6304_v27  ;;  %v5633_v50 = vmul.f32 %v5567_v43, %v12936_v13  ;;  %v6117_v52 = vmul.f32 %v8215_v19, %v6116_v44 }
 0x687   :  { %8102 = vmatmul.msk.f32.gmra.mxu3 %vm16403_vm15, %v6471_v6  ;;  %8218 = vrsqrt.f32 %v14342_v63  ;;  %v6455_v1 = vmul.f32 %v14306_v35, %v6399_v14 }
 0x688   :  { %v14360_v56 = vsub.f32 %v13980_v40, %v5633_v50  ;;  %v14373_v40 = vld [vmem:[%s15718_s13] ss:$0 sm:$0xff]  ;;  %v6118_v49 = vmul.f32 0.5, %v6117_v52 }
 0x689   :  { %v14381_v59 = vadd.f32 %v14373_v40, %v6602_v47 }
 0x68a   :  { %8086 = vmatmul.msk.f32.gmra.mxu1 %vm16405_vm4, %v6455_v1  ;;  %v5697_v29 = vmul.f32 %v14360_v56, %v14360_v56 }
 0x68b   :  { %v6700_v62 = vsel %vm16409_vm5, %v14381_v59, 0.0 }
 0x68c   :  { %v8217_v39 = vpop.eup %8216  ;;  %v5757_v34 = vsel %vm16407_vm14, %v5697_v29, 0.0  ;;  %v16410_v29 = vld [vmem:[#allocation53_spill] sm:$0xff]  ;;  %vm16411_vm14 = vmmov %vm16409_vm5 }
 0x68d   :  { %v14362_v15 = vpop.eup %8218  ;;  %v6368_v24 = vadd.f32 1.0, %v8217_v39  ;;  %5758 = vadd.xlane.f32.xlu1 %v5757_v34 }
 0x68e   :  { %vm6132_vm10 = vweird.f32 %v14362_v15 }
 0x68f   :  { %8103 = vmatmul.msk.f32.gmra.mxu3 %vm16404_vm3, %v6472_v28  ;;  %v6400_v41 = vmul.f32 0.5, %v6368_v24  ;;  %v6119_v28 = vsub.f32 1.5, %v6118_v49  ;;  %vm6133_vm15 = vmor %vm6131_vm12, %vm6132_vm10  ;;  %v6431_v49 = vrot.slane %v13847_v23, 6 }
 0x690   :  { %vm16413_vm10 = vmmov %vm16409_vm5 }
 0x691   :  { %v6456_v18 = vmul.f32 %v14306_v35, %v6400_v41  ;;  %v6120_v20 = vmul.f32 %v8215_v19, %v6119_v28  ;;  %vm16415_vm12 = vmmov %vm16409_vm5 }
 0x693   :  { %v5618_v0 = vpop.xlane.xlu2 %5617  ;;  %8087 = vmatmul.msk.f32.gmra.mxu1 %vm16408_vm13, %v6456_v18 }
 0x694   :  { %v5650_v45 = vmul.f32 %v5618_v0, %v12936_v13 }
 0x695   :  { %v5741_v46 = vpop.xlane.xlu0 %5740 }
 0x696   :  { %v14345_v10 = vsub.f32 %v13992_v30, %v5650_v45  ;;  %v5632_v30 = vmul.f32 %v5564_v54, %v12936_v13  ;;  %v5819_v22 = vmul.f32 %v5741_v46, %v12936_v13  ;;  %v6124_v45 = vsel %vm6123_vm9, %v8215_v19, %v6120_v20  ;;  %vm16412_vm9 = vmmov %vm16409_vm5 }
 0x697   :  { %v6219_v8 = vmul.f32 %v6124_v45, %v13945_v11  ;;  %v14409_v20 = vperm.slane %v6431_v49, 0 }
 0x698   :  { %v5714_v5 = vmul.f32 %v14345_v10, %v14345_v10  ;;  %v14357_v33 = vsub.f32 %v13976_v7, %v5632_v30  ;;  %v6126_v7 = vmul.f32 %v14362_v15, %v14342_v63  ;;  %v5851_v51 = vadd.f32 1e-05, %v5819_v22 }
 0x699   :  { %v6254_v43 = vmul.f32 %v14320_v25, %v6219_v8 }
 0x69a   :  { %v5808_v4 = vsel %vm16399_vm1, %v5714_v5, 0.0  ;;  %v5696_v31 = vmul.f32 %v14357_v33, %v14357_v33  ;;  %v6127_v58 = vmul.f32 %v14362_v15, %v6126_v7  ;;  %vm5961_vm4 = vweird.f32 %v5851_v51 }
 0x69b   :  { %5809 = vadd.xlane.f32.xlu0 %v5808_v4  ;;  %v5795_v55 = vpop.xlane.xlu2 %5794 }
 0x69c   :  { %v5837_v42 = vmul.f32 %v5795_v55, %v12936_v13  ;;  %v5754_v6 = vsel %vm16406_vm7, %v5696_v31, 0.0  ;;  %v6128_v60 = vmul.f32 0.5, %v6127_v58 }
 0x69d   :  { %5755 = vadd.xlane.f32.xlu2 %v5754_v6  ;;  %v5744_v27 = vpop.xlane.xlu0 %5743 }
 0x69e   :  { %v5869_v21 = vadd.f32 1e-05, %v5837_v42  ;;  %v6129_v3 = vsub.f32 1.5, %v6128_v60  ;;  %v5820_v14 = vmul.f32 %v5744_v27, %v12936_v13  ;;  %v6289_v42 = vadd.f32 %v14329_v16, %v6254_v43 }
 0x6a0   :  { %8220 = vrsqrt.f32 %v5869_v21  ;;  %v6130_v4 = vmul.f32 %v14362_v15, %v6129_v3  ;;  %v14390_v54 = vadd.f32 1e-05, %v5820_v14  ;;  %vm6141_vm2 = vweird.f32 %v5869_v21 }
 0x6a1   :  { %8222 = vrsqrt.f32 %v5851_v51  ;;  %v6321_v31 = vmul.f32 0.5, %v6289_v42 }
 0x6a2   :  { %8224 = vrsqrt.f32 %v14390_v54  ;;  %v6134_v30 = vsel %vm6133_vm15, %v14362_v15, %v6130_v4  ;;  %vm5971_vm13 = vweird.f32 %v14390_v54 }
 0x6a3   :  { %v5747_v24 = vpop.xlane.xlu2 %5746  ;;  %v6220_v63 = vmul.f32 %v6134_v30, %v16410_v29  ;;  %8226 = vtanh.f32 %v6321_v31 }
 0x6a4   :  { %v5821_v7 = vmul.f32 %v5747_v24, %v12936_v13 }
 0x6a5   :  { %6701 = vadd.xlane.f32.xlu2 %v6700_v62 }
 0x6a6   :  { %v8221_v0 = vpop.eup %8220  ;;  %v14405_v46 = vadd.f32 1e-05, %v5821_v7 }
 0x6a7   :  { %v6136_v48 = vmul.f32 %v8221_v0, %v5869_v21  ;;  %v8223_v26 = vpop.eup %8222  ;;  %vm6142_vm6 = vweird.f32 %v8221_v0 }
 0x6a8   :  { %v5956_v11 = vmul.f32 %v8223_v26, %v5851_v51  ;;  %vm6143_vm3 = vmor %vm6141_vm2, %vm6142_vm6  ;;  %vm5962_vm1 = vweird.f32 %v8223_v26  ;;  %v8225_v21 = vpop.eup %8224  ;;  %8228 = vrsqrt.f32 %v14405_v46  ;;  %vm5981_vm15 = vweird.f32 %v14405_v46 }
 0x6a9   :  { %v6137_v35 = vmul.f32 %v8221_v0, %v6136_v48  ;;  %v5966_v6 = vmul.f32 %v8225_v21, %v14390_v54  ;;  %vm5963_vm7 = vmor %vm5961_vm4, %vm5962_vm1  ;;  %v8227_v22 = vpop.eup %8226  ;;  %vm5972_vm11 = vweird.f32 %v8225_v21 }
 0x6aa   :  { %v5957_v50 = vmul.f32 %v8223_v26, %v5956_v11  ;;  %v6385_v60 = vadd.f32 1.0, %v8227_v22  ;;  %vm5973_vm8 = vmor %vm5971_vm13, %vm5972_vm11 }
 0x6ab   :  { %v6138_v5 = vmul.f32 0.5, %v6137_v35  ;;  %v5967_v47 = vmul.f32 %v8225_v21, %v5966_v6  ;;  %vm16414_vm6 = vmmov %vm16409_vm5 }
 0x6ac   :  { %v5958_v44 = vmul.f32 0.5, %v5957_v50  ;;  %v6417_v45 = vmul.f32 0.5, %v6385_v60  ;;  %vm16416_vm1 = vmmov %vm16409_vm5 }
 0x6ad   :  { %v6139_v1 = vsub.f32 1.5, %v6138_v5  ;;  %v5968_v28 = vmul.f32 0.5, %v5967_v47 }
 0x6ae   :  { %v5959_v52 = vsub.f32 1.5, %v5958_v44  ;;  %v6473_v27 = vmul.f32 %v14409_v20, %v6417_v45  ;;  %v14417_v14 = vpop.eup %8228 }
 0x6af   :  { %v6140_v55 = vmul.f32 %v8221_v0, %v6139_v1  ;;  %v5969_v8 = vsub.f32 1.5, %v5968_v28  ;;  %v5801_v1 = vpop.xlane.xlu0 %5800  ;;  %v5976_v50 = vmul.f32 %v14417_v14, %v14405_v46  ;;  %vm5982_vm2 = vweird.f32 %v14417_v14 }
 0x6b0   :  { %v5960_v15 = vmul.f32 %v8223_v26, %v5959_v52  ;;  %8104 = vmatmul.msk.f32.gmra.mxu3 %vm16411_vm14, %v6473_v27  ;;  %v5839_v44 = vmul.f32 %v5801_v1, %v12936_v13 }
 0x6b1   :  { %v6144_v19 = vsel %vm6143_vm3, %v8221_v0, %v6140_v55  ;;  %v5798_v0 = vpop.xlane.xlu1 %5797  ;;  %v5970_v4 = vmul.f32 %v8225_v21, %v5969_v8  ;;  %vm5983_vm3 = vmor %vm5981_vm15, %vm5982_vm2 }
 0x6b2   :  { %v6221_v39 = vmul.f32 %v6144_v19, %v13986_v53  ;;  %v6255_v53 = vmul.f32 %v14320_v25, %v6220_v63  ;;  %v5964_v34 = vsel %vm5963_vm7, %v8223_v26, %v5960_v15  ;;  %v5838_v62 = vmul.f32 %v5798_v0, %v12936_v13  ;;  %vm16417_vm7 = vmmov %vm16416_vm1 }
 0x6b3   :  { %v6203_v58 = vmul.f32 %v5964_v34, %v14020_v17  ;;  %v6427_v63 = vrot.slane %v13847_v23, 2  ;;  %v14436_v15 = vadd.f32 1e-05, %v5839_v44 }
 0x6b4   :  { %v6256_v41 = vmul.f32 %v14320_v25, %v6221_v39  ;;  %v6290_v51 = vadd.f32 %v14329_v16, %v6255_v53  ;;  %v14419_v26 = vadd.f32 1e-05, %v5838_v62  ;;  %v5974_v39 = vsel %vm5973_vm8, %v8225_v21, %v5970_v4 }
 0x6b5   :  { %v6238_v48 = vmul.f32 %v14320_v25, %v6203_v58  ;;  %v6204_v52 = vmul.f32 %v5974_v39, %v14029_v61  ;;  %v5977_v21 = vmul.f32 %v14417_v14, %v5976_v50 }
 0x6b6   :  { %v6291_v18 = vadd.f32 %v14329_v16, %v6256_v41  ;;  %v6322_v3 = vmul.f32 0.5, %v6290_v51  ;;  %vm6151_vm14 = vweird.f32 %v14419_v26 }
 0x6b7   :  { %v6273_v17 = vadd.f32 %v14329_v16, %v6238_v48  ;;  %v6239_v28 = vmul.f32 %v14320_v25, %v6204_v52  ;;  %v5978_v60 = vmul.f32 0.5, %v5977_v21 }
 0x6b8   :  { %v6323_v35 = vmul.f32 0.5, %v6291_v18  ;;  %8230 = vtanh.f32 %v6322_v3  ;;  %v14446_v18 = vperm.slane %v6427_v63, 0 }
 0x6b9   :  { %v6305_v5 = vmul.f32 0.5, %v6273_v17  ;;  %v6274_v3 = vadd.f32 %v14329_v16, %v6239_v28  ;;  %v5979_v8 = vsub.f32 1.5, %v5978_v60 }
 0x6ba   :  { %8232 = vtanh.f32 %v6323_v35  ;;  %v6605_v43 = vpop.f32.mrf.mxu1 }
 0x6bb   :  { %8234 = vtanh.f32 %v6305_v5  ;;  %v14423_v30 = vadd.f32 %v14373_v40, %v6605_v43  ;;  %v6306_v17 = vmul.f32 0.5, %v6274_v3 }
 0x6bc   :  { %8236 = vrsqrt.f32 %v14419_v26 }
 0x6bd   :  { %v5804_v55 = vpop.xlane.xlu2 %5803  ;;  %v6703_v24 = vsel %vm16412_vm9, %v14423_v30, 0.0  ;;  %8238 = vrsqrt.f32 %v14436_v15  ;;  %vm6161_vm9 = vweird.f32 %v14436_v15 }
 0x6be   :  { %v8231_v11 = vpop.eup %8230  ;;  %v5840_v54 = vmul.f32 %v5804_v55, %v12936_v13  ;;  %6704 = vadd.xlane.f32.xlu0 %v6703_v24 }
 0x6bf   :  { %v6386_v42 = vadd.f32 1.0, %v8231_v11  ;;  %v5750_v49 = vpop.xlane.xlu1 %5749  ;;  %v5980_v11 = vmul.f32 %v14417_v14, %v5979_v8 }
 0x6c0   :  { %v8233_v19 = vpop.eup %8232  ;;  %v14438_v53 = vadd.f32 1e-05, %v5840_v54  ;;  %v5822_v45 = vmul.f32 %v5750_v49, %v12936_v13 }
 0x6c1   :  { %v6418_v31 = vmul.f32 0.5, %v6386_v42  ;;  %v8235_v29 = vpop.eup %8234  ;;  %v6387_v41 = vadd.f32 1.0, %v8233_v19 }
 0x6c2   :  { %v6369_v6 = vadd.f32 1.0, %v8235_v29  ;;  %v6608_v34 = vpop.f32.mrf.mxu1  ;;  %v14441_v47 = vpop.eup %8236  ;;  %8240 = vrsqrt.f32 %v14438_v53  ;;  %v14461_v27 = vadd.f32 1e-05, %v5822_v45  ;;  %v5984_v29 = vsel %vm5983_vm3, %v14417_v14, %v5980_v11  ;;  %vm16418_vm3 = vmmov %vm16416_vm1 }
 0x6c3   :  { %v6474_v7 = vmul.f32 %v14409_v20, %v6418_v31  ;;  %v14444_v58 = vadd.f32 %v14373_v40, %v6608_v34  ;;  %v6419_v22 = vmul.f32 0.5, %v6387_v41  ;;  %v6146_v48 = vmul.f32 %v14441_v47, %v14419_v26  ;;  %v14464_v5 = vpop.eup %8238  ;;  %v5753_v4 = vpop.xlane.xlu0 %5752 }
 0x6c4   :  { %v6401_v61 = vmul.f32 0.5, %v6369_v6  ;;  %8242 = vtanh.f32 %v6306_v17  ;;  %v5823_v50 = vmul.f32 %v5753_v4, %v12936_v13  ;;  %v6156_v19 = vmul.f32 %v14464_v5, %v14436_v15 }
 0x6c5   :  { %8105 = vmatmul.msk.f32.gmra.mxu3 %vm16409_vm5, %v6474_v7  ;;  %v6706_v51 = vsel %vm16413_vm10, %v14444_v58, 0.0  ;;  %v6475_v35 = vmul.f32 %v14409_v20, %v6419_v22  ;;  %v6147_v62 = vmul.f32 %v14441_v47, %v6146_v48  ;;  %8244 = vrsqrt.f32 %v14461_v27 }
 0x6c6   :  { %v6457_v0 = vmul.f32 %v14446_v18, %v6401_v61  ;;  %6707 = vadd.xlane.f32.xlu1 %v6706_v51  ;;  %v14482_v52 = vadd.f32 1e-05, %v5823_v50  ;;  %v6157_v21 = vmul.f32 %v14464_v5, %v6156_v19  ;;  %v6205_v14 = vmul.f32 %v5984_v29, %v14034_v2 }
 0x6c7   :  { %v6148_v55 = vmul.f32 0.5, %v6147_v62  ;;  %vm6152_vm4 = vweird.f32 %v14441_v47  ;;  %vm6162_vm8 = vweird.f32 %v14464_v5  ;;  %vm6171_vm5 = vweird.f32 %v14438_v53 }
 0x6c8   :  { %8088 = vmatmul.msk.f32.gmra.mxu1 %vm16414_vm6, %v6457_v0  ;;  %v14466_v1 = vpop.eup %8240  ;;  %8246 = vrsqrt.f32 %v14482_v52  ;;  %v6158_v28 = vmul.f32 0.5, %v6157_v21  ;;  %vm6153_vm11 = vmor %vm6151_vm14, %vm6152_vm4  ;;  %v6240_v2 = vmul.f32 %v14320_v25, %v6205_v14  ;;  %vm5991_vm2 = vweird.f32 %v14461_v27 }
 0x6c9   :  { %v6166_v42 = vmul.f32 %v14466_v1, %v14438_v53  ;;  %v6149_v63 = vsub.f32 1.5, %v6148_v55  ;;  %vm6172_vm13 = vweird.f32 %v14466_v1  ;;  %vm6163_vm10 = vmor %vm6161_vm9, %vm6162_vm8 }
 0x6ca   :  { %v8243_v24 = vpop.eup %8242  ;;  %v6159_v48 = vsub.f32 1.5, %v6158_v28  ;;  %vm6173_vm6 = vmor %vm6171_vm5, %vm6172_vm13 }
 0x6cb   :  { %v6370_v31 = vadd.f32 1.0, %v8243_v24  ;;  %v6167_v41 = vmul.f32 %v14466_v1, %v6166_v42  ;;  %v14490_v34 = vpop.eup %8244  ;;  %v6150_v61 = vmul.f32 %v14441_v47, %v6149_v63  ;;  %vm16419_vm8 = vmmov %vm16418_vm3 }
 0x6cc   :  { %v5986_v60 = vmul.f32 %v14490_v34, %v14461_v27  ;;  %vm16420_vm9 = vmmov %vm16418_vm3 }
 0x6cd   :  { %8106 = vmatmul.msk.f32.gmra.mxu3 %vm16415_vm12, %v6475_v35  ;;  %v6402_v46 = vmul.f32 0.5, %v6370_v31  ;;  %v6168_v22 = vmul.f32 0.5, %v6167_v41  ;;  %v6154_v51 = vsel %vm6153_vm11, %v14441_v47, %v6150_v61  ;;  %v6275_v35 = vadd.f32 %v14329_v16, %v6240_v2  ;;  %vm16421_vm5 = vmmov %vm16418_vm3 }
 0x6ce   :  { %v5987_v45 = vmul.f32 %v14490_v34, %v5986_v60  ;;  %v14505_v3 = vpop.eup %8246  ;;  %v6222_v8 = vmul.f32 %v6154_v51, %v14101_v57  ;;  %v6160_v47 = vmul.f32 %v14464_v5, %v6159_v48  ;;  %vm5992_vm12 = vweird.f32 %v14490_v34 }
 0x6cf   :  { %v6458_v49 = vmul.f32 %v14446_v18, %v6402_v46  ;;  %v6169_v0 = vsub.f32 1.5, %v6168_v22  ;;  %v6307_v26 = vmul.f32 0.5, %v6275_v35  ;;  %vm5993_vm15 = vmor %vm5991_vm2, %vm5992_vm12 }
 0x6d0   :  { %v5988_v4 = vmul.f32 0.5, %v5987_v45  ;;  %v6257_v57 = vmul.f32 %v14320_v25, %v6222_v8  ;;  %v6164_v50 = vsel %vm6163_vm10, %v14464_v5, %v6160_v47  ;;  %vm16422_vm10 = vmmov %vm16418_vm3 }
 0x6d1   :  { %8089 = vmatmul.msk.f32.gmra.mxu1 %vm16417_vm7, %v6458_v49  ;;  %v6170_v62 = vmul.f32 %v14466_v1, %v6169_v0  ;;  %v6223_v53 = vmul.f32 %v6164_v50, %v14115_v32  ;;  %vm6001_vm7 = vweird.f32 %v14482_v52  ;;  %vm16424_vm12 = vmmov %vm16418_vm3 }
 0x6d2   :  { %v6611_v44 = vpop.f32.mrf.mxu1  ;;  %v5989_v42 = vsub.f32 1.5, %v5988_v4  ;;  %v6292_v15 = vadd.f32 %v14329_v16, %v6257_v57  ;;  %vm16425_vm2 = vmmov %vm16418_vm3 }
 0x6d3   :  { %v14479_v54 = vadd.f32 %v14373_v40, %v6611_v44  ;;  %v6174_v55 = vsel %vm6173_vm6, %v14466_v1, %v6170_v62  ;;  %v6258_v41 = vmul.f32 %v14320_v25, %v6223_v53  ;;  %vm16423_vm6 = vmmov %vm16418_vm3 }
 0x6d4   :  { %v6224_v24 = vmul.f32 %v6174_v55, %v14122_v37  ;;  %v6324_v31 = vmul.f32 0.5, %v6292_v15  ;;  %v5990_v29 = vmul.f32 %v14490_v34, %v5989_v42 }
 0x6d5   :  { %v6709_v7 = vsel %vm16416_vm1, %v14479_v54, 0.0  ;;  %v6293_v14 = vadd.f32 %v14329_v16, %v6258_v41  ;;  %vm6002_vm1 = vweird.f32 %v14505_v3 }
 0x6d6   :  { %6710 = vadd.xlane.f32.xlu2 %v6709_v7  ;;  %v6259_v21 = vmul.f32 %v14320_v25, %v6224_v24  ;;  %v5994_v37 = vsel %vm5993_vm15, %v14490_v34, %v5990_v29  ;;  %vm6003_vm14 = vmor %vm6001_vm7, %vm6002_vm1 }
 0x6d7   :  { %v6206_v27 = vmul.f32 %v5994_v37, %v14171_v36  ;;  %v6325_v28 = vmul.f32 0.5, %v6293_v14  ;;  %vm16426_vm15 = vmmov %vm16425_vm2 }
 0x6d8   :  { %v6294_v61 = vadd.f32 %v14329_v16, %v6259_v21 }
 0x6d9   :  { %v6241_v36 = vmul.f32 %v14320_v25, %v6206_v27 }
 0x6da   :  { %v6326_v60 = vmul.f32 0.5, %v6294_v61 }
 0x6db   :  { %v6276_v8 = vadd.f32 %v14329_v16, %v6241_v36 }
 0x6de   :  { %v5807_v43 = vpop.xlane.xlu1 %5806 }
 0x6df   :  { %v5841_v39 = vmul.f32 %v5807_v43, %v12936_v13  ;;  %v5996_v43 = vmul.f32 %v14505_v3, %v14482_v52  ;;  %v6432_v52 = vrot.slane %v13847_v23, 7 }
 0x6e1   :  { %v14488_v6 = vadd.f32 1e-05, %v5841_v39  ;;  %v5997_v19 = vmul.f32 %v14505_v3, %v5996_v43 }
 0x6e3   :  { %8248 = vrsqrt.f32 %v14488_v6  ;;  %v5998_v1 = vmul.f32 0.5, %v5997_v19  ;;  %vm6181_vm11 = vweird.f32 %v14488_v6 }
 0x6e4   :  { %8250 = vtanh.f32 %v6307_v26 }
 0x6e5   :  { %8252 = vtanh.f32 %v6324_v31  ;;  %v5999_v32 = vsub.f32 1.5, %v5998_v1 }
 0x6e6   :  { %8254 = vtanh.f32 %v6325_v28 }
 0x6e7   :  { %v6000_v2 = vmul.f32 %v14505_v3, %v5999_v32  ;;  %8256 = vtanh.f32 %v6326_v60 }
 0x6e9   :  { %v14508_v17 = vpop.eup %8248  ;;  %v6004_v48 = vsel %vm6003_vm14, %v14505_v3, %v6000_v2  ;;  %vm16428_vm14 = vmmov %vm16425_vm2 }
 0x6ea   :  { %v6176_v11 = vmul.f32 %v14508_v17, %v14488_v6  ;;  %v8251_v44 = vpop.eup %8250  ;;  %vm6182_vm4 = vweird.f32 %v14508_v17  ;;  %v6207_v62 = vmul.f32 %v6004_v48, %v14187_v12  ;;  %v6308_v6 = vmul.f32 0.5, %v6276_v8 }
 0x6eb   :  { %v6371_v63 = vadd.f32 1.0, %v8251_v44  ;;  %v8253_v22 = vpop.eup %8252  ;;  %vm6183_vm13 = vmor %vm6181_vm11, %vm6182_vm4 }
 0x6ec   :  { %v6177_v39 = vmul.f32 %v14508_v17, %v6176_v11  ;;  %v6388_v34 = vadd.f32 1.0, %v8253_v22  ;;  %v8255_v26 = vpop.eup %8254  ;;  %8258 = vtanh.f32 %v6308_v6  ;;  %v6242_v23 = vmul.f32 %v14320_v25, %v6207_v62 }
 0x6ed   :  { %v6403_v7 = vmul.f32 0.5, %v6371_v63  ;;  %v6389_v43 = vadd.f32 1.0, %v8255_v26  ;;  %v8257_v3 = vpop.eup %8256 }
 0x6ee   :  { %v6178_v5 = vmul.f32 0.5, %v6177_v39  ;;  %v6420_v0 = vmul.f32 0.5, %v6388_v34  ;;  %v6390_v55 = vadd.f32 1.0, %v8257_v3  ;;  %v6277_v50 = vadd.f32 %v14329_v16, %v6242_v23 }
 0x6ef   :  { %v6459_v46 = vmul.f32 %v14446_v18, %v6403_v7 }
 0x6f0   :  { %v6179_v49 = vsub.f32 1.5, %v6178_v5  ;;  %v6476_v45 = vmul.f32 %v14409_v20, %v6420_v0  ;;  %v6421_v20 = vmul.f32 0.5, %v6389_v43  ;;  %v6309_v39 = vmul.f32 0.5, %v6277_v50 }
 0x6f1   :  { %8090 = vmatmul.msk.f32.gmra.mxu1 %vm16418_vm3, %v6459_v46  ;;  %v6422_v24 = vmul.f32 0.5, %v6390_v55  ;;  %vm16427_vm3 = vmmov %vm16425_vm2 }
 0x6f2   :  { %v6180_v51 = vmul.f32 %v14508_v17, %v6179_v49  ;;  %8107 = vmatmul.msk.f32.gmra.mxu3 %vm16419_vm8, %v6476_v45  ;;  %v8259_v19 = vpop.eup %8258  ;;  %8260 = vtanh.f32 %v6309_v39 }
 0x6f3   :  { %v6372_v44 = vadd.f32 1.0, %v8259_v19 }
 0x6f4   :  { %v6184_v35 = vsel %vm6183_vm13, %v14508_v17, %v6180_v51  ;;  %v14558_v17 = vperm.slane %v6432_v52, 0 }
 0x6f5   :  { %v6225_v47 = vmul.f32 %v6184_v35, %v14235_v9  ;;  %v6404_v29 = vmul.f32 0.5, %v6372_v44 }
 0x6f6   :  { %v6477_v12 = vmul.f32 %v14558_v17, %v6421_v20  ;;  %v6478_v5 = vmul.f32 %v14558_v17, %v6422_v24 }
 0x6f7   :  { %v6614_v4 = vpop.f32.mrf.mxu1  ;;  %v6260_v9 = vmul.f32 %v14320_v25, %v6225_v47  ;;  %v6460_v63 = vmul.f32 %v14446_v18, %v6404_v29 }
 0x6f8   :  { %v14556_v11 = vadd.f32 %v14373_v40, %v6614_v4  ;;  %v8261_v21 = vpop.eup %8260 }
 0x6f9   :  { %v6295_v42 = vadd.f32 %v14329_v16, %v6260_v9  ;;  %8091 = vmatmul.msk.f32.gmra.mxu1 %vm16423_vm6, %v6460_v63  ;;  %v6373_v46 = vadd.f32 1.0, %v8261_v21  ;;  %vm16429_vm6 = vmmov %vm16425_vm2 }
 0x6fa   :  { %v6712_v57 = vsel %vm16420_vm9, %v14556_v11, 0.0  ;;  %8108 = vmatmul.msk.f32.gmra.mxu3 %vm16421_vm5, %v6477_v12 }
 0x6fb   :  { %6713 = vadd.xlane.f32.xlu0 %v6712_v57  ;;  %v6327_v53 = vmul.f32 0.5, %v6295_v42  ;;  %v6405_v14 = vmul.f32 0.5, %v6373_v46 }
 0x6fd   :  { %8262 = vtanh.f32 %v6327_v53  ;;  %v6461_v22 = vmul.f32 %v14080_v38, %v6405_v14 }
 0x6ff   :  { %v6617_v15 = vpop.f32.mrf.mxu1 }
 0x700   :  { %v14569_v31 = vadd.f32 %v14373_v40, %v6617_v15  ;;  %v5759_v51 = vpop.xlane.xlu1 %5758 }
 0x701   :  { %8092 = vmatmul.msk.f32.gmra.mxu1 %vm16425_vm2, %v6461_v22  ;;  %v5825_v36 = vmul.f32 %v5759_v51, %v12936_v13 }
 0x702   :  { %v6715_v1 = vsel %vm16422_vm10, %v14569_v31, 0.0  ;;  %8109 = vmatmul.msk.f32.gmra.mxu3 %vm16424_vm12, %v6478_v5  ;;  %vm16430_vm12 = vmmov %vm16425_vm2 }
 0x703   :  { %6716 = vadd.xlane.f32.xlu1 %v6715_v1  ;;  %v8263_v37 = vpop.eup %8262  ;;  %v5857_v8 = vadd.f32 1e-05, %v5825_v36 }
 0x704   :  { %v6391_v49 = vadd.f32 1.0, %v8263_v37 }
 0x705   :  { %vm6021_vm5 = vweird.f32 %v5857_v8 }
 0x706   :  { %v6423_v61 = vmul.f32 0.5, %v6391_v49 }
 0x707   :  { %v6620_v28 = vpop.f32.mrf.mxu1 }
 0x708   :  { %v6479_v18 = vmul.f32 %v14558_v17, %v6423_v61  ;;  %v14583_v2 = vadd.f32 %v14373_v40, %v6620_v28 }
 0x70a   :  { %8110 = vmatmul.msk.f32.gmra.mxu3 %vm16426_vm15, %v6479_v18  ;;  %v6718_v45 = vsel %vm16427_vm3, %v14583_v2, 0.0  ;;  %vm16431_vm15 = vmmov %vm16425_vm2 }
 0x70b   :  { %6719 = vadd.xlane.f32.xlu2 %v6718_v45  ;;  %vm16432_vm3 = vmmov %vm16425_vm2  ;;  %v6647_v45 = vpop.f32.mrf.mxu3 }
 0x70e   :  { %v5810_v7 = vpop.xlane.xlu0 %5809 }
 0x70f   :  { %v5842_v41 = vmul.f32 %v5810_v7, %v12936_v13 }
 0x710   :  { %v5756_v34 = vpop.xlane.xlu2 %5755  ;;  %v6623_v6 = vpop.f32.mrf.mxu1 }
 0x711   :  { %v5874_v32 = vadd.f32 1e-05, %v5842_v41  ;;  %v5824_v0 = vmul.f32 %v5756_v34, %v12936_v13  ;;  %v14590_v47 = vadd.f32 %v14373_v40, %v6623_v6 }
 0x713   :  { %8264 = vrsqrt.f32 %v5874_v32  ;;  %v5856_v35 = vadd.f32 1e-05, %v5824_v0  ;;  %vm6191_vm4 = vweird.f32 %v5874_v32  ;;  %v6721_v20 = vsel %vm16428_vm14, %v14590_v47, 0.0 }
 0x714   :  { %6722 = vadd.xlane.f32.xlu0 %v6721_v20 }
 0x715   :  { %8266 = vrsqrt.f32 %v5856_v35  ;;  %vm6011_vm8 = vweird.f32 %v5856_v35 }
 0x716   :  { %8268 = vrsqrt.f32 %v5857_v8 }
 0x719   :  { %v8265_v27 = vpop.eup %8264 }
 0x71a   :  { %v6186_v60 = vmul.f32 %v8265_v27, %v5874_v32  ;;  %vm6192_vm1 = vweird.f32 %v8265_v27 }
 0x71b   :  { %vm6193_vm7 = vmor %vm6191_vm4, %vm6192_vm1  ;;  %v8267_v43 = vpop.eup %8266 }
 0x71c   :  { %v6187_v48 = vmul.f32 %v8265_v27, %v6186_v60  ;;  %v8269_v57 = vpop.eup %8268  ;;  %v6006_v23 = vmul.f32 %v8267_v43, %v5856_v35  ;;  %vm6012_vm11 = vweird.f32 %v8267_v43  ;;  %vm16433_vm1 = vmmov %vm16425_vm2 }
 0x71d   :  { %v6016_v55 = vmul.f32 %v8269_v57, %v5857_v8  ;;  %vm6022_vm13 = vweird.f32 %v8269_v57  ;;  %vm6013_vm9 = vmor %vm6011_vm8, %vm6012_vm11 }
 0x71e   :  { %v6188_v52 = vmul.f32 0.5, %v6187_v48  ;;  %v6007_v9 = vmul.f32 %v8267_v43, %v6006_v23  ;;  %vm6023_vm10 = vmor %vm6021_vm5, %vm6022_vm13 }
 0x71f   :  { %v6017_v42 = vmul.f32 %v8269_v57, %v6016_v55  ;;  %vm16434_vm4 = vmmov %vm16433_vm1  ;;  %v14639_v55 = vadd.f32 %v14373_v40, %v6647_v45 }
 0x720   :  { %v6189_v26 = vsub.f32 1.5, %v6188_v52  ;;  %v6008_v19 = vmul.f32 0.5, %v6007_v9  ;;  %v6650_v52 = vpop.f32.mrf.mxu3  ;;  %vm16436_vm14 = vmmov %vm16433_vm1 }
 0x721   :  { %v6018_v15 = vmul.f32 0.5, %v6017_v42  ;;  %v6745_v42 = vsel %vm16436_vm14, %v14639_v55, 0.0  ;;  %vm16437_vm11 = vmmov %vm16433_vm1 }
 0x722   :  { %v6190_v62 = vmul.f32 %v8265_v27, %v6189_v26  ;;  %v6009_v44 = vsub.f32 1.5, %v6008_v19  ;;  %vm16438_vm13 = vmmov %vm16433_vm1 }
 0x723   :  { %vm16439_vm8 = vmmov %vm16433_vm1 }
 0x724   :  { %v6194_v4 = vsel %vm6193_vm7, %v8265_v27, %v6190_v62  ;;  %v6010_v24 = vmul.f32 %v8267_v43, %v6009_v44  ;;  %vm16435_vm7 = vmmov %vm16433_vm1 }
 0x725   :  { %v6226_v3 = vmul.f32 %v6194_v4, %v14345_v10  ;;  %v6019_v10 = vsub.f32 1.5, %v6018_v15  ;;  %vm16441_vm5 = vmmov %vm16433_vm1 }
 0x726   :  { %v6014_v29 = vsel %vm6013_vm9, %v8267_v43, %v6010_v24  ;;  %vm16440_vm9 = vmmov %vm16433_vm1 }
 0x727   :  { %v6261_v12 = vmul.f32 %v14320_v25, %v6226_v3  ;;  %v6020_v53 = vmul.f32 %v8269_v57, %v6019_v10  ;;  %v6208_v1 = vmul.f32 %v6014_v29, %v14357_v33  ;;  %vm16450_vm14 = vmmov %vm16433_vm1 }
 0x728   :  { %v14624_v26 = vpop.f32.mrf.mxu3 }
 0x729   :  { %v6296_v50 = vadd.f32 %v14329_v16, %v6261_v12  ;;  %v6024_v63 = vsel %vm6023_vm10, %v8269_v57, %v6020_v53  ;;  %v6243_v41 = vmul.f32 %v14320_v25, %v6208_v1  ;;  %vm16442_vm10 = vmmov %vm16433_vm1 }
 0x72a   :  { %v6209_v5 = vmul.f32 %v6024_v63, %v14360_v56 }
 0x72b   :  { %v6328_v39 = vmul.f32 0.5, %v6296_v50  ;;  %v6278_v32 = vadd.f32 %v14329_v16, %v6243_v41 }
 0x72c   :  { %v6244_v37 = vmul.f32 %v14320_v25, %v6209_v5 }
 0x72d   :  { %8270 = vtanh.f32 %v6328_v39  ;;  %v6310_v14 = vmul.f32 0.5, %v6278_v32 }
 0x72e   :  { %v6279_v49 = vadd.f32 %v14329_v16, %v6244_v37 }
 0x72f   :  { %8272 = vtanh.f32 %v6310_v14 }
 0x730   :  { %v6311_v22 = vmul.f32 0.5, %v6279_v49  ;;  %v6656_v4 = vpop.f32.mrf.mxu3 }
 0x731   :  { %v6705_v12 = vpop.xlane.xlu0 %6704  ;;  %v14653_v10 = vadd.f32 %v14373_v40, %v6656_v4  ;;  %v14714_v4 = vadd.f32 %v14373_v40, %v14624_v26 }
 0x732   :  { %8274 = vtanh.f32 %v6311_v22  ;;  %v6797_v9 = vmul.f32 %v6705_v12, %v12936_v13  ;;  %v6702_v22 = vpop.xlane.xlu2 %6701 }
 0x733   :  { %v8271_v7 = vpop.eup %8270  ;;  %v6754_v29 = vsel %vm16438_vm13, %v14653_v10, 0.0  ;;  %vm16452_vm13 = vmmov %vm16433_vm1 }
 0x734   :  { %v6392_v21 = vadd.f32 1.0, %v8271_v7  ;;  %v14643_v50 = vsub.f32 %v14423_v30, %v6797_v9 }
 0x735   :  { %v8273_v33 = vpop.eup %8272 }
 0x736   :  { %v6424_v46 = vmul.f32 0.5, %v6392_v21  ;;  %v6374_v18 = vadd.f32 1.0, %v8273_v33  ;;  %v6861_v39 = vmul.f32 %v14643_v50, %v14643_v50 }
 0x738   :  { %v6480_v61 = vmul.f32 %v14558_v17, %v6424_v46  ;;  %v8275_v56 = vpop.eup %8274  ;;  %v6406_v27 = vmul.f32 0.5, %v6374_v18  ;;  %v14636_v23 = vpop.f32.mrf.mxu3  ;;  %v6895_v15 = vsel %vm16437_vm11, %v6861_v39, 0.0  ;;  %v14684_v18 = vadd.f32 %v14373_v40, %v6650_v52  ;;  %vm16451_vm11 = vmmov %vm16433_vm1 }
 0x739   :  { %v6375_v28 = vadd.f32 1.0, %v8275_v56  ;;  %v6708_v33 = vpop.xlane.xlu1 %6707 }
 0x73a   :  { %8111 = vmatmul.msk.f32.gmra.mxu3 %vm16429_vm6, %v6480_v61  ;;  %v6462_v25 = vmul.f32 %v14080_v38, %v6406_v27  ;;  %v6796_v27 = vmul.f32 %v6702_v22, %v12936_v13  ;;  %vm16443_vm6 = vmmov %vm16433_vm1 }
 0x73b   :  { %v6407_v60 = vmul.f32 0.5, %v6375_v28  ;;  %v6798_v28 = vmul.f32 %v6708_v33, %v12936_v13 }
 0x73c   :  { %8093 = vmatmul.msk.f32.gmra.mxu1 %vm16430_vm12, %v6462_v25  ;;  %vm16444_vm12 = vmmov %vm16433_vm1 }
 0x73d   :  { %v6463_v16 = vmul.f32 %v14080_v38, %v6407_v60 }
 0x740   :  { %v14647_v19 = vpop.f32.mrf.mxu3 }
 0x744   :  { %8094 = vmatmul.msk.f32.gmra.mxu1 %vm16425_vm2, %v6463_v16  ;;  %vm16445_vm2 = vmmov %vm16433_vm1 }
 0x745   :  { %v6626_v17 = vpop.f32.mrf.mxu1 }
 0x746   :  { %v14610_v34 = vadd.f32 %v14373_v40, %v6626_v17  ;;  %v14695_v17 = vsub.f32 %v14381_v59, %v6796_v27 }
 0x748   :  { %v6724_v51 = vsel %vm16431_vm15, %v14610_v34, 0.0  ;;  %v6665_v30 = vpop.f32.mrf.mxu3  ;;  %vm16446_vm15 = vmmov %vm16433_vm1 }
 0x749   :  { %6725 = vadd.xlane.f32.xlu1 %v6724_v51  ;;  %v14665_v41 = vadd.f32 %v14373_v40, %v6665_v30  ;;  %v14698_v51 = vsub.f32 %v14444_v58, %v6798_v28  ;;  %v6711_v52 = vpop.xlane.xlu2 %6710  ;;  %v14740_v30 = vadd.f32 %v14373_v40, %v14647_v19 }
 0x74b   :  { %v6763_v37 = vsel %vm16440_vm9, %v14665_v41, 0.0  ;;  %v6862_v59 = vmul.f32 %v14698_v51, %v14698_v51  ;;  %vm16454_vm9 = vmmov %vm16433_vm1 }
 0x74e   :  { %v6629_v0 = vpop.f32.mrf.mxu1 }
 0x74f   :  { %v14615_v36 = vadd.f32 %v14373_v40, %v6629_v0 }
 0x750   :  { %v6668_v63 = vpop.f32.mrf.mxu3 }
 0x751   :  { %v6727_v48 = vsel %vm16432_vm3, %v14615_v36, 0.0  ;;  %vm16447_vm3 = vmmov %vm16433_vm1 }
 0x752   :  { %6728 = vadd.xlane.f32.xlu2 %v6727_v48  ;;  %v6748_v48 = vsel %vm16444_vm12, %v14684_v18, 0.0  ;;  %vm16458_vm12 = vmmov %vm16433_vm1 }
 0x758   :  { %v14673_v32 = vpop.f32.mrf.mxu3 }
 0x760   :  { %v6674_v56 = vpop.f32.mrf.mxu3 }
 0x761   :  { %v14689_v25 = vadd.f32 %v14373_v40, %v6674_v56 }
 0x763   :  { %v6772_v45 = vsel %vm16445_vm2, %v14689_v25, 0.0  ;;  %vm16459_vm2 = vmmov %vm16433_vm1 }
 0x76e   :  { %v6632_v38 = vpop.f32.mrf.mxu1  ;;  %v6714_v44 = vpop.xlane.xlu0 %6713 }
 0x76f   :  { %v14620_v35 = vadd.f32 %v14373_v40, %v6632_v38  ;;  %v6800_v24 = vmul.f32 %v6714_v44, %v12936_v13  ;;  %v6860_v38 = vmul.f32 %v14695_v17, %v14695_v17 }
 0x771   :  { %v6730_v8 = vsel %vm16433_vm1, %v14620_v35, 0.0  ;;  %v14657_v53 = vsub.f32 %v14556_v11, %v6800_v24  ;;  %v6892_v58 = vsel %vm16446_vm15, %v6860_v38, 0.0  ;;  %vm16460_vm15 = vmmov %vm16433_vm1 }
 0x772   :  { %6731 = vadd.xlane.f32.xlu0 %v6730_v8  ;;  %v6898_v8 = vsel %vm16447_vm3, %v6862_v59, 0.0  ;;  %vm16461_vm3 = vmmov %vm16433_vm1 }
 0x773   :  { %v6864_v1 = vmul.f32 %v14657_v53, %v14657_v53 }
 0x775   :  { %v6904_v5 = vsel %vm16439_vm8, %v6864_v1, 0.0  ;;  %vm16453_vm8 = vmmov %vm16433_vm1 }
 0x776   :  { %v6635_v62 = vpop.f32.mrf.mxu1 }
 0x777   :  { %v14627_v6 = vadd.f32 %v14373_v40, %v6635_v62  ;;  %v6717_v62 = vpop.xlane.xlu1 %6716 }
 0x779   :  { %v6733_v43 = vsel %vm16434_vm4, %v14627_v6, 0.0  ;;  %vm16448_vm4 = vmmov %vm16433_vm1 }
 0x77a   :  { %6734 = vadd.xlane.f32.xlu1 %v6733_v43  ;;  %v14718_v43 = vadd.f32 %v14373_v40, %v14636_v23  ;;  %v6677_v23 = vpop.f32.mrf.mxu3 }
 0x77c   :  { %v6757_v26 = vsel %vm16448_vm4, %v14718_v43, 0.0  ;;  %vm16462_vm4 = vmmov %vm16433_vm1 }
 0x77e   :  { %v6638_v3 = vpop.f32.mrf.mxu1  ;;  %v6720_v44 = vpop.xlane.xlu2 %6719 }
 0x77f   :  { %v14632_v20 = vadd.f32 %v14373_v40, %v6638_v3  ;;  %v6799_v3 = vmul.f32 %v6711_v52, %v12936_v13  ;;  %v6802_v1 = vmul.f32 %v6720_v44, %v12936_v13 }
 0x781   :  { %v6736_v57 = vsel %vm16435_vm7, %v14632_v20, 0.0  ;;  %v14723_v12 = vsub.f32 %v14479_v54, %v6799_v3  ;;  %vm16449_vm7 = vmmov %vm16433_vm1 }
 0x782   :  { %6737 = vadd.xlane.f32.xlu2 %v6736_v57  ;;  %v6801_v57 = vmul.f32 %v6717_v62, %v12936_v13 }
 0x783   :  { %v6863_v39 = vmul.f32 %v14723_v12, %v14723_v12 }
 0x784   :  { %v14726_v9 = vsub.f32 %v14569_v31, %v6801_v57 }
 0x785   :  { %v6901_v54 = vsel %vm16449_vm7, %v6863_v39, 0.0  ;;  %vm16463_vm7 = vmmov %vm16433_vm1 }
 0x787   :  { %v6723_v7 = vpop.xlane.xlu0 %6722 }
 0x788   :  { %v6803_v21 = vmul.f32 %v6723_v7, %v12936_v13  ;;  %v6680_v7 = vpop.f32.mrf.mxu3 }
 0x78a   :  { %6746 = vadd.xlane.f32.xlu2 %v6745_v42  ;;  %v14669_v11 = vsub.f32 %v14590_v47, %v6803_v21  ;;  %v6751_v42 = vsel %vm16433_vm1, %v14714_v4, 0.0 }
 0x78c   :  { %v6867_v46 = vmul.f32 %v14669_v11, %v14669_v11 }
 0x78e   :  { %v6913_v47 = vsel %vm16442_vm10, %v6867_v46, 0.0  ;;  %v6760_v46 = vsel %vm16451_vm11, %v14740_v30, 0.0  ;;  %vm16456_vm10 = vmmov %vm16433_vm1 }
 0x790   :  { %v6683_v33 = vpop.f32.mrf.mxu3 }
 0x792   :  { %6896 = vadd.xlane.f32.xlu2 %v6895_v15  ;;  %v6865_v15 = vmul.f32 %v14726_v9, %v14726_v9 }
 0x794   :  { %v6907_v31 = vsel %vm16450_vm14, %v6865_v15, 0.0  ;;  %vm16464_vm14 = vmmov %vm16433_vm1 }
 0x79a   :  { %6755 = vadd.xlane.f32.xlu2 %v6754_v29  ;;  %v14743_v29 = vadd.f32 %v14373_v40, %v6668_v63 }
 0x79c   :  { %v6766_v63 = vsel %vm16452_vm13, %v14743_v29, 0.0 }
 0x7a2   :  { %6905 = vadd.xlane.f32.xlu2 %v6904_v5 }
 0x7aa   :  { %6764 = vadd.xlane.f32.xlu2 %v6763_v37 }
 0x7b2   :  { %6914 = vadd.xlane.f32.xlu2 %v6913_v47 }
 0x7b9   :  { %v6641_v49 = vpop.f32.mrf.mxu1 }
 0x7ba   :  { %v14678_v14 = vadd.f32 %v14373_v40, %v6641_v49  ;;  %6773 = vadd.xlane.f32.xlu2 %v6772_v45  ;;  %v14751_v49 = vsub.f32 %v14583_v2, %v6802_v1 }
 0x7bc   :  { %v6739_v61 = vsel %vm16441_vm5, %v14678_v14, 0.0  ;;  %v6726_v24 = vpop.xlane.xlu1 %6725  ;;  %v6866_v2 = vmul.f32 %v14751_v49, %v14751_v49  ;;  %vm16455_vm5 = vmmov %vm16433_vm1 }
 0x7bd   :  { %6740 = vadd.xlane.f32.xlu0 %v6739_v61  ;;  %v6804_v5 = vmul.f32 %v6726_v24, %v12936_v13 }
 0x7be   :  { %v6910_v56 = vsel %vm16454_vm9, %v6866_v2, 0.0  ;;  %vm16465_vm9 = vmmov %vm16433_vm1 }
 0x7bf   :  { %v14754_v19 = vsub.f32 %v14610_v34, %v6804_v5 }
 0x7c1   :  { %v6644_v60 = vpop.f32.mrf.mxu1  ;;  %v6868_v34 = vmul.f32 %v14754_v19, %v14754_v19 }
 0x7c2   :  { %v14692_v16 = vadd.f32 %v14373_v40, %v6644_v60 }
 0x7c3   :  { %v6916_v27 = vsel %vm16455_vm5, %v6868_v34, 0.0  ;;  %vm16466_vm5 = vmmov %vm16433_vm1 }
 0x7c4   :  { %v6742_v0 = vsel %vm16443_vm6, %v14692_v16, 0.0  ;;  %vm16457_vm6 = vmmov %vm16433_vm1 }
 0x7c5   :  { %6743 = vadd.xlane.f32.xlu1 %v6742_v0  ;;  %6749 = vadd.xlane.f32.xlu0 %v6748_v48  ;;  %v6729_v28 = vpop.xlane.xlu2 %6728 }
 0x7c6   :  { %v6805_v48 = vmul.f32 %v6729_v28, %v12936_v13 }
 0x7c8   :  { %v14789_v38 = vsub.f32 %v14615_v36, %v6805_v48 }
 0x7cd   :  { %6893 = vadd.xlane.f32.xlu1 %v6892_v58  ;;  %6899 = vadd.xlane.f32.xlu0 %v6898_v8 }
 0x7d5   :  { %6752 = vadd.xlane.f32.xlu1 %v6751_v42  ;;  %6758 = vadd.xlane.f32.xlu0 %v6757_v26  ;;  %v6686_v26 = vpop.f32.mrf.mxu3 }
 0x7dd   :  { %6902 = vadd.xlane.f32.xlu1 %v6901_v54  ;;  %6908 = vadd.xlane.f32.xlu0 %v6907_v31  ;;  %v6689_v5 = vpop.f32.mrf.mxu3 }
 0x7e5   :  { %v6732_v21 = vpop.xlane.xlu0 %6731  ;;  %6761 = vadd.xlane.f32.xlu1 %v6760_v46  ;;  %6767 = vadd.xlane.f32.xlu0 %v6766_v63 }
 0x7e6   :  { %v6806_v37 = vmul.f32 %v6732_v21, %v12936_v13 }
 0x7e8   :  { %v14757_v40 = vsub.f32 %v14620_v35, %v6806_v37  ;;  %v14771_v35 = vld [vmem:[%s15718_s13] ss:$0 sm:$0xff] }
 0x7e9   :  { %v14774_v47 = vadd.f32 %v14771_v35, %v6683_v33  ;;  %v14780_v60 = vadd.f32 %v14771_v35, %v14673_v32  ;;  %v14783_v0 = vadd.f32 %v14771_v35, %v6677_v23  ;;  %v6869_v32 = vmul.f32 %v14789_v38, %v14789_v38 }
 0x7ea   :  { %v6870_v61 = vmul.f32 %v14757_v40, %v14757_v40  ;;  %v14805_v57 = vadd.f32 %v14771_v35, %v6680_v7  ;;  %v14810_v15 = vadd.f32 %v14771_v35, %v6686_v26  ;;  %v14823_v7 = vadd.f32 %v14771_v35, %v6689_v5 }
 0x7eb   :  { %v6781_v45 = vsel %vm16456_vm10, %v14774_v47, 0.0  ;;  %v6769_v59 = vsel %vm16457_vm6, %v14780_v60, 0.0  ;;  %v6775_v58 = vsel %vm16458_vm12, %v14783_v0, 0.0  ;;  %v6919_v36 = vsel %vm16459_vm2, %v6869_v32, 0.0  ;;  %vm16467_vm10 = vmmov %vm16433_vm1 }
 0x7ec   :  { %v6922_v22 = vsel %vm16453_vm8, %v6870_v61, 0.0  ;;  %v6778_v54 = vsel %vm16461_vm3, %v14805_v57, 0.0  ;;  %v6784_v31 = vsel %vm16433_vm1, %v14810_v15, 0.0  ;;  %v6787_v61 = vsel %vm16463_vm7, %v14823_v7, 0.0  ;;  %vm16468_vm6 = vmmov %vm16433_vm1 }
 0x7ed   :  { %6923 = vadd.xlane.f32.xlu2 %v6922_v22  ;;  %6911 = vadd.xlane.f32.xlu1 %v6910_v56  ;;  %v6735_v8 = vpop.xlane.xlu1 %6734  ;;  %vm16469_vm12 = vmmov %vm16433_vm1 }
 0x7ee   :  { %6917 = vadd.xlane.f32.xlu0 %v6916_v27  ;;  %v6807_v52 = vmul.f32 %v6735_v8, %v12936_v13  ;;  %vm16470_vm2 = vmmov %vm16433_vm1 }
 0x7f0   :  { %v14799_v62 = vsub.f32 %v14627_v6, %v6807_v52  ;;  %v14851_v52 = vld [vmem:[%s15721_s16] ss:$0 sm:$0xff] }
 0x7f2   :  { %v6871_v3 = vmul.f32 %v14799_v62, %v14799_v62 }
 0x7f4   :  { %v6925_v42 = vsel %vm16460_vm15, %v6871_v3, 0.0  ;;  %vm16471_vm15 = vmmov %vm16433_vm1 }
 0x7f5   :  { %6782 = vadd.xlane.f32.xlu2 %v6781_v45  ;;  %6770 = vadd.xlane.f32.xlu1 %v6769_v59  ;;  %v6738_v23 = vpop.xlane.xlu2 %6737  ;;  %v14839_v59 = vld [vmem:[%s15719_s14] ss:$0 sm:$0xff] }
 0x7f6   :  { %6776 = vadd.xlane.f32.xlu0 %v6775_v58  ;;  %v6808_v39 = vmul.f32 %v6738_v23, %v12936_v13  ;;  %v14844_v58 = vld [vmem:[%s15720_s15] ss:$0 sm:$0xff] }
 0x7f8   :  { %v14813_v6 = vsub.f32 %v14632_v20, %v6808_v39 }
 0x7fa   :  { %v6872_v44 = vmul.f32 %v14813_v6, %v14813_v6 }
 0x7fc   :  { %v6928_v1 = vsel %vm16462_vm4, %v6872_v44, 0.0 }
 0x7fd   :  { %6920 = vadd.xlane.f32.xlu1 %v6919_v36  ;;  %v6747_v24 = vpop.xlane.xlu2 %6746 }
 0x7fe   :  { %6926 = vadd.xlane.f32.xlu0 %v6925_v42  ;;  %v6811_v20 = vmul.f32 %v6747_v24, %v12936_v13 }
 0x800   :  { %v14828_v46 = vsub.f32 %v14639_v55, %v6811_v20 }
 0x802   :  { %v6875_v22 = vmul.f32 %v14828_v46, %v14828_v46 }
 0x804   :  { %v6937_v34 = vsel %vm16464_vm14, %v6875_v22, 0.0 }
 0x805   :  { %6779 = vadd.xlane.f32.xlu1 %v6778_v54  ;;  %v6897_v21 = vpop.xlane.xlu2 %6896  ;;  %v6692_v54 = vpop.f32.mrf.mxu3 }
 0x806   :  { %6785 = vadd.xlane.f32.xlu0 %v6784_v31  ;;  %v6989_v37 = vmul.f32 %v6897_v21, %v12936_v13  ;;  %v14864_v5 = vadd.f32 %v14771_v35, %v6692_v54 }
 0x808   :  { %v7021_v63 = vadd.f32 1e-05, %v6989_v37 }
 0x80a   :  { %8276 = vrsqrt.f32 %v7021_v63  ;;  %vm7068_vm13 = vweird.f32 %v7021_v63 }
 0x80d   :  { %6929 = vadd.xlane.f32.xlu1 %v6928_v1  ;;  %v6695_v21 = vpop.f32.mrf.mxu3 }
 0x810   :  { %v8277_v2 = vpop.eup %8276 }
 0x811   :  { %v7063_v33 = vmul.f32 %v8277_v2, %v7021_v63  ;;  %vm7069_vm11 = vweird.f32 %v8277_v2  ;;  %v6790_v63 = vsel %vm16468_vm6, %v14864_v5, 0.0  ;;  %vm16477_vm6 = vmmov %vm16470_vm2 }
 0x812   :  { %vm7070_vm8 = vmor %vm7068_vm13, %vm7069_vm11 }
 0x813   :  { %v7064_v56 = vmul.f32 %v8277_v2, %v7063_v33  ;;  %v14876_v33 = vpop.xlane.xlu2 %6755  ;;  %vm16472_vm13 = vmmov %vm16470_vm2 }
 0x815   :  { %6788 = vadd.xlane.f32.xlu1 %v6787_v61  ;;  %v7065_v27 = vmul.f32 0.5, %v7064_v56 }
 0x817   :  { %v7066_v28 = vsub.f32 1.5, %v7065_v27 }
 0x819   :  { %v7067_v55 = vmul.f32 %v8277_v2, %v7066_v28 }
 0x81b   :  { %v7071_v48 = vsel %vm7070_vm8, %v8277_v2, %v7067_v55  ;;  %vm16473_vm8 = vmmov %vm16470_vm2 }
 0x81c   :  { %v7373_v45 = vmul.f32 %v7071_v48, %v14643_v50 }
 0x81d   :  { %6938 = vadd.xlane.f32.xlu1 %v6937_v34 }
 0x81e   :  { %v7408_v32 = vmul.f32 %v14839_v59, %v7373_v45 }
 0x820   :  { %v7443_v8 = vadd.f32 %v14844_v58, %v7408_v32 }
 0x822   :  { %v7475_v50 = vmax.f32 %v7443_v8, 0.0 }
 0x824   :  { %v7511_v36 = vmul.f32 %v14851_v52, %v7475_v50  ;;  %v14885_v50 = vpop.xlane.xlu2 %6905 }
 0x826   :  { %v7545_v26 = vsel %vm16465_vm9, %v7511_v36, 0.0  ;;  %vm16474_vm9 = vmmov %vm16470_vm2 }
 0x827   :  { %7546 = vadd.xlane.f32.xlu1 %v7545_v26 }
 0x830   :  { %v6741_v3 = vpop.xlane.xlu0 %6740 }
 0x831   :  { %v6809_v42 = vmul.f32 %v6741_v3, %v12936_v13 }
 0x833   :  { %v14857_v23 = vsub.f32 %v14678_v14, %v6809_v42 }
 0x835   :  { %v6873_v39 = vmul.f32 %v14857_v23, %v14857_v23 }
 0x837   :  { %v6931_v31 = vsel %vm16466_vm5, %v6873_v39, 0.0  ;;  %vm16475_vm5 = vmmov %vm16470_vm2 }
 0x838   :  { %v6744_v44 = vpop.xlane.xlu1 %6743  ;;  %6932 = vadd.xlane.f32.xlu2 %v6931_v31  ;;  %v6750_v24 = vpop.xlane.xlu0 %6749 }
 0x839   :  { %v6810_v1 = vmul.f32 %v6744_v44, %v12936_v13  ;;  %v6812_v45 = vmul.f32 %v6750_v24, %v12936_v13 }
 0x83b   :  { %v14867_v20 = vsub.f32 %v14692_v16, %v6810_v1  ;;  %v14879_v16 = vadd.f32 %v14771_v35, %v6695_v21  ;;  %v14888_v42 = vsub.f32 %v14684_v18, %v6812_v45 }
 0x83d   :  { %v6874_v14 = vmul.f32 %v14867_v20, %v14867_v20  ;;  %v6793_v28 = vsel %vm16469_vm12, %v14879_v16, 0.0  ;;  %v6876_v24 = vmul.f32 %v14888_v42, %v14888_v42  ;;  %vm16478_vm12 = vmmov %vm16470_vm2 }
 0x83f   :  { %v6934_v37 = vsel %vm16467_vm10, %v6874_v14, 0.0  ;;  %v6940_v18 = vsel %vm16470_vm2, %v6876_v24, 0.0  ;;  %vm16476_vm10 = vmmov %vm16470_vm2 }
 0x840   :  { %v6894_v61 = vpop.xlane.xlu1 %6893  ;;  %6935 = vadd.xlane.f32.xlu0 %v6934_v37  ;;  %6791 = vadd.xlane.f32.xlu2 %v6790_v63  ;;  %v6900_v22 = vpop.xlane.xlu0 %6899 }
 0x841   :  { %v6988_v2 = vmul.f32 %v6894_v61, %v12936_v13  ;;  %v6990_v34 = vmul.f32 %v6900_v22, %v12936_v13 }
 0x843   :  { %v7020_v56 = vadd.f32 1e-05, %v6988_v2  ;;  %v7022_v27 = vadd.f32 1e-05, %v6990_v34 }
 0x845   :  { %8278 = vrsqrt.f32 %v7020_v56  ;;  %vm7058_vm4 = vweird.f32 %v7020_v56  ;;  %vm7078_vm14 = vweird.f32 %v7022_v27 }
 0x846   :  { %8280 = vrsqrt.f32 %v7022_v27 }
 0x848   :  { %v6753_v55 = vpop.xlane.xlu1 %6752  ;;  %6794 = vadd.xlane.f32.xlu0 %v6793_v28  ;;  %v6759_v14 = vpop.xlane.xlu0 %6758  ;;  %6941 = vadd.xlane.f32.xlu2 %v6940_v18 }
 0x849   :  { %v6813_v32 = vmul.f32 %v6753_v55, %v12936_v13  ;;  %v6815_v63 = vmul.f32 %v6759_v14, %v12936_v13 }
 0x84b   :  { %v8279_v48 = vpop.eup %8278  ;;  %v14891_v39 = vsub.f32 %v14714_v4, %v6813_v32  ;;  %v6765_v4 = vpop.xlane.xlu2 %6764  ;;  %v14901_v22 = vsub.f32 %v14718_v43, %v6815_v63 }
 0x84c   :  { %v8281_v8 = vpop.eup %8280  ;;  %v7053_v36 = vmul.f32 %v8279_v48, %v7020_v56  ;;  %vm7059_vm3 = vweird.f32 %v8279_v48 }
 0x84d   :  { %v7073_v35 = vmul.f32 %v8281_v8, %v7022_v27  ;;  %v6877_v37 = vmul.f32 %v14891_v39, %v14891_v39  ;;  %vm7079_vm1 = vweird.f32 %v8281_v8  ;;  %v6879_v28 = vmul.f32 %v14901_v22, %v14901_v22  ;;  %vm7060_vm7 = vmor %vm7058_vm4, %vm7059_vm3 }
 0x84e   :  { %v7054_v3 = vmul.f32 %v8279_v48, %v7053_v36  ;;  %vm7080_vm11 = vmor %vm7078_vm14, %vm7079_vm1 }
 0x84f   :  { %v7074_v26 = vmul.f32 %v8281_v8, %v7073_v35  ;;  %v6943_v61 = vsel %vm16471_vm15, %v6877_v37, 0.0  ;;  %v6949_v45 = vsel %vm16472_vm13, %v6879_v28, 0.0  ;;  %vm16479_vm15 = vmmov %vm16475_vm5 }
 0x850   :  { %v7055_v54 = vmul.f32 0.5, %v7054_v3  ;;  %v6903_v21 = vpop.xlane.xlu1 %6902  ;;  %6944 = vadd.xlane.f32.xlu0 %v6943_v61  ;;  %6950 = vadd.xlane.f32.xlu1 %v6949_v45  ;;  %v14907_v43 = vpop.xlane.xlu0 %6908  ;;  %v6814_v61 = vmul.f32 %v14876_v33, %v12936_v13  ;;  %vm16480_vm3 = vmmov %vm16475_vm5 }
 0x851   :  { %v7075_v31 = vmul.f32 0.5, %v7074_v26  ;;  %v6991_v55 = vmul.f32 %v6903_v21, %v12936_v13  ;;  %vm16482_vm14 = vmmov %vm16480_vm3 }
 0x852   :  { %v7056_v44 = vsub.f32 1.5, %v7055_v54  ;;  %vm16483_vm13 = vmmov %vm16480_vm3 }
 0x853   :  { %v7076_v1 = vsub.f32 1.5, %v7075_v31  ;;  %v14910_v26 = vadd.f32 1e-05, %v6991_v55  ;;  %v14917_v31 = vpop.xlane.xlu2 %6914 }
 0x854   :  { %v7057_v2 = vmul.f32 %v8279_v48, %v7056_v44 }
 0x855   :  { %v7077_v34 = vmul.f32 %v8281_v8, %v7076_v1  ;;  %8282 = vrsqrt.f32 %v14910_v26  ;;  %vm7088_vm1 = vweird.f32 %v14910_v26 }
 0x856   :  { %v7061_v32 = vsel %vm7060_vm7, %v8279_v48, %v7057_v2  ;;  %v6817_v2 = vmul.f32 %v6765_v4, %v12936_v13  ;;  %vm16481_vm7 = vmmov %vm16480_vm3 }
 0x857   :  { %v7081_v36 = vsel %vm7080_vm11, %v8281_v8, %v7077_v34  ;;  %v7372_v56 = vmul.f32 %v7061_v32, %v14695_v17 }
 0x858   :  { %v6762_v35 = vpop.xlane.xlu1 %6761  ;;  %v7374_v54 = vmul.f32 %v7081_v36, %v14698_v51  ;;  %v6768_v24 = vpop.xlane.xlu0 %6767  ;;  %v14944_v36 = vsub.f32 %v14653_v10, %v6814_v61  ;;  %v14947_v33 = vsub.f32 %v14665_v41, %v6817_v2 }
 0x859   :  { %v6816_v3 = vmul.f32 %v6762_v35, %v12936_v13  ;;  %v7407_v44 = vmul.f32 %v14839_v59, %v7372_v56  ;;  %v6818_v51 = vmul.f32 %v6768_v24, %v12936_v13 }
 0x85a   :  { %v7409_v1 = vmul.f32 %v14839_v59, %v7374_v54  ;;  %v6878_v41 = vmul.f32 %v14944_v36, %v14944_v36 }
 0x85b   :  { %v14915_v27 = vsub.f32 %v14740_v30, %v6816_v3  ;;  %v7442_v30 = vadd.f32 %v14844_v58, %v7407_v44  ;;  %v14929_v21 = vsub.f32 %v14743_v29, %v6818_v51  ;;  %v14931_v18 = vpop.eup %8282  ;;  %v6774_v45 = vpop.xlane.xlu2 %6773  ;;  %v6881_v44 = vmul.f32 %v14947_v33, %v14947_v33 }
 0x85c   :  { %v7444_v14 = vadd.f32 %v14844_v58, %v7409_v1  ;;  %v7083_v29 = vmul.f32 %v14931_v18, %v14910_v26  ;;  %vm7089_vm2 = vweird.f32 %v14931_v18 }
 0x85d   :  { %v6880_v48 = vmul.f32 %v14915_v27, %v14915_v27  ;;  %v7474_v37 = vmax.f32 %v7442_v30, 0.0  ;;  %v6882_v32 = vmul.f32 %v14929_v21, %v14929_v21  ;;  %v6946_v30 = vsel %vm16477_vm6, %v6878_v41, 0.0  ;;  %vm7090_vm4 = vmor %vm7088_vm1, %vm7089_vm2 }
 0x85e   :  { %v7476_v63 = vmax.f32 %v7444_v14, 0.0  ;;  %v7084_v10 = vmul.f32 %v14931_v18, %v7083_v29  ;;  %v6955_v14 = vsel %vm16478_vm12, %v6881_v44, 0.0  ;;  %vm16485_vm2 = vmmov %vm16480_vm3 }
 0x85f   :  { %v6952_v8 = vsel %vm16473_vm8, %v6880_v48, 0.0  ;;  %v7510_v28 = vmul.f32 %v14851_v52, %v7474_v37  ;;  %v6958_v54 = vsel %vm16476_vm10, %v6882_v32, 0.0  ;;  %vm16488_vm1 = vmmov %vm16485_vm2 }
 0x860   :  { %v6912_v17 = vpop.xlane.xlu1 %6911  ;;  %6953 = vadd.xlane.f32.xlu1 %v6952_v8  ;;  %v7512_v55 = vmul.f32 %v14851_v52, %v7476_v63  ;;  %v7085_v24 = vmul.f32 0.5, %v7084_v10 }
 0x861   :  { %v6994_v34 = vmul.f32 %v6912_v17, %v12936_v13  ;;  %v14949_v4 = vpop.xlane.xlu0 %6917  ;;  %v7542_v35 = vsel %vm16474_vm9, %v7510_v28, 0.0  ;;  %vm16484_vm9 = vmmov %vm16480_vm3 }
 0x862   :  { %v7548_v3 = vsel %vm16475_vm5, %v7512_v55, 0.0  ;;  %7543 = vadd.xlane.f32.xlu0 %v7542_v35  ;;  %v7086_v2 = vsub.f32 1.5, %v7085_v24  ;;  %v6820_v55 = vmul.f32 %v6774_v45, %v12936_v13 }
 0x863   :  { %7549 = vadd.xlane.f32.xlu2 %v7548_v3  ;;  %v14954_v48 = vadd.f32 1e-05, %v6994_v34  ;;  %v14963_v1 = vpop.xlane.xlu2 %6923 }
 0x864   :  { %v7087_v35 = vmul.f32 %v14931_v18, %v7086_v2  ;;  %v14990_v3 = vsub.f32 %v14689_v25, %v6820_v55 }
 0x865   :  { %8284 = vrsqrt.f32 %v14954_v48  ;;  %vm7118_vm5 = vweird.f32 %v14954_v48 }
 0x866   :  { %v7091_v24 = vsel %vm7090_vm4, %v14931_v18, %v7087_v35  ;;  %v6884_v26 = vmul.f32 %v14990_v3, %v14990_v3 }
 0x868   :  { %v6771_v56 = vpop.xlane.xlu1 %6770  ;;  %6959 = vadd.xlane.f32.xlu1 %v6958_v54 }
 0x869   :  { %v6819_v8 = vmul.f32 %v6771_v56, %v12936_v13  ;;  %v6777_v51 = vpop.xlane.xlu0 %6776 }
 0x86a   :  { %v6821_v63 = vmul.f32 %v6777_v51, %v12936_v13  ;;  %6947 = vadd.xlane.f32.xlu0 %v6946_v30 }
 0x86b   :  { %v14966_v17 = vsub.f32 %v14780_v60, %v6819_v8  ;;  %6956 = vadd.xlane.f32.xlu2 %v6955_v14  ;;  %v14977_v60 = vpop.eup %8284  ;;  %v6783_v8 = vpop.xlane.xlu2 %6782 }
 0x86c   :  { %v14973_v34 = vsub.f32 %v14783_v0, %v6821_v63  ;;  %v7113_v0 = vmul.f32 %v14977_v60, %v14954_v48  ;;  %v6823_v30 = vmul.f32 %v6783_v8, %v12936_v13  ;;  %v7375_v63 = vmul.f32 %v7091_v24, %v14723_v12 }
 0x86d   :  { %v6883_v29 = vmul.f32 %v14966_v17, %v14966_v17  ;;  %v6992_v24 = vmul.f32 %v14885_v50, %v12936_v13  ;;  %vm7119_vm11 = vweird.f32 %v14977_v60  ;;  %v6993_v48 = vmul.f32 %v14907_v43, %v12936_v13 }
 0x86e   :  { %v6885_v32 = vmul.f32 %v14973_v34, %v14973_v34  ;;  %v7114_v25 = vmul.f32 %v14977_v60, %v7113_v0  ;;  %v15012_v55 = vsub.f32 %v14774_v47, %v6823_v30  ;;  %vm7120_vm10 = vmor %vm7118_vm5, %vm7119_vm11 }
 0x86f   :  { %v6961_v45 = vsel %vm16479_vm15, %v6883_v29, 0.0  ;;  %v15036_v50 = vadd.f32 1e-05, %v6992_v24  ;;  %vm16486_vm15 = vmmov %vm16485_vm2 }
 0x870   :  { %v6921_v37 = vpop.xlane.xlu1 %6920  ;;  %v6967_v54 = vsel %vm16480_vm3, %v6885_v32, 0.0  ;;  %v7115_v2 = vmul.f32 0.5, %v7114_v25  ;;  %v6964_v32 = vsel %vm16482_vm14, %v6884_v26, 0.0  ;;  %v6887_v47 = vmul.f32 %v15012_v55, %v15012_v55  ;;  %vm16487_vm3 = vmmov %vm16485_vm2 }
 0x871   :  { %v6997_v61 = vmul.f32 %v6921_v37, %v12936_v13  ;;  %v14992_v56 = vpop.xlane.xlu0 %6926 }
 0x872   :  { %6968 = vadd.xlane.f32.xlu0 %v6967_v54  ;;  %v7116_v12 = vsub.f32 1.5, %v7115_v2  ;;  %v6973_v26 = vsel %vm16484_vm9, %v6887_v47, 0.0  ;;  %v6996_v47 = vmul.f32 %v14949_v4, %v12936_v13 }
 0x873   :  { %v14975_v28 = vadd.f32 1e-05, %v6997_v61  ;;  %6962 = vadd.xlane.f32.xlu2 %v6961_v45  ;;  %v7410_v45 = vmul.f32 %v14839_v59, %v7375_v63 }
 0x874   :  { %v7117_v25 = vmul.f32 %v14977_v60, %v7116_v12 }
 0x875   :  { %8286 = vrsqrt.f32 %v14975_v28  ;;  %v7445_v8 = vadd.f32 %v14844_v58, %v7410_v45  ;;  %vm7148_vm6 = vweird.f32 %v14975_v28 }
 0x876   :  { %8288 = vrsqrt.f32 %v15036_v50 }
 0x878   :  { %v6780_v10 = vpop.xlane.xlu1 %6779 }
 0x879   :  { %v6822_v41 = vmul.f32 %v6780_v10, %v12936_v13  ;;  %v6786_v29 = vpop.xlane.xlu0 %6785 }
 0x87a   :  { %v6824_v0 = vmul.f32 %v6786_v29, %v12936_v13 }
 0x87b   :  { %v8287_v44 = vpop.eup %8286  ;;  %v15001_v51 = vsub.f32 %v14805_v57, %v6822_v41  ;;  %6965 = vadd.xlane.f32.xlu2 %v6964_v32 }
 0x87c   :  { %v7143_v14 = vmul.f32 %v8287_v44, %v14975_v28  ;;  %v15020_v54 = vsub.f32 %v14810_v15, %v6824_v0  ;;  %vm7149_vm8 = vweird.f32 %v8287_v44  ;;  %v6995_v28 = vmul.f32 %v14917_v31, %v12936_v13 }
 0x87d   :  { %v6886_v37 = vmul.f32 %v15001_v51, %v15001_v51  ;;  %vm7150_vm12 = vmor %vm7148_vm6, %vm7149_vm8  ;;  %v15054_v0 = vadd.f32 1e-05, %v6993_v48 }
 0x87e   :  { %v7144_v61 = vmul.f32 %v8287_v44, %v7143_v14  ;;  %v6888_v41 = vmul.f32 %v15020_v54, %v15020_v54  ;;  %v15057_v45 = vadd.f32 1e-05, %v6995_v28 }
 0x87f   :  { %v6970_v18 = vsel %vm16481_vm7, %v6886_v37, 0.0  ;;  %v7477_v37 = vmax.f32 %v7445_v8, 0.0  ;;  %8290 = vrsqrt.f32 %v15054_v0  ;;  %vm7098_vm7 = vweird.f32 %v15036_v50 }
 0x880   :  { %v7145_v57 = vmul.f32 0.5, %v7144_v61  ;;  %v15015_v35 = vpop.xlane.xlu1 %6929  ;;  %6971 = vadd.xlane.f32.xlu0 %v6970_v18  ;;  %v6976_v30 = vsel %vm16483_vm13, %v6888_v41, 0.0  ;;  %v7121_v61 = vsel %vm7120_vm10, %v14977_v60, %v7117_v25  ;;  %8292 = vrsqrt.f32 %v15057_v45 }
 0x881   :  { %6977 = vadd.xlane.f32.xlu1 %v6976_v30  ;;  %v7378_v32 = vmul.f32 %v7121_v61, %v14751_v49  ;;  %v6998_v41 = vmul.f32 %v14963_v1, %v12936_v13  ;;  %v7000_v48 = vmul.f32 %v15015_v35, %v12936_v13  ;;  %v6999_v35 = vmul.f32 %v14992_v56, %v12936_v13 }
 0x882   :  { %v7146_v10 = vsub.f32 1.5, %v7145_v57  ;;  %v7513_v57 = vmul.f32 %v14851_v52, %v7477_v37  ;;  %vm7108_vm8 = vweird.f32 %v15054_v0  ;;  %vm7128_vm5 = vweird.f32 %v15057_v45 }
 0x883   :  { %v7413_v43 = vmul.f32 %v14839_v59, %v7378_v32  ;;  %v15075_v37 = vadd.f32 1e-05, %v6998_v41 }
 0x884   :  { %v7147_v15 = vmul.f32 %v8287_v44, %v7146_v10  ;;  %v8289_v10 = vpop.eup %8288 }
 0x885   :  { %v7448_v12 = vadd.f32 %v14844_v58, %v7413_v43  ;;  %v7093_v8 = vmul.f32 %v8289_v10, %v15036_v50  ;;  %v15095_v43 = vadd.f32 1e-05, %v7000_v48  ;;  %vm7099_vm4 = vweird.f32 %v8289_v10 }
 0x886   :  { %v7151_v18 = vsel %vm7150_vm12, %v8287_v44, %v7147_v15  ;;  %v7551_v44 = vsel %vm16486_vm15, %v7513_v57, 0.0  ;;  %v15071_v15 = vpop.eup %8290  ;;  %vm7100_vm14 = vmor %vm7098_vm7, %vm7099_vm4  ;;  %vm7158_vm15 = vweird.f32 %v15075_v37  ;;  %vm16491_vm4 = vcmask 261120  }
 0x887   :  { %v7381_v60 = vmul.f32 %v7151_v18, %v14789_v38  ;;  %v7480_v38 = vmax.f32 %v7448_v12, 0.0  ;;  %v7103_v4 = vmul.f32 %v15071_v15, %v15054_v0  ;;  %vm7109_vm11 = vweird.f32 %v15071_v15 }
 0x888   :  { %v6789_v14 = vpop.xlane.xlu1 %6788  ;;  %6974 = vadd.xlane.f32.xlu0 %v6973_v26  ;;  %v7094_v26 = vmul.f32 %v8289_v10, %v7093_v8  ;;  %vm7110_vm9 = vmor %vm7108_vm8, %vm7109_vm11  ;;  %vm7178_vm8 = vweird.f32 %v15095_v43 }
 0x889   :  { %v6825_v63 = vmul.f32 %v6789_v14, %v12936_v13  ;;  %v7416_v49 = vmul.f32 %v14839_v59, %v7381_v60  ;;  %v7516_v24 = vmul.f32 %v14851_v52, %v7480_v38  ;;  %v15073_v14 = vadd.f32 1e-05, %v6996_v47 }
 0x88a   :  { %v7095_v61 = vmul.f32 0.5, %v7094_v26  ;;  %v7104_v57 = vmul.f32 %v15071_v15, %v7103_v4  ;;  %v15107_v26 = vadd.f32 1e-05, %v6999_v35 }
 0x88b   :  { %v15040_v2 = vsub.f32 %v14823_v7, %v6825_v63  ;;  %v7451_v31 = vadd.f32 %v14844_v58, %v7416_v49  ;;  %v7560_v25 = vsel %vm16487_vm3, %v7516_v24, 0.0  ;;  %v15077_v63 = vpop.eup %8292  ;;  %8294 = vrsqrt.f32 %v15073_v14 }
 0x88c   :  { %v7123_v18 = vmul.f32 %v15077_v63, %v15057_v45  ;;  %8296 = vrsqrt.f32 %v15075_v37  ;;  %v7096_v32 = vsub.f32 1.5, %v7095_v61  ;;  %vm7129_vm13 = vweird.f32 %v15077_v63 }
 0x88d   :  { %v6889_v29 = vmul.f32 %v15040_v2, %v15040_v2  ;;  %v7483_v30 = vmax.f32 %v7451_v31, 0.0  ;;  %8298 = vrsqrt.f32 %v15095_v43  ;;  %vm7130_vm10 = vmor %vm7128_vm5, %vm7129_vm13 }
 0x88e   :  { %v7124_v28 = vmul.f32 %v15077_v63, %v7123_v18  ;;  %v7097_v49 = vmul.f32 %v8289_v10, %v7096_v32  ;;  %8300 = vrsqrt.f32 %v15107_v26  ;;  %vm16492_vm13 = vmmov %vm16491_vm4 }
 0x88f   :  { %v6979_v7 = vsel %vm16485_vm2, %v6889_v29, 0.0  ;;  %v7519_v1 = vmul.f32 %v14851_v52, %v7483_v30  ;;  %vm7138_vm2 = vweird.f32 %v15073_v14  ;;  %vm16493_vm5 = vmmov %vm16491_vm4 }
 0x890   :  { %6980 = vadd.xlane.f32.xlu2 %v6979_v7  ;;  %7552 = vadd.xlane.f32.xlu0 %v7551_v44  ;;  %v7105_v44 = vmul.f32 0.5, %v7104_v57  ;;  %v7125_v12 = vmul.f32 0.5, %v7124_v28  ;;  %v7101_v24 = vsel %vm7100_vm14, %v8289_v10, %v7097_v49 }
 0x891   :  { %v7569_v29 = vsel %vm16488_vm1, %v7519_v1, 0.0  ;;  %v15091_v60 = vpop.eup %8294  ;;  %v7376_v50 = vmul.f32 %v7101_v24, %v14657_v53 }
 0x892   :  { %v15093_v7 = vpop.eup %8296  ;;  %v7133_v38 = vmul.f32 %v15091_v60, %v15073_v14  ;;  %v7106_v41 = vsub.f32 1.5, %v7105_v44  ;;  %vm7139_vm12 = vweird.f32 %v15091_v60 }
 0x893   :  { %v7153_v47 = vmul.f32 %v15093_v7, %v15075_v37  ;;  %v15116_v61 = vpop.eup %8298  ;;  %vm7159_vm6 = vweird.f32 %v15093_v7  ;;  %vm7140_vm3 = vmor %vm7138_vm2, %vm7139_vm12 }
 0x894   :  { %v7134_v30 = vmul.f32 %v15091_v60, %v7133_v38  ;;  %v7107_v1 = vmul.f32 %v15071_v15, %v7106_v41  ;;  %v7173_v28 = vmul.f32 %v15116_v61, %v15095_v43  ;;  %v15134_v45 = vpop.eup %8300  ;;  %vm15158_vm1 = vmor %vm7158_vm15, %vm7159_vm6  ;;  %vm7179_vm14 = vweird.f32 %v15116_v61 }
 0x895   :  { %v7154_v56 = vmul.f32 %v15093_v7, %v7153_v47  ;;  %v7163_v24 = vmul.f32 %v15134_v45, %v15107_v26  ;;  %vm7169_vm6 = vweird.f32 %v15134_v45  ;;  %vm16496_vm2 = vmmov %vm16491_vm4 }
 0x896   :  { %v7135_v18 = vmul.f32 0.5, %v7134_v30  ;;  %v7111_v53 = vsel %vm7110_vm9, %v15071_v15, %v7107_v1 }
 0x897   :  { %v7155_v48 = vmul.f32 0.5, %v7154_v56  ;;  %v7377_v35 = vmul.f32 %v7111_v53, %v14726_v9  ;;  %v7164_v37 = vmul.f32 %v15134_v45, %v7163_v24 }
 0x898   :  { %7561 = vadd.xlane.f32.xlu0 %v7560_v25  ;;  %v7126_v25 = vsub.f32 1.5, %v7125_v12  ;;  %v7136_v49 = vsub.f32 1.5, %v7135_v18  ;;  %v7411_v12 = vmul.f32 %v14839_v59, %v7376_v50 }
 0x899   :  { %v7156_v38 = vsub.f32 1.5, %v7155_v48 }
 0x89a   :  { %v7127_v10 = vmul.f32 %v15077_v63, %v7126_v25  ;;  %v7446_v9 = vadd.f32 %v14844_v58, %v7411_v12  ;;  %v6939_v25 = vpop.xlane.xlu1 %6938 }
 0x89b   :  { %v7157_v41 = vmul.f32 %v15093_v7, %v7156_v38 }
 0x89c   :  { %v7131_v44 = vsel %vm7130_vm10, %v15077_v63, %v7127_v10  ;;  %v7137_v63 = vmul.f32 %v15091_v60, %v7136_v49  ;;  %vm15192_vm10 = vmor %vm7178_vm8, %vm7179_vm14 }
 0x89d   :  { %v7379_v47 = vmul.f32 %v7131_v44, %v14669_v11  ;;  %v7412_v11 = vmul.f32 %v14839_v59, %v7377_v35  ;;  %v7161_v48 = vsel %vm15158_vm1, %v15093_v7, %v7157_v41  ;;  %vm16502_vm14 = vmmov %vm16496_vm2 }
 0x89e   :  { %v7382_v35 = vmul.f32 %v7161_v48, %v14757_v40 }
 0x89f   :  { %v7414_v10 = vmul.f32 %v14839_v59, %v7379_v47 }
 0x8a0   :  { %7570 = vadd.xlane.f32.xlu0 %v7569_v29  ;;  %v7417_v18 = vmul.f32 %v14839_v59, %v7382_v35 }
 0x8a1   :  { %v7449_v7 = vadd.f32 %v14844_v58, %v7414_v10 }
 0x8a2   :  { %v7547_v40 = vpop.xlane.xlu1 %7546 }
 0x8ab   :  { %v6933_v31 = vpop.xlane.xlu2 %6932 }
 0x8ac   :  { %v7001_v8 = vmul.f32 %v6933_v31, %v12936_v13 }
 0x8ae   :  { %v15110_v4 = vadd.f32 1e-05, %v7001_v8  ;;  %v7174_v8 = vmul.f32 %v15116_v61, %v7173_v28 }
 0x8b0   :  { %8302 = vrsqrt.f32 %v15110_v4  ;;  %v7175_v50 = vmul.f32 0.5, %v7174_v8  ;;  %v7165_v8 = vmul.f32 0.5, %v7164_v37  ;;  %vm7188_vm15 = vweird.f32 %v15110_v4 }
 0x8b2   :  { %v7176_v12 = vsub.f32 1.5, %v7175_v50  ;;  %v7481_v50 = vmax.f32 %v7449_v7, 0.0 }
 0x8b3   :  { %v6936_v57 = vpop.xlane.xlu0 %6935  ;;  %v6792_v32 = vpop.xlane.xlu2 %6791 }
 0x8b4   :  { %v7002_v29 = vmul.f32 %v6936_v57, %v12936_v13  ;;  %v6826_v31 = vmul.f32 %v6792_v32, %v12936_v13  ;;  %v7478_v57 = vmax.f32 %v7446_v9, 0.0  ;;  %v7447_v32 = vadd.f32 %v14844_v58, %v7412_v11 }
 0x8b6   :  { %v15127_v0 = vadd.f32 1e-05, %v7002_v29  ;;  %v15136_v15 = vpop.eup %8302  ;;  %v15148_v30 = vsub.f32 %v14864_v5, %v6826_v31  ;;  %v7141_v5 = vsel %vm7140_vm3, %v15091_v60, %v7137_v63  ;;  %v7003_v63 = vmul.f32 %v6939_v25, %v12936_v13 }
 0x8b7   :  { %v7183_v56 = vmul.f32 %v15136_v15, %v15110_v4  ;;  %v7380_v49 = vmul.f32 %v7141_v5, %v14754_v19  ;;  %v7514_v9 = vmul.f32 %v14851_v52, %v7478_v57  ;;  %v7479_v41 = vmax.f32 %v7447_v32, 0.0 }
 0x8b8   :  { %8304 = vrsqrt.f32 %v15127_v0  ;;  %v6890_v29 = vmul.f32 %v15148_v30, %v15148_v30  ;;  %vm7198_vm11 = vweird.f32 %v15127_v0  ;;  %v7166_v5 = vsub.f32 1.5, %v7165_v8 }
 0x8b9   :  { %v7184_v28 = vmul.f32 %v15136_v15, %v7183_v56  ;;  %v7177_v56 = vmul.f32 %v15116_v61, %v7176_v12  ;;  %v15196_v48 = vadd.f32 1e-05, %v7003_v63  ;;  %v7515_v32 = vmul.f32 %v14851_v52, %v7479_v41 }
 0x8ba   :  { %v6982_v38 = vsel %vm16491_vm4, %v6890_v29, 0.0  ;;  %v7517_v12 = vmul.f32 %v14851_v52, %v7481_v50  ;;  %vm7189_vm12 = vweird.f32 %v15136_v15  ;;  %vm7168_vm3 = vweird.f32 %v15107_v26 }
 0x8bb   :  { %v6795_v53 = vpop.xlane.xlu0 %6794  ;;  %6983 = vadd.xlane.f32.xlu1 %v6982_v38  ;;  %v7185_v24 = vmul.f32 0.5, %v7184_v28  ;;  %v7181_v43 = vsel %vm15192_vm10, %v15116_v61, %v7177_v56  ;;  %v15212_v38 = vstv %s15722_s17  ;;  %8306 = vrsqrt.f32 %v15196_v48  ;;  %vm15230_vm1 = vmor %vm7188_vm15, %vm7189_vm12 }
 0x8bc   :  { %v6827_v60 = vmul.f32 %v6795_v53, %v12936_v13  ;;  %v7384_v35 = vmul.f32 %v7181_v43, %v14813_v6  ;;  %v7557_v63 = vsel %vm16496_vm2, %v7515_v32, 0.0  ;;  %vm15236_vm4 = vmor %vm7168_vm3, %vm7169_vm6  ;;  %vm7208_vm3 = vweird.f32 %v15196_v48 }
 0x8bd   :  { %v7186_v37 = vsub.f32 1.5, %v7185_v24  ;;  %vm16507_vm15 = vmmov %vm16496_vm2 }
 0x8be   :  { %v8305_v1 = vpop.eup %8304  ;;  %v15178_v47 = vsub.f32 %v14879_v16, %v6827_v60  ;;  %v7415_v16 = vmul.f32 %v14839_v59, %v7380_v49  ;;  %v7419_v26 = vmul.f32 %v14839_v59, %v7384_v35 }
 0x8bf   :  { %v7193_v14 = vmul.f32 %v8305_v1, %v15127_v0  ;;  %vm7199_vm7 = vweird.f32 %v8305_v1  ;;  %v6942_v0 = vpop.xlane.xlu2 %6941 }
 0x8c0   :  { %v6891_v11 = vmul.f32 %v15178_v47, %v15178_v47  ;;  %vm7200_vm9 = vmor %vm7198_vm11, %vm7199_vm7  ;;  %v7004_v28 = vmul.f32 %v6942_v0, %v12936_v13  ;;  %v7450_v60 = vadd.f32 %v14844_v58, %v7415_v16  ;;  %v7641_v16 = vadd.f32 %v15212_v38, %v7547_v40 }
 0x8c1   :  { %v7194_v44 = vmul.f32 %v8305_v1, %v7193_v14  ;;  %v7554_v14 = vsel %vm16493_vm5, %v7514_v9, 0.0  ;;  %vm16501_vm7 = vmmov %vm16496_vm2  ;;  %v7454_v0 = vadd.f32 %v14844_v58, %v7419_v26 }
 0x8c2   :  { %v6985_v25 = vsel %vm16492_vm13, %v6891_v11, 0.0  ;;  %v15214_v61 = vadd.f32 1e-05, %v7004_v28  ;;  %v7482_v9 = vmax.f32 %v7450_v60, 0.0  ;;  %v7563_v11 = vsel %vm16501_vm7, %v7517_v12, 0.0  ;;  %vm16503_vm11 = vmmov %vm16496_vm2 }
 0x8c3   :  { %v7195_v31 = vmul.f32 0.5, %v7194_v44  ;;  %6986 = vadd.xlane.f32.xlu2 %v6985_v25  ;;  %v6945_v53 = vpop.xlane.xlu0 %6944  ;;  %7555 = vadd.xlane.f32.xlu1 %v7554_v14  ;;  %v6951_v8 = vpop.xlane.xlu1 %6950  ;;  %vm16504_vm13 = vmmov %vm16496_vm2 }
 0x8c4   :  { %v7005_v44 = vmul.f32 %v6945_v53, %v12936_v13  ;;  %8308 = vrsqrt.f32 %v15214_v61  ;;  %v7007_v41 = vmul.f32 %v6951_v8, %v12936_v13  ;;  %v7673_v53 = vmul.f32 0.5, %v7641_v16 }
 0x8c5   :  { %v7196_v19 = vsub.f32 1.5, %v7195_v31  ;;  %v7167_v31 = vmul.f32 %v15134_v45, %v7166_v5  ;;  %vm7218_vm6 = vweird.f32 %v15214_v61 }
 0x8c6   :  { %v15216_v7 = vadd.f32 1e-05, %v7005_v44 }
 0x8c7   :  { %v7197_v10 = vmul.f32 %v8305_v1, %v7196_v19  ;;  %v7171_v50 = vsel %vm15236_vm4, %v15134_v45, %v7167_v31  ;;  %v7486_v31 = vmax.f32 %v7454_v0, 0.0 }
 0x8c8   :  { %8310 = vrsqrt.f32 %v15216_v7 }
 0x8c9   :  { %v7201_v29 = vsel %vm7200_vm9, %v8305_v1, %v7197_v10  ;;  %v7452_v1 = vadd.f32 %v14844_v58, %v7417_v18  ;;  %v15250_v10 = vadd.f32 1e-05, %v7007_v41  ;;  %v15252_v18 = vpop.eup %8306  ;;  %vm7228_vm9 = vweird.f32 %v15216_v7 }
 0x8ca   :  { %v7386_v49 = vmul.f32 %v7201_v29, %v14867_v20  ;;  %v7187_v20 = vmul.f32 %v15136_v15, %v7186_v37  ;;  %v15255_v14 = vpop.eup %8308  ;;  %v7383_v29 = vmul.f32 %v7171_v50, %v14799_v62  ;;  %vm7209_vm4 = vweird.f32 %v15252_v18 }
 0x8cb   :  { %7558 = vadd.xlane.f32.xlu2 %v7557_v63  ;;  %v7484_v25 = vmax.f32 %v7452_v1, 0.0  ;;  %7564 = vadd.xlane.f32.xlu1 %v7563_v11  ;;  %v7213_v45 = vmul.f32 %v15255_v14, %v15214_v61  ;;  %8312 = vrsqrt.f32 %v15250_v10  ;;  %vm7219_vm5 = vweird.f32 %v15255_v14 }
 0x8cc   :  { %v7421_v6 = vmul.f32 %v14839_v59, %v7386_v49  ;;  %v7191_v4 = vsel %vm15230_vm1, %v15136_v15, %v7187_v20  ;;  %v7518_v15 = vmul.f32 %v14851_v52, %v7482_v9  ;;  %v7203_v49 = vmul.f32 %v15252_v18, %v15196_v48  ;;  %vm15293_vm12 = vmor %vm7218_vm6, %vm7219_vm5 }
 0x8cd   :  { %v7385_v57 = vmul.f32 %v7191_v4, %v14857_v23  ;;  %v7520_v28 = vmul.f32 %v14851_v52, %v7484_v25  ;;  %v7214_v23 = vmul.f32 %v15255_v14, %v7213_v45  ;;  %v7418_v8 = vmul.f32 %v14839_v59, %v7383_v29  ;;  %vm16509_vm1 = vmmov %vm16496_vm2 }
 0x8ce   :  { %v7456_v56 = vadd.f32 %v14844_v58, %v7421_v6  ;;  %v8311_v37 = vpop.eup %8310  ;;  %v7566_v62 = vsel %vm16502_vm14, %v7518_v15, 0.0  ;;  %8314 = vtanh.f32 %v7673_v53  ;;  %v7204_v19 = vmul.f32 %v15252_v18, %v7203_v49  ;;  %vm16514_vm5 = vmmov %vm16509_vm1 }
 0x8cf   :  { %v7223_v32 = vmul.f32 %v8311_v37, %v15216_v7  ;;  %v7420_v1 = vmul.f32 %v14839_v59, %v7385_v57  ;;  %v7215_v35 = vmul.f32 0.5, %v7214_v23  ;;  %v7572_v9 = vsel %vm16504_vm13, %v7520_v28, 0.0 }
 0x8d0   :  { %v7488_v5 = vmax.f32 %v7456_v56, 0.0  ;;  %vm7229_vm8 = vweird.f32 %v8311_v37  ;;  %v7522_v56 = vmul.f32 %v14851_v52, %v7486_v31  ;;  %v7453_v26 = vadd.f32 %v14844_v58, %v7418_v8 }
 0x8d1   :  { %v7224_v12 = vmul.f32 %v8311_v37, %v7223_v32  ;;  %v7455_v41 = vadd.f32 %v14844_v58, %v7420_v1  ;;  %v7216_v6 = vsub.f32 1.5, %v7215_v35  ;;  %v15279_v24 = vpop.eup %8312  ;;  %vm7230_vm10 = vmor %vm7228_vm9, %vm7229_vm8  ;;  %v7205_v45 = vmul.f32 0.5, %v7204_v19 }
 0x8d2   :  { %v7524_v40 = vmul.f32 %v14851_v52, %v7488_v5  ;;  %v7243_v15 = vmul.f32 %v15279_v24, %v15250_v10  ;;  %v7485_v23 = vmax.f32 %v7453_v26, 0.0  ;;  %vm7249_vm13 = vweird.f32 %v15279_v24  ;;  %vm15362_vm9 = vmor %vm7208_vm3, %vm7209_vm4 }
 0x8d3   :  { %v6954_v43 = vpop.xlane.xlu1 %6953  ;;  %7567 = vadd.xlane.f32.xlu2 %v7566_v62  ;;  %v7225_v63 = vmul.f32 0.5, %v7224_v12  ;;  %7573 = vadd.xlane.f32.xlu1 %v7572_v9  ;;  %v7487_v11 = vmax.f32 %v7455_v41, 0.0  ;;  %v7217_v50 = vmul.f32 %v15255_v14, %v7216_v6  ;;  %v7578_v62 = vsel %vm16507_vm15, %v7522_v56, 0.0  ;;  %v16508_v41 = vld [vmem:[#allocation6_spill] sm:$0xff] }
 0x8d4   :  { %v7008_v44 = vmul.f32 %v6954_v43, %v12936_v13  ;;  %v7584_v60 = vsel %vm16503_vm11, %v7524_v40, 0.0  ;;  %v8315_v29 = vpop.eup %8314  ;;  %v7244_v49 = vmul.f32 %v15279_v24, %v7243_v15  ;;  %v7206_v9 = vsub.f32 1.5, %v7205_v45 }
 0x8d5   :  { %7585 = vadd.xlane.f32.xlu0 %v7584_v60  ;;  %v7226_v4 = vsub.f32 1.5, %v7225_v63  ;;  %v7523_v25 = vmul.f32 %v14851_v52, %v7487_v11  ;;  %v7544_v57 = vpop.xlane.xlu0 %7543  ;;  %v7737_v60 = vadd.f32 1.0, %v8315_v29  ;;  %v15317_v6 = vadd.s32 4294967288, %v16508_v41 }
 0x8d6   :  { %v15273_v20 = vadd.f32 1e-05, %v7008_v44  ;;  %v7550_v5 = vpop.xlane.xlu2 %7549  ;;  %v7640_v32 = vadd.f32 %v15212_v38, %v7544_v57  ;;  %v7221_v44 = vsel %vm15293_vm12, %v15255_v14, %v7217_v50  ;;  %vm7811_vm11 = vcmask 130112  }
 0x8d7   :  { %v7227_v16 = vmul.f32 %v8311_v37, %v7226_v4  ;;  %v7581_v28 = vsel %vm16496_vm2, %v7523_v25, 0.0  ;;  %v7388_v31 = vmul.f32 %v7221_v44, %v14888_v42  ;;  %v7642_v14 = vadd.f32 %v15212_v38, %v7550_v5  ;;  %vm16517_vm2 = vmmov %vm16509_vm1 }
 0x8d8   :  { %8316 = vrsqrt.f32 %v15273_v20  ;;  %v7672_v12 = vmul.f32 0.5, %v7640_v32  ;;  %v7769_v19 = vmul.f32 0.5, %v7737_v60  ;;  %v7245_v4 = vmul.f32 0.5, %v7244_v49 }
 0x8d9   :  { %v7231_v7 = vsel %vm7230_vm10, %v8311_v37, %v7227_v16  ;;  %v7674_v16 = vmul.f32 0.5, %v7642_v14  ;;  %v7423_v15 = vmul.f32 %v14839_v59, %v7388_v31  ;;  %vm7258_vm14 = vweird.f32 %v15273_v20 }
 0x8da   :  { %v7389_v61 = vmul.f32 %v7231_v7, %v14891_v39  ;;  %8318 = vtanh.f32 %v7672_v12  ;;  %v7521_v39 = vmul.f32 %v14851_v52, %v7485_v23  ;;  %v7246_v7 = vsub.f32 1.5, %v7245_v4 }
 0x8db   :  { %v6960_v40 = vpop.xlane.xlu1 %6959  ;;  %7582 = vadd.xlane.f32.xlu2 %v7581_v28  ;;  %7579 = vadd.xlane.f32.xlu1 %v7578_v62  ;;  %v7458_v53 = vadd.f32 %v14844_v58, %v7423_v15  ;;  %vm7248_vm10 = vweird.f32 %v15250_v10 }
 0x8dc   :  { %v7010_v43 = vmul.f32 %v6960_v40, %v12936_v13  ;;  %v7424_v63 = vmul.f32 %v14839_v59, %v7389_v61  ;;  %v7575_v25 = vsel %vm16509_vm1, %v7521_v39, 0.0  ;;  %v7207_v59 = vmul.f32 %v15252_v18, %v7206_v9  ;;  %v15350_v61 = vld [vmem:[%s15721_s16] ss:$0 sm:$0xff]  ;;  %vm15385_vm6 = vmor %vm7248_vm10, %vm7249_vm13 }
 0x8dd   :  { %v6948_v56 = vpop.xlane.xlu0 %6947 }
 0x8de   :  { %v15291_v0 = vpop.eup %8316  ;;  %v15308_v1 = vadd.f32 1e-05, %v7010_v43  ;;  %v6957_v11 = vpop.xlane.xlu2 %6956  ;;  %v7006_v50 = vmul.f32 %v6948_v56, %v12936_v13  ;;  %v7459_v52 = vadd.f32 %v14844_v58, %v7424_v63  ;;  %v7810_v43 = vperm.slane %v7769_v19, %v15317_v6 }
 0x8df   :  { %v7253_v37 = vmul.f32 %v15291_v0, %v15273_v20  ;;  %v7009_v42 = vmul.f32 %v6957_v11, %v12936_v13  ;;  %vm7259_vm7 = vweird.f32 %v15291_v0  ;;  %v7211_v63 = vsel %vm15362_vm9, %v15252_v18, %v7207_v59  ;;  %vm16518_vm9 = vmmov %vm16517_vm2 }
 0x8e0   :  { %8320 = vrsqrt.f32 %v15308_v1  ;;  %v15328_v57 = vadd.f32 1e-05, %v7006_v50  ;;  %v7491_v29 = vmax.f32 %v7459_v52, 0.0  ;;  %v8319_v45 = vpop.eup %8318  ;;  %vm15342_vm8 = vmor %vm7258_vm14, %vm7259_vm7  ;;  %vm7278_vm15 = vweird.f32 %v15308_v1 }
 0x8e1   :  { %v7254_v35 = vmul.f32 %v15291_v0, %v7253_v37  ;;  %v15326_v5 = vadd.f32 1e-05, %v7009_v42  ;;  %v7736_v28 = vadd.f32 1.0, %v8319_v45  ;;  %v7247_v37 = vmul.f32 %v15279_v24, %v7246_v7 }
 0x8e2   :  { %v7527_v20 = vmul.f32 %v15350_v61, %v7491_v29  ;;  %v15403_v7 = vadd.s32 4294967280, %v16508_v41  ;;  %vm7238_vm13 = vweird.f32 %v15328_v57 }
 0x8e3   :  { %v7255_v8 = vmul.f32 0.5, %v7254_v35  ;;  %7576 = vadd.xlane.f32.xlu2 %v7575_v25  ;;  %8322 = vrsqrt.f32 %v15326_v5  ;;  %v7768_v44 = vmul.f32 0.5, %v7736_v28  ;;  %v7490_v35 = vmax.f32 %v7458_v53, 0.0 }
 0x8e4   :  { %8324 = vtanh.f32 %v7674_v16  ;;  %v15393_v16 = vmul.f32 %v7211_v63, %v14828_v46  ;;  %v7251_v25 = vsel %vm15385_vm6, %v15279_v24, %v7247_v37  ;;  %v15409_v46 = vld [vmem:[%s15719_s14] ss:$0 sm:$0xff]  ;;  %vm7268_vm1 = vweird.f32 %v15326_v5 }
 0x8e5   :  { %v7256_v26 = vsub.f32 1.5, %v7255_v8  ;;  %8326 = vrsqrt.f32 %v15328_v57  ;;  %v6969_v12 = vpop.xlane.xlu0 %6968  ;;  %v7808_v14 = vperm.slane %v7768_v44, %v16508_v41  ;;  %v7593_v8 = vsel %vm16514_vm5, %v7527_v20, 0.0  ;;  %v15422_v37 = vld [vmem:[%s15720_s15] ss:$0 sm:$0xff]  ;;  %s8448_s15 = smov [#allocation3]  }
 0x8e6   :  { %v15333_v32 = vpop.eup %8320  ;;  %v6963_v49 = vpop.xlane.xlu2 %6962  ;;  %7594 = vadd.xlane.f32.xlu0 %v7593_v8  ;;  %v7526_v48 = vmul.f32 %v15350_v61, %v7490_v35  ;;  %v15413_v53 = vmul.f32 %v7251_v25, %v14901_v22  ;;  %s7934_s24 = sshll.u32 %s8448_s15, 4  ;;  %s7935_s24 = int_to_ptr.vmem [resolvable:$true] %s7934_s24 }
 0x8e7   :  { %v7257_v40 = vmul.f32 %v15291_v0, %v7256_v26  ;;  %v7273_v23 = vmul.f32 %v15333_v32, %v15308_v1  ;;  %v7011_v39 = vmul.f32 %v6963_v49, %v12936_v13  ;;  %v15377_v11 = vsel %vm7811_vm11, %v7810_v43, %v7808_v14 }
 0x8e8   :  { %vm7279_vm12 = vweird.f32 %v15333_v32 }
 0x8e9   :  { %v7261_v62 = vsel %vm15342_vm8, %v15291_v0, %v7257_v40  ;;  %v7274_v60 = vmul.f32 %v15333_v32, %v7273_v23  ;;  %v7013_v0 = vmul.f32 %v6969_v12, %v12936_v13  ;;  %v8323_v19 = vpop.eup %8322  ;;  %v15379_v56 = vadd.f32 1e-05, %v7011_v39  ;;  %vm7280_vm3 = vmor %vm7278_vm15, %vm7279_vm12 }
 0x8ea   :  { %v7392_v4 = vmul.f32 %v7261_v62, %v14915_v27  ;;  %v8325_v42 = vpop.eup %8324  ;;  %v7263_v50 = vmul.f32 %v8323_v19, %v15326_v5  ;;  %v7590_v27 = vsel %vm16517_vm2, %v7526_v48, 0.0  ;;  %vm7269_vm4 = vweird.f32 %v8323_v19 }
 0x8eb   :  { %v7275_v9 = vmul.f32 0.5, %v7274_v60  ;;  %v15381_v26 = vadd.f32 1e-05, %v7013_v0  ;;  %v8327_v52 = vpop.eup %8326  ;;  %8328 = vrsqrt.f32 %v15379_v56  ;;  %7591 = vadd.xlane.f32.xlu2 %v7590_v27  ;;  %v7738_v40 = vadd.f32 1.0, %v8325_v42  ;;  %vm7270_vm14 = vmor %vm7268_vm1, %vm7269_vm4 }
 0x8ec   :  { %v7264_v29 = vmul.f32 %v8323_v19, %v7263_v50  ;;  %v7233_v45 = vmul.f32 %v8327_v52, %v15328_v57  ;;  %v7427_v24 = vmul.f32 %v15409_v46, %v7392_v4  ;;  %vm7239_vm7 = vweird.f32 %v8327_v52  ;;  %vm16521_vm1 = vmmov %vm16518_vm9 }
 0x8ed   :  { %v7276_v10 = vsub.f32 1.5, %v7275_v9  ;;  %8330 = vrsqrt.f32 %v15381_v26  ;;  %v15428_v49 = vmul.f32 0.5, %v7738_v40  ;;  %vm7240_vm8 = vmor %vm7238_vm13, %vm7239_vm7  ;;  %vm7288_vm5 = vweird.f32 %v15379_v56 }
 0x8ee   :  { %v7265_v59 = vmul.f32 0.5, %v7264_v29  ;;  %v7234_v43 = vmul.f32 %v8327_v52, %v7233_v45  ;;  %v6966_v28 = vpop.xlane.xlu2 %6965  ;;  %v7462_v22 = vadd.f32 %v15422_v37, %v7427_v24  ;;  %vm7308_vm6 = vweird.f32 %v15381_v26 }
 0x8ef   :  { %v7277_v15 = vmul.f32 %v15333_v32, %v7276_v10  ;;  %v7012_v44 = vmul.f32 %v6966_v28, %v12936_v13  ;;  %v7814_v42 = vperm.slane %v15428_v49, %v15403_v7  ;;  %vm7815_vm15 = vcmask 195712  }
 0x8f0   :  { %v7266_v62 = vsub.f32 1.5, %v7265_v59  ;;  %v7494_v35 = vmax.f32 %v7462_v22, 0.0 }
 0x8f1   :  { %v7281_v1 = vsel %vm7280_vm3, %v15333_v32, %v7277_v15  ;;  %v7235_v32 = vmul.f32 0.5, %v7234_v43  ;;  %v15426_v60 = vpop.eup %8328 }
 0x8f2   :  { %v7394_v58 = vmul.f32 %v7281_v1, %v14929_v21  ;;  %v15430_v21 = vadd.f32 1e-05, %v7012_v44  ;;  %v7267_v31 = vmul.f32 %v8323_v19, %v7266_v62  ;;  %v7283_v39 = vmul.f32 %v15426_v60, %v15379_v56 }
 0x8f3   :  { %v6972_v23 = vpop.xlane.xlu0 %6971  ;;  %v7236_v14 = vsub.f32 1.5, %v7235_v32  ;;  %v15436_v8 = vpop.eup %8330  ;;  %v7530_v5 = vmul.f32 %v15350_v61, %v7494_v35  ;;  %vm7289_vm10 = vweird.f32 %v15426_v60  ;;  %v7426_v32 = vmul.f32 %v15409_v46, %v15413_v53 }
 0x8f4   :  { %v7014_v20 = vmul.f32 %v6972_v23, %v12936_v13  ;;  %8332 = vrsqrt.f32 %v15430_v21  ;;  %v7429_v0 = vmul.f32 %v15409_v46, %v7394_v58  ;;  %v7271_v63 = vsel %vm7270_vm14, %v8323_v19, %v7267_v31  ;;  %v6978_v57 = vpop.xlane.xlu1 %6977  ;;  %vm15475_vm12 = vmor %vm7288_vm5, %vm7289_vm10 }
 0x8f5   :  { %v7237_v9 = vmul.f32 %v8327_v52, %v7236_v14  ;;  %v7284_v48 = vmul.f32 %v15426_v60, %v7283_v39  ;;  %v7303_v4 = vmul.f32 %v15436_v8, %v15381_v26  ;;  %v7393_v18 = vmul.f32 %v7271_v63, %v14947_v33  ;;  %vm16524_vm5 = vmmov %vm16521_vm1 }
 0x8f6   :  { %v15432_v12 = vadd.f32 1e-05, %v7014_v20  ;;  %v7602_v10 = vsel %vm16518_vm9, %v7530_v5, 0.0  ;;  %v7016_v25 = vmul.f32 %v6978_v57, %v12936_v13  ;;  %v7464_v33 = vadd.f32 %v15422_v37, %v7429_v0  ;;  %vm16525_vm10 = vmmov %vm16521_vm1 }
 0x8f7   :  { %v7241_v50 = vsel %vm7240_vm8, %v8327_v52, %v7237_v9  ;;  %v7285_v27 = vmul.f32 0.5, %v7284_v48  ;;  %v7304_v19 = vmul.f32 %v15436_v8, %v7303_v4  ;;  %7603 = vadd.xlane.f32.xlu1 %v7602_v10  ;;  %v7428_v40 = vmul.f32 %v15409_v46, %v7393_v18 }
 0x8f8   :  { %8334 = vrsqrt.f32 %v15432_v12  ;;  %v7390_v29 = vmul.f32 %v7241_v50, %v14944_v36  ;;  %v15457_v52 = vadd.f32 1e-05, %v7016_v25  ;;  %v7496_v36 = vmax.f32 %v7464_v33, 0.0 }
 0x8f9   :  { %v7286_v24 = vsub.f32 1.5, %v7285_v27  ;;  %v7305_v1 = vmul.f32 0.5, %v7304_v19  ;;  %v7463_v44 = vadd.f32 %v15422_v37, %v7428_v40  ;;  %vm7298_vm2 = vweird.f32 %v15430_v21 }
 0x8fa   :  { %v8333_v59 = vpop.eup %8332  ;;  %8336 = vrsqrt.f32 %v15457_v52  ;;  %v7532_v22 = vmul.f32 %v15350_v61, %v7496_v36  ;;  %v7425_v62 = vmul.f32 %v15409_v46, %v7390_v29  ;;  %vm7309_vm3 = vweird.f32 %v15436_v8 }
 0x8fb   :  { %v6975_v15 = vpop.xlane.xlu0 %6974  ;;  %v7287_v28 = vmul.f32 %v15426_v60, %v7286_v24  ;;  %v7306_v23 = vsub.f32 1.5, %v7305_v1  ;;  %v7293_v58 = vmul.f32 %v8333_v59, %v15430_v21  ;;  %v7495_v63 = vmax.f32 %v7463_v44, 0.0  ;;  %vm15503_vm14 = vmor %vm7308_vm6, %vm7309_vm3 }
 0x8fc   :  { %v7015_v45 = vmul.f32 %v6975_v15, %v12936_v13  ;;  %v7608_v56 = vsel %vm16521_vm1, %v7532_v22, 0.0  ;;  %vm7318_vm4 = vweird.f32 %v15432_v12  ;;  %v7460_v48 = vadd.f32 %v15422_v37, %v7425_v62 }
 0x8fd   :  { %v7294_v35 = vmul.f32 %v8333_v59, %v7293_v58  ;;  %v7291_v14 = vsel %vm15475_vm12, %v15426_v60, %v7287_v28  ;;  %v7307_v39 = vmul.f32 %v15436_v8, %v7306_v23  ;;  %v15495_v4 = vsel %vm7815_vm15, %v7814_v42, %v15377_v11 }
 0x8fe   :  { %v15461_v43 = vadd.f32 1e-05, %v7015_v45  ;;  %v15466_v20 = vpop.eup %8334  ;;  %vm7299_vm7 = vweird.f32 %v8333_v59  ;;  %v7531_v10 = vmul.f32 %v15350_v61, %v7495_v63  ;;  %v7395_v27 = vmul.f32 %v7291_v14, %v14966_v17 }
 0x8ff   :  { %v7313_v31 = vmul.f32 %v15466_v20, %v15432_v12  ;;  %v7295_v5 = vmul.f32 0.5, %v7294_v35  ;;  %7609 = vadd.xlane.f32.xlu1 %v7608_v56  ;;  %v7492_v25 = vmax.f32 %v7460_v48, 0.0  ;;  %v7311_v42 = vsel %vm15503_vm14, %v15436_v8, %v7307_v39  ;;  %vm7300_vm8 = vmor %vm7298_vm2, %vm7299_vm7 }
 0x900   :  { %8338 = vrsqrt.f32 %v15461_v43  ;;  %v8337_v50 = vpop.eup %8336  ;;  %vm7338_vm13 = vweird.f32 %v15457_v52  ;;  %vm7319_vm9 = vweird.f32 %v15466_v20  ;;  %v7605_v33 = vsel %vm16524_vm5, %v7531_v10, 0.0 }
 0x901   :  { %v7314_v0 = vmul.f32 %v15466_v20, %v7313_v31  ;;  %v7296_v18 = vsub.f32 1.5, %v7295_v5  ;;  %v7333_v17 = vmul.f32 %v8337_v50, %v15457_v52  ;;  %v7528_v40 = vmul.f32 %v15350_v61, %v7492_v25  ;;  %7606 = vadd.xlane.f32.xlu2 %v7605_v33  ;;  %vm15529_vm6 = vmor %vm7318_vm4, %vm7319_vm9 }
 0x902   :  { %v7397_v28 = vmul.f32 %v7311_v42, %v14973_v34  ;;  %vm7328_vm12 = vweird.f32 %v15461_v43  ;;  %v7430_v62 = vmul.f32 %v15409_v46, %v7395_v27  ;;  %vm7339_vm2 = vweird.f32 %v8337_v50 }
 0x903   :  { %v6981_v53 = vpop.xlane.xlu2 %6980  ;;  %v7553_v9 = vpop.xlane.xlu0 %7552  ;;  %v7315_v57 = vmul.f32 0.5, %v7314_v0  ;;  %v7297_v29 = vmul.f32 %v8333_v59, %v7296_v18  ;;  %v7334_v24 = vmul.f32 %v8337_v50, %v7333_v17  ;;  %v7596_v23 = vsel %vm16525_vm10, %v7528_v40, 0.0  ;;  %vm7340_vm4 = vmor %vm7338_vm13, %vm7339_vm2 }
 0x904   :  { %v7017_v60 = vmul.f32 %v6981_v53, %v12936_v13  ;;  %v7643_v11 = vadd.f32 %v15212_v38, %v7553_v9  ;;  %7597 = vadd.xlane.f32.xlu0 %v7596_v23  ;;  %v7465_v35 = vadd.f32 %v15422_v37, %v7430_v62  ;;  %v15542_v56 = vadd.s32 4294967272, %v16508_v41  ;;  %vm16528_vm13 = vmmov %vm16524_vm5 }
 0x905   :  { %v7316_v45 = vsub.f32 1.5, %v7315_v57  ;;  %v7301_v8 = vsel %vm7300_vm8, %v8333_v59, %v7297_v29  ;;  %v7335_v44 = vmul.f32 0.5, %v7334_v24  ;;  %vm7819_vm3 = vcmask 261312   ;;  %vm16529_vm8 = vmmov %vm16524_vm5 }
 0x906   :  { %v15507_v15 = vadd.f32 1e-05, %v7017_v60  ;;  %v8339_v26 = vpop.eup %8338  ;;  %v7396_v21 = vmul.f32 %v7301_v8, %v14990_v3  ;;  %v7675_v58 = vmul.f32 0.5, %v7643_v11  ;;  %v7461_v3 = vadd.f32 %v15422_v37, %v7426_v32  ;;  %vm16532_vm2 = vmmov %vm16524_vm5 }
 0x907   :  { %v7317_v1 = vmul.f32 %v15466_v20, %v7316_v45  ;;  %v7323_v36 = vmul.f32 %v8339_v26, %v15461_v43  ;;  %v7336_v49 = vsub.f32 1.5, %v7335_v44  ;;  %v7432_v39 = vmul.f32 %v15409_v46, %v7397_v28 }
 0x908   :  { %8340 = vrsqrt.f32 %v15507_v15  ;;  %v7431_v31 = vmul.f32 %v15409_v46, %v7396_v21  ;;  %v7493_v53 = vmax.f32 %v7461_v3, 0.0  ;;  %vm7329_vm1 = vweird.f32 %v8339_v26 }
 0x909   :  { %v7324_v59 = vmul.f32 %v8339_v26, %v7323_v36  ;;  %v7321_v34 = vsel %vm15529_vm6, %v15466_v20, %v7317_v1  ;;  %8342 = vtanh.f32 %v7675_v58  ;;  %v7337_v5 = vmul.f32 %v8337_v50, %v7336_v49  ;;  %vm7330_vm7 = vmor %vm7328_vm12, %vm7329_vm1 }
 0x90a   :  { %v7398_v32 = vmul.f32 %v7321_v34, %v15001_v51  ;;  %v7497_v63 = vmax.f32 %v7465_v35, 0.0  ;;  %v7529_v9 = vmul.f32 %v15350_v61, %v7493_v53  ;;  %v7466_v48 = vadd.f32 %v15422_v37, %v7431_v31  ;;  %vm16530_vm6 = vmmov %vm16524_vm5 }
 0x90b   :  { %v7325_v12 = vmul.f32 0.5, %v7324_v59  ;;  %v7341_v60 = vsel %vm7340_vm4, %v8337_v50, %v7337_v5  ;;  %v7467_v10 = vadd.f32 %v15422_v37, %v7432_v39  ;;  %vm7348_vm9 = vweird.f32 %v15507_v15  ;;  %vm16531_vm12 = vmmov %vm16524_vm5 }
 0x90c   :  { %v7400_v19 = vmul.f32 %v7341_v60, %v15020_v54  ;;  %v7533_v52 = vmul.f32 %v15350_v61, %v7497_v63  ;;  %v7599_v51 = vsel %vm16528_vm13, %v7529_v9, 0.0  ;;  %v7498_v50 = vmax.f32 %v7466_v48, 0.0  ;;  %vm16533_vm1 = vmmov %vm16532_vm2 }
 0x90d   :  { %v7326_v0 = vsub.f32 1.5, %v7325_v12  ;;  %7600 = vadd.xlane.f32.xlu0 %v7599_v51  ;;  %v7499_v45 = vmax.f32 %v7467_v10, 0.0  ;;  %v7433_v8 = vmul.f32 %v15409_v46, %v7398_v32  ;;  %v7422_v22 = vmul.f32 %v15409_v46, %v15393_v16  ;;  %vm16534_vm4 = vmmov %vm16533_vm1 }
 0x90e   :  { %v8341_v14 = vpop.eup %8340  ;;  %v7611_v17 = vsel %vm16529_vm8, %v7533_v52, 0.0  ;;  %v7435_v54 = vmul.f32 %v15409_v46, %v7400_v19  ;;  %v7534_v40 = vmul.f32 %v15350_v61, %v7498_v50 }
 0x90f   :  { %v7343_v20 = vmul.f32 %v8341_v14, %v15507_v15  ;;  %v7327_v18 = vmul.f32 %v8339_v26, %v7326_v0  ;;  %v8343_v27 = vpop.eup %8342  ;;  %vm7349_vm14 = vweird.f32 %v8341_v14  ;;  %7612 = vadd.xlane.f32.xlu1 %v7611_v17  ;;  %v7468_v21 = vadd.f32 %v15422_v37, %v7433_v8 }
 0x910   :  { %v7739_v42 = vadd.f32 1.0, %v8343_v27  ;;  %v7470_v24 = vadd.f32 %v15422_v37, %v7435_v54  ;;  %v7614_v28 = vsel %vm16524_vm5, %v7534_v40, 0.0  ;;  %vm7350_vm10 = vmor %vm7348_vm9, %vm7349_vm14 }
 0x911   :  { %v7344_v57 = vmul.f32 %v8341_v14, %v7343_v20  ;;  %v7331_v25 = vsel %vm7330_vm7, %v8339_v26, %v7327_v18  ;;  %v7535_v26 = vmul.f32 %v15350_v61, %v7499_v45  ;;  %7615 = vadd.xlane.f32.xlu2 %v7614_v28  ;;  %v7500_v44 = vmax.f32 %v7468_v21, 0.0  ;;  %vm16535_vm7 = vmmov %vm16533_vm1 }
 0x912   :  { %v7399_v29 = vmul.f32 %v7331_v25, %v15012_v55  ;;  %v7771_v43 = vmul.f32 0.5, %v7739_v42  ;;  %v7502_v34 = vmax.f32 %v7470_v24, 0.0 }
 0x913   :  { %v7345_v11 = vmul.f32 0.5, %v7344_v57  ;;  %v7617_v62 = vsel %vm16530_vm6, %v7535_v26, 0.0  ;;  %v7536_v49 = vmul.f32 %v15350_v61, %v7500_v44  ;;  %vm16536_vm6 = vmmov %vm16533_vm1 }
 0x914   :  { %v7434_v55 = vmul.f32 %v15409_v46, %v7399_v29  ;;  %v7818_v36 = vperm.slane %v7771_v43, %v15542_v56 }
 0x915   :  { %v7346_v33 = vsub.f32 1.5, %v7345_v11  ;;  %7618 = vadd.xlane.f32.xlu0 %v7617_v62 }
 0x916   :  { %v7469_v23 = vadd.f32 %v15422_v37, %v7434_v55  ;;  %v15574_v15 = vsel %vm7819_vm3, %v7818_v36, %v15495_v4  ;;  %v7538_v4 = vmul.f32 %v15350_v61, %v7502_v34 }
 0x917   :  { %v7347_v1 = vmul.f32 %v8341_v14, %v7346_v33 }
 0x918   :  { %v7501_v3 = vmax.f32 %v7469_v23, 0.0  ;;  %v7626_v39 = vsel %vm16533_vm1, %v7538_v4, 0.0 }
 0x919   :  { %v7351_v58 = vsel %vm7350_vm10, %v8341_v14, %v7347_v1  ;;  %v7457_v14 = vadd.f32 %v15422_v37, %v7422_v22 }
 0x91a   :  { %v7401_v59 = vmul.f32 %v7351_v58, %v15040_v2  ;;  %v7537_v12 = vmul.f32 %v15350_v61, %v7501_v3  ;;  %v7620_v2 = vsel %vm16532_vm2, %v7536_v49, 0.0  ;;  %vm7843_vm2 = vcmask 392512  }
 0x91b   :  { %7621 = vadd.xlane.f32.xlu2 %v7620_v2  ;;  %v7489_v5 = vmax.f32 %v7457_v14, 0.0 }
 0x91c   :  { %v7436_v35 = vmul.f32 %v15409_v46, %v7401_v59  ;;  %v7623_v31 = vsel %vm16531_vm12, %v7537_v12, 0.0  ;;  %vm16537_vm12 = vmmov %vm16533_vm1  ;;  %v7562_v59 = vpop.xlane.xlu0 %7561  ;;  %vm7847_vm1 = vcmask 458112  }
 0x91d   :  { %7624 = vadd.xlane.f32.xlu1 %v7623_v31  ;;  %7627 = vadd.xlane.f32.xlu0 %v7626_v39  ;;  %v7525_v32 = vmul.f32 %v15350_v61, %v7489_v5  ;;  %v7646_v4 = vadd.f32 %v15212_v38, %v7562_v59 }
 0x91e   :  { %v7471_v16 = vadd.f32 %v15422_v37, %v7436_v35 }
 0x91f   :  { %v7587_v63 = vsel %vm16535_vm7, %v7525_v32, 0.0  ;;  %v7678_v39 = vmul.f32 0.5, %v7646_v4  ;;  %vm7828_vm7 = vcmask 1041409  }
 0x920   :  { %v7503_v53 = vmax.f32 %v7471_v16, 0.0 }
 0x922   :  { %v7539_v0 = vmul.f32 %v15350_v61, %v7503_v53 }
 0x924   :  { %v7629_v20 = vsel %vm16534_vm4, %v7539_v0, 0.0  ;;  %v15611_v34 = vpop.xlane.xlu0 %7570  ;;  %vm7851_vm4 = vcmask 523712  }
 0x925   :  { %7630 = vadd.xlane.f32.xlu1 %v7629_v20  ;;  %7588 = vadd.xlane.f32.xlu0 %v7587_v63 }
 0x92e   :  { %v6984_v9 = vpop.xlane.xlu1 %6983 }
 0x92f   :  { %v7018_v48 = vmul.f32 %v6984_v9, %v12936_v13 }
 0x931   :  { %v7050_v60 = vadd.f32 1e-05, %v7018_v48 }
 0x933   :  { %8344 = vrsqrt.f32 %v7050_v60  ;;  %vm7358_vm13 = vweird.f32 %v7050_v60 }
 0x936   :  { %v6987_v18 = vpop.xlane.xlu2 %6986  ;;  %v7556_v55 = vpop.xlane.xlu1 %7555 }
 0x937   :  { %v7019_v57 = vmul.f32 %v6987_v18, %v12936_v13  ;;  %v7644_v31 = vadd.f32 %v15212_v38, %v7556_v55 }
 0x939   :  { %v7051_v10 = vadd.f32 1e-05, %v7019_v57  ;;  %v8345_v27 = vpop.eup %8344  ;;  %v7676_v20 = vmul.f32 0.5, %v7644_v31 }
 0x93a   :  { %v7353_v19 = vmul.f32 %v8345_v27, %v7050_v60  ;;  %vm7359_vm14 = vweird.f32 %v8345_v27 }
 0x93b   :  { %8346 = vrsqrt.f32 %v7051_v10  ;;  %vm7360_vm8 = vmor %vm7358_vm13, %vm7359_vm14  ;;  %vm7368_vm5 = vweird.f32 %v7051_v10  ;;  %vm7882_vm13 = vcmask 786112  }
 0x93c   :  { %v7354_v52 = vmul.f32 %v8345_v27, %v7353_v19  ;;  %8348 = vtanh.f32 %v7678_v39  ;;  %vm16538_vm14 = vmmov %vm16536_vm6 }
 0x93d   :  { %8350 = vtanh.f32 %v7676_v20 }
 0x93e   :  { %v7355_v25 = vmul.f32 0.5, %v7354_v52  ;;  %v7559_v26 = vpop.xlane.xlu2 %7558  ;;  %v7565_v22 = vpop.xlane.xlu1 %7564 }
 0x93f   :  { %v7645_v14 = vadd.f32 %v15212_v38, %v7559_v26 }
 0x940   :  { %v7356_v42 = vsub.f32 1.5, %v7355_v25  ;;  %v7647_v25 = vadd.f32 %v15212_v38, %v7565_v22 }
 0x941   :  { %v8347_v51 = vpop.eup %8346  ;;  %v7677_v63 = vmul.f32 0.5, %v7645_v14 }
 0x942   :  { %v7363_v11 = vmul.f32 %v8347_v51, %v7051_v10  ;;  %v7357_v29 = vmul.f32 %v8345_v27, %v7356_v42  ;;  %vm7369_vm9 = vweird.f32 %v8347_v51 }
 0x943   :  { %vm7370_vm10 = vmor %vm7368_vm5, %vm7369_vm9  ;;  %8352 = vtanh.f32 %v7677_v63  ;;  %vm7913_vm9 = vcmask 1048512   ;;  %vm7926_vm5 = vcmask 785408  }
 0x944   :  { %v7364_v50 = vmul.f32 %v8347_v51, %v7363_v11  ;;  %v7361_v45 = vsel %vm7360_vm8, %v8345_v27, %v7357_v29  ;;  %v8349_v29 = vpop.eup %8348  ;;  %vm7909_vm8 = vcmask 982912  }
 0x945   :  { %v7402_v54 = vmul.f32 %v7361_v45, %v15148_v30  ;;  %v8351_v45 = vpop.eup %8350  ;;  %v7742_v14 = vadd.f32 1.0, %v8349_v29 }
 0x946   :  { %v7365_v17 = vmul.f32 0.5, %v7364_v50  ;;  %v15604_v44 = vpop.xlane.xlu2 %7567 }
 0x947   :  { %v7437_v43 = vmul.f32 %v15409_v46, %v7402_v54 }
 0x948   :  { %v7366_v33 = vsub.f32 1.5, %v7365_v17  ;;  %v15615_v3 = vpop.xlane.xlu0 %7585 }
 0x949   :  { %v7472_v24 = vadd.f32 %v15422_v37, %v7437_v43 }
 0x94a   :  { %v7367_v13 = vmul.f32 %v8347_v51, %v7366_v33  ;;  %v8353_v33 = vpop.eup %8352 }
 0x94b   :  { %v7504_v1 = vmax.f32 %v7472_v24, 0.0  ;;  %v7741_v55 = vadd.f32 1.0, %v8353_v33 }
 0x94c   :  { %v7371_v40 = vsel %vm7370_vm10, %v8347_v51, %v7367_v13  ;;  %v7679_v13 = vmul.f32 0.5, %v7647_v25 }
 0x94d   :  { %v7403_v8 = vmul.f32 %v7371_v40, %v15178_v47  ;;  %v7540_v28 = vmul.f32 %v15350_v61, %v7504_v1  ;;  %v7773_v22 = vmul.f32 0.5, %v7741_v55 }
 0x94e   :  { %v15607_v62 = vpop.xlane.xlu2 %7582 }
 0x94f   :  { %v7438_v36 = vmul.f32 %v15409_v46, %v7403_v8  ;;  %v7632_v21 = vsel %vm16536_vm6, %v7540_v28, 0.0  ;;  %v15609_v46 = vpop.xlane.xlu1 %7573 }
 0x950   :  { %7633 = vadd.xlane.f32.xlu2 %v7632_v21 }
 0x951   :  { %v7473_v30 = vadd.f32 %v15422_v37, %v7438_v36 }
 0x953   :  { %v7505_v23 = vmax.f32 %v7473_v30, 0.0  ;;  %v7740_v30 = vadd.f32 1.0, %v8351_v45 }
 0x955   :  { %v7541_v58 = vmul.f32 %v15350_v61, %v7505_v23 }
 0x956   :  { %v15613_v37 = vpop.xlane.xlu2 %7576 }
 0x957   :  { %v7635_v47 = vsel %vm16537_vm12, %v7541_v58, 0.0  ;;  %v15617_v49 = vpop.xlane.xlu1 %7579 }
 0x958   :  { %7636 = vadd.xlane.f32.xlu1 %v7635_v47  ;;  %v7841_v47 = vadd.s32 4294967256, %v16508_v41 }
 0x959   :  { %v7595_v61 = vpop.xlane.xlu0 %7594 }
 0x95a   :  { %v7657_v53 = vadd.f32 %v15212_v38, %v7595_v61  ;;  %v7842_v20 = vperm.slane %v7773_v22, %v7841_v47  ;;  %v7650_v22 = vadd.f32 %v15212_v38, %v15609_v46 }
 0x95c   :  { %v7689_v48 = vmul.f32 0.5, %v7657_v53 }
 0x95e   :  { %v7592_v12 = vpop.xlane.xlu2 %7591  ;;  %8354 = vtanh.f32 %v7689_v48 }
 0x95f   :  { %v7656_v5 = vadd.f32 %v15212_v38, %v7592_v12 }
 0x961   :  { %v7688_v18 = vmul.f32 0.5, %v7656_v5 }
 0x963   :  { %8356 = vtanh.f32 %v7688_v18  ;;  %v7845_v18 = vadd.s32 4294967248, %v16508_v41 }
 0x964   :  { %v8355_v43 = vpop.eup %8354 }
 0x965   :  { %v7753_v12 = vadd.f32 1.0, %v8355_v43 }
 0x967   :  { %v7785_v63 = vmul.f32 0.5, %v7753_v12 }
 0x969   :  { %v8357_v40 = vpop.eup %8356 }
 0x96a   :  { %v7604_v35 = vpop.xlane.xlu1 %7603  ;;  %v7752_v23 = vadd.f32 1.0, %v8357_v40 }
 0x96b   :  { %v7660_v9 = vadd.f32 %v15212_v38, %v7604_v35 }
 0x96c   :  { %v7784_v39 = vmul.f32 0.5, %v7752_v23 }
 0x96d   :  { %v7692_v10 = vmul.f32 0.5, %v7660_v9 }
 0x972   :  { %v7610_v0 = vpop.xlane.xlu1 %7609 }
 0x973   :  { %v7662_v27 = vadd.f32 %v15212_v38, %v7610_v0 }
 0x974   :  { %v7607_v16 = vpop.xlane.xlu2 %7606 }
 0x975   :  { %v7661_v32 = vadd.f32 %v15212_v38, %v7607_v16  ;;  %v7694_v17 = vmul.f32 0.5, %v7662_v27  ;;  %v7839_v16 = vadd.s32 4294967264, %v16508_v41 }
 0x977   :  { %v7598_v2 = vpop.xlane.xlu0 %7597  ;;  %v7693_v57 = vmul.f32 0.5, %v7661_v32 }
 0x978   :  { %v7658_v60 = vadd.f32 %v15212_v38, %v7598_v2  ;;  %v7772_v2 = vmul.f32 0.5, %v7740_v30  ;;  %v7649_v30 = vadd.f32 %v15212_v38, %v15611_v34 }
 0x979   :  { %8358 = vtanh.f32 %v7693_v57  ;;  %v7774_v57 = vmul.f32 0.5, %v7742_v14 }
 0x97a   :  { %v7690_v52 = vmul.f32 0.5, %v7658_v60  ;;  %8360 = vtanh.f32 %v7692_v10  ;;  %v7840_v10 = vperm.slane %v7772_v2, %v7839_v16  ;;  %v7651_v2 = vadd.f32 %v15212_v38, %v15613_v37 }
 0x97c   :  { %8362 = vtanh.f32 %v7690_v52  ;;  %v7821_v52 = vperm.slane %v7784_v39, %v16508_v41 }
 0x97f   :  { %v8359_v8 = vpop.eup %8358 }
 0x980   :  { %v7601_v19 = vpop.xlane.xlu0 %7600  ;;  %v8361_v26 = vpop.eup %8360  ;;  %v7757_v36 = vadd.f32 1.0, %v8359_v8 }
 0x981   :  { %v7659_v51 = vadd.f32 %v15212_v38, %v7601_v19  ;;  %v7756_v58 = vadd.f32 1.0, %v8361_v26  ;;  %v7849_v19 = vadd.s32 4294967240, %v16508_v41 }
 0x982   :  { %v7613_v11 = vpop.xlane.xlu1 %7612  ;;  %v8363_v24 = vpop.eup %8362  ;;  %v7789_v35 = vmul.f32 0.5, %v7757_v36 }
 0x983   :  { %v7663_v42 = vadd.f32 %v15212_v38, %v7613_v11  ;;  %v7691_v50 = vmul.f32 0.5, %v7659_v51  ;;  %v7754_v59 = vadd.f32 1.0, %v8363_v24  ;;  %v7788_v5 = vmul.f32 0.5, %v7756_v58 }
 0x984   :  { %v7854_v9 = vperm.slane %v7789_v35, %v7841_v47  ;;  %v7844_v11 = vsel %vm7843_vm2, %v7842_v20, %v7840_v10  ;;  %v7681_v58 = vmul.f32 0.5, %v7649_v30  ;;  %v7648_v47 = vadd.f32 %v15212_v38, %v15604_v44 }
 0x985   :  { %v7695_v54 = vmul.f32 0.5, %v7663_v42  ;;  %8364 = vtanh.f32 %v7691_v50  ;;  %v7786_v32 = vmul.f32 0.5, %v7754_v59  ;;  %v7853_v51 = vperm.slane %v7788_v5, %v7839_v16 }
 0x986   :  { %v7822_v50 = vperm.slane %v7785_v63, %v15317_v6  ;;  %v7652_v59 = vadd.f32 %v15212_v38, %v15617_v49  ;;  %v7680_v12 = vmul.f32 0.5, %v7648_v47  ;;  %v7682_v35 = vmul.f32 0.5, %v7650_v22 }
 0x987   :  { %8366 = vtanh.f32 %v7695_v54  ;;  %v7824_v42 = vperm.slane %v7786_v32, %v15403_v7  ;;  %v7855_v29 = vsel %vm7843_vm2, %v7854_v9, %v7853_v51  ;;  %v7846_v54 = vperm.slane %v7774_v57, %v7845_v18 }
 0x988   :  { %8368 = vtanh.f32 %v7694_v17  ;;  %v7619_v36 = vpop.xlane.xlu0 %7618  ;;  %v7684_v14 = vmul.f32 0.5, %v7652_v59  ;;  %v15672_v51 = vadd.s32 4294967224, %v16508_v41  ;;  %v7901_v22 = vadd.s32 4294967200, %v16508_v41 }
 0x989   :  { %8370 = vtanh.f32 %v7679_v13  ;;  %v7823_v13 = vsel %vm7811_vm11, %v7822_v50, %v7821_v52  ;;  %v7848_v43 = vsel %vm7847_vm1, %v7846_v54, %v7844_v11  ;;  %vm7874_vm11 = vcmask 654912  }
 0x98a   :  { %v7825_v40 = vsel %vm7815_vm15, %v7824_v42, %v7823_v13  ;;  %8372 = vtanh.f32 %v7681_v58  ;;  %vm7905_vm15 = vcmask 917312  }
 0x98b   :  { %v8365_v1 = vpop.eup %8364  ;;  %8374 = vtanh.f32 %v7680_v12 }
 0x98c   :  { %v7755_v31 = vadd.f32 1.0, %v8365_v1  ;;  %8376 = vtanh.f32 %v7682_v35 }
 0x98d   :  { %v8367_v28 = vpop.eup %8366 }
 0x98e   :  { %v8369_v21 = vpop.eup %8368  ;;  %v7759_v4 = vadd.f32 1.0, %v8367_v28  ;;  %v7787_v60 = vmul.f32 0.5, %v7755_v31  ;;  %v7616_v28 = vpop.xlane.xlu2 %7615 }
 0x98f   :  { %v8371_v61 = vpop.eup %8370  ;;  %v7758_v53 = vadd.f32 1.0, %v8369_v21  ;;  %v7664_v34 = vadd.f32 %v15212_v38, %v7616_v28 }
 0x990   :  { %v7743_v0 = vadd.f32 1.0, %v8371_v61  ;;  %v7791_v48 = vmul.f32 0.5, %v7759_v4  ;;  %v7826_v45 = vperm.slane %v7787_v60, %v15542_v56  ;;  %v7625_v21 = vpop.xlane.xlu1 %7624  ;;  %v7628_v23 = vpop.xlane.xlu0 %7627  ;;  %v7665_v4 = vadd.f32 %v15212_v38, %v7619_v36 }
 0x991   :  { %v7790_v27 = vmul.f32 0.5, %v7758_v53  ;;  %v7667_v46 = vadd.f32 %v15212_v38, %v7625_v21  ;;  %v7696_v49 = vmul.f32 0.5, %v7664_v34  ;;  %v8373_v5 = vpop.eup %8372  ;;  %v7668_v32 = vadd.f32 %v15212_v38, %v7628_v23 }
 0x992   :  { %v7775_v25 = vmul.f32 0.5, %v7743_v0  ;;  %v7858_v17 = vperm.slane %v7791_v48, %v7849_v19  ;;  %v7827_v7 = vsel %vm7819_vm3, %v7826_v45, %v7825_v40  ;;  %v7697_v53 = vmul.f32 0.5, %v7665_v4 }
 0x993   :  { %v7856_v33 = vperm.slane %v7790_v27, %v7845_v18  ;;  %v7829_v55 = vsel %vm7828_vm7, %v7827_v7, %v15574_v15  ;;  %v7653_v15 = vadd.f32 %v15212_v38, %v15607_v62  ;;  %v7654_v62 = vadd.f32 %v15212_v38, %v15615_v3  ;;  %v8375_v18 = vpop.eup %8374 }
 0x994   :  { %v7850_v26 = vperm.slane %v7775_v25, %v7849_v19  ;;  %v7699_v63 = vmul.f32 0.5, %v7667_v46  ;;  %v7745_v48 = vadd.f32 1.0, %v8373_v5  ;;  %v7683_v60 = vmul.f32 0.5, %v7651_v2  ;;  %v8377_v57 = vpop.eup %8376 }
 0x995   :  { %v7857_v8 = vsel %vm7847_vm1, %v7856_v33, %v7855_v29  ;;  %v7685_v31 = vmul.f32 0.5, %v7653_v15  ;;  %v7686_v9 = vmul.f32 0.5, %v7654_v62  ;;  %v7700_v10 = vmul.f32 0.5, %v7668_v32 }
 0x996   :  { %v7859_v24 = vsel %vm7851_vm4, %v7858_v17, %v7857_v8  ;;  %v7852_v6 = vsel %vm7851_vm4, %v7850_v26, %v7848_v43  ;;  %v7622_v61 = vpop.xlane.xlu2 %7621  ;;  %v15674_v25 = vmul.f32 0.5, %v7745_v48  ;;  %v7744_v33 = vadd.f32 1.0, %v8375_v18 }
 0x997   :  { %v7860_v56 = vsel %vm7828_vm7, %v7859_v24, %v7852_v6  ;;  %v7666_v44 = vadd.f32 %v15212_v38, %v7622_v61  ;;  %8378 = vtanh.f32 %v7685_v31  ;;  %v15680_v40 = vadd.s32 4294967216, %v16508_v41 }
 0x998   :  { %v15648_v1 = vsel %vm16538_vm14, %v7829_v55, %v7860_v56  ;;  %v7631_v16 = vpop.xlane.xlu1 %7630  ;;  %v7589_v39 = vpop.xlane.xlu0 %7588  ;;  %8380 = vtanh.f32 %v7684_v14  ;;  %v7873_v54 = vperm.slane %v15674_v25, %v15672_v51  ;;  %v7870_v8 = vadd.s32 4294967232, %v16508_v41 }
 0x999   :  { %v7698_v0 = vmul.f32 0.5, %v7666_v44  ;;  %v7669_v20 = vadd.f32 %v15212_v38, %v7631_v16  ;;  %8382 = vtanh.f32 %v7696_v49  ;;  %v7655_v3 = vadd.f32 %v15212_v38, %v7589_v39 }
 0x99a   :  { %8384 = vtanh.f32 %v7697_v53  ;;  %v7746_v6 = vadd.f32 1.0, %v8377_v57  ;;  %v7776_v47 = vmul.f32 0.5, %v7744_v33  ;;  %v7903_v15 = vadd.s32 4294967192, %v16508_v41 }
 0x99b   :  { %8386 = vtanh.f32 %v7698_v0  ;;  %v7701_v37 = vmul.f32 0.5, %v7669_v20  ;;  %v7687_v19 = vmul.f32 0.5, %v7655_v3  ;;  %v7880_v31 = vadd.s32 4294967208, %v16508_v41 }
 0x99c   :  { %8388 = vtanh.f32 %v7699_v63  ;;  %v7778_v4 = vmul.f32 0.5, %v7746_v6  ;;  %v7871_v49 = vperm.slane %v7776_v47, %v7870_v8  ;;  %vm7878_vm3 = vcmask 720512  }
 0x99d   :  { %v8379_v27 = vpop.eup %8378  ;;  %8390 = vtanh.f32 %v7686_v9 }
 0x99e   :  { %v8381_v52 = vpop.eup %8380  ;;  %8392 = vtanh.f32 %v7683_v60  ;;  %v7749_v30 = vadd.f32 1.0, %v8379_v27  ;;  %v7877_v63 = vperm.slane %v7778_v4, %v15680_v40  ;;  %v7875_v57 = vsel %vm7874_vm11, %v7873_v54, %v7871_v49 }
 0x99f   :  { %v8383_v11 = vpop.eup %8382  ;;  %8394 = vtanh.f32 %v7701_v37  ;;  %v7748_v28 = vadd.f32 1.0, %v8381_v52  ;;  %v7911_v27 = vadd.s32 4294967176, %v16508_v41 }
 0x9a0   :  { %v8385_v50 = vpop.eup %8384  ;;  %8396 = vtanh.f32 %v7700_v10  ;;  %v7760_v26 = vadd.f32 1.0, %v8383_v11  ;;  %v7781_v16 = vmul.f32 0.5, %v7749_v30  ;;  %v7879_v54 = vsel %vm7878_vm3, %v7877_v63, %v7875_v57 }
 0x9a1   :  { %v8387_v17 = vpop.eup %8386  ;;  %8398 = vtanh.f32 %v7687_v19  ;;  %v7761_v24 = vadd.f32 1.0, %v8385_v50  ;;  %v7780_v46 = vmul.f32 0.5, %v7748_v28 }
 0x9a2   :  { %v8389_v45 = vpop.eup %8388  ;;  %v7762_v55 = vadd.f32 1.0, %v8387_v17  ;;  %v7792_v12 = vmul.f32 0.5, %v7760_v26  ;;  %v7904_v60 = vperm.slane %v7781_v16, %v7903_v15 }
 0x9a3   :  { %v8391_v43 = vpop.eup %8390  ;;  %v7763_v21 = vadd.f32 1.0, %v8389_v45  ;;  %v7793_v34 = vmul.f32 0.5, %v7761_v24  ;;  %v7902_v48 = vperm.slane %v7780_v46, %v7901_v22 }
 0x9a4   :  { %v8393_v7 = vpop.eup %8392  ;;  %v7794_v44 = vmul.f32 0.5, %v7762_v55  ;;  %v7750_v2 = vadd.f32 1.0, %v8391_v43  ;;  %v7884_v0 = vperm.slane %v7792_v12, %v7870_v8 }
 0x9a5   :  { %v8395_v36 = vpop.eup %8394  ;;  %v7747_v61 = vadd.f32 1.0, %v8393_v7  ;;  %v7885_v20 = vperm.slane %v7793_v34, %v15672_v51  ;;  %v7907_v51 = vadd.s32 4294967184, %v16508_v41  ;;  %v7906_v45 = vsel %vm7905_vm15, %v7904_v60, %v7902_v48 }
 0x9a6   :  { %v8397_v58 = vpop.eup %8396  ;;  %v7765_v14 = vadd.f32 1.0, %v8395_v36  ;;  %v7887_v9 = vperm.slane %v7794_v44, %v15680_v40  ;;  %v7782_v25 = vmul.f32 0.5, %v7750_v2 }
 0x9a7   :  { %v8399_v59 = vpop.eup %8398  ;;  %v7764_v53 = vadd.f32 1.0, %v8397_v58  ;;  %v7779_v5 = vmul.f32 0.5, %v7747_v61 }
 0x9a8   :  { %v7751_v39 = vadd.f32 1.0, %v8399_v59  ;;  %v7797_v3 = vmul.f32 0.5, %v7765_v14  ;;  %v7908_v41 = vperm.slane %v7782_v25, %v7907_v51 }
 0x9a9   :  { %v7796_v10 = vmul.f32 0.5, %v7764_v53  ;;  %v7881_v11 = vperm.slane %v7779_v5, %v7880_v31 }
 0x9aa   :  { %v7783_v19 = vmul.f32 0.5, %v7751_v39 }
 0x9ab   :  { %v7915_v43 = vperm.slane %v7796_v10, %v7901_v22  ;;  %v7883_v26 = vsel %vm7882_vm13, %v7881_v11, %v7879_v54 }
 0x9ac   :  { %v7912_v40 = vperm.slane %v7783_v19, %v7911_v27 }
 0x9c3   :  { %v7634_v42 = vpop.xlane.xlu2 %7633 }
 0x9c4   :  { %v7670_v29 = vadd.f32 %v15212_v38, %v7634_v42  ;;  %v7886_v42 = vsel %vm7874_vm11, %v7885_v20, %v7884_v0 }
 0x9c5   :  { %v7888_v50 = vsel %vm7878_vm3, %v7887_v9, %v7886_v42 }
 0x9c6   :  { %v7702_v13 = vmul.f32 0.5, %v7670_v29  ;;  %v7916_v29 = vperm.slane %v7797_v3, %v7903_v15 }
 0x9c8   :  { %8400 = vtanh.f32 %v7702_v13  ;;  %v7917_v24 = vsel %vm7905_vm15, %v7916_v29, %v7915_v43 }
 0x9cb   :  { %v7637_v56 = vpop.xlane.xlu1 %7636 }
 0x9cc   :  { %v7671_v23 = vadd.f32 %v15212_v38, %v7637_v56  ;;  %v7795_v38 = vmul.f32 0.5, %v7763_v21  ;;  %v7910_v56 = vsel %vm7909_vm8, %v7908_v41, %v7906_v45 }
 0x9cd   :  { %v7914_v36 = vsel %vm7913_vm9, %v7912_v40, %v7910_v56 }
 0x9ce   :  { %v7703_v35 = vmul.f32 0.5, %v7671_v23  ;;  %v8401_v62 = vpop.eup %8400  ;;  %v7889_v18 = vperm.slane %v7795_v38, %v7880_v31 }
 0x9cf   :  { %v7766_v32 = vadd.f32 1.0, %v8401_v62 }
 0x9d0   :  { %8402 = vtanh.f32 %v7703_v35  ;;  %v7890_v33 = vsel %vm7882_vm13, %v7889_v18, %v7888_v50 }
 0x9d1   :  { %v7798_v37 = vmul.f32 0.5, %v7766_v32  ;;  %v7891_v6 = vsel %vm7828_vm7, %v7890_v33, %v7883_v26 }
 0x9d2   :  { %v7925_v21 = vsel %vm5311_vm0, %v15648_v1, %v7891_v6 }
 0x9d3   :  { %v7918_v13 = vperm.slane %v7798_v37, %v7907_v51 }
 0x9d5   :  { %v7919_v55 = vsel %vm7909_vm8, %v7918_v13, %v7917_v24 }
 0x9d6   :  { %v8403_v52 = vpop.eup %8402 }
 0x9d7   :  { %v7767_v17 = vadd.f32 1.0, %v8403_v52 }
 0x9d9   :  { %v7799_v8 = vmul.f32 0.5, %v7767_v17 }
 0x9db   :  { %v7920_v7 = vperm.slane %v7799_v8, %v7911_v27 }
 0x9dd   :  { %v7921_v28 = vsel %vm7913_vm9, %v7920_v7, %v7919_v55 }
 0x9de   :  { %v7922_v30 = vsel %vm7828_vm7, %v7921_v28, %v7914_v36 }
 0x9df   :  { %v7927_v23 = vsel %vm7926_vm5, %v7925_v21, %v7922_v30 }
 0x9e0   :  { %7928 = vst [vmem:[#allocation3] sm:$0x3] %v7927_v23 }
 0x9e1   :  { %7939 = dma.vmem_to_hbm [thread:$0]  %s7935_s24, 32, %s7937_s8, [#allocation4]  }
 0x9e2   :  { %8437 = dma.done.wait [#allocation4], 32  }
 0x9e3   :  { %8438 = vsyncadd [#allocation4], 4294967264 }
 0x9e4   :  { %7944 = vsyncpa [#allocation4], 1 }

</bundles_post_ra>
